<compile_context>
chip_gen: v5e
topology: v5e:2x2
jax: 0.10.0
libtpu: 0.0.40
codegen_flags: <defaults>
</compile_context>

<pallas_src>
import functools

import jax
import jax.numpy as jnp
from jax.experimental import pallas as pl
from jax.experimental.pallas import tpu as pltpu

_EPS = 1e-5      # nn.BatchNorm2d default eps
_LANE = 128      # TPU lane width


def _conv3x3_kernel(x_ref, scale_ref, shift_ref, w_ref, y_ref, stats_ref,
                    hp_ref, patch_ref, *, normalize_input):
    """One image per grid step: [BN+ReLU ->] 3x3 conv -> raw out + partial stats."""
    H, W, cout = y_ref.shape[1], y_ref.shape[2], y_ref.shape[3]
    cin = x_ref.shape[3]

    x = x_ref[0].astype(jnp.float32)                         # (H, W, cin) f32
    if normalize_input:
        # previous layer's BatchNorm folded into per-channel scale/shift (f32)
        scale = scale_ref[...].reshape(1, 1, cin)
        shift = shift_ref[...].reshape(1, 1, cin)
        x = jnp.maximum(x * scale + shift, 0.0)

    # padding=1 halo: small per-image scratch (KB), not a full-batch buffer
    hp_ref[...] = jnp.zeros(hp_ref.shape, hp_ref.dtype)
    hp_ref[1:H + 1, 1:W + 1, :] = x

    # im2col: build the (H*W, 9*cin) patch matrix once, then ONE MXU matmul
    for t in range(9):
        kh, kw = t // 3, t % 3
        tap = hp_ref[kh:kh + H, kw:kw + W, :].reshape(H * W, cin)
        patch_ref[:, t * cin:(t + 1) * cin] = tap.astype(jnp.bfloat16)

    acc = jnp.dot(patch_ref[...], w_ref[...],
                  preferred_element_type=jnp.float32)        # (H*W, Cp) f32
    out = acc[:, :cout]                                      # drop lane padding

    # store only the real channels (bf16) -> minimal HBM traffic
    y_ref[0] = out.reshape(H, W, cout).astype(y_ref.dtype)

    # per-image partial BatchNorm statistics (reduced across images in wrapper)
    stats_ref[0, 0:1, :] = jnp.sum(out, axis=0, keepdims=True)
    stats_ref[0, 1:2, :] = jnp.sum(out * out, axis=0, keepdims=True)


def _bn_relu_kernel(y_ref, scale_ref, shift_ref, o_ref):
    """Final BN (precomputed affine) + ReLU, one image per grid step."""
    c = y_ref.shape[3]
    y = y_ref[0].astype(jnp.float32)
    scale = scale_ref[...].reshape(1, 1, c)
    shift = shift_ref[...].reshape(1, 1, c)
    o_ref[0] = jnp.maximum(y * scale + shift, 0.0)


def _compiler_params():
    return pltpu.CompilerParams(
        dimension_semantics=("parallel",),       # batch axis -> both TCs on v7x
        vmem_limit_bytes=32 * 1024 * 1024,       # explicit; fits v5e/v6e/v7x
    )


def _conv_pass(x_nhwc, w_mat, scale, shift, *, cout, cp, normalize_input):
    # NOTE: for large H*W this grid would be extended with H-row tiles (halo
    # rows via index_map / manual DMA); one full image per step is enough here.
    B, H, W, Cx = x_nhwc.shape
    kernel = functools.partial(_conv3x3_kernel, normalize_input=normalize_input)
    return pl.pallas_call(
        kernel,
        grid=(B,),
        in_specs=[
            pl.BlockSpec((1, H, W, Cx), lambda b: (b, 0, 0, 0)),
            pl.BlockSpec((1, Cx), lambda b: (0, 0)),
            pl.BlockSpec((1, Cx), lambda b: (0, 0)),
            pl.BlockSpec((9 * Cx, cp), lambda b: (0, 0)),
        ],
        out_specs=(
            pl.BlockSpec((1, H, W, cout), lambda b: (b, 0, 0, 0)),
            pl.BlockSpec((1, 2, cout), lambda b: (b, 0, 0)),
        ),
        out_shape=(
            jax.ShapeDtypeStruct((B, H, W, cout), jnp.bfloat16),  # raw conv out
            jax.ShapeDtypeStruct((B, 2, cout), jnp.float32),      # (sum, sumsq)
        ),
        scratch_shapes=[
            pltpu.VMEM((H + 2, W + 2, Cx), jnp.float32),          # halo tile
            pltpu.VMEM((H * W, 9 * Cx), jnp.bfloat16),            # im2col patch
        ],
        compiler_params=_compiler_params(),
    )(x_nhwc, scale, shift, w_mat)


def _bn_affine(stats, gamma, beta, count):
    """Reduce per-image (sum, sumsq) -> training-mode BN folded to scale/shift."""
    s = jnp.sum(stats[:, 0, :], axis=0)
    sq = jnp.sum(stats[:, 1, :], axis=0)
    mean = s / count
    var = jnp.maximum(sq / count - mean * mean, 0.0)   # biased batch variance
    scale = gamma * jax.lax.rsqrt(var + _EPS)
    shift = beta - mean * scale
    return scale.reshape(1, -1), shift.reshape(1, -1)


@jax.jit
def unet_block_nchw(x_nchw, w1, b1, w2, b2, gamma, beta):
    """x_nchw: (B, Cin, H, W); conv weights HWIO. Returns (B, Cout, H, W)."""
    del b1, b2  # cancelled exactly by the train-mode BN mean subtraction
    x = jnp.transpose(x_nchw, (0, 2, 3, 1)).astype(jnp.float32)   # -> NHWC
    B, H, W, Cin = x.shape
    Cout = w1.shape[-1]
    Cp = ((Cout + _LANE - 1) // _LANE) * _LANE     # lane-dense matmul N dim
    count = B * H * W

    # im2col weight matrices, bf16 (MXU-native), out-channel padded to Cp
    w1_mat = jnp.pad(w1.reshape(9 * Cin, Cout),
                     ((0, 0), (0, Cp - Cout))).astype(jnp.bfloat16)
    w2_mat = jnp.pad(w2.reshape(9 * Cout, Cout),
                     ((0, 0), (0, Cp - Cout))).astype(jnp.bfloat16)
    dummy = jnp.zeros((1, Cin), jnp.float32)       # unused in pass 1

    # pass 1: conv1 + per-image BN partial stats
    y1, st1 = _conv_pass(x, w1_mat, dummy, dummy,
                         cout=Cout, cp=Cp, normalize_input=False)
    scale1, shift1 = _bn_affine(st1, gamma, beta, count)

    # pass 2: BN1 + ReLU fused into conv2 + per-image BN partial stats
    y2, st2 = _conv_pass(y1, w2_mat, scale1, shift1,
                         cout=Cout, cp=Cp, normalize_input=True)
    scale2, shift2 = _bn_affine(st2, gamma, beta, count)

    # pass 3: BN2 + ReLU, written directly at the real channel width
    out = pl.pallas_call(
        _bn_relu_kernel,
        grid=(B,),
        in_specs=[
            pl.BlockSpec((1, H, W, Cout), lambda b: (b, 0, 0, 0)),
            pl.BlockSpec((1, Cout), lambda b: (0, 0)),
            pl.BlockSpec((1, Cout), lambda b: (0, 0)),
        ],
        out_specs=pl.BlockSpec((1, H, W, Cout), lambda b: (b, 0, 0, 0)),
        out_shape=jax.ShapeDtypeStruct((B, H, W, Cout), jnp.float32),
        compiler_params=_compiler_params(),
    )(y2, scale2, shift2)

    return jnp.transpose(out, (0, 3, 1, 2))        # NHWC -> NCHW


def _ref_forward_nchw(x_nchw, w1, b1, w2, b2, gamma, beta):
    """Pure-JAX f32 reference (training-mode BatchNorm), biases included."""
    x = jnp.transpose(x_nchw, (0, 2, 3, 1)).astype(jnp.float32)

    def conv(z, w, b):
        y = jax.lax.conv_general_dilated(
            z, w, window_strides=(1, 1), padding="SAME",
            dimension_numbers=("NHWC", "HWIO", "NHWC"),
            precision=jax.lax.Precision.HIGHEST)
        return y + b.reshape(1, 1, 1, -1)

    def bn_relu(y):
        mean = jnp.mean(y, axis=(0, 1, 2), keepdims=True)
        var = jnp.mean(jnp.square(y - mean), axis=(0, 1, 2), keepdims=True)
        yhat = (y - mean) * jax.lax.rsqrt(var + _EPS)
        return jnp.maximum(yhat * gamma.reshape(1, 1, 1, -1)
                           + beta.reshape(1, 1, 1, -1), 0.0)

    h = bn_relu(conv(x, w1, b1))
    h = bn_relu(conv(h, w2, b2))
    return jnp.transpose(h, (0, 3, 1, 2))


if __name__ == "__main__":
    B, Cin, Cout, H, W = 2, 4, 8, 16, 16
    key = jax.random.PRNGKey(0)
    k = jax.random.split(key, 7)

    x = jax.random.normal(k[0], (B, Cin, H, W), jnp.float32)             # NCHW
    w1 = 0.2 * jax.random.normal(k[1], (3, 3, Cin, Cout), jnp.float32)   # HWIO
    b1 = 0.1 * jax.random.normal(k[2], (Cout,), jnp.float32)
    w2 = 0.2 * jax.random.normal(k[3], (3, 3, Cout, Cout), jnp.float32)
    b2 = 0.1 * jax.random.normal(k[4], (Cout,), jnp.float32)
    gamma = 1.0 + 0.1 * jax.random.normal(k[5], (Cout,), jnp.float32)
    beta = 0.1 * jax.random.normal(k[6], (Cout,), jnp.float32)

    out = jax.block_until_ready(unet_block_nchw(x, w1, b1, w2, b2, gamma, beta))
    assert out.shape == (B, Cout, H, W)

    ref = _ref_forward_nchw(x, w1, b1, w2, b2, gamma, beta)
    # Tolerance sized for bf16 MXU operands + bf16 inter-pass activations
    # through two chained 3x3 convs and two batch-norms (reference is full
    # f32 / HIGHEST precision). Any structural bug (tap/weight indexing, BN
    # stats) would show up as O(1) error.
    if not jnp.allclose(out, ref, atol=4e-2, rtol=4e-2):
        max_err = float(jnp.max(jnp.abs(out - ref)))
        raise AssertionError(f"mismatch vs reference, max abs err = {max_err}")
    print("KERNEL_OK")
</pallas_src>

<mosaic_0001>
module attributes {stable_mosaic.version = 11 : i64} {
  func.func @_bn_relu_kernel(%arg0: i32, %arg1: memref<1x16x16x8xbf16, #tpu.memory_space<vmem>>, %arg2: memref<1x8xf32, #tpu.memory_space<vmem>>, %arg3: memref<1x8xf32, #tpu.memory_space<vmem>>, %arg4: memref<1x16x16x8xf32, #tpu.memory_space<vmem>>) attributes {dimension_semantics = [#tpu.dimension_semantics<parallel>], iteration_bounds = array<i64: 2>, scalar_prefetch = 0 : i64, scratch_operands = 0 : i64, tpu.core_type = #tpu.core_type<tc>, window_params = [{transform_indices = @transform_0, window_bounds = array<i64: 1, 16, 16, 8>}, {pipeline_mode = #tpu.pipeline_mode<synchronous>, transform_indices = @transform_1, window_bounds = array<i64: 1, 8>}, {pipeline_mode = #tpu.pipeline_mode<synchronous>, transform_indices = @transform_2, window_bounds = array<i64: 1, 8>}, {transform_indices = @transform_3, window_bounds = array<i64: 1, 16, 16, 8>}]} {
    %c0 = arith.constant 0 : index
    %c0_0 = arith.constant 0 : index
    %c0_1 = arith.constant 0 : index
    %c0_2 = arith.constant 0 : index
    %0 = vector.load %arg1[%c0, %c0_0, %c0_1, %c0_2] : memref<1x16x16x8xbf16, #tpu.memory_space<vmem>>, vector<1x16x16x8xbf16>
    %1 = vector.shape_cast %0 : vector<1x16x16x8xbf16> to vector<16x16x8xbf16>
    %2 = arith.extf %1 : vector<16x16x8xbf16> to vector<16x16x8xf32>
    %c0_3 = arith.constant 0 : index
    %c0_4 = arith.constant 0 : index
    %3 = vector.load %arg2[%c0_3, %c0_4] : memref<1x8xf32, #tpu.memory_space<vmem>>, vector<1x8xf32>
    %4 = vector.shape_cast %3 : vector<1x8xf32> to vector<1x1x8xf32>
    %c0_5 = arith.constant 0 : index
    %c0_6 = arith.constant 0 : index
    %5 = vector.load %arg3[%c0_5, %c0_6] : memref<1x8xf32, #tpu.memory_space<vmem>>, vector<1x8xf32>
    %6 = vector.shape_cast %5 : vector<1x8xf32> to vector<1x1x8xf32>
    %7 = vector.broadcast %4 : vector<1x1x8xf32> to vector<16x16x8xf32>
    %8 = arith.mulf %2, %7 : vector<16x16x8xf32>
    %9 = vector.broadcast %6 : vector<1x1x8xf32> to vector<16x16x8xf32>
    %10 = arith.addf %8, %9 : vector<16x16x8xf32>
    %cst = arith.constant 0.000000e+00 : f32
    %11 = vector.broadcast %cst : f32 to vector<16x16x8xf32>
    %12 = arith.maximumf %10, %11 : vector<16x16x8xf32>
    %c0_7 = arith.constant 0 : index
    %c0_8 = arith.constant 0 : index
    %c0_9 = arith.constant 0 : index
    %c0_10 = arith.constant 0 : index
    %13 = vector.load %arg4[%c0_7, %c0_8, %c0_9, %c0_10] : memref<1x16x16x8xf32, #tpu.memory_space<vmem>>, vector<1x16x16x8xf32>
    %14 = vector.shape_cast %13 : vector<1x16x16x8xf32> to vector<16x16x8xf32>
    %15 = vector.shape_cast %12 : vector<16x16x8xf32> to vector<1x16x16x8xf32>
    tpu.vector_store %arg4[%c0_7, %c0_8, %c0_9, %c0_10], %15 {strides = array<i32>} : memref<1x16x16x8xf32, #tpu.memory_space<vmem>>, vector<1x16x16x8xf32>,
    return
  }
  func.func @transform_0(%arg0: i32) -> (i32, i32, i32, i32) {
    %c0_i32 = arith.constant 0 : i32
    %c0_i32_0 = arith.constant 0 : i32
    %c0_i32_1 = arith.constant 0 : i32
    %c0_i32_2 = arith.constant 0 : i32
    return %arg0, %c0_i32, %c0_i32_0, %c0_i32_1 : i32, i32, i32, i32
  }
  func.func @transform_1(%arg0: i32) -> (i32, i32) {
    %c0_i32 = arith.constant 0 : i32
    %c0_i32_0 = arith.constant 0 : i32
    %c0_i32_1 = arith.constant 0 : i32
    return %c0_i32, %c0_i32_0 : i32, i32
  }
  func.func @transform_2(%arg0: i32) -> (i32, i32) {
    %c0_i32 = arith.constant 0 : i32
    %c0_i32_0 = arith.constant 0 : i32
    %c0_i32_1 = arith.constant 0 : i32
    return %c0_i32, %c0_i32_0 : i32, i32
  }
  func.func @transform_3(%arg0: i32) -> (i32, i32, i32, i32) {
    %c0_i32 = arith.constant 0 : i32
    %c0_i32_0 = arith.constant 0 : i32
    %c0_i32_1 = arith.constant 0 : i32
    %c0_i32_2 = arith.constant 0 : i32
    return %arg0, %c0_i32, %c0_i32_0, %c0_i32_1 : i32, i32, i32, i32
  }
}

module attributes {stable_mosaic.version = 11 : i64} {
  func.func @_conv3x3_kernel(%arg0: i32, %arg1: memref<1x16x16x4xf32, #tpu.memory_space<vmem>>, %arg2: memref<1x4xf32, #tpu.memory_space<vmem>>, %arg3: memref<1x4xf32, #tpu.memory_space<vmem>>, %arg4: memref<36x128xbf16, #tpu.memory_space<vmem>>, %arg5: memref<1x16x16x8xbf16, #tpu.memory_space<vmem>>, %arg6: memref<1x2x8xf32, #tpu.memory_space<vmem>>, %arg7: memref<18x18x4xf32, #tpu.memory_space<vmem>>, %arg8: memref<256x36xbf16, #tpu.memory_space<vmem>>) attributes {dimension_semantics = [#tpu.dimension_semantics<parallel>], iteration_bounds = array<i64: 2>, scalar_prefetch = 0 : i64, scratch_operands = 2 : i64, tpu.core_type = #tpu.core_type<tc>, window_params = [{transform_indices = @transform_0, window_bounds = array<i64: 1, 16, 16, 4>}, {pipeline_mode = #tpu.pipeline_mode<synchronous>, transform_indices = @transform_1, window_bounds = array<i64: 1, 4>}, {pipeline_mode = #tpu.pipeline_mode<synchronous>, transform_indices = @transform_2, window_bounds = array<i64: 1, 4>}, {pipeline_mode = #tpu.pipeline_mode<synchronous>, transform_indices = @transform_3, window_bounds = array<i64: 36, 128>}, {transform_indices = @transform_4, window_bounds = array<i64: 1, 16, 16, 8>}, {transform_indices = @transform_5, window_bounds = array<i64: 1, 2, 8>}]} {
    %c0 = arith.constant 0 : index
    %c0_0 = arith.constant 0 : index
    %c0_1 = arith.constant 0 : index
    %c0_2 = arith.constant 0 : index
    %0 = vector.load %arg1[%c0, %c0_0, %c0_1, %c0_2] : memref<1x16x16x4xf32, #tpu.memory_space<vmem>>, vector<1x16x16x4xf32>
    %1 = vector.shape_cast %0 : vector<1x16x16x4xf32> to vector<16x16x4xf32>
    %cst = arith.constant 0.000000e+00 : f32
    %2 = vector.broadcast %cst : f32 to vector<18x18x4xf32>
    %c0_3 = arith.constant 0 : index
    %c0_4 = arith.constant 0 : index
    %c0_5 = arith.constant 0 : index
    %3 = vector.load %arg7[%c0_3, %c0_4, %c0_5] : memref<18x18x4xf32, #tpu.memory_space<vmem>>, vector<18x18x4xf32>
    tpu.vector_store %arg7[%c0_3, %c0_4, %c0_5], %2 {strides = array<i32>} : memref<18x18x4xf32, #tpu.memory_space<vmem>>, vector<18x18x4xf32>,
    %c1 = arith.constant 1 : index
    %c1_6 = arith.constant 1 : index
    %c0_7 = arith.constant 0 : index
    %4 = vector.load %arg7[%c1, %c1_6, %c0_7] : memref<18x18x4xf32, #tpu.memory_space<vmem>>, vector<16x16x4xf32>
    tpu.vector_store %arg7[%c1, %c1_6, %c0_7], %1 {strides = array<i32>} : memref<18x18x4xf32, #tpu.memory_space<vmem>>, vector<16x16x4xf32>,
    %c0_8 = arith.constant 0 : index
    %c0_9 = arith.constant 0 : index
    %c0_10 = arith.constant 0 : index
    %5 = vector.load %arg7[%c0_8, %c0_9, %c0_10] : memref<18x18x4xf32, #tpu.memory_space<vmem>>, vector<16x16x4xf32>
    %6 = vector.shape_cast %5 : vector<16x16x4xf32> to vector<256x4xf32>
    %7 = arith.truncf %6 : vector<256x4xf32> to vector<256x4xbf16>
    %c0_11 = arith.constant 0 : index
    %c0_12 = arith.constant 0 : index
    %8 = vector.load %arg8[%c0_11, %c0_12] : memref<256x36xbf16, #tpu.memory_space<vmem>>, vector<256x4xbf16>
    tpu.vector_store %arg8[%c0_11, %c0_12], %7 {strides = array<i32>} : memref<256x36xbf16, #tpu.memory_space<vmem>>, vector<256x4xbf16>,
    %c0_13 = arith.constant 0 : index
    %c1_14 = arith.constant 1 : index
    %c0_15 = arith.constant 0 : index
    %9 = vector.load %arg7[%c0_13, %c1_14, %c0_15] : memref<18x18x4xf32, #tpu.memory_space<vmem>>, vector<16x16x4xf32>
    %10 = vector.shape_cast %9 : vector<16x16x4xf32> to vector<256x4xf32>
    %11 = arith.truncf %10 : vector<256x4xf32> to vector<256x4xbf16>
    %c0_16 = arith.constant 0 : index
    %c4 = arith.constant 4 : index
    %12 = vector.load %arg8[%c0_16, %c4] : memref<256x36xbf16, #tpu.memory_space<vmem>>, vector<256x4xbf16>
    tpu.vector_store %arg8[%c0_16, %c4], %11 {strides = array<i32>} : memref<256x36xbf16, #tpu.memory_space<vmem>>, vector<256x4xbf16>,
    %c0_17 = arith.constant 0 : index
    %c2 = arith.constant 2 : index
    %c0_18 = arith.constant 0 : index
    %13 = vector.load %arg7[%c0_17, %c2, %c0_18] : memref<18x18x4xf32, #tpu.memory_space<vmem>>, vector<16x16x4xf32>
    %14 = vector.shape_cast %13 : vector<16x16x4xf32> to vector<256x4xf32>
    %15 = arith.truncf %14 : vector<256x4xf32> to vector<256x4xbf16>
    %c0_19 = arith.constant 0 : index
    %c8 = arith.constant 8 : index
    %16 = vector.load %arg8[%c0_19, %c8] : memref<256x36xbf16, #tpu.memory_space<vmem>>, vector<256x4xbf16>
    tpu.vector_store %arg8[%c0_19, %c8], %15 {strides = array<i32>} : memref<256x36xbf16, #tpu.memory_space<vmem>>, vector<256x4xbf16>,
    %c1_20 = arith.constant 1 : index
    %c0_21 = arith.constant 0 : index
    %c0_22 = arith.constant 0 : index
    %17 = vector.load %arg7[%c1_20, %c0_21, %c0_22] : memref<18x18x4xf32, #tpu.memory_space<vmem>>, vector<16x16x4xf32>
    %18 = vector.shape_cast %17 : vector<16x16x4xf32> to vector<256x4xf32>
    %19 = arith.truncf %18 : vector<256x4xf32> to vector<256x4xbf16>
    %c0_23 = arith.constant 0 : index
    %c12 = arith.constant 12 : index
    %20 = vector.load %arg8[%c0_23, %c12] : memref<256x36xbf16, #tpu.memory_space<vmem>>, vector<256x4xbf16>
    tpu.vector_store %arg8[%c0_23, %c12], %19 {strides = array<i32>} : memref<256x36xbf16, #tpu.memory_space<vmem>>, vector<256x4xbf16>,
    %c1_24 = arith.constant 1 : index
    %c1_25 = arith.constant 1 : index
    %c0_26 = arith.constant 0 : index
    %21 = vector.load %arg7[%c1_24, %c1_25, %c0_26] : memref<18x18x4xf32, #tpu.memory_space<vmem>>, vector<16x16x4xf32>
    %22 = vector.shape_cast %21 : vector<16x16x4xf32> to vector<256x4xf32>
    %23 = arith.truncf %22 : vector<256x4xf32> to vector<256x4xbf16>
    %c0_27 = arith.constant 0 : index
    %c16 = arith.constant 16 : index
    %24 = vector.load %arg8[%c0_27, %c16] : memref<256x36xbf16, #tpu.memory_space<vmem>>, vector<256x4xbf16>
    tpu.vector_store %arg8[%c0_27, %c16], %23 {strides = array<i32>} : memref<256x36xbf16, #tpu.memory_space<vmem>>, vector<256x4xbf16>,
    %c1_28 = arith.constant 1 : index
    %c2_29 = arith.constant 2 : index
    %c0_30 = arith.constant 0 : index
    %25 = vector.load %arg7[%c1_28, %c2_29, %c0_30] : memref<18x18x4xf32, #tpu.memory_space<vmem>>, vector<16x16x4xf32>
    %26 = vector.shape_cast %25 : vector<16x16x4xf32> to vector<256x4xf32>
    %27 = arith.truncf %26 : vector<256x4xf32> to vector<256x4xbf16>
    %c0_31 = arith.constant 0 : index
    %c20 = arith.constant 20 : index
    %28 = vector.load %arg8[%c0_31, %c20] : memref<256x36xbf16, #tpu.memory_space<vmem>>, vector<256x4xbf16>
    tpu.vector_store %arg8[%c0_31, %c20], %27 {strides = array<i32>} : memref<256x36xbf16, #tpu.memory_space<vmem>>, vector<256x4xbf16>,
    %c2_32 = arith.constant 2 : index
    %c0_33 = arith.constant 0 : index
    %c0_34 = arith.constant 0 : index
    %29 = vector.load %arg7[%c2_32, %c0_33, %c0_34] : memref<18x18x4xf32, #tpu.memory_space<vmem>>, vector<16x16x4xf32>
    %30 = vector.shape_cast %29 : vector<16x16x4xf32> to vector<256x4xf32>
    %31 = arith.truncf %30 : vector<256x4xf32> to vector<256x4xbf16>
    %c0_35 = arith.constant 0 : index
    %c24 = arith.constant 24 : index
    %32 = vector.load %arg8[%c0_35, %c24] : memref<256x36xbf16, #tpu.memory_space<vmem>>, vector<256x4xbf16>
    tpu.vector_store %arg8[%c0_35, %c24], %31 {strides = array<i32>} : memref<256x36xbf16, #tpu.memory_space<vmem>>, vector<256x4xbf16>,
    %c2_36 = arith.constant 2 : index
    %c1_37 = arith.constant 1 : index
    %c0_38 = arith.constant 0 : index
    %33 = vector.load %arg7[%c2_36, %c1_37, %c0_38] : memref<18x18x4xf32, #tpu.memory_space<vmem>>, vector<16x16x4xf32>
    %34 = vector.shape_cast %33 : vector<16x16x4xf32> to vector<256x4xf32>
    %35 = arith.truncf %34 : vector<256x4xf32> to vector<256x4xbf16>
    %c0_39 = arith.constant 0 : index
    %c28 = arith.constant 28 : index
    %36 = vector.load %arg8[%c0_39, %c28] : memref<256x36xbf16, #tpu.memory_space<vmem>>, vector<256x4xbf16>
    tpu.vector_store %arg8[%c0_39, %c28], %35 {strides = array<i32>} : memref<256x36xbf16, #tpu.memory_space<vmem>>, vector<256x4xbf16>,
    %c2_40 = arith.constant 2 : index
    %c2_41 = arith.constant 2 : index
    %c0_42 = arith.constant 0 : index
    %37 = vector.load %arg7[%c2_40, %c2_41, %c0_42] : memref<18x18x4xf32, #tpu.memory_space<vmem>>, vector<16x16x4xf32>
    %38 = vector.shape_cast %37 : vector<16x16x4xf32> to vector<256x4xf32>
    %39 = arith.truncf %38 : vector<256x4xf32> to vector<256x4xbf16>
    %c0_43 = arith.constant 0 : index
    %c32 = arith.constant 32 : index
    %40 = vector.load %arg8[%c0_43, %c32] : memref<256x36xbf16, #tpu.memory_space<vmem>>, vector<256x4xbf16>
    tpu.vector_store %arg8[%c0_43, %c32], %39 {strides = array<i32>} : memref<256x36xbf16, #tpu.memory_space<vmem>>, vector<256x4xbf16>,
    %c0_44 = arith.constant 0 : index
    %c0_45 = arith.constant 0 : index
    %41 = vector.load %arg8[%c0_44, %c0_45] : memref<256x36xbf16, #tpu.memory_space<vmem>>, vector<256x36xbf16>
    %c0_46 = arith.constant 0 : index
    %c0_47 = arith.constant 0 : index
    %42 = vector.load %arg4[%c0_46, %c0_47] : memref<36x128xbf16, #tpu.memory_space<vmem>>, vector<36x128xbf16>
    %cst_48 = arith.constant dense<0.000000e+00> : vector<256x128xf32>
    %43 = tpu.matmul %41, %42, %cst_48 {dimension_numbers = #tpu.dot_dimension_numbers<[1], [0], [0], [1], [0, 0, 1, 1], [], []>} : vector<256x36xbf16>, vector<36x128xbf16>, vector<256x128xf32> -> vector<256x128xf32>
    %44 = vector.extract_strided_slice %43 {offsets = [0, 0], sizes = [256, 8], strides = [1, 1]} : vector<256x128xf32> to vector<256x8xf32>
    %45 = vector.shape_cast %44 : vector<256x8xf32> to vector<16x16x8xf32>
    %46 = arith.truncf %45 : vector<16x16x8xf32> to vector<16x16x8xbf16>
    %c0_49 = arith.constant 0 : index
    %c0_50 = arith.constant 0 : index
    %c0_51 = arith.constant 0 : index
    %c0_52 = arith.constant 0 : index
    %47 = vector.load %arg5[%c0_49, %c0_50, %c0_51, %c0_52] : memref<1x16x16x8xbf16, #tpu.memory_space<vmem>>, vector<1x16x16x8xbf16>
    %48 = vector.shape_cast %47 : vector<1x16x16x8xbf16> to vector<16x16x8xbf16>
    %49 = vector.shape_cast %46 : vector<16x16x8xbf16> to vector<1x16x16x8xbf16>
    tpu.vector_store %arg5[%c0_49, %c0_50, %c0_51, %c0_52], %49 {strides = array<i32>} : memref<1x16x16x8xbf16, #tpu.memory_space<vmem>>, vector<1x16x16x8xbf16>,
    %cst_53 = arith.constant dense<0.000000e+00> : vector<8xf32>
    %50 = vector.multi_reduction <add>, %44, %cst_53 [0] : vector<256x8xf32> to vector<8xf32>
    %51 = vector.shape_cast %50 : vector<8xf32> to vector<1x8xf32>
    %c0_54 = arith.constant 0 : index
    %c0_55 = arith.constant 0 : index
    %c0_56 = arith.constant 0 : index
    %52 = vector.load %arg6[%c0_54, %c0_55, %c0_56] : memref<1x2x8xf32, #tpu.memory_space<vmem>>, vector<1x1x8xf32>
    %53 = vector.shape_cast %52 : vector<1x1x8xf32> to vector<1x8xf32>
    %54 = vector.shape_cast %51 : vector<1x8xf32> to vector<1x1x8xf32>
    tpu.vector_store %arg6[%c0_54, %c0_55, %c0_56], %54 {strides = array<i32>} : memref<1x2x8xf32, #tpu.memory_space<vmem>>, vector<1x1x8xf32>,
    %55 = arith.mulf %44, %44 : vector<256x8xf32>
    %cst_57 = arith.constant dense<0.000000e+00> : vector<8xf32>
    %56 = vector.multi_reduction <add>, %55, %cst_57 [0] : vector<256x8xf32> to vector<8xf32>
    %57 = vector.shape_cast %56 : vector<8xf32> to vector<1x8xf32>
    %c0_58 = arith.constant 0 : index
    %c1_59 = arith.constant 1 : index
    %c0_60 = arith.constant 0 : index
    %58 = vector.load %arg6[%c0_58, %c1_59, %c0_60] : memref<1x2x8xf32, #tpu.memory_space<vmem>>, vector<1x1x8xf32>
    %59 = vector.shape_cast %58 : vector<1x1x8xf32> to vector<1x8xf32>
    %60 = vector.shape_cast %57 : vector<1x8xf32> to vector<1x1x8xf32>
    tpu.vector_store %arg6[%c0_58, %c1_59, %c0_60], %60 {strides = array<i32>} : memref<1x2x8xf32, #tpu.memory_space<vmem>>, vector<1x1x8xf32>,
    return
  }
  func.func @transform_0(%arg0: i32) -> (i32, i32, i32, i32) {
    %c0_i32 = arith.constant 0 : i32
    %c0_i32_0 = arith.constant 0 : i32
    %c0_i32_1 = arith.constant 0 : i32
    %c0_i32_2 = arith.constant 0 : i32
    return %arg0, %c0_i32, %c0_i32_0, %c0_i32_1 : i32, i32, i32, i32
  }
  func.func @transform_1(%arg0: i32) -> (i32, i32) {
    %c0_i32 = arith.constant 0 : i32
    %c0_i32_0 = arith.constant 0 : i32
    %c0_i32_1 = arith.constant 0 : i32
    return %c0_i32, %c0_i32_0 : i32, i32
  }
  func.func @transform_2(%arg0: i32) -> (i32, i32) {
    %c0_i32 = arith.constant 0 : i32
    %c0_i32_0 = arith.constant 0 : i32
    %c0_i32_1 = arith.constant 0 : i32
    return %c0_i32, %c0_i32_0 : i32, i32
  }
  func.func @transform_3(%arg0: i32) -> (i32, i32) {
    %c0_i32 = arith.constant 0 : i32
    %c0_i32_0 = arith.constant 0 : i32
    %c0_i32_1 = arith.constant 0 : i32
    return %c0_i32, %c0_i32_0 : i32, i32
  }
  func.func @transform_4(%arg0: i32) -> (i32, i32, i32, i32) {
    %c0_i32 = arith.constant 0 : i32
    %c0_i32_0 = arith.constant 0 : i32
    %c0_i32_1 = arith.constant 0 : i32
    %c0_i32_2 = arith.constant 0 : i32
    return %arg0, %c0_i32, %c0_i32_0, %c0_i32_1 : i32, i32, i32, i32
  }
  func.func @transform_5(%arg0: i32) -> (i32, i32, i32) {
    %c0_i32 = arith.constant 0 : i32
    %c0_i32_0 = arith.constant 0 : i32
    %c0_i32_1 = arith.constant 0 : i32
    return %arg0, %c0_i32, %c0_i32_0 : i32, i32, i32
  }
}

module attributes {stable_mosaic.version = 11 : i64} {
  func.func @_conv3x3_kernel(%arg0: i32, %arg1: memref<1x16x16x8xbf16, #tpu.memory_space<vmem>>, %arg2: memref<1x8xf32, #tpu.memory_space<vmem>>, %arg3: memref<1x8xf32, #tpu.memory_space<vmem>>, %arg4: memref<72x128xbf16, #tpu.memory_space<vmem>>, %arg5: memref<1x16x16x8xbf16, #tpu.memory_space<vmem>>, %arg6: memref<1x2x8xf32, #tpu.memory_space<vmem>>, %arg7: memref<18x18x8xf32, #tpu.memory_space<vmem>>, %arg8: memref<256x72xbf16, #tpu.memory_space<vmem>>) attributes {dimension_semantics = [#tpu.dimension_semantics<parallel>], iteration_bounds = array<i64: 2>, scalar_prefetch = 0 : i64, scratch_operands = 2 : i64, tpu.core_type = #tpu.core_type<tc>, window_params = [{transform_indices = @transform_0, window_bounds = array<i64: 1, 16, 16, 8>}, {pipeline_mode = #tpu.pipeline_mode<synchronous>, transform_indices = @transform_1, window_bounds = array<i64: 1, 8>}, {pipeline_mode = #tpu.pipeline_mode<synchronous>, transform_indices = @transform_2, window_bounds = array<i64: 1, 8>}, {pipeline_mode = #tpu.pipeline_mode<synchronous>, transform_indices = @transform_3, window_bounds = array<i64: 72, 128>}, {transform_indices = @transform_4, window_bounds = array<i64: 1, 16, 16, 8>}, {transform_indices = @transform_5, window_bounds = array<i64: 1, 2, 8>}]} {
    %c0 = arith.constant 0 : index
    %c0_0 = arith.constant 0 : index
    %c0_1 = arith.constant 0 : index
    %c0_2 = arith.constant 0 : index
    %0 = vector.load %arg1[%c0, %c0_0, %c0_1, %c0_2] : memref<1x16x16x8xbf16, #tpu.memory_space<vmem>>, vector<1x16x16x8xbf16>
    %1 = vector.shape_cast %0 : vector<1x16x16x8xbf16> to vector<16x16x8xbf16>
    %2 = arith.extf %1 : vector<16x16x8xbf16> to vector<16x16x8xf32>
    %c0_3 = arith.constant 0 : index
    %c0_4 = arith.constant 0 : index
    %3 = vector.load %arg2[%c0_3, %c0_4] : memref<1x8xf32, #tpu.memory_space<vmem>>, vector<1x8xf32>
    %4 = vector.shape_cast %3 : vector<1x8xf32> to vector<1x1x8xf32>
    %c0_5 = arith.constant 0 : index
    %c0_6 = arith.constant 0 : index
    %5 = vector.load %arg3[%c0_5, %c0_6] : memref<1x8xf32, #tpu.memory_space<vmem>>, vector<1x8xf32>
    %6 = vector.shape_cast %5 : vector<1x8xf32> to vector<1x1x8xf32>
    %7 = vector.broadcast %4 : vector<1x1x8xf32> to vector<16x16x8xf32>
    %8 = arith.mulf %2, %7 : vector<16x16x8xf32>
    %9 = vector.broadcast %6 : vector<1x1x8xf32> to vector<16x16x8xf32>
    %10 = arith.addf %8, %9 : vector<16x16x8xf32>
    %cst = arith.constant 0.000000e+00 : f32
    %11 = vector.broadcast %cst : f32 to vector<16x16x8xf32>
    %12 = arith.maximumf %10, %11 : vector<16x16x8xf32>
    %cst_7 = arith.constant 0.000000e+00 : f32
    %13 = vector.broadcast %cst_7 : f32 to vector<18x18x8xf32>
    %c0_8 = arith.constant 0 : index
    %c0_9 = arith.constant 0 : index
    %c0_10 = arith.constant 0 : index
    %14 = vector.load %arg7[%c0_8, %c0_9, %c0_10] : memref<18x18x8xf32, #tpu.memory_space<vmem>>, vector<18x18x8xf32>
    tpu.vector_store %arg7[%c0_8, %c0_9, %c0_10], %13 {strides = array<i32>} : memref<18x18x8xf32, #tpu.memory_space<vmem>>, vector<18x18x8xf32>,
    %c1 = arith.constant 1 : index
    %c1_11 = arith.constant 1 : index
    %c0_12 = arith.constant 0 : index
    %15 = vector.load %arg7[%c1, %c1_11, %c0_12] : memref<18x18x8xf32, #tpu.memory_space<vmem>>, vector<16x16x8xf32>
    tpu.vector_store %arg7[%c1, %c1_11, %c0_12], %12 {strides = array<i32>} : memref<18x18x8xf32, #tpu.memory_space<vmem>>, vector<16x16x8xf32>,
    %c0_13 = arith.constant 0 : index
    %c0_14 = arith.constant 0 : index
    %c0_15 = arith.constant 0 : index
    %16 = vector.load %arg7[%c0_13, %c0_14, %c0_15] : memref<18x18x8xf32, #tpu.memory_space<vmem>>, vector<16x16x8xf32>
    %17 = vector.shape_cast %16 : vector<16x16x8xf32> to vector<256x8xf32>
    %18 = arith.truncf %17 : vector<256x8xf32> to vector<256x8xbf16>
    %c0_16 = arith.constant 0 : index
    %c0_17 = arith.constant 0 : index
    %19 = vector.load %arg8[%c0_16, %c0_17] : memref<256x72xbf16, #tpu.memory_space<vmem>>, vector<256x8xbf16>
    tpu.vector_store %arg8[%c0_16, %c0_17], %18 {strides = array<i32>} : memref<256x72xbf16, #tpu.memory_space<vmem>>, vector<256x8xbf16>,
    %c0_18 = arith.constant 0 : index
    %c1_19 = arith.constant 1 : index
    %c0_20 = arith.constant 0 : index
    %20 = vector.load %arg7[%c0_18, %c1_19, %c0_20] : memref<18x18x8xf32, #tpu.memory_space<vmem>>, vector<16x16x8xf32>
    %21 = vector.shape_cast %20 : vector<16x16x8xf32> to vector<256x8xf32>
    %22 = arith.truncf %21 : vector<256x8xf32> to vector<256x8xbf16>
    %c0_21 = arith.constant 0 : index
    %c8 = arith.constant 8 : index
    %23 = vector.load %arg8[%c0_21, %c8] : memref<256x72xbf16, #tpu.memory_space<vmem>>, vector<256x8xbf16>
    tpu.vector_store %arg8[%c0_21, %c8], %22 {strides = array<i32>} : memref<256x72xbf16, #tpu.memory_space<vmem>>, vector<256x8xbf16>,
    %c0_22 = arith.constant 0 : index
    %c2 = arith.constant 2 : index
    %c0_23 = arith.constant 0 : index
    %24 = vector.load %arg7[%c0_22, %c2, %c0_23] : memref<18x18x8xf32, #tpu.memory_space<vmem>>, vector<16x16x8xf32>
    %25 = vector.shape_cast %24 : vector<16x16x8xf32> to vector<256x8xf32>
    %26 = arith.truncf %25 : vector<256x8xf32> to vector<256x8xbf16>
    %c0_24 = arith.constant 0 : index
    %c16 = arith.constant 16 : index
    %27 = vector.load %arg8[%c0_24, %c16] : memref<256x72xbf16, #tpu.memory_space<vmem>>, vector<256x8xbf16>
    tpu.vector_store %arg8[%c0_24, %c16], %26 {strides = array<i32>} : memref<256x72xbf16, #tpu.memory_space<vmem>>, vector<256x8xbf16>,
    %c1_25 = arith.constant 1 : index
    %c0_26 = arith.constant 0 : index
    %c0_27 = arith.constant 0 : index
    %28 = vector.load %arg7[%c1_25, %c0_26, %c0_27] : memref<18x18x8xf32, #tpu.memory_space<vmem>>, vector<16x16x8xf32>
    %29 = vector.shape_cast %28 : vector<16x16x8xf32> to vector<256x8xf32>
    %30 = arith.truncf %29 : vector<256x8xf32> to vector<256x8xbf16>
    %c0_28 = arith.constant 0 : index
    %c24 = arith.constant 24 : index
    %31 = vector.load %arg8[%c0_28, %c24] : memref<256x72xbf16, #tpu.memory_space<vmem>>, vector<256x8xbf16>
    tpu.vector_store %arg8[%c0_28, %c24], %30 {strides = array<i32>} : memref<256x72xbf16, #tpu.memory_space<vmem>>, vector<256x8xbf16>,
    %c1_29 = arith.constant 1 : index
    %c1_30 = arith.constant 1 : index
    %c0_31 = arith.constant 0 : index
    %32 = vector.load %arg7[%c1_29, %c1_30, %c0_31] : memref<18x18x8xf32, #tpu.memory_space<vmem>>, vector<16x16x8xf32>
    %33 = vector.shape_cast %32 : vector<16x16x8xf32> to vector<256x8xf32>
    %34 = arith.truncf %33 : vector<256x8xf32> to vector<256x8xbf16>
    %c0_32 = arith.constant 0 : index
    %c32 = arith.constant 32 : index
    %35 = vector.load %arg8[%c0_32, %c32] : memref<256x72xbf16, #tpu.memory_space<vmem>>, vector<256x8xbf16>
    tpu.vector_store %arg8[%c0_32, %c32], %34 {strides = array<i32>} : memref<256x72xbf16, #tpu.memory_space<vmem>>, vector<256x8xbf16>,
    %c1_33 = arith.constant 1 : index
    %c2_34 = arith.constant 2 : index
    %c0_35 = arith.constant 0 : index
    %36 = vector.load %arg7[%c1_33, %c2_34, %c0_35] : memref<18x18x8xf32, #tpu.memory_space<vmem>>, vector<16x16x8xf32>
    %37 = vector.shape_cast %36 : vector<16x16x8xf32> to vector<256x8xf32>
    %38 = arith.truncf %37 : vector<256x8xf32> to vector<256x8xbf16>
    %c0_36 = arith.constant 0 : index
    %c40 = arith.constant 40 : index
    %39 = vector.load %arg8[%c0_36, %c40] : memref<256x72xbf16, #tpu.memory_space<vmem>>, vector<256x8xbf16>
    tpu.vector_store %arg8[%c0_36, %c40], %38 {strides = array<i32>} : memref<256x72xbf16, #tpu.memory_space<vmem>>, vector<256x8xbf16>,
    %c2_37 = arith.constant 2 : index
    %c0_38 = arith.constant 0 : index
    %c0_39 = arith.constant 0 : index
    %40 = vector.load %arg7[%c2_37, %c0_38, %c0_39] : memref<18x18x8xf32, #tpu.memory_space<vmem>>, vector<16x16x8xf32>
    %41 = vector.shape_cast %40 : vector<16x16x8xf32> to vector<256x8xf32>
    %42 = arith.truncf %41 : vector<256x8xf32> to vector<256x8xbf16>
    %c0_40 = arith.constant 0 : index
    %c48 = arith.constant 48 : index
    %43 = vector.load %arg8[%c0_40, %c48] : memref<256x72xbf16, #tpu.memory_space<vmem>>, vector<256x8xbf16>
    tpu.vector_store %arg8[%c0_40, %c48], %42 {strides = array<i32>} : memref<256x72xbf16, #tpu.memory_space<vmem>>, vector<256x8xbf16>,
    %c2_41 = arith.constant 2 : index
    %c1_42 = arith.constant 1 : index
    %c0_43 = arith.constant 0 : index
    %44 = vector.load %arg7[%c2_41, %c1_42, %c0_43] : memref<18x18x8xf32, #tpu.memory_space<vmem>>, vector<16x16x8xf32>
    %45 = vector.shape_cast %44 : vector<16x16x8xf32> to vector<256x8xf32>
    %46 = arith.truncf %45 : vector<256x8xf32> to vector<256x8xbf16>
    %c0_44 = arith.constant 0 : index
    %c56 = arith.constant 56 : index
    %47 = vector.load %arg8[%c0_44, %c56] : memref<256x72xbf16, #tpu.memory_space<vmem>>, vector<256x8xbf16>
    tpu.vector_store %arg8[%c0_44, %c56], %46 {strides = array<i32>} : memref<256x72xbf16, #tpu.memory_space<vmem>>, vector<256x8xbf16>,
    %c2_45 = arith.constant 2 : index
    %c2_46 = arith.constant 2 : index
    %c0_47 = arith.constant 0 : index
    %48 = vector.load %arg7[%c2_45, %c2_46, %c0_47] : memref<18x18x8xf32, #tpu.memory_space<vmem>>, vector<16x16x8xf32>
    %49 = vector.shape_cast %48 : vector<16x16x8xf32> to vector<256x8xf32>
    %50 = arith.truncf %49 : vector<256x8xf32> to vector<256x8xbf16>
    %c0_48 = arith.constant 0 : index
    %c64 = arith.constant 64 : index
    %51 = vector.load %arg8[%c0_48, %c64] : memref<256x72xbf16, #tpu.memory_space<vmem>>, vector<256x8xbf16>
    tpu.vector_store %arg8[%c0_48, %c64], %50 {strides = array<i32>} : memref<256x72xbf16, #tpu.memory_space<vmem>>, vector<256x8xbf16>,
    %c0_49 = arith.constant 0 : index
    %c0_50 = arith.constant 0 : index
    %52 = vector.load %arg8[%c0_49, %c0_50] : memref<256x72xbf16, #tpu.memory_space<vmem>>, vector<256x72xbf16>
    %c0_51 = arith.constant 0 : index
    %c0_52 = arith.constant 0 : index
    %53 = vector.load %arg4[%c0_51, %c0_52] : memref<72x128xbf16, #tpu.memory_space<vmem>>, vector<72x128xbf16>
    %cst_53 = arith.constant dense<0.000000e+00> : vector<256x128xf32>
    %54 = tpu.matmul %52, %53, %cst_53 {dimension_numbers = #tpu.dot_dimension_numbers<[1], [0], [0], [1], [0, 0, 1, 1], [], []>} : vector<256x72xbf16>, vector<72x128xbf16>, vector<256x128xf32> -> vector<256x128xf32>
    %55 = vector.extract_strided_slice %54 {offsets = [0, 0], sizes = [256, 8], strides = [1, 1]} : vector<256x128xf32> to vector<256x8xf32>
    %56 = vector.shape_cast %55 : vector<256x8xf32> to vector<16x16x8xf32>
    %57 = arith.truncf %56 : vector<16x16x8xf32> to vector<16x16x8xbf16>
    %c0_54 = arith.constant 0 : index
    %c0_55 = arith.constant 0 : index
    %c0_56 = arith.constant 0 : index
    %c0_57 = arith.constant 0 : index
    %58 = vector.load %arg5[%c0_54, %c0_55, %c0_56, %c0_57] : memref<1x16x16x8xbf16, #tpu.memory_space<vmem>>, vector<1x16x16x8xbf16>
    %59 = vector.shape_cast %58 : vector<1x16x16x8xbf16> to vector<16x16x8xbf16>
    %60 = vector.shape_cast %57 : vector<16x16x8xbf16> to vector<1x16x16x8xbf16>
    tpu.vector_store %arg5[%c0_54, %c0_55, %c0_56, %c0_57], %60 {strides = array<i32>} : memref<1x16x16x8xbf16, #tpu.memory_space<vmem>>, vector<1x16x16x8xbf16>,
    %cst_58 = arith.constant dense<0.000000e+00> : vector<8xf32>
    %61 = vector.multi_reduction <add>, %55, %cst_58 [0] : vector<256x8xf32> to vector<8xf32>
    %62 = vector.shape_cast %61 : vector<8xf32> to vector<1x8xf32>
    %c0_59 = arith.constant 0 : index
    %c0_60 = arith.constant 0 : index
    %c0_61 = arith.constant 0 : index
    %63 = vector.load %arg6[%c0_59, %c0_60, %c0_61] : memref<1x2x8xf32, #tpu.memory_space<vmem>>, vector<1x1x8xf32>
    %64 = vector.shape_cast %63 : vector<1x1x8xf32> to vector<1x8xf32>
    %65 = vector.shape_cast %62 : vector<1x8xf32> to vector<1x1x8xf32>
    tpu.vector_store %arg6[%c0_59, %c0_60, %c0_61], %65 {strides = array<i32>} : memref<1x2x8xf32, #tpu.memory_space<vmem>>, vector<1x1x8xf32>,
    %66 = arith.mulf %55, %55 : vector<256x8xf32>
    %cst_62 = arith.constant dense<0.000000e+00> : vector<8xf32>
    %67 = vector.multi_reduction <add>, %66, %cst_62 [0] : vector<256x8xf32> to vector<8xf32>
    %68 = vector.shape_cast %67 : vector<8xf32> to vector<1x8xf32>
    %c0_63 = arith.constant 0 : index
    %c1_64 = arith.constant 1 : index
    %c0_65 = arith.constant 0 : index
    %69 = vector.load %arg6[%c0_63, %c1_64, %c0_65] : memref<1x2x8xf32, #tpu.memory_space<vmem>>, vector<1x1x8xf32>
    %70 = vector.shape_cast %69 : vector<1x1x8xf32> to vector<1x8xf32>
    %71 = vector.shape_cast %68 : vector<1x8xf32> to vector<1x1x8xf32>
    tpu.vector_store %arg6[%c0_63, %c1_64, %c0_65], %71 {strides = array<i32>} : memref<1x2x8xf32, #tpu.memory_space<vmem>>, vector<1x1x8xf32>,
    return
  }
  func.func @transform_0(%arg0: i32) -> (i32, i32, i32, i32) {
    %c0_i32 = arith.constant 0 : i32
    %c0_i32_0 = arith.constant 0 : i32
    %c0_i32_1 = arith.constant 0 : i32
    %c0_i32_2 = arith.constant 0 : i32
    return %arg0, %c0_i32, %c0_i32_0, %c0_i32_1 : i32, i32, i32, i32
  }
  func.func @transform_1(%arg0: i32) -> (i32, i32) {
    %c0_i32 = arith.constant 0 : i32
    %c0_i32_0 = arith.constant 0 : i32
    %c0_i32_1 = arith.constant 0 : i32
    return %c0_i32, %c0_i32_0 : i32, i32
  }
  func.func @transform_2(%arg0: i32) -> (i32, i32) {
    %c0_i32 = arith.constant 0 : i32
    %c0_i32_0 = arith.constant 0 : i32
    %c0_i32_1 = arith.constant 0 : i32
    return %c0_i32, %c0_i32_0 : i32, i32
  }
  func.func @transform_3(%arg0: i32) -> (i32, i32) {
    %c0_i32 = arith.constant 0 : i32
    %c0_i32_0 = arith.constant 0 : i32
    %c0_i32_1 = arith.constant 0 : i32
    return %c0_i32, %c0_i32_0 : i32, i32
  }
  func.func @transform_4(%arg0: i32) -> (i32, i32, i32, i32) {
    %c0_i32 = arith.constant 0 : i32
    %c0_i32_0 = arith.constant 0 : i32
    %c0_i32_1 = arith.constant 0 : i32
    %c0_i32_2 = arith.constant 0 : i32
    return %arg0, %c0_i32, %c0_i32_0, %c0_i32_1 : i32, i32, i32, i32
  }
  func.func @transform_5(%arg0: i32) -> (i32, i32, i32) {
    %c0_i32 = arith.constant 0 : i32
    %c0_i32_0 = arith.constant 0 : i32
    %c0_i32_1 = arith.constant 0 : i32
    return %arg0, %c0_i32, %c0_i32_0 : i32, i32, i32
  }
}

</mosaic_0001>

<bundles_post_ra>
// kernel: unet_block_nchw.5
= control target key start
LH: loop header
LB: loop body
LE: loop exit
PB: predicated region body
PF: predicated region fallthrough
CT: control target
= control target key end

     0   :  { %s557_s12 = smov 0   ;;  %s736_s0 = inlined_call_operand.vmem [shape: bf16[2,16,16,8], index: 0, kind: input, shape index: {}]   ;;  %s737_s1 = inlined_call_operand.vmem [shape: f32[1,8], index: 1, kind: input, shape index: {}]   ;;  %s738_s2 = inlined_call_operand.vmem [shape: f32[1,8], index: 2, kind: input, shape index: {}]   ;;  %s739_s3 = inlined_call_operand.vmem [shape: f32[2,16,16,8], index: 3, kind: output, shape index: {}]  }
   0x1 LB: > { %s427_s13 = sadd.s32 4294967295, %s535_s12   ;;  %p431_p0 = scmp.ge.s32.totalorder %s535_s12, 1  ;;  %s535_s12 = sphi %s557_s12, %s13_s12  }
   0x2   : > { %p137_p1 = scmp.lt.s32.totalorder %s535_s12, 3 }
   0x4   : > { %p138_p2 = pnand %p431_p0, %p137_p1 }
   0x5   : > { %p161_p3 = scmp.lt.s32.totalorder (!%p138_p2), %s427_s13, 1 }
   0x6   : > { %141 = sbr.rel (%p138_p2) target bundleno = 55 (0x37), region = 32 }
   0xb   : > { %s741_s13 = smov (!%p161_p3, %s427_s13), 1  ;;  %v576_v0 = vld [vmem:[%s737_s1] ss:$0 sm:$0xff]  ;;  %vm339_vm0 = vcmask 64512  }
   0xc   : > { %s438_s14 = sshll.u32 %s741_s13, 7  ;;  %v584_v5 = vld [vmem:[%s738_s2] ss:$0 sm:$0xff]  ;;  %s439_s22 = sshll.u32 %s741_s13, 8 }
   0xd   : > { %s571_s17 = scalar_lea.vmem %s736_s0, %s438_s14  ;;  %s603_s25 = scalar_lea.vmem %s739_s3, %s439_s22 }
   0xe   : > { %v441_v1 = vld [vmem:[%s571_s17] sm:$0xff]   ;;  %v504_v2 = vld [vmem:[%s571_s17 + $0x8] sm:$0xff]   ;;  %v505_v3 = vld [vmem:[%s571_s17 + $0x10] sm:$0xff]  }
   0xf   : > { %v442_v4 = vunpack.c.l.bf16 %v441_v1  ;;  %v443_v6 = vunpack.c.h.bf16 %v441_v1  ;;  %v446_v7 = vunpack.c.l.bf16 %v504_v2  ;;  %v447_v8 = vunpack.c.h.bf16 %v504_v2  ;;  %v506_v9 = vld [vmem:[%s571_s17 + $0x18] sm:$0xff]   ;;  %v507_v30 = vld [vmem:[%s571_s17 + $0x20] sm:$0xff]   ;;  %v508_v31 = vld [vmem:[%s571_s17 + $0x28] sm:$0xff]  }
  0x10   : > { %v450_v10 = vunpack.c.l.bf16 %v505_v3  ;;  %v451_v11 = vunpack.c.h.bf16 %v505_v3  ;;  %v454_v12 = vunpack.c.l.bf16 %v506_v9  ;;  %v455_v13 = vunpack.c.h.bf16 %v506_v9  ;;  %v509_v36 = vld [vmem:[%s571_s17 + $0x30] sm:$0xff]   ;;  %v510_v37 = vld [vmem:[%s571_s17 + $0x38] sm:$0xff]   ;;  %v511_v3 = vld [vmem:[%s571_s17 + $0x40] sm:$0xff]  }
  0x11   : > { %v240_v14 = vmul.f32 %v576_v0, %v442_v4  ;;  %v241_v15 = vmul.f32 %v576_v0, %v443_v6  ;;  %v242_v16 = vmul.f32 %v576_v0, %v446_v7  ;;  %v243_v17 = vmul.f32 %v576_v0, %v447_v8  ;;  %v512_v4 = vld [vmem:[%s571_s17 + $0x48] sm:$0xff]   ;;  %v513_v6 = vld [vmem:[%s571_s17 + $0x50] sm:$0xff]  }
  0x12   : > { %v244_v18 = vmul.f32 %v576_v0, %v450_v10  ;;  %v245_v19 = vmul.f32 %v576_v0, %v451_v11  ;;  %v246_v20 = vmul.f32 %v576_v0, %v454_v12  ;;  %v247_v21 = vmul.f32 %v576_v0, %v455_v13  ;;  %v514_v11 = vld [vmem:[%s571_s17 + $0x58] sm:$0xff]  }
  0x13   : > { %v275_v22 = vadd.f32 %v584_v5, %v240_v14  ;;  %v276_v23 = vadd.f32 %v584_v5, %v241_v15  ;;  %v277_v24 = vadd.f32 %v584_v5, %v242_v16  ;;  %v278_v25 = vadd.f32 %v584_v5, %v243_v17 }
  0x14   : > { %v279_v26 = vadd.f32 %v584_v5, %v244_v18  ;;  %v280_v27 = vadd.f32 %v584_v5, %v245_v19  ;;  %v281_v28 = vadd.f32 %v584_v5, %v246_v20  ;;  %v282_v29 = vadd.f32 %v584_v5, %v247_v21 }
  0x15   : > { %v307_v32 = vmax.f32 %v275_v22, 0.0  ;;  %v308_v33 = vmax.f32 %v276_v23, 0.0  ;;  %v309_v34 = vmax.f32 %v277_v24, 0.0  ;;  %v310_v35 = vmax.f32 %v278_v25, 0.0 }
  0x16   : > { %v311_v38 = vmax.f32 %v279_v26, 0.0  ;;  %v312_v39 = vmax.f32 %v280_v27, 0.0  ;;  %v313_v40 = vmax.f32 %v281_v28, 0.0  ;;  %v314_v41 = vmax.f32 %v282_v29, 0.0 }
  0x17   : > { %340 = vst.msk [vmem:[%s603_s25] sm:$0xff] %vm339_vm0, %v307_v32  ;;  %v458_v42 = vunpack.c.l.bf16 %v507_v30  ;;  %v459_v43 = vunpack.c.h.bf16 %v507_v30  ;;  %v462_v44 = vunpack.c.l.bf16 %v508_v31  ;;  %v463_v45 = vunpack.c.h.bf16 %v508_v31 }
  0x18   : > { %341 = vst.msk [vmem:[%s603_s25 + $0x8] sm:$0xff] %vm339_vm0, %v308_v33  ;;  %v466_v46 = vunpack.c.l.bf16 %v509_v36  ;;  %v467_v47 = vunpack.c.h.bf16 %v509_v36  ;;  %v470_v48 = vunpack.c.l.bf16 %v510_v37  ;;  %v471_v49 = vunpack.c.h.bf16 %v510_v37 }
  0x19   : > { %342 = vst.msk [vmem:[%s603_s25 + $0x10] sm:$0xff] %vm339_vm0, %v309_v34  ;;  %v248_v50 = vmul.f32 %v576_v0, %v458_v42  ;;  %v249_v51 = vmul.f32 %v576_v0, %v459_v43  ;;  %v250_v52 = vmul.f32 %v576_v0, %v462_v44  ;;  %v251_v53 = vmul.f32 %v576_v0, %v463_v45  ;;  %v517_v42 = vld [vmem:[%s571_s17 + $0x70] sm:$0xff]  }
  0x1a   : > { %343 = vst.msk [vmem:[%s603_s25 + $0x18] sm:$0xff] %vm339_vm0, %v310_v35  ;;  %v252_v54 = vmul.f32 %v576_v0, %v466_v46  ;;  %v253_v55 = vmul.f32 %v576_v0, %v467_v47  ;;  %v254_v56 = vmul.f32 %v576_v0, %v470_v48  ;;  %v255_v57 = vmul.f32 %v576_v0, %v471_v49  ;;  %v518_v47 = vld [vmem:[%s571_s17 + $0x78] sm:$0xff]  }
  0x1b   : > { %344 = vst.msk [vmem:[%s603_s25 + $0x20] sm:$0xff] %vm339_vm0, %v311_v38  ;;  %v283_v58 = vadd.f32 %v584_v5, %v248_v50  ;;  %v284_v59 = vadd.f32 %v584_v5, %v249_v51  ;;  %v285_v60 = vadd.f32 %v584_v5, %v250_v52  ;;  %v286_v61 = vadd.f32 %v584_v5, %v251_v53 }
  0x1c   : > { %345 = vst.msk [vmem:[%s603_s25 + $0x28] sm:$0xff] %vm339_vm0, %v312_v39  ;;  %v287_v62 = vadd.f32 %v584_v5, %v252_v54  ;;  %v288_v63 = vadd.f32 %v584_v5, %v253_v55  ;;  %v289_v1 = vadd.f32 %v584_v5, %v254_v56  ;;  %v290_v2 = vadd.f32 %v584_v5, %v255_v57 }
  0x1d   : > { %346 = vst.msk [vmem:[%s603_s25 + $0x30] sm:$0xff] %vm339_vm0, %v313_v40  ;;  %v315_v7 = vmax.f32 %v283_v58, 0.0  ;;  %v316_v8 = vmax.f32 %v284_v59, 0.0  ;;  %v317_v9 = vmax.f32 %v285_v60, 0.0  ;;  %v318_v10 = vmax.f32 %v286_v61, 0.0  ;;  %v515_v40 = vld [vmem:[%s571_s17 + $0x60] sm:$0xff]  }
  0x1e   : > { %347 = vst.msk [vmem:[%s603_s25 + $0x38] sm:$0xff] %vm339_vm0, %v314_v41  ;;  %v319_v12 = vmax.f32 %v287_v62, 0.0  ;;  %v320_v13 = vmax.f32 %v288_v63, 0.0  ;;  %v321_v14 = vmax.f32 %v289_v1, 0.0  ;;  %v322_v15 = vmax.f32 %v290_v2, 0.0  ;;  %v516_v41 = vld [vmem:[%s571_s17 + $0x68] sm:$0xff]  }
  0x1f   : > { %348 = vst.msk [vmem:[%s603_s25 + $0x40] sm:$0xff] %vm339_vm0, %v315_v7  ;;  %v474_v16 = vunpack.c.l.bf16 %v511_v3  ;;  %v475_v17 = vunpack.c.h.bf16 %v511_v3  ;;  %v478_v18 = vunpack.c.l.bf16 %v512_v4  ;;  %v479_v19 = vunpack.c.h.bf16 %v512_v4 }
  0x20   : > { %349 = vst.msk [vmem:[%s603_s25 + $0x48] sm:$0xff] %vm339_vm0, %v316_v8  ;;  %v482_v20 = vunpack.c.l.bf16 %v513_v6  ;;  %v483_v21 = vunpack.c.h.bf16 %v513_v6  ;;  %v486_v22 = vunpack.c.l.bf16 %v514_v11  ;;  %v487_v23 = vunpack.c.h.bf16 %v514_v11 }
  0x21   : > { %350 = vst.msk [vmem:[%s603_s25 + $0x50] sm:$0xff] %vm339_vm0, %v317_v9  ;;  %v256_v24 = vmul.f32 %v576_v0, %v474_v16  ;;  %v257_v25 = vmul.f32 %v576_v0, %v475_v17  ;;  %v258_v26 = vmul.f32 %v576_v0, %v478_v18  ;;  %v259_v27 = vmul.f32 %v576_v0, %v479_v19 }
  0x22   : > { %351 = vst.msk [vmem:[%s603_s25 + $0x58] sm:$0xff] %vm339_vm0, %v318_v10  ;;  %v260_v28 = vmul.f32 %v576_v0, %v482_v20  ;;  %v261_v29 = vmul.f32 %v576_v0, %v483_v21  ;;  %v262_v30 = vmul.f32 %v576_v0, %v486_v22  ;;  %v263_v31 = vmul.f32 %v576_v0, %v487_v23 }
  0x23   : > { %352 = vst.msk [vmem:[%s603_s25 + $0x60] sm:$0xff] %vm339_vm0, %v319_v12  ;;  %v291_v32 = vadd.f32 %v584_v5, %v256_v24  ;;  %v292_v33 = vadd.f32 %v584_v5, %v257_v25  ;;  %v293_v34 = vadd.f32 %v584_v5, %v258_v26  ;;  %v294_v35 = vadd.f32 %v584_v5, %v259_v27 }
  0x24   : > { %353 = vst.msk [vmem:[%s603_s25 + $0x68] sm:$0xff] %vm339_vm0, %v320_v13  ;;  %v295_v36 = vadd.f32 %v584_v5, %v260_v28  ;;  %v296_v37 = vadd.f32 %v584_v5, %v261_v29  ;;  %v297_v38 = vadd.f32 %v584_v5, %v262_v30  ;;  %v298_v39 = vadd.f32 %v584_v5, %v263_v31 }
  0x25   : > { %354 = vst.msk [vmem:[%s603_s25 + $0x70] sm:$0xff] %vm339_vm0, %v321_v14  ;;  %v323_v43 = vmax.f32 %v291_v32, 0.0  ;;  %v324_v44 = vmax.f32 %v292_v33, 0.0  ;;  %v325_v45 = vmax.f32 %v293_v34, 0.0  ;;  %v326_v46 = vmax.f32 %v294_v35, 0.0 }
  0x26   : > { %355 = vst.msk [vmem:[%s603_s25 + $0x78] sm:$0xff] %vm339_vm0, %v322_v15  ;;  %v327_v48 = vmax.f32 %v295_v36, 0.0  ;;  %v328_v49 = vmax.f32 %v296_v37, 0.0  ;;  %v329_v50 = vmax.f32 %v297_v38, 0.0  ;;  %v330_v51 = vmax.f32 %v298_v39, 0.0 }
  0x27   : > { %356 = vst.msk [vmem:[%s603_s25 + $0x80] sm:$0xff] %vm339_vm0, %v323_v43  ;;  %v490_v52 = vunpack.c.l.bf16 %v515_v40  ;;  %v491_v53 = vunpack.c.h.bf16 %v515_v40  ;;  %v494_v54 = vunpack.c.l.bf16 %v516_v41  ;;  %v495_v55 = vunpack.c.h.bf16 %v516_v41 }
  0x28   : > { %357 = vst.msk [vmem:[%s603_s25 + $0x88] sm:$0xff] %vm339_vm0, %v324_v44  ;;  %v498_v56 = vunpack.c.l.bf16 %v517_v42  ;;  %v499_v57 = vunpack.c.h.bf16 %v517_v42  ;;  %v502_v58 = vunpack.c.l.bf16 %v518_v47  ;;  %v503_v59 = vunpack.c.h.bf16 %v518_v47 }
  0x29   : > { %358 = vst.msk [vmem:[%s603_s25 + $0x90] sm:$0xff] %vm339_vm0, %v325_v45  ;;  %v264_v60 = vmul.f32 %v576_v0, %v490_v52  ;;  %v265_v61 = vmul.f32 %v576_v0, %v491_v53  ;;  %v266_v62 = vmul.f32 %v576_v0, %v494_v54  ;;  %v267_v63 = vmul.f32 %v576_v0, %v495_v55 }
  0x2a   : > { %359 = vst.msk [vmem:[%s603_s25 + $0x98] sm:$0xff] %vm339_vm0, %v326_v46  ;;  %v268_v1 = vmul.f32 %v576_v0, %v498_v56  ;;  %v269_v2 = vmul.f32 %v576_v0, %v499_v57  ;;  %v270_v3 = vmul.f32 %v576_v0, %v502_v58  ;;  %v271_v4 = vmul.f32 %v576_v0, %v503_v59 }
  0x2b   : > { %360 = vst.msk [vmem:[%s603_s25 + $0xa0] sm:$0xff] %vm339_vm0, %v327_v48  ;;  %v299_v6 = vadd.f32 %v584_v5, %v264_v60  ;;  %v300_v7 = vadd.f32 %v584_v5, %v265_v61  ;;  %v301_v8 = vadd.f32 %v584_v5, %v266_v62  ;;  %v302_v9 = vadd.f32 %v584_v5, %v267_v63 }
  0x2c   : > { %361 = vst.msk [vmem:[%s603_s25 + $0xa8] sm:$0xff] %vm339_vm0, %v328_v49  ;;  %v303_v10 = vadd.f32 %v584_v5, %v268_v1  ;;  %v304_v0 = vadd.f32 %v584_v5, %v269_v2  ;;  %v305_v14 = vadd.f32 %v584_v5, %v270_v3  ;;  %v306_v16 = vadd.f32 %v584_v5, %v271_v4 }
  0x2d   : > { %362 = vst.msk [vmem:[%s603_s25 + $0xb0] sm:$0xff] %vm339_vm0, %v329_v50  ;;  %v331_v11 = vmax.f32 %v299_v6, 0.0  ;;  %v332_v12 = vmax.f32 %v300_v7, 0.0  ;;  %v333_v13 = vmax.f32 %v301_v8, 0.0  ;;  %v334_v15 = vmax.f32 %v302_v9, 0.0 }
  0x2e   : > { %363 = vst.msk [vmem:[%s603_s25 + $0xb8] sm:$0xff] %vm339_vm0, %v330_v51  ;;  %v335_v17 = vmax.f32 %v303_v10, 0.0  ;;  %v336_v18 = vmax.f32 %v304_v0, 0.0  ;;  %v337_v19 = vmax.f32 %v305_v14, 0.0  ;;  %v338_v20 = vmax.f32 %v306_v16, 0.0 }
  0x2f   : > { %364 = vst.msk [vmem:[%s603_s25 + $0xc0] sm:$0xff] %vm339_vm0, %v331_v11 }
  0x30   : > { %365 = vst.msk [vmem:[%s603_s25 + $0xc8] sm:$0xff] %vm339_vm0, %v332_v12 }
  0x31   : > { %366 = vst.msk [vmem:[%s603_s25 + $0xd0] sm:$0xff] %vm339_vm0, %v333_v13 }
  0x32   : > { %367 = vst.msk [vmem:[%s603_s25 + $0xd8] sm:$0xff] %vm339_vm0, %v334_v15 }
  0x33   : > { %368 = vst.msk [vmem:[%s603_s25 + $0xe0] sm:$0xff] %vm339_vm0, %v335_v17 }
  0x34   : > { %369 = vst.msk [vmem:[%s603_s25 + $0xe8] sm:$0xff] %vm339_vm0, %v336_v18 }
  0x35   : > { %370 = vst.msk [vmem:[%s603_s25 + $0xf0] sm:$0xff] %vm339_vm0, %v337_v19 }
  0x36   : > { %371 = vst.msk [vmem:[%s603_s25 + $0xf8] sm:$0xff] %vm339_vm0, %v338_v20 }
  0x37 PF: > { %s13_s12 = sadd.s32 1, %s535_s12  }
  0x38   : > { %p10_p4 = scmp.ge.s32.totalorder %s13_s12, 4  }
  0x3a   :  { %12 = sbr.rel (!%p10_p4) target bundleno = 1 (0x1), region = 62 }

// kernel: unet_block_nchw.3
= control target key start
LH: loop header
LB: loop body
LE: loop exit
PB: predicated region body
PF: predicated region fallthrough
CT: control target
= control target key end

     0   :  { %s3048_s18 = smov 0   ;;  %s4334_s0 = inlined_call_operand.vmem [shape: f32[2,16,16,4], index: 0, kind: input, shape index: {}]   ;;  %s4335_s1 = inlined_call_operand.vmem [shape: f32[1,4], index: 1, kind: input, shape index: {}, may-alias: {1,2}]   ;;  %s4336_s2 = inlined_call_operand.vmem [shape: f32[1,4], index: 2, kind: input, shape index: {}, may-alias: {1,2}]   ;;  %s4337_s3 = inlined_call_operand.vmem [shape: bf16[36,128], index: 3, kind: input, shape index: {}]   ;;  %s4338_s4 = inlined_call_operand.vmem [shape: bf16[2,16,16,8], index: 4, kind: output, shape index: {0}]   ;;  %s4339_s5 = inlined_call_operand.vmem [shape: f32[2,2,8], index: 5, kind: output, shape index: {1}]  }
   0x1 LB: > { %s2855_s1 = sadd.s32 4294967295, %s3007_s18   ;;  %p2859_p0 = scmp.ge.s32.totalorder %s3007_s18, 1  ;;  %s3007_s18 = sphi %s3048_s18, %s16_s18  }
   0x2   : > { %p190_p1 = scmp.lt.s32.totalorder %s3007_s18, 3 }
   0x4   : > { %p191_p2 = pnand %p2859_p0, %p190_p1 }
   0x5   : > { %s3010_s2 = smov (!%p191_p2), 4   ;;  %p222_p3 = scmp.lt.s32.totalorder (!%p191_p2), %s2855_s1, 1 }
   0x6   : > { %194 = sbr.rel (%p191_p2) target bundleno = 1023 (0x3ff), region = 36  ;;  %s3011_s23 = smov (!%p191_p2), 8  }
   0x7   : > { %s3012_s24 = smov (!%p191_p2), 12   ;;  %s3013_s25 = smov (!%p191_p2), 16  }
   0x8   : > { %s3014_s26 = smov (!%p191_p2), 20   ;;  %s3015_s27 = smov (!%p191_p2), 24  }
   0x9   : > { %s3016_s28 = smov (!%p191_p2), 28   ;;  %s3017_s29 = smov (!%p191_p2), 32  }
   0xb   : > { %vm269_vm0 = vcmask 31744   ;;  %v3009_v0 = vmov 0.0   ;;  %s4341_s1 = smov (!%p222_p3, %s2855_s1), 1  ;;  %vm272_vm1 = vcmask 25600   ;;  %vm422_vm2 = vcmask 27648  }
   0xc   : > { %270 = vst.msk [vmem:[#allocation2] sm:$0xff] %vm269_vm0, %v3009_v0  ;;  %s2955_s19 = sshll.u32 %s4341_s1, 8  ;;  %vm647_vm3 = vcmask 60448   ;;  %vm872_vm4 = vcmask 93248   ;;  %vm1097_vm5 = vcmask 126048   ;;  %vm1322_vm6 = vcmask 158848  }
   0xd   : > { %271 = vst.msk [vmem:[#allocation2 + $0x8] sm:$0xff] %vm269_vm0, %v3009_v0  ;;  %s3129_s22 = scalar_lea.vmem %s4334_s0, %s2955_s19  ;;  %vm1547_vm7 = vcmask 191648   ;;  %vm2437_vm8 = vcmask 1041408   ;;  %vm1773_vm9 = vcmask 224448   ;;  %vm1998_vm10 = vcmask 257248   ;;  %s2956_s11 = sshll.u32 %s4341_s1, 7 }
   0xe   : > { %274 = vst.msk [vmem:[#allocation2 + $0x18] sm:$0xff] %vm269_vm0, %v3009_v0  ;;  %v237_v3 = vld [vmem:[%s3129_s22] sm:$0xff]  ;;  %v238_v8 = vld [vmem:[%s3129_s22 + $0x8] sm:$0xff]  ;;  %v244_v11 = vld [vmem:[%s3129_s22 + $0x38] sm:$0xff]  ;;  %vm2223_vm11 = vcmask 290048   ;;  %vm2388_vm12 = vcmask 293888   ;;  %s4059_s14 = scalar_lea.vmem %s4338_s4, %s2956_s11 }
   0xf   : > { %275 = vst.msk [vmem:[#allocation2 + $0x20] sm:$0xff] %vm269_vm0, %v3009_v0  ;;  %v241_v9 = vld [vmem:[%s3129_s22 + $0x20] sm:$0xff]  ;;  %v242_v10 = vld [vmem:[%s3129_s22 + $0x28] sm:$0xff]  ;;  %v239_v12 = vld [vmem:[%s3129_s22 + $0x10] sm:$0xff]  ;;  %vm2562_vm13 = vcmask 60416   ;;  %vm2595_vm14 = vcmask 64512  }
  0x10   : > { %277 = vst.msk [vmem:[#allocation2 + $0x30] sm:$0xff] %vm269_vm0, %v3009_v0  ;;  %v245_v13 = vld [vmem:[%s3129_s22 + $0x40] sm:$0xff]  ;;  %v247_v14 = vld [vmem:[%s3129_s22 + $0x50] sm:$0xff]  ;;  %v240_v15 = vld [vmem:[%s3129_s22 + $0x18] sm:$0xff]  ;;  %s2864_s15 = sshll.u32 %s4341_s1, 1  ;;  %vm2665_vm15 = vcmask 57344  }
  0x11   : > { %278 = vst.msk [vmem:[#allocation2 + $0x38] sm:$0xff] %vm269_vm0, %v3009_v0  ;;  %v248_v16 = vld [vmem:[%s3129_s22 + $0x58] sm:$0xff]  ;;  %v250_v17 = vld [vmem:[%s3129_s22 + $0x68] sm:$0xff]  ;;  %v243_v19 = vld [vmem:[%s3129_s22 + $0x30] sm:$0xff] }
  0x12   : > { %280 = vst.msk [vmem:[#allocation2 + $0x48] sm:$0xff] %vm269_vm0, %v3009_v0  ;;  %v251_v22 = vld [vmem:[%s3129_s22 + $0x70] sm:$0xff]  ;;  %v253_v24 = vld [vmem:[%s3129_s22 + $0x80] sm:$0xff]  ;;  %v246_v25 = vld [vmem:[%s3129_s22 + $0x48] sm:$0xff] }
  0x13   : > { %281 = vst.msk [vmem:[#allocation2 + $0x50] sm:$0xff] %vm269_vm0, %v3009_v0  ;;  %v254_v28 = vld [vmem:[%s3129_s22 + $0x88] sm:$0xff]  ;;  %v256_v31 = vld [vmem:[%s3129_s22 + $0x98] sm:$0xff]  ;;  %v249_v35 = vld [vmem:[%s3129_s22 + $0x60] sm:$0xff] }
  0x14   : > { %v455_v1 = vld [vmem:[#allocation2 + $0x1] sm:$0xff]  ;;  %283 = vst.msk [vmem:[#allocation2 + $0x60] sm:$0xff] %vm269_vm0, %v3009_v0  ;;  %v259_v37 = vld [vmem:[%s3129_s22 + $0xb0] sm:$0xff]  ;;  %v252_v44 = vld [vmem:[%s3129_s22 + $0x78] sm:$0xff] }
  0x15   : > { %v487_v2 = vpack.c.bf16 %v455_v1, %v455_v1  ;;  %284 = vst.msk [vmem:[#allocation2 + $0x68] sm:$0xff] %vm269_vm0, %v3009_v0  ;;  %v257_v36 = vld [vmem:[%s3129_s22 + $0xa0] sm:$0xff]  ;;  %v260_v45 = vld [vmem:[%s3129_s22 + $0xb8] sm:$0xff]  ;;  %v262_v46 = vld [vmem:[%s3129_s22 + $0xc8] sm:$0xff] }
  0x16   : > { %286 = vst.msk [vmem:[#allocation2 + $0x78] sm:$0xff] %vm269_vm0, %v3009_v0  ;;  %v255_v53 = vld [vmem:[%s3129_s22 + $0x90] sm:$0xff]  ;;  %v265_v55 = vld [vmem:[%s3129_s22 + $0xe0] sm:$0xff]  ;;  %v258_v62 = vld [vmem:[%s3129_s22 + $0xa8] sm:$0xff] }
  0x17   : > { %551 = vrot.lane.b32.xlu0 %v487_v2, %s3010_s2  ;;  %287 = vst.msk [vmem:[#allocation2 + $0x80] sm:$0xff] %vm269_vm0, %v3009_v0  ;;  %v263_v54 = vld [vmem:[%s3129_s22 + $0xd0] sm:$0xff]  ;;  %v266_v63 = vld [vmem:[%s3129_s22 + $0xe8] sm:$0xff] }
  0x18   : > { %289 = vst.msk [vmem:[#allocation2 + $0x90] sm:$0xff] %vm269_vm0, %v3009_v0 }
  0x19   : > { %290 = vst.msk [vmem:[#allocation2 + $0x98] sm:$0xff] %vm269_vm0, %v3009_v0 }
  0x1a   : > { %292 = vst.msk [vmem:[#allocation2 + $0xa8] sm:$0xff] %vm269_vm0, %v3009_v0 }
  0x1b   : > { %293 = vst.msk [vmem:[#allocation2 + $0xb0] sm:$0xff] %vm269_vm0, %v3009_v0 }
  0x1c   : > { %295 = vst.msk [vmem:[#allocation2 + $0xc0] sm:$0xff] %vm269_vm0, %v3009_v0 }
  0x1d   : > { %296 = vst.msk [vmem:[#allocation2 + $0xc8] sm:$0xff] %vm269_vm0, %v3009_v0 }
  0x1e   : > { %298 = vst.msk [vmem:[#allocation2 + $0xd8] sm:$0xff] %vm269_vm0, %v3009_v0 }
  0x1f   : > { %299 = vst.msk [vmem:[#allocation2 + $0xe0] sm:$0xff] %vm269_vm0, %v3009_v0 }
  0x20   : > { %301 = vst.msk [vmem:[#allocation2 + $0xf0] sm:$0xff] %vm269_vm0, %v3009_v0 }
  0x21   : > { %302 = vst.msk [vmem:[#allocation2 + $0xf8] sm:$0xff] %vm269_vm0, %v3009_v0 }
  0x22   : > { %304 = vst.msk [vmem:[#allocation2 + $0x108] sm:$0xff] %vm269_vm0, %v3009_v0 }
  0x23   : > { %305 = vst.msk [vmem:[#allocation2 + $0x110] sm:$0xff] %vm269_vm0, %v3009_v0 }
  0x24   : > { %307 = vst.msk [vmem:[#allocation2 + $0x120] sm:$0xff] %vm269_vm0, %v3009_v0 }
  0x25   : > { %308 = vst.msk [vmem:[#allocation2 + $0x128] sm:$0xff] %vm269_vm0, %v3009_v0 }
  0x26   : > { %310 = vst.msk [vmem:[#allocation2 + $0x138] sm:$0xff] %vm269_vm0, %v3009_v0 }
  0x27   : > { %311 = vst.msk [vmem:[#allocation2 + $0x140] sm:$0xff] %vm269_vm0, %v3009_v0 }
  0x28   : > { %313 = vst.msk [vmem:[#allocation2 + $0x150] sm:$0xff] %vm269_vm0, %v3009_v0 }
  0x29   : > { %314 = vst.msk [vmem:[#allocation2 + $0x158] sm:$0xff] %vm269_vm0, %v3009_v0 }
  0x2a   : > { %316 = vst.msk [vmem:[#allocation2 + $0x168] sm:$0xff] %vm269_vm0, %v3009_v0 }
  0x2b   : > { %317 = vst.msk [vmem:[#allocation2 + $0x170] sm:$0xff] %vm269_vm0, %v3009_v0 }
  0x2c   : > { %319 = vst.msk [vmem:[#allocation2 + $0x180] sm:$0xff] %vm269_vm0, %v3009_v0 }
  0x2d   : > { %320 = vst.msk [vmem:[#allocation2 + $0x188] sm:$0xff] %vm269_vm0, %v3009_v0 }
  0x2e   : > { %322 = vst.msk [vmem:[#allocation2 + $0x198] sm:$0xff] %vm269_vm0, %v3009_v0 }
  0x2f   : > { %323 = vst.msk [vmem:[#allocation2 + $0x1a0] sm:$0xff] %vm269_vm0, %v3009_v0 }
  0x30   : > { %326 = vst.msk [vmem:[#allocation2 + $0x19] sm:$0xff] %vm269_vm0, %v237_v3 }
  0x31   : > { %273 = vst.msk [vmem:[#allocation2 + $0x10] sm:$0x3] %vm272_vm1, %v3009_v0 }
  0x32   : > { %276 = vst.msk [vmem:[#allocation2 + $0x28] sm:$0x3] %vm272_vm1, %v3009_v0 }
  0x33   : > { %279 = vst.msk [vmem:[#allocation2 + $0x40] sm:$0x3] %vm272_vm1, %v3009_v0 }
  0x34   : > { %282 = vst.msk [vmem:[#allocation2 + $0x58] sm:$0x3] %vm272_vm1, %v3009_v0 }
  0x35   : > { %285 = vst.msk [vmem:[#allocation2 + $0x70] sm:$0x3] %vm272_vm1, %v3009_v0 }
  0x36   : > { %288 = vst.msk [vmem:[#allocation2 + $0x88] sm:$0x3] %vm272_vm1, %v3009_v0 }
  0x37   : > { %v457_v4 = vld [vmem:[#allocation2 + $0x19] sm:$0xff]  ;;  %291 = vst.msk [vmem:[#allocation2 + $0xa0] sm:$0x3] %vm272_vm1, %v3009_v0 }
  0x38   : > { %v489_v5 = vpack.c.bf16 %v457_v4, %v457_v4  ;;  %v456_v6 = vld [vmem:[#allocation2 + $0x9] sm:$0xff]  ;;  %294 = vst.msk [vmem:[#allocation2 + $0xb8] sm:$0x3] %vm272_vm1, %v3009_v0 }
  0x39   : > { %v488_v7 = vpack.c.bf16 %v456_v6, %v456_v6  ;;  %297 = vst.msk [vmem:[#allocation2 + $0xd0] sm:$0x3] %vm272_vm1, %v3009_v0  ;;  %v261_v6 = vld [vmem:[%s3129_s22 + $0xc0] sm:$0xff] }
  0x3a   : > { %555 = vrot.lane.b32.xlu1 %v489_v5, %s3010_s2  ;;  %300 = vst.msk [vmem:[#allocation2 + $0xe8] sm:$0x3] %vm272_vm1, %v3009_v0 }
  0x3b   : > { %553 = vrot.lane.b32.xlu0 %v488_v7, %s3010_s2  ;;  %303 = vst.msk [vmem:[#allocation2 + $0x100] sm:$0x3] %vm272_vm1, %v3009_v0 }
  0x3c   : > { %306 = vst.msk [vmem:[#allocation2 + $0x118] sm:$0x3] %vm272_vm1, %v3009_v0 }
  0x3d   : > { %309 = vst.msk [vmem:[#allocation2 + $0x130] sm:$0x3] %vm272_vm1, %v3009_v0 }
  0x3e   : > { %312 = vst.msk [vmem:[#allocation2 + $0x148] sm:$0x3] %vm272_vm1, %v3009_v0 }
  0x3f   : > { %315 = vst.msk [vmem:[#allocation2 + $0x160] sm:$0x3] %vm272_vm1, %v3009_v0 }
  0x40   : > { %318 = vst.msk [vmem:[#allocation2 + $0x178] sm:$0x3] %vm272_vm1, %v3009_v0 }
  0x41   : > { %321 = vst.msk [vmem:[#allocation2 + $0x190] sm:$0x3] %vm272_vm1, %v3009_v0 }
  0x42   : > { %324 = vst.msk [vmem:[#allocation2 + $0x1a8] sm:$0x3] %vm272_vm1, %v3009_v0 }
  0x43   : > { %327 = vst.msk [vmem:[#allocation2 + $0x21] sm:$0xff] %vm269_vm0, %v238_v8 }
  0x44   : > { %330 = vst.msk [vmem:[#allocation2 + $0x49] sm:$0xff] %vm269_vm0, %v241_v9 }
  0x45   : > { %331 = vst.msk [vmem:[#allocation2 + $0x51] sm:$0xff] %vm269_vm0, %v242_v10 }
  0x46   : > { %333 = vst.msk [vmem:[#allocation2 + $0x69] sm:$0xff] %vm269_vm0, %v244_v11 }
  0x47   : > { %328 = vst.msk [vmem:[#allocation2 + $0x31] sm:$0xff] %vm269_vm0, %v239_v12 }
  0x48   : > { %334 = vst.msk [vmem:[#allocation2 + $0x79] sm:$0xff] %vm269_vm0, %v245_v13  ;;  %v264_v13 = vld [vmem:[%s3129_s22 + $0xd8] sm:$0xff] }
  0x49   : > { %336 = vst.msk [vmem:[#allocation2 + $0x91] sm:$0xff] %vm269_vm0, %v247_v14 }
  0x4a   : > { %v458_v18 = vld [vmem:[#allocation2 + $0x21] sm:$0xff]  ;;  %329 = vst.msk [vmem:[#allocation2 + $0x39] sm:$0xff] %vm269_vm0, %v240_v15 }
  0x4b   : > { %v490_v20 = vpack.c.bf16 %v458_v18, %v458_v18  ;;  %v461_v21 = vld [vmem:[#allocation2 + $0x49] sm:$0xff]  ;;  %337 = vst.msk [vmem:[#allocation2 + $0x99] sm:$0xff] %vm269_vm0, %v248_v16 }
  0x4c   : > { %v493_v23 = vpack.c.bf16 %v461_v21, %v461_v21  ;;  %339 = vst.msk [vmem:[#allocation2 + $0xb1] sm:$0xff] %vm269_vm0, %v250_v17  ;;  %v462_v26 = vld [vmem:[#allocation2 + $0x51] sm:$0xff] }
  0x4d   : > { %557 = vrot.lane.b32.xlu1 %v490_v20, %s3010_s2  ;;  %332 = vst.msk [vmem:[#allocation2 + $0x61] sm:$0xff] %vm269_vm0, %v243_v19  ;;  %v464_v29 = vld [vmem:[#allocation2 + $0x69] sm:$0xff]  ;;  %v494_v32 = vpack.c.bf16 %v462_v26, %v462_v26 }
  0x4e   : > { %563 = vrot.lane.b32.xlu0 %v493_v23, %s3010_s2  ;;  %v459_v27 = vld [vmem:[#allocation2 + $0x31] sm:$0xff]  ;;  %340 = vst.msk [vmem:[#allocation2 + $0xc1] sm:$0xff] %vm269_vm0, %v251_v22  ;;  %v496_v33 = vpack.c.bf16 %v464_v29, %v464_v29 }
  0x4f   : > { %v491_v30 = vpack.c.bf16 %v459_v27, %v459_v27  ;;  %342 = vst.msk [vmem:[#allocation2 + $0xd9] sm:$0xff] %vm269_vm0, %v253_v24  ;;  %v465_v39 = vld [vmem:[#allocation2 + $0x79] sm:$0xff]  ;;  %v681_v29 = vld [vmem:[#allocation2 + $0xa] sm:$0xff] }
  0x50   : > { %335 = vst.msk [vmem:[#allocation2 + $0x81] sm:$0xff] %vm269_vm0, %v246_v25  ;;  %v467_v40 = vld [vmem:[#allocation2 + $0x91] sm:$0xff]  ;;  %v497_v41 = vpack.c.bf16 %v465_v39, %v465_v39 }
  0x51   : > { %559 = vrot.lane.b32.xlu2 %v491_v30, %s3010_s2  ;;  %343 = vst.msk [vmem:[#allocation2 + $0xe1] sm:$0xff] %vm269_vm0, %v254_v28  ;;  %v460_v34 = vld [vmem:[#allocation2 + $0x39] sm:$0xff]  ;;  %v499_v42 = vpack.c.bf16 %v467_v40, %v467_v40  ;;  %v359_v40 = vld [vmem:[#allocation2 + $0x8] sm:$0xff] }
  0x52   : > { %345 = vst.msk [vmem:[#allocation2 + $0xf9] sm:$0xff] %vm269_vm0, %v256_v31  ;;  %v492_v38 = vpack.c.bf16 %v460_v34, %v460_v34  ;;  %v468_v48 = vld [vmem:[#allocation2 + $0x99] sm:$0xff] }
  0x53   : > { %338 = vst.msk [vmem:[#allocation2 + $0xa9] sm:$0xff] %vm269_vm0, %v249_v35  ;;  %v470_v49 = vld [vmem:[#allocation2 + $0xb1] sm:$0xff]  ;;  %v500_v50 = vpack.c.bf16 %v468_v48, %v468_v48  ;;  %v358_v28 = vld [vmem:[#allocation2] sm:$0xff] }
  0x54   : > { %346 = vst.msk [vmem:[#allocation2 + $0x109] sm:$0xff] %vm269_vm0, %v257_v36  ;;  %v463_v43 = vld [vmem:[#allocation2 + $0x61] sm:$0xff]  ;;  %v502_v51 = vpack.c.bf16 %v470_v49, %v470_v49  ;;  %v390_v31 = vpack.c.bf16 %v358_v28, %v358_v28  ;;  %v360_v36 = vld [vmem:[#allocation2 + $0x18] sm:$0xff] }
  0x55   : > { %565 = vrot.lane.b32.xlu1 %v494_v32, %s3010_s2  ;;  %348 = vst.msk [vmem:[#allocation2 + $0x121] sm:$0xff] %vm269_vm0, %v259_v37  ;;  %v495_v47 = vpack.c.bf16 %v463_v43, %v463_v43  ;;  %v471_v57 = vld [vmem:[#allocation2 + $0xc1] sm:$0xff]  ;;  %v3270_v39 = vpack.c.bf16 %v360_v36, %v360_v36  ;;  %v391_v43 = vpack.c.bf16 %v359_v40, %v359_v40 }
  0x56   : > { %569 = vrot.lane.b32.xlu0 %v496_v33, %s3010_s2  ;;  %341 = vst.msk [vmem:[#allocation2 + $0xc9] sm:$0xff] %vm269_vm0, %v252_v44  ;;  %v473_v58 = vld [vmem:[#allocation2 + $0xd9] sm:$0xff]  ;;  %v503_v59 = vpack.c.bf16 %v471_v57, %v471_v57  ;;  %v713_v33 = vpack.c.bf16 %v681_v29, %v681_v29 }
  0x57   : > { %349 = vst.msk [vmem:[#allocation2 + $0x129] sm:$0xff] %vm269_vm0, %v260_v45  ;;  %v466_v52 = vld [vmem:[#allocation2 + $0x81] sm:$0xff]  ;;  %v505_v60 = vpack.c.bf16 %v473_v58, %v473_v58 }
  0x58   : > { %351 = vst.msk [vmem:[#allocation2 + $0x141] sm:$0xff] %vm269_vm0, %v262_v46  ;;  %v498_v56 = vpack.c.bf16 %v466_v52, %v466_v52  ;;  %v474_v1 = vld [vmem:[#allocation2 + $0xe1] sm:$0xff] }
  0x59   : > { %561 = vrot.lane.b32.xlu2 %v492_v38, %s3010_s2  ;;  %344 = vst.msk [vmem:[#allocation2 + $0xf1] sm:$0xff] %vm269_vm0, %v255_v53  ;;  %v476_v2 = vld [vmem:[#allocation2 + $0xf9] sm:$0xff]  ;;  %v506_v3 = vpack.c.bf16 %v474_v1, %v474_v1  ;;  %v362_v38 = vld [vmem:[#allocation2 + $0x30] sm:$0xff]  ;;  %v680_v46 = vld [vmem:[#allocation2 + $0x2] sm:$0xff] }
  0x5a   : > { %352 = vst.msk [vmem:[#allocation2 + $0x151] sm:$0xff] %vm269_vm0, %v263_v54  ;;  %v469_v61 = vld [vmem:[#allocation2 + $0xa9] sm:$0xff]  ;;  %v508_v4 = vpack.c.bf16 %v476_v2, %v476_v2  ;;  %v682_v37 = vld [vmem:[#allocation2 + $0x1a] sm:$0xff]  ;;  %v687_v53 = vld [vmem:[#allocation2 + $0x52] sm:$0xff] }
  0x5b   : > { %354 = vst.msk [vmem:[#allocation2 + $0x169] sm:$0xff] %vm269_vm0, %v265_v55  ;;  %v501_v0 = vpack.c.bf16 %v469_v61, %v469_v61  ;;  %v477_v8 = vld [vmem:[#allocation2 + $0x109] sm:$0xff]  ;;  %v714_v44 = vpack.c.bf16 %v682_v37, %v682_v37  ;;  %v361_v48 = vld [vmem:[#allocation2 + $0x20] sm:$0xff]  ;;  %v719_v57 = vpack.c.bf16 %v687_v53, %v687_v53 }
  0x5c   : > { %347 = vst.msk [vmem:[#allocation2 + $0x111] sm:$0xff] %vm269_vm0, %v258_v62  ;;  %v479_v9 = vld [vmem:[#allocation2 + $0x121] sm:$0xff]  ;;  %v509_v10 = vpack.c.bf16 %v477_v8, %v477_v8  ;;  %v373_v28 = vld [vmem:[#allocation2 + $0xb0] sm:$0xff] }
  0x5d   : > { %571 = vrot.lane.b32.xlu1 %v497_v41, %s3010_s2  ;;  %355 = vst.msk [vmem:[#allocation2 + $0x171] sm:$0xff] %vm269_vm0, %v266_v63  ;;  %v472_v5 = vld [vmem:[#allocation2 + $0xc9] sm:$0xff]  ;;  %v511_v11 = vpack.c.bf16 %v479_v9, %v479_v9  ;;  %v684_v41 = vld [vmem:[#allocation2 + $0x32] sm:$0xff]  ;;  %v685_v49 = vld [vmem:[#allocation2 + $0x3a] sm:$0xff] }
  0x5e   : > { %575 = vrot.lane.b32.xlu0 %v499_v42, %s3010_s2  ;;  %350 = vst.msk [vmem:[#allocation2 + $0x139] sm:$0xff] %vm269_vm0, %v261_v6  ;;  %v504_v7 = vpack.c.bf16 %v472_v5, %v472_v5  ;;  %v480_v15 = vld [vmem:[#allocation2 + $0x129] sm:$0xff]  ;;  %v3272_v42 = vpack.c.bf16 %v362_v38, %v362_v38  ;;  %v716_v45 = vpack.c.bf16 %v684_v41, %v684_v41  ;;  %v366_v62 = vld [vmem:[#allocation2 + $0x60] sm:$0xff]  ;;  %v376_v41 = vld [vmem:[#allocation2 + $0xd8] sm:$0xff] }
  0x5f   : > { %353 = vst.msk [vmem:[#allocation2 + $0x159] sm:$0xff] %vm269_vm0, %v264_v13  ;;  %v482_v16 = vld [vmem:[#allocation2 + $0x141] sm:$0xff]  ;;  %v512_v17 = vpack.c.bf16 %v480_v15, %v480_v15  ;;  %v3299_v2 = vpack.c.bf16 %v366_v62, %v366_v62  ;;  %v686_v6 = vld [vmem:[#allocation2 + $0x4a] sm:$0xff] }
  0x60   : > { %v475_v12 = vld [vmem:[#allocation2 + $0xf1] sm:$0xff]  ;;  %v514_v18 = vpack.c.bf16 %v482_v16, %v482_v16  ;;  %423 = vst.msk [vmem:[#allocation3] sm:$0xf] %vm422_vm2, %v390_v31  ;;  %v364_v52 = vld [vmem:[#allocation2 + $0x48] sm:$0xff]  ;;  %v690_v1 = vld [vmem:[#allocation2 + $0x7a] sm:$0xff]  ;;  %v3337_v31 = vpack.c.bf16 %v373_v28, %v373_v28 }
  0x61   : > { %567 = vrot.lane.b32.xlu2 %v495_v47, %s3010_s2  ;;  %v507_v14 = vpack.c.bf16 %v475_v12, %v475_v12  ;;  %v483_v21 = vld [vmem:[#allocation2 + $0x151] sm:$0xff]  ;;  %425 = vst.msk [vmem:[#allocation3 + $0x8] sm:$0xf] %vm422_vm2, %v3270_v39  ;;  %v712_v47 = vpack.c.bf16 %v680_v46, %v680_v46  ;;  %v3286_v55 = vpack.c.bf16 %v364_v52, %v364_v52  ;;  %v683_v58 = vld [vmem:[#allocation2 + $0x22] sm:$0xff]  ;;  %v693_v16 = vld [vmem:[#allocation2 + $0x9a] sm:$0xff] }
  0x62   : > { %v485_v22 = vld [vmem:[#allocation2 + $0x169] sm:$0xff]  ;;  %v515_v23 = vpack.c.bf16 %v483_v21, %v483_v21  ;;  %427 = vst.msk [vmem:[#allocation3 + $0x10] sm:$0xf] %vm422_vm2, %v3272_v42  ;;  %v722_v5 = vpack.c.bf16 %v690_v1, %v690_v1  ;;  %v369_v13 = vld [vmem:[#allocation2 + $0x80] sm:$0xff]  ;;  %v695_v52 = vld [vmem:[#allocation2 + $0xb2] sm:$0xff] }
  0x63   : > { %v478_v19 = vld [vmem:[#allocation2 + $0x111] sm:$0xff]  ;;  %v517_v24 = vpack.c.bf16 %v485_v22, %v485_v22  ;;  %424 = vst.msk [vmem:[#allocation3 + $0x4] sm:$0xf] %vm422_vm2, %v391_v43  ;;  %v688_v61 = vld [vmem:[#allocation2 + $0x62] sm:$0xff]  ;;  %v701_v28 = vld [vmem:[#allocation2 + $0xfa] sm:$0xff] }
  0x64   : > { %v510_v20 = vpack.c.bf16 %v478_v19, %v478_v19  ;;  %v486_v27 = vld [vmem:[#allocation2 + $0x171] sm:$0xff]  ;;  %429 = vst.msk [vmem:[#allocation3 + $0x18] sm:$0xf] %vm422_vm2, %v3286_v55  ;;  %v691_v12 = vld [vmem:[#allocation2 + $0x82] sm:$0xff] }
  0x65   : > { %577 = vrot.lane.b32.xlu1 %v500_v50, %s3010_s2  ;;  %v481_v25 = vld [vmem:[#allocation2 + $0x139] sm:$0xff]  ;;  %v518_v32 = vpack.c.bf16 %v486_v27, %v486_v27  ;;  %431 = vst.msk [vmem:[#allocation3 + $0x20] sm:$0xf] %vm422_vm2, %v3299_v2  ;;  %v370_v15 = vld [vmem:[#allocation2 + $0x90] sm:$0xff]  ;;  %v723_v19 = vpack.c.bf16 %v691_v12, %v691_v12  ;;  %v696_v29 = vld [vmem:[#allocation2 + $0xc2] sm:$0xff] }
  0x66   : > { %581 = vrot.lane.b32.xlu0 %v502_v51, %s3010_s2  ;;  %v513_v26 = vpack.c.bf16 %v481_v25, %v481_v25  ;;  %v484_v34 = vld [vmem:[#allocation2 + $0x159] sm:$0xff]  ;;  %v3282_v51 = vpack.c.bf16 %v361_v48, %v361_v48  ;;  %v689_v21 = vld [vmem:[#allocation2 + $0x6a] sm:$0xff]  ;;  %438 = vst.msk [vmem:[#allocation3 + $0x3c] sm:$0xf] %vm422_vm2, %v3337_v31 }
  0x67   : > { %v516_v35 = vpack.c.bf16 %v484_v34, %v484_v34  ;;  %v363_v50 = vld [vmem:[#allocation2 + $0x38] sm:$0xff]  ;;  %v694_v25 = vld [vmem:[#allocation2 + $0xaa] sm:$0xff]  ;;  %v374_v37 = vld [vmem:[#allocation2 + $0xc0] sm:$0xff] }
  0x68   : > { %v3284_v54 = vpack.c.bf16 %v363_v50, %v363_v50  ;;  %426 = vst.msk [vmem:[#allocation3 + $0xc] sm:$0xf] %vm422_vm2, %v3282_v51  ;;  %v692_v34 = vld [vmem:[#allocation2 + $0x92] sm:$0xff]  ;;  %v697_v38 = vld [vmem:[#allocation2 + $0xca] sm:$0xff]  ;;  %v3354_v46 = vpack.c.bf16 %v374_v37, %v374_v37  ;;  %v385_v37 = vld [vmem:[#allocation2 + $0x140] sm:$0xff] }
  0x69   : > { %573 = vrot.lane.b32.xlu2 %v498_v56, %s3010_s2  ;;  %v717_v56 = vpack.c.bf16 %v685_v49, %v685_v49  ;;  %v3349_v36 = vpack.c.bf16 %v692_v34, %v692_v34  ;;  %v375_v40 = vld [vmem:[#allocation2 + $0xc8] sm:$0xff]  ;;  %v729_v48 = vpack.c.bf16 %v697_v38, %v697_v38  ;;  %v3360_v49 = vpack.c.bf16 %v376_v41, %v376_v41  ;;  %v703_v12 = vld [vmem:[#allocation2 + $0x112] sm:$0xff]  ;;  %v706_v34 = vld [vmem:[#allocation2 + $0x13a] sm:$0xff] }
  0x6a   : > { %428 = vst.msk [vmem:[#allocation3 + $0x14] sm:$0xf] %vm422_vm2, %v3284_v54  ;;  %v702_v62 = vld [vmem:[#allocation2 + $0x10a] sm:$0xff] }
  0x6b   : > { %439 = vst.msk [vmem:[#allocation3 + $0x40] sm:$0xf] %vm422_vm2, %v3354_v46 }
  0x6c   : > { %441 = vst.msk [vmem:[#allocation3 + $0x48] sm:$0xf] %vm422_vm2, %v3360_v49 }
  0x6d   : > { %583 = vrot.lane.b32.xlu1 %v503_v59, %s3010_s2  ;;  %v715_v59 = vpack.c.bf16 %v683_v58, %v683_v58  ;;  %v700_v58 = vld [vmem:[#allocation2 + $0xf2] sm:$0xff] }
  0x6e   : > { %587 = vrot.lane.b32.xlu0 %v505_v60, %s3010_s2  ;;  %v365_v60 = vld [vmem:[#allocation2 + $0x50] sm:$0xff] }
  0x6f   : > { %v3297_v63 = vpack.c.bf16 %v365_v60, %v365_v60  ;;  %v379_v60 = vld [vmem:[#allocation2 + $0xf8] sm:$0xff] }
  0x71   : > { %579 = vrot.lane.b32.xlu2 %v501_v0, %s3010_s2  ;;  %v367_v0 = vld [vmem:[#allocation2 + $0x68] sm:$0xff]  ;;  %430 = vst.msk [vmem:[#allocation3 + $0x1c] sm:$0xf] %vm422_vm2, %v3297_v63 }
  0x75   : > { %589 = vrot.lane.b32.xlu1 %v506_v3, %s3010_s2  ;;  %v3301_v3 = vpack.c.bf16 %v367_v0, %v367_v0 }
  0x76   : > { %593 = vrot.lane.b32.xlu0 %v508_v4, %s3010_s2  ;;  %v720_v4 = vpack.c.bf16 %v688_v61, %v688_v61 }
  0x77   : > { %432 = vst.msk [vmem:[#allocation3 + $0x24] sm:$0xf] %vm422_vm2, %v3301_v3 }
  0x79   : > { %585 = vrot.lane.b32.xlu2 %v504_v7, %s3010_s2 }
  0x7d   : > { %595 = vrot.lane.b32.xlu1 %v509_v10, %s3010_s2  ;;  %v718_v10 = vpack.c.bf16 %v686_v6, %v686_v6  ;;  %v3381_v6 = vpack.c.bf16 %v379_v60, %v379_v60  ;;  %v387_v60 = vld [vmem:[#allocation2 + $0x158] sm:$0xff] }
  0x7e   : > { %599 = vrot.lane.b32.xlu0 %v511_v11, %s3010_s2  ;;  %v368_v11 = vld [vmem:[#allocation2 + $0x78] sm:$0xff] }
  0x7f   : > { %444 = vst.msk [vmem:[#allocation3 + $0x54] sm:$0xf] %vm422_vm2, %v3381_v6 }
  0x81   : > { %591 = vrot.lane.b32.xlu2 %v507_v14, %s3010_s2  ;;  %v3315_v14 = vpack.c.bf16 %v368_v11, %v368_v11  ;;  %v380_v11 = vld [vmem:[#allocation2 + $0x108] sm:$0xff] }
  0x83   : > { %433 = vst.msk [vmem:[#allocation3 + $0x28] sm:$0xf] %vm422_vm2, %v3315_v14 }
  0x85   : > { %601 = vrot.lane.b32.xlu1 %v512_v17, %s3010_s2  ;;  %v3317_v17 = vpack.c.bf16 %v369_v13, %v369_v13  ;;  %v381_v13 = vld [vmem:[#allocation2 + $0x110] sm:$0xff] }
  0x86   : > { %605 = vrot.lane.b32.xlu0 %v514_v18, %s3010_s2  ;;  %v3319_v18 = vpack.c.bf16 %v370_v15, %v370_v15  ;;  %v382_v15 = vld [vmem:[#allocation2 + $0x120] sm:$0xff] }
  0x87   : > { %434 = vst.msk [vmem:[#allocation3 + $0x2c] sm:$0xf] %vm422_vm2, %v3317_v17 }
  0x88   : > { %435 = vst.msk [vmem:[#allocation3 + $0x30] sm:$0xf] %vm422_vm2, %v3319_v18 }
  0x89   : > { %597 = vrot.lane.b32.xlu2 %v510_v20, %s3010_s2  ;;  %v552_v30 = vpop.permute.xlu0 %551  ;;  %v725_v20 = vpack.c.bf16 %v693_v16, %v693_v16 }
  0x8a   : > { %648 = vst.msk [vmem:[#allocation3] sm:$0xf] %vm647_vm3, %v552_v30 }
  0x8d   : > { %607 = vrot.lane.b32.xlu1 %v515_v23, %s3010_s2  ;;  %v3330_v23 = vpack.c.bf16 %v689_v21, %v689_v21  ;;  %v3396_v21 = vpack.c.bf16 %v380_v11, %v380_v11 }
  0x8e   : > { %611 = vrot.lane.b32.xlu0 %v517_v24, %s3010_s2  ;;  %v371_v24 = vld [vmem:[#allocation2 + $0x98] sm:$0xff] }
  0x8f   : > { %v3333_v27 = vpack.c.bf16 %v371_v24, %v371_v24  ;;  %v735_v24 = vpack.c.bf16 %v703_v12, %v703_v12  ;;  %445 = vst.msk [vmem:[#allocation3 + $0x58] sm:$0xf] %vm422_vm2, %v3396_v21 }
  0x91   : > { %603 = vrot.lane.b32.xlu2 %v513_v26, %s3010_s2  ;;  %v372_v26 = vld [vmem:[#allocation2 + $0xa8] sm:$0xff]  ;;  %436 = vst.msk [vmem:[#allocation3 + $0x34] sm:$0xf] %vm422_vm2, %v3333_v27 }
  0x92   : > { %v3335_v30 = vpack.c.bf16 %v372_v26, %v372_v26 }
  0x94   : > { %437 = vst.msk [vmem:[#allocation3 + $0x38] sm:$0xf] %vm422_vm2, %v3335_v30 }
  0x95   : > { %613 = vrot.lane.b32.xlu1 %v518_v32, %s3010_s2  ;;  %v726_v32 = vpack.c.bf16 %v694_v25, %v694_v25  ;;  %v3402_v25 = vpack.c.bf16 %v382_v15, %v382_v15 }
  0x96   : > { %778 = vrot.lane.b32.xlu0 %v713_v33, %s3011_s23  ;;  %v728_v33 = vpack.c.bf16 %v696_v29, %v696_v29 }
  0x97   : > { %447 = vst.msk [vmem:[#allocation3 + $0x60] sm:$0xf] %vm422_vm2, %v3402_v25 }
  0x99   : > { %609 = vrot.lane.b32.xlu2 %v516_v35, %s3010_s2  ;;  %s235_s2 = scalar_lea.vmem %s4339_s5, %s2864_s15 }
  0x9d   : > { %780 = vrot.lane.b32.xlu1 %v714_v44, %s3011_s23  ;;  %v699_v44 = vld [vmem:[#allocation2 + $0xe2] sm:$0xff] }
  0x9e   : > { %784 = vrot.lane.b32.xlu0 %v716_v45, %s3011_s23  ;;  %v3352_v45 = vpack.c.bf16 %v375_v40, %v375_v40  ;;  %v731_v50 = vpack.c.bf16 %v699_v44, %v699_v44  ;;  %v708_v40 = vld [vmem:[#allocation2 + $0x152] sm:$0xff] }
  0xa0   : > { %440 = vst.msk [vmem:[#allocation3 + $0x44] sm:$0xf] %vm422_vm2, %v3352_v45 }
  0xa1   : > { %776 = vrot.lane.b32.xlu2 %v712_v47, %s3011_s23 }
  0xa5   : > { %786 = vrot.lane.b32.xlu1 %v717_v56, %s3011_s23  ;;  %v3368_v56 = vpack.c.bf16 %v695_v52, %v695_v52  ;;  %v704_v52 = vld [vmem:[#allocation2 + $0x122] sm:$0xff] }
  0xa6   : > { %790 = vrot.lane.b32.xlu0 %v719_v57, %s3011_s23  ;;  %v377_v57 = vld [vmem:[#allocation2 + $0xe0] sm:$0xff] }
  0xa7   : > { %v3375_v1 = vpack.c.bf16 %v377_v57, %v377_v57  ;;  %v3431_v57 = vpack.c.bf16 %v704_v52, %v704_v52 }
  0xa9   : > { %782 = vrot.lane.b32.xlu2 %v715_v59, %s3011_s23  ;;  %v378_v59 = vld [vmem:[#allocation2 + $0xf0] sm:$0xff]  ;;  %442 = vst.msk [vmem:[#allocation3 + $0x4c] sm:$0xf] %vm422_vm2, %v3375_v1 }
  0xaa   : > { %v3373_v0 = vpack.c.bf16 %v378_v59, %v378_v59  ;;  %v709_v59 = vld [vmem:[#allocation2 + $0x15a] sm:$0xff] }
  0xab   : > { %v560_v7 = vpop.permute.xlu2 %559 }
  0xac   : > { %652 = vst.msk [vmem:[#allocation3 + $0x10] sm:$0xf] %vm647_vm3, %v560_v7  ;;  %v556_v8 = vpop.permute.xlu1 %555  ;;  %v734_v7 = vpack.c.bf16 %v702_v62, %v702_v62 }
  0xad   : > { %792 = vrot.lane.b32.xlu1 %v720_v4, %s3011_s23  ;;  %650 = vst.msk [vmem:[#allocation3 + $0x8] sm:$0xf] %vm647_vm3, %v556_v8  ;;  %v554_v9 = vpop.permute.xlu0 %553  ;;  %v698_v8 = vld [vmem:[#allocation2 + $0xda] sm:$0xff] }
  0xae   : > { %796 = vrot.lane.b32.xlu0 %v722_v5, %s3011_s23  ;;  %649 = vst.msk [vmem:[#allocation3 + $0x4] sm:$0xf] %vm647_vm3, %v554_v9  ;;  %v732_v5 = vpack.c.bf16 %v700_v58, %v700_v58  ;;  %v386_v58 = vld [vmem:[#allocation2 + $0x150] sm:$0xff] }
  0xaf   : > { %443 = vst.msk [vmem:[#allocation3 + $0x50] sm:$0xf] %vm422_vm2, %v3373_v0 }
  0xb1   : > { %788 = vrot.lane.b32.xlu2 %v718_v10, %s3011_s23  ;;  %v3389_v10 = vpack.c.bf16 %v698_v8, %v698_v8 }
  0xb3   : > { %v562_v22 = vpop.permute.xlu2 %561 }
  0xb4   : > { %653 = vst.msk [vmem:[#allocation3 + $0x14] sm:$0xf] %vm647_vm3, %v562_v22 }
  0xb5   : > { %798 = vrot.lane.b32.xlu1 %v723_v19, %s3011_s23  ;;  %v705_v19 = vld [vmem:[#allocation2 + $0x12a] sm:$0xff] }
  0xb6   : > { %802 = vrot.lane.b32.xlu0 %v725_v20, %s3011_s23  ;;  %v3394_v20 = vpack.c.bf16 %v381_v13, %v381_v13  ;;  %v737_v26 = vpack.c.bf16 %v705_v19, %v705_v19  ;;  %v707_v13 = vld [vmem:[#allocation2 + $0x142] sm:$0xff]  ;;  %v389_v19 = vld [vmem:[#allocation2 + $0x170] sm:$0xff] }
  0xb8   : > { %446 = vst.msk [vmem:[#allocation3 + $0x5c] sm:$0xf] %vm422_vm2, %v3394_v20 }
  0xb9   : > { %794 = vrot.lane.b32.xlu2 %v3330_v23, %s3011_s23 }
  0xbb   : > { %v568_v35 = vpop.permute.xlu2 %567 }
  0xbc   : > { %656 = vst.msk [vmem:[#allocation3 + $0x20] sm:$0xf] %vm647_vm3, %v568_v35  ;;  %v384_v35 = vld [vmem:[#allocation2 + $0x138] sm:$0xff] }
  0xbd   : > { %804 = vrot.lane.b32.xlu1 %v726_v32, %s3011_s23  ;;  %v3410_v32 = vpack.c.bf16 %v701_v28, %v701_v28  ;;  %v3415_v41 = vpack.c.bf16 %v384_v35, %v384_v35  ;;  %v710_v28 = vld [vmem:[#allocation2 + $0x16a] sm:$0xff] }
  0xbe   : > { %808 = vrot.lane.b32.xlu0 %v728_v33, %s3011_s23  ;;  %v383_v33 = vld [vmem:[#allocation2 + $0x128] sm:$0xff] }
  0xbf   : > { %v558_v43 = vpop.permute.xlu1 %557  ;;  %449 = vst.msk [vmem:[#allocation3 + $0x68] sm:$0xf] %vm422_vm2, %v3415_v41 }
  0xc0   : > { %651 = vst.msk [vmem:[#allocation3 + $0xc] sm:$0xf] %vm647_vm3, %v558_v43  ;;  %v564_v47 = vpop.permute.xlu0 %563  ;;  %v3417_v43 = vpack.c.bf16 %v383_v33, %v383_v33  ;;  %v3468_v33 = vpack.c.bf16 %v710_v28, %v710_v28  ;;  %v1137_v28 = vld [vmem:[#allocation2 + $0x69] sm:$0xff] }
  0xc1   : > { %654 = vst.msk [vmem:[#allocation3 + $0x18] sm:$0xf] %vm647_vm3, %v564_v47  ;;  %800 = vrot.lane.b32.xlu2 %v3349_v36, %s3011_s23  ;;  %v738_v47 = vpack.c.bf16 %v706_v34, %v706_v34 }
  0xc2   : > { %448 = vst.msk [vmem:[#allocation3 + $0x64] sm:$0xf] %vm422_vm2, %v3417_v43 }
  0xc3   : > { %v574_v53 = vpop.permute.xlu2 %573 }
  0xc4   : > { %659 = vst.msk [vmem:[#allocation3 + $0x2c] sm:$0xf] %vm647_vm3, %v574_v53 }
  0xc5   : > { %810 = vrot.lane.b32.xlu1 %v729_v48, %s3011_s23  ;;  %v3423_v48 = vpack.c.bf16 %v385_v37, %v385_v37 }
  0xc6   : > { %814 = vrot.lane.b32.xlu0 %v731_v50, %s3011_s23  ;;  %v740_v50 = vpack.c.bf16 %v708_v40, %v708_v40  ;;  %v267_v40 = vld [vmem:[%s3129_s22 + $0xf0] sm:$0xff] }
  0xc7   : > { %v566_v61 = vpop.permute.xlu1 %565  ;;  %450 = vst.msk [vmem:[#allocation3 + $0x6c] sm:$0xf] %vm422_vm2, %v3423_v48 }
  0xc8   : > { %655 = vst.msk [vmem:[#allocation3 + $0x1c] sm:$0xf] %vm647_vm3, %v566_v61  ;;  %v570_v4 = vpop.permute.xlu0 %569  ;;  %v388_v61 = vld [vmem:[#allocation2 + $0x168] sm:$0xff] }
  0xc9   : > { %657 = vst.msk [vmem:[#allocation3 + $0x24] sm:$0xf] %vm647_vm3, %v570_v4  ;;  %806 = vrot.lane.b32.xlu2 %v3368_v56, %s3011_s23  ;;  %v711_v4 = vld [vmem:[#allocation2 + $0x172] sm:$0xff]  ;;  %v3444_v11 = vpack.c.bf16 %v388_v61, %v388_v61 }
  0xca   : > { %v743_v12 = vpack.c.bf16 %v711_v4, %v711_v4  ;;  %356 = vst.msk [vmem:[#allocation2 + $0x181] sm:$0xff] %vm269_vm0, %v267_v40  ;;  %v1133_v61 = vld [vmem:[#allocation2 + $0x39] sm:$0xff] }
  0xcb   : > { %v580_v9 = vpop.permute.xlu2 %579  ;;  %453 = vst.msk [vmem:[#allocation3 + $0x78] sm:$0xf] %vm422_vm2, %v3444_v11 }
  0xcc   : > { %662 = vst.msk [vmem:[#allocation3 + $0x38] sm:$0xf] %vm647_vm3, %v580_v9  ;;  %v741_v9 = vpack.c.bf16 %v709_v59, %v709_v59  ;;  %v1131_v59 = vld [vmem:[#allocation2 + $0x21] sm:$0xff] }
  0xcd   : > { %816 = vrot.lane.b32.xlu1 %v732_v5, %s3011_s23  ;;  %v3436_v5 = vpack.c.bf16 %v387_v60, %v387_v60  ;;  %v1163_v4 = vpack.c.bf16 %v1131_v59, %v1131_v59  ;;  %v1151_v59 = vld [vmem:[#allocation2 + $0x111] sm:$0xff] }
  0xce   : > { %820 = vrot.lane.b32.xlu0 %v734_v7, %s3011_s23  ;;  %v3438_v7 = vpack.c.bf16 %v386_v58, %v386_v58 }
  0xcf   : > { %v572_v16 = vpop.permute.xlu1 %571  ;;  %452 = vst.msk [vmem:[#allocation3 + $0x74] sm:$0xf] %vm422_vm2, %v3436_v5 }
  0xd0   : > { %658 = vst.msk [vmem:[#allocation3 + $0x28] sm:$0xf] %vm647_vm3, %v572_v16  ;;  %v576_v22 = vpop.permute.xlu0 %575  ;;  %v3452_v16 = vpack.c.bf16 %v707_v13, %v707_v13  ;;  %v1136_v13 = vld [vmem:[#allocation2 + $0x61] sm:$0xff] }
  0xd1   : > { %660 = vst.msk [vmem:[#allocation3 + $0x30] sm:$0xf] %vm647_vm3, %v576_v22  ;;  %812 = vrot.lane.b32.xlu2 %v3389_v10, %s3011_s23  ;;  %v3457_v22 = vpack.c.bf16 %v389_v19, %v389_v19  ;;  %v3579_v19 = vpack.c.bf16 %v1136_v13, %v1136_v13 }
  0xd2   : > { %451 = vst.msk [vmem:[#allocation3 + $0x70] sm:$0xf] %vm422_vm2, %v3438_v7 }
  0xd3   : > { %v586_v29 = vpop.permute.xlu2 %585  ;;  %454 = vst.msk [vmem:[#allocation3 + $0x7c] sm:$0xf] %vm422_vm2, %v3457_v22 }
  0xd4   : > { %665 = vst.msk [vmem:[#allocation3 + $0x44] sm:$0xf] %vm647_vm3, %v586_v29 }
  0xd5   : > { %822 = vrot.lane.b32.xlu1 %v735_v24, %s3011_s23 }
  0xd6   : > { %826 = vrot.lane.b32.xlu0 %v737_v26, %s3011_s23 }
  0xd7   : > { %v578_v38 = vpop.permute.xlu1 %577 }
  0xd8   : > { %661 = vst.msk [vmem:[#allocation3 + $0x34] sm:$0xf] %vm647_vm3, %v578_v38  ;;  %v582_v44 = vpop.permute.xlu0 %581 }
  0xd9   : > { %663 = vst.msk [vmem:[#allocation3 + $0x3c] sm:$0xf] %vm647_vm3, %v582_v44  ;;  %818 = vrot.lane.b32.xlu2 %v3410_v32, %s3011_s23  ;;  %v268_v44 = vld [vmem:[%s3129_s22 + $0xf8] sm:$0xff] }
  0xda   : > { %357 = vst.msk [vmem:[#allocation2 + $0x189] sm:$0xff] %vm269_vm0, %v268_v44 }
  0xdb   : > { %v592_v53 = vpop.permute.xlu2 %591 }
  0xdc   : > { %668 = vst.msk [vmem:[#allocation3 + $0x50] sm:$0xf] %vm647_vm3, %v592_v53 }
  0xdd   : > { %828 = vrot.lane.b32.xlu1 %v738_v47, %s3011_s23 }
  0xde   : > { %832 = vrot.lane.b32.xlu0 %v740_v50, %s3011_s23  ;;  %v1130_v50 = vld [vmem:[#allocation2 + $0x19] sm:$0xff] }
  0xdf   : > { %v584_v62 = vpop.permute.xlu1 %583 }
  0xe0   : > { %664 = vst.msk [vmem:[#allocation3 + $0x40] sm:$0xf] %vm647_vm3, %v584_v62  ;;  %v588_v8 = vpop.permute.xlu0 %587 }
  0xe1   : > { %666 = vst.msk [vmem:[#allocation3 + $0x48] sm:$0xf] %vm647_vm3, %v588_v8  ;;  %824 = vrot.lane.b32.xlu2 %v3431_v57, %s3011_s23 }
  0xe3   : > { %v598_v15 = vpop.permute.xlu2 %597 }
  0xe4   : > { %671 = vst.msk [vmem:[#allocation3 + $0x5c] sm:$0xf] %vm647_vm3, %v598_v15 }
  0xe5   : > { %834 = vrot.lane.b32.xlu1 %v741_v9, %s3011_s23  ;;  %v1134_v9 = vld [vmem:[#allocation2 + $0x49] sm:$0xff] }
  0xe6   : > { %838 = vrot.lane.b32.xlu0 %v743_v12, %s3011_s23 }
  0xe7   : > { %v590_v24 = vpop.permute.xlu1 %589 }
  0xe8   : > { %667 = vst.msk [vmem:[#allocation3 + $0x4c] sm:$0xf] %vm647_vm3, %v590_v24  ;;  %v594_v26 = vpop.permute.xlu0 %593 }
  0xe9   : > { %669 = vst.msk [vmem:[#allocation3 + $0x54] sm:$0xf] %vm647_vm3, %v594_v26  ;;  %830 = vrot.lane.b32.xlu2 %v3452_v16, %s3011_s23 }
  0xeb   : > { %v604_v29 = vpop.permute.xlu2 %603 }
  0xec   : > { %674 = vst.msk [vmem:[#allocation3 + $0x68] sm:$0xf] %vm647_vm3, %v604_v29 }
  0xed   : > { %1001 = vrot.lane.b32.xlu1 %v3270_v39, %s3012_s24 }
  0xee   : > { %1005 = vrot.lane.b32.xlu0 %v3272_v42, %s3012_s24 }
  0xef   : > { %v596_v34 = vpop.permute.xlu1 %595 }
  0xf0   : > { %670 = vst.msk [vmem:[#allocation3 + $0x58] sm:$0xf] %vm647_vm3, %v596_v34  ;;  %v600_v35 = vpop.permute.xlu0 %599  ;;  %v1139_v34 = vld [vmem:[#allocation2 + $0x81] sm:$0xff] }
  0xf1   : > { %672 = vst.msk [vmem:[#allocation3 + $0x60] sm:$0xf] %vm647_vm3, %v600_v35  ;;  %836 = vrot.lane.b32.xlu2 %v3468_v33, %s3011_s23 }
  0xf3   : > { %v610_v37 = vpop.permute.xlu2 %609 }
  0xf4   : > { %677 = vst.msk [vmem:[#allocation3 + $0x74] sm:$0xf] %vm647_vm3, %v610_v37  ;;  %v3590_v37 = vpack.c.bf16 %v1137_v28, %v1137_v28 }
  0xf5   : > { %1007 = vrot.lane.b32.xlu1 %v3284_v54, %s3012_s24 }
  0xf6   : > { %1011 = vrot.lane.b32.xlu0 %v3297_v63, %s3012_s24 }
  0xf7   : > { %v602_v39 = vpop.permute.xlu1 %601 }
  0xf8   : > { %673 = vst.msk [vmem:[#allocation3 + $0x64] sm:$0xf] %vm647_vm3, %v602_v39  ;;  %v606_v42 = vpop.permute.xlu0 %605  ;;  %v1171_v39 = vpack.c.bf16 %v1139_v34, %v1139_v34  ;;  %v1155_v34 = vld [vmem:[#allocation2 + $0x141] sm:$0xff] }
  0xf9   : > { %675 = vst.msk [vmem:[#allocation3 + $0x6c] sm:$0xf] %vm647_vm3, %v606_v42  ;;  %1003 = vrot.lane.b32.xlu2 %v3282_v51, %s3012_s24  ;;  %v1135_v42 = vld [vmem:[#allocation2 + $0x51] sm:$0xff] }
  0xfb   : > { %v777_v38 = vpop.permute.xlu2 %776 }
  0xfc   : > { %873 = vst.msk [vmem:[#allocation3] sm:$0xf] %vm872_vm4, %v777_v38 }
  0xfd   : > { %1013 = vrot.lane.b32.xlu1 %v3299_v2, %s3012_s24 }
  0xfe   : > { %1017 = vrot.lane.b32.xlu0 %v3315_v14, %s3012_s24 }
  0xff   : > { %v608_v54 = vpop.permute.xlu1 %607 }
 0x100   : > { %676 = vst.msk [vmem:[#allocation3 + $0x70] sm:$0xf] %vm647_vm3, %v608_v54  ;;  %v612_v63 = vpop.permute.xlu0 %611  ;;  %v3597_v54 = vpack.c.bf16 %v1135_v42, %v1135_v42 }
 0x101   : > { %678 = vst.msk [vmem:[#allocation3 + $0x78] sm:$0xf] %vm647_vm3, %v612_v63  ;;  %1009 = vrot.lane.b32.xlu2 %v3286_v55, %s3012_s24  ;;  %v1140_v63 = vld [vmem:[#allocation2 + $0x91] sm:$0xff] }
 0x103   : > { %v783_v51 = vpop.permute.xlu2 %782 }
 0x104   : > { %876 = vst.msk [vmem:[#allocation3 + $0xc] sm:$0xf] %vm872_vm4, %v783_v51 }
 0x105   : > { %1019 = vrot.lane.b32.xlu1 %v3317_v17, %s3012_s24 }
 0x106   : > { %1023 = vrot.lane.b32.xlu0 %v3333_v27, %s3012_s24 }
 0x107   : > { %v614_v2 = vpop.permute.xlu1 %613 }
 0x108   : > { %679 = vst.msk [vmem:[#allocation3 + $0x7c] sm:$0xf] %vm647_vm3, %v614_v2  ;;  %v779_v14 = vpop.permute.xlu0 %778  ;;  %v1142_v2 = vld [vmem:[#allocation2 + $0xa9] sm:$0xff] }
 0x109   : > { %874 = vst.msk [vmem:[#allocation3 + $0x4] sm:$0xf] %vm872_vm4, %v779_v14  ;;  %1015 = vrot.lane.b32.xlu2 %v3301_v3, %s3012_s24 }
 0x10b   : > { %v789_v55 = vpop.permute.xlu2 %788 }
 0x10c   : > { %879 = vst.msk [vmem:[#allocation3 + $0x18] sm:$0xf] %vm872_vm4, %v789_v55  ;;  %v3602_v55 = vpack.c.bf16 %v1140_v63, %v1140_v63 }
 0x10d   : > { %1025 = vrot.lane.b32.xlu1 %v3335_v30, %s3012_s24 }
 0x10e   : > { %1029 = vrot.lane.b32.xlu0 %v3354_v46, %s3012_s24 }
 0x10f   : > { %v781_v17 = vpop.permute.xlu1 %780 }
 0x110   : > { %875 = vst.msk [vmem:[#allocation3 + $0x8] sm:$0xf] %vm872_vm4, %v781_v17  ;;  %v785_v27 = vpop.permute.xlu0 %784  ;;  %v3606_v17 = vpack.c.bf16 %v1142_v2, %v1142_v2 }
 0x111   : > { %877 = vst.msk [vmem:[#allocation3 + $0x10] sm:$0xf] %vm872_vm4, %v785_v27  ;;  %1021 = vrot.lane.b32.xlu2 %v3319_v18, %s3012_s24  ;;  %v1138_v27 = vld [vmem:[#allocation2 + $0x79] sm:$0xff] }
 0x113   : > { %v795_v3 = vpop.permute.xlu2 %794 }
 0x114   : > { %882 = vst.msk [vmem:[#allocation3 + $0x24] sm:$0xf] %vm872_vm4, %v795_v3  ;;  %v1170_v3 = vpack.c.bf16 %v1138_v27, %v1138_v27  ;;  %v1158_v27 = vld [vmem:[#allocation2 + $0x169] sm:$0xff] }
 0x115   : > { %1031 = vrot.lane.b32.xlu1 %v3352_v45, %s3012_s24 }
 0x116   : > { %1035 = vrot.lane.b32.xlu0 %v3375_v1, %s3012_s24 }
 0x117   : > { %v787_v30 = vpop.permute.xlu1 %786 }
 0x118   : > { %878 = vst.msk [vmem:[#allocation3 + $0x14] sm:$0xf] %vm872_vm4, %v787_v30  ;;  %v791_v46 = vpop.permute.xlu0 %790  ;;  %v1143_v30 = vld [vmem:[#allocation2 + $0xb1] sm:$0xff] }
 0x119   : > { %880 = vst.msk [vmem:[#allocation3 + $0x1c] sm:$0xf] %vm872_vm4, %v791_v46  ;;  %1027 = vrot.lane.b32.xlu2 %v3337_v31, %s3012_s24 }
 0x11b   : > { %v801_v18 = vpop.permute.xlu2 %800 }
 0x11c   : > { %885 = vst.msk [vmem:[#allocation3 + $0x30] sm:$0xf] %vm872_vm4, %v801_v18  ;;  %v1145_v18 = vld [vmem:[#allocation2 + $0xc9] sm:$0xff] }
 0x11d   : > { %1037 = vrot.lane.b32.xlu1 %v3373_v0, %s3012_s24 }
 0x11e   : > { %1041 = vrot.lane.b32.xlu0 %v3396_v21, %s3012_s24 }
 0x11f   : > { %v793_v45 = vpop.permute.xlu1 %792 }
 0x120   : > { %881 = vst.msk [vmem:[#allocation3 + $0x20] sm:$0xf] %vm872_vm4, %v793_v45  ;;  %v797_v1 = vpop.permute.xlu0 %796 }
 0x121   : > { %883 = vst.msk [vmem:[#allocation3 + $0x28] sm:$0xf] %vm872_vm4, %v797_v1  ;;  %1033 = vrot.lane.b32.xlu2 %v3360_v49, %s3012_s24  ;;  %v3615_v1 = vpack.c.bf16 %v1143_v30, %v1143_v30 }
 0x123   : > { %v807_v31 = vpop.permute.xlu2 %806 }
 0x124   : > { %888 = vst.msk [vmem:[#allocation3 + $0x3c] sm:$0xf] %vm872_vm4, %v807_v31  ;;  %v1177_v31 = vpack.c.bf16 %v1145_v18, %v1145_v18 }
 0x125   : > { %1043 = vrot.lane.b32.xlu1 %v3394_v20, %s3012_s24 }
 0x126   : > { %1047 = vrot.lane.b32.xlu0 %v3417_v43, %s3012_s24 }
 0x127   : > { %v799_v0 = vpop.permute.xlu1 %798 }
 0x128   : > { %884 = vst.msk [vmem:[#allocation3 + $0x2c] sm:$0xf] %vm872_vm4, %v799_v0  ;;  %v803_v21 = vpop.permute.xlu0 %802  ;;  %v1141_v0 = vld [vmem:[#allocation2 + $0x99] sm:$0xff] }
 0x129   : > { %886 = vst.msk [vmem:[#allocation3 + $0x34] sm:$0xf] %vm872_vm4, %v803_v21  ;;  %1039 = vrot.lane.b32.xlu2 %v3381_v6, %s3012_s24  ;;  %v3621_v44 = vpack.c.bf16 %v1141_v0, %v1141_v0 }
 0x12b   : > { %v813_v49 = vpop.permute.xlu2 %812 }
 0x12c   : > { %891 = vst.msk [vmem:[#allocation3 + $0x48] sm:$0xf] %vm872_vm4, %v813_v49  ;;  %v1146_v49 = vld [vmem:[#allocation2 + $0xd9] sm:$0xff] }
 0x12d   : > { %1049 = vrot.lane.b32.xlu1 %v3415_v41, %s3012_s24  ;;  %v935_v41 = vld [vmem:[#allocation2 + $0x180] sm:$0xff] }
 0x12e   : > { %1053 = vrot.lane.b32.xlu0 %v3438_v7, %s3012_s24  ;;  %v967_v53 = vpack.c.bf16 %v935_v41, %v935_v41  ;;  %v1178_v41 = vpack.c.bf16 %v1146_v49, %v1146_v49 }
 0x12f   : > { %v805_v20 = vpop.permute.xlu1 %804 }
 0x130   : > { %887 = vst.msk [vmem:[#allocation3 + $0x38] sm:$0xf] %vm872_vm4, %v805_v20  ;;  %v809_v43 = vpop.permute.xlu0 %808 }
 0x131   : > { %889 = vst.msk [vmem:[#allocation3 + $0x40] sm:$0xf] %vm872_vm4, %v809_v43  ;;  %1045 = vrot.lane.b32.xlu2 %v3402_v25, %s3012_s24  ;;  %v1162_v25 = vpack.c.bf16 %v1130_v50, %v1130_v50  ;;  %v1148_v43 = vld [vmem:[#allocation2 + $0xf1] sm:$0xff]  ;;  %v1144_v50 = vld [vmem:[#allocation2 + $0xc1] sm:$0xff] }
 0x133   : > { %v819_v6 = vpop.permute.xlu2 %818 }
 0x134   : > { %894 = vst.msk [vmem:[#allocation3 + $0x54] sm:$0xf] %vm872_vm4, %v819_v6 }
 0x135   : > { %1055 = vrot.lane.b32.xlu1 %v3436_v5, %s3012_s24  ;;  %v936_v5 = vld [vmem:[#allocation2 + $0x188] sm:$0xff] }
 0x136   : > { %1059 = vrot.lane.b32.xlu0 %v3457_v22, %s3012_s24  ;;  %v968_v8 = vpack.c.bf16 %v936_v5, %v936_v5  ;;  %v1132_v22 = vld [vmem:[#allocation2 + $0x31] sm:$0xff] }
 0x137   : > { %v811_v47 = vpop.permute.xlu1 %810  ;;  %v3584_v26 = vpack.c.bf16 %v1132_v22, %v1132_v22 }
 0x138   : > { %890 = vst.msk [vmem:[#allocation3 + $0x44] sm:$0xf] %vm872_vm4, %v811_v47  ;;  %v815_v52 = vpop.permute.xlu0 %814  ;;  %v3628_v47 = vpack.c.bf16 %v1148_v43, %v1148_v43 }
 0x139   : > { %892 = vst.msk [vmem:[#allocation3 + $0x4c] sm:$0xf] %vm872_vm4, %v815_v52  ;;  %1051 = vrot.lane.b32.xlu2 %v3423_v48, %s3012_s24  ;;  %v3568_v48 = vpack.c.bf16 %v1133_v61, %v1133_v61 }
 0x13b   : > { %v825_v58 = vpop.permute.xlu2 %824 }
 0x13c   : > { %897 = vst.msk [vmem:[#allocation3 + $0x60] sm:$0xf] %vm872_vm4, %v825_v58 }
 0x13d   : > { %1061 = vrot.lane.b32.xlu1 %v967_v53, %s3012_s24  ;;  %v3632_v53 = vpack.c.bf16 %v1144_v50, %v1144_v50  ;;  %v1159_v50 = vld [vmem:[#allocation2 + $0x171] sm:$0xff] }
 0x13e   : > { %1226 = vrot.lane.b32.xlu0 %v1162_v25, %s3013_s25  ;;  %v1149_v25 = vld [vmem:[#allocation2 + $0xf9] sm:$0xff] }
 0x13f   : > { %v817_v60 = vpop.permute.xlu1 %816  ;;  %v3638_v61 = vpack.c.bf16 %v1149_v25, %v1149_v25  ;;  %v1191_v25 = vpack.c.bf16 %v1159_v50, %v1159_v50 }
 0x140   : > { %893 = vst.msk [vmem:[#allocation3 + $0x50] sm:$0xf] %vm872_vm4, %v817_v60  ;;  %v821_v62 = vpop.permute.xlu0 %820 }
 0x141   : > { %895 = vst.msk [vmem:[#allocation3 + $0x58] sm:$0xf] %vm872_vm4, %v821_v62  ;;  %1057 = vrot.lane.b32.xlu2 %v3444_v11, %s3012_s24  ;;  %v3576_v11 = vpack.c.bf16 %v1134_v9, %v1134_v9  ;;  %v3642_v62 = vpack.c.bf16 %v1151_v59, %v1151_v59 }
 0x143   : > { %v831_v7 = vpop.permute.xlu2 %830 }
 0x144   : > { %900 = vst.msk [vmem:[#allocation3 + $0x6c] sm:$0xf] %vm872_vm4, %v831_v7 }
 0x145   : > { %1228 = vrot.lane.b32.xlu1 %v1163_v4, %s3013_s25  ;;  %v1147_v4 = vld [vmem:[#allocation2 + $0xe1] sm:$0xff] }
 0x146   : > { %1232 = vrot.lane.b32.xlu0 %v3568_v48, %s3013_s25  ;;  %v1179_v7 = vpack.c.bf16 %v1147_v4, %v1147_v4 }
 0x147   : > { %v823_v12 = vpop.permute.xlu1 %822 }
 0x148   : > { %896 = vst.msk [vmem:[#allocation3 + $0x5c] sm:$0xf] %vm872_vm4, %v823_v12  ;;  %v827_v15 = vpop.permute.xlu0 %826  ;;  %v1154_v12 = vld [vmem:[#allocation2 + $0x139] sm:$0xff] }
 0x149   : > { %898 = vst.msk [vmem:[#allocation3 + $0x64] sm:$0xf] %vm872_vm4, %v827_v15  ;;  %1063 = vrot.lane.b32.xlu2 %v968_v8, %s3012_s24  ;;  %v1152_v8 = vld [vmem:[#allocation2 + $0x121] sm:$0xff]  ;;  %v1186_v22 = vpack.c.bf16 %v1154_v12, %v1154_v12 }
 0x14a   : > { %v1184_v15 = vpack.c.bf16 %v1152_v8, %v1152_v8  ;;  %v1355_v8 = vld [vmem:[#allocation2 + $0x1a] sm:$0xff] }
 0x14b   : > { %v837_v24 = vpop.permute.xlu2 %836  ;;  %v1387_v12 = vpack.c.bf16 %v1355_v8, %v1355_v8 }
 0x14c   : > { %903 = vst.msk [vmem:[#allocation3 + $0x78] sm:$0xf] %vm872_vm4, %v837_v24  ;;  %v1150_v24 = vld [vmem:[#allocation2 + $0x109] sm:$0xff] }
 0x14d   : > { %1234 = vrot.lane.b32.xlu1 %v3576_v11, %s3013_s25 }
 0x14e   : > { %1238 = vrot.lane.b32.xlu0 %v3579_v19, %s3013_s25 }
 0x14f   : > { %v829_v29 = vpop.permute.xlu1 %828 }
 0x150   : > { %899 = vst.msk [vmem:[#allocation3 + $0x68] sm:$0xf] %vm872_vm4, %v829_v29  ;;  %v833_v35 = vpop.permute.xlu0 %832  ;;  %v3654_v29 = vpack.c.bf16 %v1150_v24, %v1150_v24 }
 0x151   : > { %901 = vst.msk [vmem:[#allocation3 + $0x70] sm:$0xf] %vm872_vm4, %v833_v35  ;;  %1230 = vrot.lane.b32.xlu2 %v3584_v26, %s3013_s25 }
 0x153   : > { %v1004_v38 = vpop.permute.xlu2 %1003 }
 0x154   : > { %1099 = vst.msk [vmem:[#allocation3 + $0x4] sm:$0xf] %vm1097_vm5, %v1004_v38  ;;  %v1187_v38 = vpack.c.bf16 %v1155_v34, %v1155_v34 }
 0x155   : > { %1240 = vrot.lane.b32.xlu1 %v3590_v37, %s3013_s25 }
 0x156   : > { %1244 = vrot.lane.b32.xlu0 %v1171_v39, %s3013_s25  ;;  %v1157_v39 = vld [vmem:[#allocation2 + $0x159] sm:$0xff] }
 0x157   : > { %v835_v51 = vpop.permute.xlu1 %834  ;;  %v3661_v63 = vpack.c.bf16 %v1157_v39, %v1157_v39  ;;  %v1363_v39 = vld [vmem:[#allocation2 + $0x7a] sm:$0xff] }
 0x158   : > { %902 = vst.msk [vmem:[#allocation3 + $0x74] sm:$0xf] %vm872_vm4, %v835_v51  ;;  %v839_v14 = vpop.permute.xlu0 %838  ;;  %v1153_v51 = vld [vmem:[#allocation2 + $0x129] sm:$0xff] }
 0x159   : > { %904 = vst.msk [vmem:[#allocation3 + $0x7c] sm:$0xf] %vm872_vm4, %v839_v14  ;;  %1236 = vrot.lane.b32.xlu2 %v3597_v54, %s3013_s25  ;;  %v3665_v14 = vpack.c.bf16 %v1153_v51, %v1153_v51  ;;  %v3711_v51 = vpack.c.bf16 %v1363_v39, %v1363_v39  ;;  %v1376_v39 = vld [vmem:[#allocation2 + $0x112] sm:$0xff] }
 0x15b   : > { %v1010_v40 = vpop.permute.xlu2 %1009 }
 0x15c   : > { %1102 = vst.msk [vmem:[#allocation3 + $0x10] sm:$0xf] %vm1097_vm5, %v1010_v40 }
 0x15d   : > { %1246 = vrot.lane.b32.xlu1 %v3602_v55, %s3013_s25 }
 0x15e   : > { %1250 = vrot.lane.b32.xlu0 %v3606_v17, %s3013_s25 }
 0x15f   : > { %v1002_v46 = vpop.permute.xlu1 %1001 }
 0x160   : > { %1098 = vst.msk [vmem:[#allocation3] sm:$0xf] %vm1097_vm5, %v1002_v46  ;;  %v1006_v45 = vpop.permute.xlu0 %1005  ;;  %v1190_v46 = vpack.c.bf16 %v1158_v27, %v1158_v27 }
 0x161   : > { %1100 = vst.msk [vmem:[#allocation3 + $0x8] sm:$0xf] %vm1097_vm5, %v1006_v45  ;;  %1242 = vrot.lane.b32.xlu2 %v1170_v3, %s3013_s25  ;;  %v1160_v3 = vld [vmem:[#allocation2 + $0x181] sm:$0xff]  ;;  %v1156_v45 = vld [vmem:[#allocation2 + $0x151] sm:$0xff] }
 0x162   : > { %v1192_v18 = vpack.c.bf16 %v1160_v3, %v1160_v3  ;;  %v3675_v0 = vpack.c.bf16 %v1156_v45, %v1156_v45 }
 0x163   : > { %v1016_v21 = vpop.permute.xlu2 %1015 }
 0x164   : > { %1105 = vst.msk [vmem:[#allocation3 + $0x1c] sm:$0xf] %vm1097_vm5, %v1016_v21  ;;  %v1161_v21 = vld [vmem:[#allocation2 + $0x189] sm:$0xff] }
 0x165   : > { %1252 = vrot.lane.b32.xlu1 %v3615_v1, %s3013_s25 }
 0x166   : > { %1256 = vrot.lane.b32.xlu0 %v1177_v31, %s3013_s25 }
 0x167   : > { %v1008_v20 = vpop.permute.xlu1 %1007 }
 0x168   : > { %1101 = vst.msk [vmem:[#allocation3 + $0xc] sm:$0xf] %vm1097_vm5, %v1008_v20  ;;  %v1012_v6 = vpop.permute.xlu0 %1011  ;;  %v1356_v20 = vld [vmem:[#allocation2 + $0x22] sm:$0xff] }
 0x169   : > { %1103 = vst.msk [vmem:[#allocation3 + $0x14] sm:$0xf] %vm1097_vm5, %v1012_v6  ;;  %1248 = vrot.lane.b32.xlu2 %v3621_v44, %s3013_s25  ;;  %v1193_v6 = vpack.c.bf16 %v1161_v21, %v1161_v21 }
 0x16b   : > { %v1022_v52 = vpop.permute.xlu2 %1021 }
 0x16c   : > { %1108 = vst.msk [vmem:[#allocation3 + $0x28] sm:$0xf] %vm1097_vm5, %v1022_v52 }
 0x16d   : > { %1258 = vrot.lane.b32.xlu1 %v1178_v41, %s3013_s25  ;;  %v1388_v41 = vpack.c.bf16 %v1356_v20, %v1356_v20 }
 0x16e   : > { %1262 = vrot.lane.b32.xlu0 %v3628_v47, %s3013_s25 }
 0x16f   : > { %v1014_v58 = vpop.permute.xlu1 %1013 }
 0x170   : > { %1104 = vst.msk [vmem:[#allocation3 + $0x18] sm:$0xf] %vm1097_vm5, %v1014_v58  ;;  %v1018_v60 = vpop.permute.xlu0 %1017  ;;  %v1357_v58 = vld [vmem:[#allocation2 + $0x32] sm:$0xff] }
 0x171   : > { %1106 = vst.msk [vmem:[#allocation3 + $0x20] sm:$0xf] %vm1097_vm5, %v1018_v60  ;;  %1254 = vrot.lane.b32.xlu2 %v3632_v53, %s3013_s25  ;;  %v1359_v60 = vld [vmem:[#allocation2 + $0x4a] sm:$0xff] }
 0x173   : > { %v1028_v5 = vpop.permute.xlu2 %1027 }
 0x174   : > { %1111 = vst.msk [vmem:[#allocation3 + $0x34] sm:$0xf] %vm1097_vm5, %v1028_v5  ;;  %v3687_v5 = vpack.c.bf16 %v1357_v58, %v1357_v58  ;;  %v1370_v58 = vld [vmem:[#allocation2 + $0xca] sm:$0xff] }
 0x175   : > { %1264 = vrot.lane.b32.xlu1 %v3638_v61, %s3013_s25 }
 0x176   : > { %1268 = vrot.lane.b32.xlu0 %v3642_v62, %s3013_s25 }
 0x177   : > { %v1020_v9 = vpop.permute.xlu1 %1019 }
 0x178   : > { %1107 = vst.msk [vmem:[#allocation3 + $0x24] sm:$0xf] %vm1097_vm5, %v1020_v9  ;;  %v1024_v13 = vpop.permute.xlu0 %1023 }
 0x179   : > { %1109 = vst.msk [vmem:[#allocation3 + $0x2c] sm:$0xf] %vm1097_vm5, %v1024_v13  ;;  %1260 = vrot.lane.b32.xlu2 %v1179_v7, %s3013_s25  ;;  %v3690_v7 = vpack.c.bf16 %v1359_v60, %v1359_v60  ;;  %v1360_v13 = vld [vmem:[#allocation2 + $0x52] sm:$0xff]  ;;  %v1375_v60 = vld [vmem:[#allocation2 + $0x10a] sm:$0xff] }
 0x17a   : > { %v3699_v24 = vpack.c.bf16 %v1360_v13, %v1360_v13 }
 0x17b   : > { %v1034_v28 = vpop.permute.xlu2 %1033 }
 0x17c   : > { %1114 = vst.msk [vmem:[#allocation3 + $0x40] sm:$0xf] %vm1097_vm5, %v1034_v28  ;;  %v1358_v28 = vld [vmem:[#allocation2 + $0x3a] sm:$0xff] }
 0x17d   : > { %1270 = vrot.lane.b32.xlu1 %v1184_v15, %s3013_s25 }
 0x17e   : > { %1274 = vrot.lane.b32.xlu0 %v1186_v22, %s3013_s25 }
 0x17f   : > { %v1026_v35 = vpop.permute.xlu1 %1025 }
 0x180   : > { %1110 = vst.msk [vmem:[#allocation3 + $0x30] sm:$0xf] %vm1097_vm5, %v1026_v35  ;;  %v1030_v42 = vpop.permute.xlu0 %1029  ;;  %v3705_v35 = vpack.c.bf16 %v1358_v28, %v1358_v28 }
 0x181   : > { %1112 = vst.msk [vmem:[#allocation3 + $0x38] sm:$0xf] %vm1097_vm5, %v1030_v42  ;;  %1266 = vrot.lane.b32.xlu2 %v3654_v29, %s3013_s25 }
 0x183   : > { %v1040_v2 = vpop.permute.xlu2 %1039 }
 0x184   : > { %1117 = vst.msk [vmem:[#allocation3 + $0x4c] sm:$0xf] %vm1097_vm5, %v1040_v2  ;;  %v1361_v2 = vld [vmem:[#allocation2 + $0x62] sm:$0xff] }
 0x185   : > { %1276 = vrot.lane.b32.xlu1 %v1187_v38, %s3013_s25 }
 0x186   : > { %1280 = vrot.lane.b32.xlu0 %v3661_v63, %s3013_s25 }
 0x187   : > { %v1032_v40 = vpop.permute.xlu1 %1031 }
 0x188   : > { %1113 = vst.msk [vmem:[#allocation3 + $0x3c] sm:$0xf] %vm1097_vm5, %v1032_v40  ;;  %v1036_v30 = vpop.permute.xlu0 %1035  ;;  %v1366_v40 = vld [vmem:[#allocation2 + $0x9a] sm:$0xff] }
 0x189   : > { %1115 = vst.msk [vmem:[#allocation3 + $0x44] sm:$0xf] %vm1097_vm5, %v1036_v30  ;;  %1272 = vrot.lane.b32.xlu2 %v3665_v14, %s3013_s25 }
 0x18b   : > { %v1046_v31 = vpop.permute.xlu2 %1045 }
 0x18c   : > { %1120 = vst.msk [vmem:[#allocation3 + $0x58] sm:$0xf] %vm1097_vm5, %v1046_v31  ;;  %v1369_v31 = vld [vmem:[#allocation2 + $0xc2] sm:$0xff] }
 0x18d   : > { %1282 = vrot.lane.b32.xlu1 %v1190_v46, %s3013_s25  ;;  %v3724_v46 = vpack.c.bf16 %v1366_v40, %v1366_v40  ;;  %v3737_v20 = vpack.c.bf16 %v1369_v31, %v1369_v31 }
 0x18e   : > { %1286 = vrot.lane.b32.xlu0 %v1192_v18, %s3013_s25  ;;  %v1364_v18 = vld [vmem:[#allocation2 + $0x82] sm:$0xff] }
 0x18f   : > { %v1038_v49 = vpop.permute.xlu1 %1037 }
 0x190   : > { %1116 = vst.msk [vmem:[#allocation3 + $0x48] sm:$0xf] %vm1097_vm5, %v1038_v49  ;;  %v1042_v43 = vpop.permute.xlu0 %1041 }
 0x191   : > { %1118 = vst.msk [vmem:[#allocation3 + $0x50] sm:$0xf] %vm1097_vm5, %v1042_v43  ;;  %1278 = vrot.lane.b32.xlu2 %v3675_v0, %s3013_s25  ;;  %v1367_v43 = vld [vmem:[#allocation2 + $0xaa] sm:$0xff] }
 0x193   : > { %v1052_v52 = vpop.permute.xlu2 %1051 }
 0x194   : > { %1123 = vst.msk [vmem:[#allocation3 + $0x64] sm:$0xf] %vm1097_vm5, %v1052_v52 }
 0x195   : > { %1288 = vrot.lane.b32.xlu1 %v1193_v6, %s3013_s25 }
 0x196   : > { %1453 = vrot.lane.b32.xlu0 %v1388_v41, %s3014_s26  ;;  %v1372_v41 = vld [vmem:[#allocation2 + $0xe2] sm:$0xff] }
 0x197   : > { %v1044_v59 = vpop.permute.xlu1 %1043 }
 0x198   : > { %1119 = vst.msk [vmem:[#allocation3 + $0x54] sm:$0xf] %vm1097_vm5, %v1044_v59  ;;  %v1048_v4 = vpop.permute.xlu0 %1047 }
 0x199   : > { %1121 = vst.msk [vmem:[#allocation3 + $0x5c] sm:$0xf] %vm1097_vm5, %v1048_v4  ;;  %1284 = vrot.lane.b32.xlu2 %v1191_v25, %s3013_s25  ;;  %v3750_v25 = vpack.c.bf16 %v1372_v41, %v1372_v41 }
 0x19b   : > { %v1058_v9 = vpop.permute.xlu2 %1057 }
 0x19c   : > { %1126 = vst.msk [vmem:[#allocation3 + $0x70] sm:$0xf] %vm1097_vm5, %v1058_v9  ;;  %v3763_v9 = vpack.c.bf16 %v1375_v60, %v1375_v60  ;;  %v1589_v60 = vld [vmem:[#allocation2 + $0x90] sm:$0xff] }
 0x19d   : > { %1455 = vrot.lane.b32.xlu1 %v3687_v5, %s3014_s26 }
 0x19e   : > { %1459 = vrot.lane.b32.xlu0 %v3690_v7, %s3014_s26 }
 0x19f   : > { %v1050_v15 = vpop.permute.xlu1 %1049 }
 0x1a0   : > { %1122 = vst.msk [vmem:[#allocation3 + $0x60] sm:$0xf] %vm1097_vm5, %v1050_v15  ;;  %v1054_v22 = vpop.permute.xlu0 %1053  ;;  %v1378_v15 = vld [vmem:[#allocation2 + $0x12a] sm:$0xff] }
 0x1a1   : > { %1124 = vst.msk [vmem:[#allocation3 + $0x68] sm:$0xf] %vm1097_vm5, %v1054_v22  ;;  %1451 = vrot.lane.b32.xlu2 %v1387_v12, %s3014_s26  ;;  %v1373_v12 = vld [vmem:[#allocation2 + $0xf2] sm:$0xff] }
 0x1a3   : > { %v1064_v34 = vpop.permute.xlu2 %1063 }
 0x1a4   : > { %1129 = vst.msk [vmem:[#allocation3 + $0x7c] sm:$0xf] %vm1097_vm5, %v1064_v34  ;;  %v3776_v34 = vpack.c.bf16 %v1378_v15, %v1378_v15 }
 0x1a5   : > { %1461 = vrot.lane.b32.xlu1 %v3699_v24, %s3014_s26 }
 0x1a6   : > { %1465 = vrot.lane.b32.xlu0 %v3330_v23, %s3014_s26  ;;  %v3718_v23 = vpack.c.bf16 %v1361_v2, %v1361_v2 }
 0x1a7   : > { %v1056_v42 = vpop.permute.xlu1 %1055 }
 0x1a8   : > { %1125 = vst.msk [vmem:[#allocation3 + $0x6c] sm:$0xf] %vm1097_vm5, %v1056_v42  ;;  %v1060_v38 = vpop.permute.xlu0 %1059 }
 0x1a9   : > { %1127 = vst.msk [vmem:[#allocation3 + $0x74] sm:$0xf] %vm1097_vm5, %v1060_v38  ;;  %1457 = vrot.lane.b32.xlu2 %v3705_v35, %s3014_s26  ;;  %v1381_v38 = vld [vmem:[#allocation2 + $0x152] sm:$0xff] }
 0x1aa   : > { %v3789_v40 = vpack.c.bf16 %v1381_v38, %v1381_v38 }
 0x1ab   : > { %v1231_v27 = vpop.permute.xlu2 %1230 }
 0x1ac   : > { %1325 = vst.msk [vmem:[#allocation3 + $0x8] sm:$0xf] %vm1322_vm6, %v1231_v27 }
 0x1ad   : > { %1467 = vrot.lane.b32.xlu1 %v3711_v51, %s3014_s26 }
 0x1ae   : > { %1471 = vrot.lane.b32.xlu0 %v3349_v36, %s3014_s26  ;;  %v3731_v36 = vpack.c.bf16 %v1364_v18, %v1364_v18  ;;  %v1581_v18 = vld [vmem:[#allocation2 + $0x30] sm:$0xff] }
 0x1af   : > { %v1062_v3 = vpop.permute.xlu1 %1061 }
 0x1b0   : > { %1128 = vst.msk [vmem:[#allocation3 + $0x78] sm:$0xf] %vm1097_vm5, %v1062_v3  ;;  %v1227_v30 = vpop.permute.xlu0 %1226  ;;  %v1379_v3 = vld [vmem:[#allocation2 + $0x13a] sm:$0xff] }
 0x1b1   : > { %1323 = vst.msk [vmem:[#allocation3] sm:$0xf] %vm1322_vm6, %v1227_v30  ;;  %1463 = vrot.lane.b32.xlu2 %v3718_v23, %s3014_s26 }
 0x1b3   : > { %v1237_v45 = vpop.permute.xlu2 %1236 }
 0x1b4   : > { %1328 = vst.msk [vmem:[#allocation3 + $0x14] sm:$0xf] %vm1322_vm6, %v1237_v45 }
 0x1b5   : > { %1473 = vrot.lane.b32.xlu1 %v3724_v46, %s3014_s26 }
 0x1b6   : > { %1477 = vrot.lane.b32.xlu0 %v3368_v56, %s3014_s26  ;;  %v3744_v56 = vpack.c.bf16 %v1367_v43, %v1367_v43 }
 0x1b7   : > { %v1229_v21 = vpop.permute.xlu1 %1228 }
 0x1b8   : > { %1324 = vst.msk [vmem:[#allocation3 + $0x4] sm:$0xf] %vm1322_vm6, %v1229_v21  ;;  %v1233_v49 = vpop.permute.xlu0 %1232  ;;  %v1613_v21 = vpack.c.bf16 %v1581_v18, %v1581_v18 }
 0x1b9   : > { %1326 = vst.msk [vmem:[#allocation3 + $0xc] sm:$0xf] %vm1322_vm6, %v1233_v49  ;;  %1469 = vrot.lane.b32.xlu2 %v3731_v36, %s3014_s26  ;;  %v1382_v49 = vld [vmem:[#allocation2 + $0x15a] sm:$0xff] }
 0x1bb   : > { %v1243_v6 = vpop.permute.xlu2 %1242 }
 0x1bc   : > { %1331 = vst.msk [vmem:[#allocation3 + $0x20] sm:$0xf] %vm1322_vm6, %v1243_v6  ;;  %v3806_v6 = vpack.c.bf16 %v1382_v49, %v1382_v49  ;;  %v1598_v49 = vld [vmem:[#allocation2 + $0xf8] sm:$0xff] }
 0x1bd   : > { %1479 = vrot.lane.b32.xlu1 %v3737_v20, %s3014_s26 }
 0x1be   : > { %1483 = vrot.lane.b32.xlu0 %v3389_v10, %s3014_s26  ;;  %v3757_v10 = vpack.c.bf16 %v1370_v58, %v1370_v58 }
 0x1bf   : > { %v1235_v50 = vpop.permute.xlu1 %1234 }
 0x1c0   : > { %1327 = vst.msk [vmem:[#allocation3 + $0x10] sm:$0xf] %vm1322_vm6, %v1235_v50  ;;  %v1239_v52 = vpop.permute.xlu0 %1238  ;;  %v1582_v50 = vld [vmem:[#allocation2 + $0x38] sm:$0xff] }
 0x1c1   : > { %1329 = vst.msk [vmem:[#allocation3 + $0x18] sm:$0xf] %vm1322_vm6, %v1239_v52  ;;  %1475 = vrot.lane.b32.xlu2 %v3744_v56, %s3014_s26  ;;  %v1614_v58 = vpack.c.bf16 %v1582_v50, %v1582_v50  ;;  %v1591_v50 = vld [vmem:[#allocation2 + $0xa8] sm:$0xff] }
 0x1c3   : > { %v1249_v59 = vpop.permute.xlu2 %1248 }
 0x1c4   : > { %1334 = vst.msk [vmem:[#allocation3 + $0x2c] sm:$0xf] %vm1322_vm6, %v1249_v59 }
 0x1c5   : > { %1485 = vrot.lane.b32.xlu1 %v3750_v25, %s3014_s26 }
 0x1c6   : > { %1489 = vrot.lane.b32.xlu0 %v3410_v32, %s3014_s26  ;;  %v3770_v32 = vpack.c.bf16 %v1373_v12, %v1373_v12  ;;  %v1621_v12 = vpack.c.bf16 %v1589_v60, %v1589_v60 }
 0x1c7   : > { %v1241_v4 = vpop.permute.xlu1 %1240 }
 0x1c8   : > { %1330 = vst.msk [vmem:[#allocation3 + $0x1c] sm:$0xf] %vm1322_vm6, %v1241_v4  ;;  %v1245_v8 = vpop.permute.xlu0 %1244 }
 0x1c9   : > { %1332 = vst.msk [vmem:[#allocation3 + $0x24] sm:$0xf] %vm1322_vm6, %v1245_v8  ;;  %1481 = vrot.lane.b32.xlu2 %v3757_v10, %s3014_s26 }
 0x1cb   : > { %v1255_v13 = vpop.permute.xlu2 %1254 }
 0x1cc   : > { %1337 = vst.msk [vmem:[#allocation3 + $0x38] sm:$0xf] %vm1322_vm6, %v1255_v13 }
 0x1cd   : > { %1491 = vrot.lane.b32.xlu1 %v3763_v9, %s3014_s26 }
 0x1ce   : > { %1495 = vrot.lane.b32.xlu0 %v3431_v57, %s3014_s26  ;;  %v3783_v57 = vpack.c.bf16 %v1376_v39, %v1376_v39 }
 0x1cf   : > { %v1247_v22 = vpop.permute.xlu1 %1246 }
 0x1d0   : > { %1333 = vst.msk [vmem:[#allocation3 + $0x28] sm:$0xf] %vm1322_vm6, %v1247_v22  ;;  %v1251_v28 = vpop.permute.xlu0 %1250 }
 0x1d1   : > { %1335 = vst.msk [vmem:[#allocation3 + $0x30] sm:$0xf] %vm1322_vm6, %v1251_v28  ;;  %1487 = vrot.lane.b32.xlu2 %v3770_v32, %s3014_s26  ;;  %v1584_v28 = vld [vmem:[#allocation2 + $0x50] sm:$0xff] }
 0x1d3   : > { %v1261_v42 = vpop.permute.xlu2 %1260 }
 0x1d4   : > { %1340 = vst.msk [vmem:[#allocation3 + $0x44] sm:$0xf] %vm1322_vm6, %v1261_v42  ;;  %v1616_v42 = vpack.c.bf16 %v1584_v28, %v1584_v28 }
 0x1d5   : > { %1497 = vrot.lane.b32.xlu1 %v3776_v34, %s3014_s26 }
 0x1d6   : > { %1501 = vrot.lane.b32.xlu0 %v3452_v16, %s3014_s26  ;;  %v3796_v16 = vpack.c.bf16 %v1379_v3, %v1379_v3 }
 0x1d7   : > { %v1253_v2 = vpop.permute.xlu1 %1252 }
 0x1d8   : > { %1336 = vst.msk [vmem:[#allocation3 + $0x34] sm:$0xf] %vm1322_vm6, %v1253_v2  ;;  %v1257_v27 = vpop.permute.xlu0 %1256 }
 0x1d9   : > { %1338 = vst.msk [vmem:[#allocation3 + $0x3c] sm:$0xf] %vm1322_vm6, %v1257_v27  ;;  %1493 = vrot.lane.b32.xlu2 %v3783_v57, %s3014_s26 }
 0x1db   : > { %v1267_v30 = vpop.permute.xlu2 %1266 }
 0x1dc   : > { %1343 = vst.msk [vmem:[#allocation3 + $0x50] sm:$0xf] %vm1322_vm6, %v1267_v30 }
 0x1dd   : > { %1503 = vrot.lane.b32.xlu1 %v3789_v40, %s3014_s26 }
 0x1de   : > { %1507 = vrot.lane.b32.xlu0 %v3468_v33, %s3014_s26 }
 0x1df   : > { %v1259_v45 = vpop.permute.xlu1 %1258 }
 0x1e0   : > { %1339 = vst.msk [vmem:[#allocation3 + $0x40] sm:$0xf] %vm1322_vm6, %v1259_v45  ;;  %v1263_v31 = vpop.permute.xlu0 %1262 }
 0x1e1   : > { %1341 = vst.msk [vmem:[#allocation3 + $0x48] sm:$0xf] %vm1322_vm6, %v1263_v31  ;;  %1499 = vrot.lane.b32.xlu2 %v3796_v16, %s3014_s26  ;;  %v2048_v31 = vld [vmem:[#allocation2 + $0xfa] sm:$0xff] }
 0x1e3   : > { %v1273_v43 = vpop.permute.xlu2 %1272 }
 0x1e4   : > { %1346 = vst.msk [vmem:[#allocation3 + $0x5c] sm:$0xf] %vm1322_vm6, %v1273_v43 }
 0x1e5   : > { %1677 = vrot.lane.b32.xlu1 %v1613_v21, %s3015_s27 }
 0x1e6   : > { %1902 = vrot.lane.b32.xlu0 %v3584_v26, %s3016_s28  ;;  %v1583_v26 = vld [vmem:[#allocation2 + $0x48] sm:$0xff] }
 0x1e7   : > { %v1265_v33 = vpop.permute.xlu1 %1264  ;;  %v1615_v8 = vpack.c.bf16 %v1583_v26, %v1583_v26  ;;  %v1623_v26 = vpack.c.bf16 %v1591_v50, %v1591_v50  ;;  %v1593_v50 = vld [vmem:[#allocation2 + $0xc0] sm:$0xff] }
 0x1e8   : > { %1342 = vst.msk [vmem:[#allocation3 + $0x4c] sm:$0xf] %vm1322_vm6, %v1265_v33  ;;  %v1269_v41 = vpop.permute.xlu0 %1268  ;;  %v1630_v33 = vpack.c.bf16 %v1598_v49, %v1598_v49 }
 0x1e9   : > { %1344 = vst.msk [vmem:[#allocation3 + $0x54] sm:$0xf] %vm1322_vm6, %v1269_v41  ;;  %1505 = vrot.lane.b32.xlu2 %v3806_v6, %s3014_s26 }
 0x1eb   : > { %v1279_v52 = vpop.permute.xlu2 %1278 }
 0x1ec   : > { %1349 = vst.msk [vmem:[#allocation3 + $0x68] sm:$0xf] %vm1322_vm6, %v1279_v52 }
 0x1ed   : > { %1904 = vrot.lane.b32.xlu1 %v3568_v48, %s3016_s28  ;;  %v1590_v48 = vld [vmem:[#allocation2 + $0x98] sm:$0xff] }
 0x1ee   : > { %2129 = vrot.lane.b32.xlu0 %v3705_v35, %s3017_s29  ;;  %v1622_v22 = vpack.c.bf16 %v1590_v48, %v1590_v48 }
 0x1ef   : > { %v1271_v59 = vpop.permute.xlu1 %1270 }
 0x1f0   : > { %1345 = vst.msk [vmem:[#allocation3 + $0x58] sm:$0xf] %vm1322_vm6, %v1271_v59  ;;  %v1275_v4 = vpop.permute.xlu0 %1274 }
 0x1f1   : > { %1347 = vst.msk [vmem:[#allocation3 + $0x60] sm:$0xf] %vm1322_vm6, %v1275_v4  ;;  %1679 = vrot.lane.b32.xlu2 %v1614_v58, %s3015_s27 }
 0x1f3   : > { %v1285_v13 = vpop.permute.xlu2 %1284 }
 0x1f4   : > { %1352 = vst.msk [vmem:[#allocation3 + $0x74] sm:$0xf] %vm1322_vm6, %v1285_v13 }
 0x1f5   : > { %1681 = vrot.lane.b32.xlu1 %v1615_v8, %s3015_s27 }
 0x1f6   : > { %1693 = vrot.lane.b32.xlu0 %v1621_v12, %s3015_s27  ;;  %v1586_v12 = vld [vmem:[#allocation2 + $0x68] sm:$0xff] }
 0x1f7   : > { %v1277_v35 = vpop.permute.xlu1 %1276  ;;  %v1618_v48 = vpack.c.bf16 %v1586_v12, %v1586_v12 }
 0x1f8   : > { %1348 = vst.msk [vmem:[#allocation3 + $0x64] sm:$0xf] %vm1322_vm6, %v1277_v35  ;;  %v1281_v15 = vpop.permute.xlu0 %1280 }
 0x1f9   : > { %1350 = vst.msk [vmem:[#allocation3 + $0x6c] sm:$0xf] %vm1322_vm6, %v1281_v15  ;;  %2127 = vrot.lane.b32.xlu2 %v3687_v5, %s3017_s29 }
 0x1fb   : > { %v1452_v39 = vpop.permute.xlu2 %1451 }
 0x1fc   : > { %1548 = vst.msk [vmem:[#allocation3] sm:$0xf] %vm1547_vm7, %v1452_v39 }
 0x1fd   : > { %1695 = vrot.lane.b32.xlu1 %v1622_v22, %s3015_s27 }
 0x1fe   : > { %1908 = vrot.lane.b32.xlu0 %v3597_v54, %s3016_s28 }
 0x1ff   : > { %v1283_v38 = vpop.permute.xlu1 %1282 }
 0x200   : > { %1351 = vst.msk [vmem:[#allocation3 + $0x70] sm:$0xf] %vm1322_vm6, %v1283_v38  ;;  %v1287_v2 = vpop.permute.xlu0 %1286 }
 0x201   : > { %1353 = vst.msk [vmem:[#allocation3 + $0x78] sm:$0xf] %vm1322_vm6, %v1287_v2  ;;  %1683 = vrot.lane.b32.xlu2 %v1616_v42, %s3015_s27 }
 0x203   : > { %v1458_v5 = vpop.permute.xlu2 %1457 }
 0x204   : > { %1551 = vst.msk [vmem:[#allocation3 + $0xc] sm:$0xf] %vm1547_vm7, %v1458_v5 }
 0x205   : > { %1918 = vrot.lane.b32.xlu1 %v3602_v55, %s3016_s28  ;;  %v1597_v55 = vld [vmem:[#allocation2 + $0xf0] sm:$0xff] }
 0x206   : > { %2131 = vrot.lane.b32.xlu0 %v3690_v7, %s3017_s29  ;;  %v1629_v18 = vpack.c.bf16 %v1597_v55, %v1597_v55 }
 0x207   : > { %v1289_v27 = vpop.permute.xlu1 %1288 }
 0x208   : > { %1354 = vst.msk [vmem:[#allocation3 + $0x7c] sm:$0xf] %vm1322_vm6, %v1289_v27  ;;  %v1454_v54 = vpop.permute.xlu0 %1453  ;;  %v1599_v27 = vld [vmem:[#allocation2 + $0x108] sm:$0xff] }
 0x209   : > { %1549 = vst.msk [vmem:[#allocation3 + $0x4] sm:$0xf] %vm1547_vm7, %v1454_v54  ;;  %1906 = vrot.lane.b32.xlu2 %v3576_v11, %s3016_s28  ;;  %v2039_v11 = vld [vmem:[#allocation2 + $0x92] sm:$0xff] }
 0x20b   : > { %v1464_v3 = vpop.permute.xlu2 %1463 }
 0x20c   : > { %1554 = vst.msk [vmem:[#allocation3 + $0x18] sm:$0xf] %vm1547_vm7, %v1464_v3  ;;  %v1605_v3 = vld [vmem:[#allocation2 + $0x150] sm:$0xff] }
 0x20d   : > { %2133 = vrot.lane.b32.xlu1 %v3699_v24, %s3017_s29  ;;  %v2071_v24 = vpack.c.bf16 %v2039_v11, %v2039_v11 }
 0x20e   : > { %2145 = vrot.lane.b32.xlu0 %v3724_v46, %s3017_s29 }
 0x20f   : > { %v1456_v7 = vpop.permute.xlu1 %1455 }
 0x210   : > { %1550 = vst.msk [vmem:[#allocation3 + $0x8] sm:$0xf] %vm1547_vm7, %v1456_v7  ;;  %v1460_v30 = vpop.permute.xlu0 %1459  ;;  %v1631_v7 = vpack.c.bf16 %v1599_v27, %v1599_v27 }
 0x211   : > { %1552 = vst.msk [vmem:[#allocation3 + $0x10] sm:$0xf] %vm1547_vm7, %v1460_v30  ;;  %1920 = vrot.lane.b32.xlu2 %v3621_v44, %s3016_s28  ;;  %v2080_v44 = vpack.c.bf16 %v2048_v31, %v2048_v31  ;;  %v2974_v30 = vld [vmem:[%s4337_s3 + $0x8] sm:$0xff] }
 0x213   : > { %v1470_v45 = vpop.permute.xlu2 %1469 }
 0x214   : > { %1557 = vst.msk [vmem:[#allocation3 + $0x24] sm:$0xf] %vm1547_vm7, %v1470_v45  ;;  %v1606_v45 = vld [vmem:[#allocation2 + $0x158] sm:$0xff] }
 0x215   : > { %1709 = vrot.lane.b32.xlu1 %v1629_v18, %s3015_s27  ;;  %v1637_v18 = vpack.c.bf16 %v1605_v3, %v1605_v3  ;;  %v1638_v31 = vpack.c.bf16 %v1606_v45, %v1606_v45  ;;  %v2051_v45 = vld [vmem:[#allocation2 + $0x122] sm:$0xff] }
 0x216   : > { %1934 = vrot.lane.b32.xlu0 %v3628_v47, %s3016_s28  ;;  %v1585_v47 = vld [vmem:[#allocation2 + $0x60] sm:$0xff] }
 0x217   : > { %v1462_v46 = vpop.permute.xlu1 %1461  ;;  %v1617_v58 = vpack.c.bf16 %v1585_v47, %v1585_v47 }
 0x218   : > { %1553 = vst.msk [vmem:[#allocation3 + $0x14] sm:$0xf] %vm1547_vm7, %v1462_v46  ;;  %v1466_v21 = vpop.permute.xlu0 %1465 }
 0x219   : > { %1555 = vst.msk [vmem:[#allocation3 + $0x1c] sm:$0xf] %vm1547_vm7, %v1466_v21  ;;  %2143 = vrot.lane.b32.xlu2 %v2071_v24, %s3017_s29  ;;  %v1600_v21 = vld [vmem:[#allocation2 + $0x110] sm:$0xff] }
 0x21a   : > { %v1632_v49 = vpack.c.bf16 %v1600_v21, %v1600_v21 }
 0x21b   : > { %v1476_v43 = vpop.permute.xlu2 %1475 }
 0x21c   : > { %1560 = vst.msk [vmem:[#allocation3 + $0x30] sm:$0xf] %vm1547_vm7, %v1476_v43 }
 0x21d   : > { %1936 = vrot.lane.b32.xlu1 %v3638_v61, %s3016_s28  ;;  %v1592_v61 = vld [vmem:[#allocation2 + $0xb0] sm:$0xff] }
 0x21e   : > { %2161 = vrot.lane.b32.xlu0 %v2080_v44, %s3017_s29  ;;  %v1624_v8 = vpack.c.bf16 %v1592_v61, %v1592_v61 }
 0x21f   : > { %v1468_v41 = vpop.permute.xlu1 %1467 }
 0x220   : > { %1556 = vst.msk [vmem:[#allocation3 + $0x20] sm:$0xf] %vm1547_vm7, %v1468_v41  ;;  %v1472_v52 = vpop.permute.xlu0 %1471 }
 0x221   : > { %1558 = vst.msk [vmem:[#allocation3 + $0x28] sm:$0xf] %vm1547_vm7, %v1472_v52  ;;  %1711 = vrot.lane.b32.xlu2 %v1630_v33, %s3015_s27 }
 0x223   : > { %v1482_v59 = vpop.permute.xlu2 %1481 }
 0x224   : > { %1563 = vst.msk [vmem:[#allocation3 + $0x3c] sm:$0xf] %vm1547_vm7, %v1482_v59  ;;  %v1813_v59 = vld [vmem:[#allocation2 + $0x81] sm:$0xff] }
 0x225   : > { %1685 = vrot.lane.b32.xlu1 %v1617_v58, %s3015_s27  ;;  %v1625_v58 = vpack.c.bf16 %v1593_v50, %v1593_v50 }
 0x226   : > { %1697 = vrot.lane.b32.xlu0 %v1623_v26, %s3015_s27 }
 0x227   : > { %v1474_v60 = vpop.permute.xlu1 %1473 }
 0x228   : > { %1559 = vst.msk [vmem:[#allocation3 + $0x2c] sm:$0xf] %vm1547_vm7, %v1474_v60  ;;  %v1478_v4 = vpop.permute.xlu0 %1477 }
 0x229   : > { %1561 = vst.msk [vmem:[#allocation3 + $0x34] sm:$0xf] %vm1547_vm7, %v1478_v4  ;;  %2159 = vrot.lane.b32.xlu2 %v3770_v32, %s3017_s29  ;;  %v2036_v32 = vld [vmem:[#allocation2 + $0x6a] sm:$0xff] }
 0x22a   : > { %v2068_v42 = vpack.c.bf16 %v2036_v32, %v2036_v32 }
 0x22b   : > { %v1488_v13 = vpop.permute.xlu2 %1487 }
 0x22c   : > { %1566 = vst.msk [vmem:[#allocation3 + $0x48] sm:$0xf] %vm1547_vm7, %v1488_v13 }
 0x22d   : > { %1699 = vrot.lane.b32.xlu1 %v1624_v8, %s3015_s27  ;;  %v1588_v8 = vld [vmem:[#allocation2 + $0x80] sm:$0xff] }
 0x22e   : > { %1912 = vrot.lane.b32.xlu0 %v3590_v37, %s3016_s28  ;;  %v2042_v37 = vld [vmem:[#allocation2 + $0xb2] sm:$0xff]  ;;  %v1620_v13 = vpack.c.bf16 %v1588_v8, %v1588_v8 }
 0x22f   : > { %v1480_v35 = vpop.permute.xlu1 %1479  ;;  %v2074_v38 = vpack.c.bf16 %v2042_v37, %v2042_v37  ;;  %v1819_v37 = vld [vmem:[#allocation2 + $0xc9] sm:$0xff] }
 0x230   : > { %1562 = vst.msk [vmem:[#allocation3 + $0x38] sm:$0xf] %vm1547_vm7, %v1480_v35  ;;  %v1484_v15 = vpop.permute.xlu0 %1483 }
 0x231   : > { %1564 = vst.msk [vmem:[#allocation3 + $0x40] sm:$0xf] %vm1547_vm7, %v1484_v15  ;;  %1687 = vrot.lane.b32.xlu2 %v1618_v48, %s3015_s27 }
 0x233   : > { %v1494_v22 = vpop.permute.xlu2 %1493 }
 0x234   : > { %1569 = vst.msk [vmem:[#allocation3 + $0x54] sm:$0xf] %vm1547_vm7, %v1494_v22 }
 0x235   : > { %1922 = vrot.lane.b32.xlu1 %v3606_v17, %s3016_s28  ;;  %v2292_v17 = vld [vmem:[%s4337_s3 + $0x10] sm:$0x3] }
 0x236   : > { %2135 = vrot.lane.b32.xlu0 %v3718_v23, %s3017_s29  ;;  %v2382_v5 = vunpack.c.l.b16 %v2292_v17 }
 0x237   : > { %v1486_v28 = vpop.permute.xlu1 %1485 }
 0x238   : > { %1565 = vst.msk [vmem:[#allocation3 + $0x44] sm:$0xf] %vm1547_vm7, %v1486_v28  ;;  %v1490_v39 = vpop.permute.xlu0 %1489  ;;  %v2385_v23 = vpack.c.b16 %v2382_v5, %v2382_v5 }
 0x239   : > { %1567 = vst.msk [vmem:[#allocation3 + $0x4c] sm:$0xf] %vm1547_vm7, %v1490_v39  ;;  %1910 = vrot.lane.b32.xlu2 %v3579_v19, %s3016_s28 }
 0x23a   : > { %v2439_v55 = vsel %vm2437_vm8, %v2385_v23, 0 }
 0x23b   : > { %v1500_v2 = vpop.permute.xlu2 %1499  ;;  %2446 = vmatpush.bf16.msra.mxu0 %v2439_v55  ;;  %2975 = vmatpush.bf16.msra.mxu1 %v2439_v55 }
 0x23c   : > { %1572 = vst.msk [vmem:[#allocation3 + $0x60] sm:$0xf] %vm1547_vm7, %v1500_v2  ;;  %2976 = vmatpush.bf16.msra.mxu2 %v2439_v55  ;;  %2977 = vmatpush.bf16.msra.mxu3 %v2439_v55 }
 0x23d   : > { %2137 = vrot.lane.b32.xlu1 %v2068_v42, %s3017_s29 }
 0x23e   : > { %2149 = vrot.lane.b32.xlu0 %v2074_v38, %s3017_s29  ;;  %v1607_v38 = vld [vmem:[#allocation2 + $0x168] sm:$0xff] }
 0x23f   : > { %v1492_v54 = vpop.permute.xlu1 %1491  ;;  %2447 = vmatpush.bf16.msra.mxu0 %v2974_v30  ;;  %2978 = vmatpush.bf16.msra.mxu1 %v2974_v30  ;;  %v1639_v5 = vpack.c.bf16 %v1607_v38, %v1607_v38 }
 0x240   : > { %1568 = vst.msk [vmem:[#allocation3 + $0x50] sm:$0xf] %vm1547_vm7, %v1492_v54  ;;  %v1496_v19 = vpop.permute.xlu0 %1495  ;;  %2979 = vmatpush.bf16.msra.mxu2 %v2974_v30  ;;  %2980 = vmatpush.bf16.msra.mxu3 %v2974_v30 }
 0x241   : > { %1570 = vst.msk [vmem:[#allocation3 + $0x58] sm:$0xf] %vm1547_vm7, %v1496_v19  ;;  %1924 = vrot.lane.b32.xlu2 %v3615_v1, %s3016_s28  ;;  %v2973_v1 = vld [vmem:[%s4337_s3] sm:$0xff]  ;;  %v1602_v19 = vld [vmem:[#allocation2 + $0x128] sm:$0xff] }
 0x242   : > { %v1634_v30 = vpack.c.bf16 %v1602_v19, %v1602_v19 }
 0x243   : > { %v1506_v11 = vpop.permute.xlu2 %1505  ;;  %2448 = vmatpush.bf16.msra.mxu0 %v2973_v1  ;;  %2981 = vmatpush.bf16.msra.mxu1 %v2973_v1 }
 0x244   : > { %1575 = vst.msk [vmem:[#allocation3 + $0x6c] sm:$0xf] %vm1547_vm7, %v1506_v11  ;;  %2982 = vmatpush.bf16.msra.mxu2 %v2973_v1  ;;  %2983 = vmatpush.bf16.msra.mxu3 %v2973_v1 }
 0x245   : > { %1713 = vrot.lane.b32.xlu1 %v1631_v7, %s3015_s27 }
 0x246   : > { %1725 = vrot.lane.b32.xlu0 %v1637_v18, %s3015_s27  ;;  %v1832_v18 = vld [vmem:[#allocation2 + $0x169] sm:$0xff] }
 0x247   : > { %v1498_v24 = vpop.permute.xlu1 %1497  ;;  %v1864_v1 = vpack.c.bf16 %v1832_v18, %v1832_v18 }
 0x248   : > { %1571 = vst.msk [vmem:[#allocation3 + $0x5c] sm:$0xf] %vm1547_vm7, %v1498_v24  ;;  %v1502_v46 = vpop.permute.xlu0 %1501  ;;  %v2083_v24 = vpack.c.bf16 %v2051_v45, %v2051_v45 }
 0x249   : > { %1573 = vst.msk [vmem:[#allocation3 + $0x64] sm:$0xf] %vm1547_vm7, %v1502_v46  ;;  %2147 = vrot.lane.b32.xlu2 %v3744_v56, %s3017_s29  ;;  %v1826_v46 = vld [vmem:[#allocation2 + $0x121] sm:$0xff] }
 0x24a   : > { %v1858_v21 = vpack.c.bf16 %v1826_v46, %v1826_v46 }
 0x24b   : > { %v1680_v44 = vpop.permute.xlu2 %1679 }
 0x24c   : > { %1775 = vst.msk [vmem:[#allocation3 + $0x4] sm:$0xf] %vm1773_vm9, %v1680_v44  ;;  %v2058_v44 = vld [vmem:[#allocation2 + $0x172] sm:$0xff] }
 0x24d   : > { %1727 = vrot.lane.b32.xlu1 %v1638_v31, %s3015_s27 }
 0x24e   : > { %1940 = vrot.lane.b32.xlu0 %v3642_v62, %s3016_s28 }
 0x24f   : > { %v1504_v43 = vpop.permute.xlu1 %1503 }
 0x250   : > { %1574 = vst.msk [vmem:[#allocation3 + $0x68] sm:$0xf] %vm1547_vm7, %v1504_v43  ;;  %v1508_v33 = vpop.permute.xlu0 %1507 }
 0x251   : > { %1576 = vst.msk [vmem:[#allocation3 + $0x70] sm:$0xf] %vm1547_vm7, %v1508_v33  ;;  %1715 = vrot.lane.b32.xlu2 %v1632_v49, %s3015_s27  ;;  %v2090_v33 = vpack.c.bf16 %v2058_v44, %v2058_v44 }
 0x253   : > { %v2128_v56 = vpop.permute.xlu2 %2127 }
 0x255   : > { %1950 = vrot.lane.b32.xlu1 %v3675_v0, %s3016_s28  ;;  %v1587_v0 = vld [vmem:[#allocation2 + $0x78] sm:$0xff] }
 0x256   : > { %2163 = vrot.lane.b32.xlu0 %v3763_v9, %s3017_s29 }
 0x257   : > { %v1678_v47 = vpop.permute.xlu1 %1677 }
 0x258   : > { %1774 = vst.msk [vmem:[#allocation3] sm:$0xf] %vm1773_vm9, %v1678_v47  ;;  %v1903_v62 = vpop.permute.xlu0 %1902 }
 0x259   : > { %1999 = vst.msk [vmem:[#allocation3] sm:$0xf] %vm1998_vm10, %v1903_v62  ;;  %1938 = vrot.lane.b32.xlu2 %v3654_v29, %s3016_s28  ;;  %v1619_v29 = vpack.c.bf16 %v1587_v0, %v1587_v0 }
 0x25a   : > { %2224 = vst.msk [vmem:[#allocation3] sm:$0xf] %vm2223_vm11, %v2128_v56  ;;  %v1833_v56 = vld [vmem:[#allocation2 + $0x171] sm:$0xff] }
 0x25b   : > { %v1684_v41 = vpop.permute.xlu2 %1683  ;;  %v1865_v62 = vpack.c.bf16 %v1833_v56, %v1833_v56 }
 0x25c   : > { %1777 = vst.msk [vmem:[#allocation3 + $0xc] sm:$0xf] %vm1773_vm9, %v1684_v41  ;;  %v1595_v41 = vld [vmem:[#allocation2 + $0xd8] sm:$0xff] }
 0x25d   : > { %2165 = vrot.lane.b32.xlu1 %v3783_v57, %s3017_s29  ;;  %v1594_v57 = vld [vmem:[#allocation2 + $0xc8] sm:$0xff] }
 0x25e   : > { %2177 = vrot.lane.b32.xlu0 %v3806_v6, %s3017_s29  ;;  %v1626_v4 = vpack.c.bf16 %v1594_v57, %v1594_v57  ;;  %v1821_v57 = vld [vmem:[#allocation2 + $0xe1] sm:$0xff] }
 0x25f   : > { %v1905_v9 = vpop.permute.xlu1 %1904 }
 0x260   : > { %2000 = vst.msk [vmem:[#allocation3 + $0x4] sm:$0xf] %vm1998_vm10, %v1905_v9  ;;  %v2130_v52 = vpop.permute.xlu0 %2129  ;;  %v1820_v9 = vld [vmem:[#allocation2 + $0xd9] sm:$0xff] }
 0x261   : > { %2225 = vst.msk [vmem:[#allocation3 + $0x4] sm:$0xf] %vm2223_vm11, %v2130_v52  ;;  %1952 = vrot.lane.b32.xlu2 %v3661_v63, %s3016_s28  ;;  %v1845_v63 = vpack.c.bf16 %v1813_v59, %v1813_v59  ;;  %v1627_v52 = vpack.c.bf16 %v1595_v41, %v1595_v41 }
 0x263   : > { %v1907_v26 = vpop.permute.xlu2 %1906 }
 0x265   : > { %1689 = vrot.lane.b32.xlu1 %v1619_v29, %s3015_s27  ;;  %v1852_v29 = vpack.c.bf16 %v1820_v9, %v1820_v9  ;;  %v1837_v9 = vld [vmem:[#allocation2 + $0x1a1] sm:$0xff] }
 0x266   : > { %1701 = vrot.lane.b32.xlu0 %v1625_v58, %s3015_s27  ;;  %v2057_v58 = vld [vmem:[#allocation2 + $0x16a] sm:$0xff] }
 0x267   : > { %v1682_v6 = vpop.permute.xlu1 %1681 }
 0x268   : > { %1776 = vst.msk [vmem:[#allocation3 + $0x8] sm:$0xf] %vm1773_vm9, %v1682_v6  ;;  %v1694_v61 = vpop.permute.xlu0 %1693  ;;  %v2957_v60 = vld [vmem:[#allocation3] sm:$0xff] }
 0x269   : > { %1782 = vst.msk [vmem:[#allocation3 + $0x20] sm:$0xf] %vm1773_vm9, %v1694_v61  ;;  %2175 = vrot.lane.b32.xlu2 %v3789_v40, %s3017_s29  ;;  %2937 = vmatmul.msk.bf16.vlgmr.msra.gmra.mxu0 %vm2388_vm12, %v2957_v60  ;;  %v1812_v40 = vld [vmem:[#allocation2 + $0x79] sm:$0xff]  ;;  %v1853_v61 = vpack.c.bf16 %v1821_v57, %v1821_v57 }
 0x26a   : > { %2001 = vst.msk [vmem:[#allocation3 + $0x8] sm:$0xf] %vm1998_vm10, %v1907_v26  ;;  %v1844_v22 = vpack.c.bf16 %v1812_v40, %v1812_v40  ;;  %v1596_v60 = vld [vmem:[#allocation2 + $0xe0] sm:$0xff] }
 0x26b   : > { %v1921_v12 = vpop.permute.xlu2 %1920 }
 0x26d   : > { %1703 = vrot.lane.b32.xlu1 %v1626_v4, %s3015_s27 }
 0x26e   : > { %1916 = vrot.lane.b32.xlu0 %v1845_v63, %s3016_s28  ;;  %v1628_v63 = vpack.c.bf16 %v1596_v60, %v1596_v60 }
 0x26f   : > { %v1696_v48 = vpop.permute.xlu1 %1695 }
 0x270   : > { %1783 = vst.msk [vmem:[#allocation3 + $0x24] sm:$0xf] %vm1773_vm9, %v1696_v48  ;;  %v1909_v35 = vpop.permute.xlu0 %1908 }
 0x271   : > { %2002 = vst.msk [vmem:[#allocation3 + $0xc] sm:$0xf] %vm1998_vm10, %v1909_v35  ;;  %1691 = vrot.lane.b32.xlu2 %v1620_v13, %s3015_s27  ;;  %v2045_v35 = vld [vmem:[#allocation2 + $0xda] sm:$0xff] }
 0x272   : > { %2008 = vst.msk [vmem:[#allocation3 + $0x24] sm:$0xf] %vm1998_vm10, %v1921_v12  ;;  %v1604_v12 = vld [vmem:[#allocation2 + $0x140] sm:$0xff] }
 0x273   : > { %v2144_v15 = vpop.permute.xlu2 %2143  ;;  %v1636_v48 = vpack.c.bf16 %v1604_v12, %v1604_v12 }
 0x275   : > { %1926 = vrot.lane.b32.xlu1 %v3632_v53, %s3016_s28  ;;  %v1851_v53 = vpack.c.bf16 %v1819_v37, %v1819_v37 }
 0x276   : > { %2139 = vrot.lane.b32.xlu0 %v3711_v51, %s3017_s29  ;;  %v1601_v51 = vld [vmem:[#allocation2 + $0x120] sm:$0xff] }
 0x277   : > { %v1919_v32 = vpop.permute.xlu1 %1918  ;;  %v1633_v2 = vpack.c.bf16 %v1601_v51, %v1601_v51 }
 0x278   : > { %2007 = vst.msk [vmem:[#allocation3 + $0x20] sm:$0xf] %vm1998_vm10, %v1919_v32  ;;  %v2132_v28 = vpop.permute.xlu0 %2131 }
 0x279   : > { %2226 = vst.msk [vmem:[#allocation3 + $0x8] sm:$0xf] %vm2223_vm11, %v2132_v28  ;;  %1914 = vrot.lane.b32.xlu2 %v1844_v22, %s3016_s28  ;;  %v1609_v22 = vld [vmem:[#allocation2 + $0x180] sm:$0xff] }
 0x27a   : > { %2232 = vst.msk [vmem:[#allocation3 + $0x20] sm:$0xf] %vm2223_vm11, %v2144_v15  ;;  %v2077_v15 = vpack.c.bf16 %v2045_v35, %v2045_v35  ;;  %v1828_v28 = vld [vmem:[#allocation2 + $0x139] sm:$0xff] }
 0x27b   : > { %v1712_v39 = vpop.permute.xlu2 %1711  ;;  %v1860_v51 = vpack.c.bf16 %v1828_v28, %v1828_v28 }
 0x27c   : > { %1791 = vst.msk [vmem:[#allocation3 + $0x44] sm:$0xf] %vm1773_vm9, %v1712_v39 }
 0x27d   : > { %2141 = vrot.lane.b32.xlu1 %v3731_v36, %s3017_s29  ;;  %v1608_v36 = vld [vmem:[#allocation2 + $0x170] sm:$0xff] }
 0x27e   : > { %2153 = vrot.lane.b32.xlu0 %v3757_v10, %s3017_s29  ;;  %v1640_v55 = vpack.c.bf16 %v1608_v36, %v1608_v36 }
 0x27f   : > { %v2134_v42 = vpop.permute.xlu1 %2133 }
 0x280   : > { %2227 = vst.msk [vmem:[#allocation3 + $0xc] sm:$0xf] %vm2223_vm11, %v2134_v42  ;;  %v2146_v17 = vpop.permute.xlu0 %2145  ;;  %v1603_v42 = vld [vmem:[#allocation2 + $0x138] sm:$0xff] }
 0x281   : > { %2233 = vst.msk [vmem:[#allocation3 + $0x24] sm:$0xf] %vm2223_vm11, %v2146_v17  ;;  %1928 = vrot.lane.b32.xlu2 %v1851_v53, %s3016_s28  ;;  %v1641_v53 = vpack.c.bf16 %v1609_v22, %v1609_v22  ;;  %v1635_v17 = vpack.c.bf16 %v1603_v42, %v1603_v42 }
 0x283   : > { %v2160_v23 = vpop.permute.xlu2 %2159 }
 0x285   : > { %1717 = vrot.lane.b32.xlu1 %v1633_v2, %s3015_s27  ;;  %v1829_v2 = vld [vmem:[#allocation2 + $0x141] sm:$0xff] }
 0x286   : > { %1729 = vrot.lane.b32.xlu0 %v1639_v5, %s3015_s27 }
 0x287   : > { %v1710_v27 = vpop.permute.xlu1 %1709  ;;  %v2958_v10 = vld [vmem:[#allocation3 + $0x8] sm:$0xff] }
 0x288   : > { %1790 = vst.msk [vmem:[#allocation3 + $0x40] sm:$0xf] %vm1773_vm9, %v1710_v27  ;;  %v1935_v54 = vpop.permute.xlu0 %1934  ;;  %v2961_v3 = vld [vmem:[#allocation3 + $0x20] sm:$0xff]  ;;  %2938 = vmatmul.msk.bf16.gmra.mxu0 %vm2388_vm12, %v2958_v10  ;;  %v1861_v27 = vpack.c.bf16 %v1829_v2, %v1829_v2 }
 0x289   : > { %2015 = vst.msk [vmem:[#allocation3 + $0x40] sm:$0xf] %vm1998_vm10, %v1935_v54  ;;  %2151 = vrot.lane.b32.xlu2 %v3737_v20, %s3017_s29  ;;  %2941 = vmatmul.msk.bf16.vlgmr.msra.gmra.mxu1 %vm2388_vm12, %v2961_v3  ;;  %v1610_v54 = vld [vmem:[#allocation2 + $0x188] sm:$0xff] }
 0x28a   : > { %2240 = vst.msk [vmem:[#allocation3 + $0x40] sm:$0xf] %vm2223_vm11, %v2160_v23  ;;  %v1835_v23 = vld [vmem:[#allocation2 + $0x189] sm:$0xff] }
 0x28b   : > { %v1688_v7 = vpop.permute.xlu2 %1687  ;;  %v1867_v10 = vpack.c.bf16 %v1835_v23, %v1835_v23 }
 0x28c   : > { %1779 = vst.msk [vmem:[#allocation3 + $0x14] sm:$0xf] %vm1773_vm9, %v1688_v7  ;;  %v2059_v7 = vld [vmem:[#allocation2 + $0x182] sm:$0xff] }
 0x28d   : > { %1731 = vrot.lane.b32.xlu1 %v1640_v55, %s3015_s27  ;;  %v1642_v55 = vpack.c.bf16 %v1610_v54, %v1610_v54  ;;  %v2091_v18 = vpack.c.bf16 %v2059_v7, %v2059_v7 }
 0x28e   : > { %1944 = vrot.lane.b32.xlu0 %v3665_v14, %s3016_s28 }
 0x28f   : > { %v1937_v11 = vpop.permute.xlu1 %1936 }
 0x290   : > { %2016 = vst.msk [vmem:[#allocation3 + $0x44] sm:$0xf] %vm1998_vm10, %v1937_v11  ;;  %v2162_v20 = vpop.permute.xlu0 %2161  ;;  %v1834_v11 = vld [vmem:[#allocation2 + $0x181] sm:$0xff] }
 0x291   : > { %2241 = vst.msk [vmem:[#allocation3 + $0x44] sm:$0xf] %vm2223_vm11, %v2162_v20  ;;  %1719 = vrot.lane.b32.xlu2 %v1634_v30, %s3015_s27  ;;  %v1866_v20 = vpack.c.bf16 %v1834_v11, %v1834_v11 }
 0x293   : > { %v1911_v31 = vpop.permute.xlu2 %1910 }
 0x295   : > { %1954 = vrot.lane.b32.xlu1 %v1864_v1, %s3016_s28  ;;  %v2060_v1 = vld [vmem:[#allocation2 + $0x18a] sm:$0xff] }
 0x296   : > { %2167 = vrot.lane.b32.xlu0 %v2083_v24, %s3017_s29 }
 0x297   : > { %v1686_v14 = vpop.permute.xlu1 %1685 }
 0x298   : > { %1778 = vst.msk [vmem:[#allocation3 + $0x10] sm:$0xf] %vm1773_vm9, %v1686_v14  ;;  %v1698_v49 = vpop.permute.xlu0 %1697  ;;  %v2965_v43 = vld [vmem:[#allocation3 + $0x40] sm:$0xff] }
 0x299   : > { %1784 = vst.msk [vmem:[#allocation3 + $0x28] sm:$0xf] %vm1773_vm9, %v1698_v49  ;;  %1942 = vrot.lane.b32.xlu2 %v1858_v21, %s3016_s28  ;;  %2945 = vmatmul.msk.bf16.vlgmr.msra.gmra.mxu2 %vm2388_vm12, %v2965_v43  ;;  %v2054_v21 = vld [vmem:[#allocation2 + $0x142] sm:$0xff] }
 0x29a   : > { %2003 = vst.msk [vmem:[#allocation3 + $0x10] sm:$0xf] %vm1998_vm10, %v1911_v31  ;;  %v2092_v31 = vpack.c.bf16 %v2060_v1, %v2060_v1  ;;  %v2086_v44 = vpack.c.bf16 %v2054_v21, %v2054_v21 }
 0x29b   : > { %v1925_v47 = vpop.permute.xlu2 %1924 }
 0x29d   : > { %2169 = vrot.lane.b32.xlu1 %v3776_v34, %s3017_s29  ;;  %v2089_v34 = vpack.c.bf16 %v2057_v58, %v2057_v58  ;;  %v1869_v58 = vpack.c.bf16 %v1837_v9, %v1837_v9 }
 0x29e   : > { %2181 = vrot.lane.b32.xlu0 %v2090_v33, %s3017_s29 }
 0x29f   : > { %v1700_v0 = vpop.permute.xlu1 %1699 }
 0x2a0   : > { %1785 = vst.msk [vmem:[#allocation3 + $0x2c] sm:$0xf] %vm1773_vm9, %v1700_v0  ;;  %v1913_v50 = vpop.permute.xlu0 %1912 }
 0x2a1   : > { %2004 = vst.msk [vmem:[#allocation3 + $0x14] sm:$0xf] %vm1998_vm10, %v1913_v50  ;;  %1956 = vrot.lane.b32.xlu2 %v1865_v62, %s3016_s28 }
 0x2a2   : > { %2010 = vst.msk [vmem:[#allocation3 + $0x2c] sm:$0xf] %vm1998_vm10, %v1925_v47 }
 0x2a3   : > { %v2148_v26 = vpop.permute.xlu2 %2147 }
 0x2a5   : > { %1705 = vrot.lane.b32.xlu1 %v1627_v52, %s3015_s27  ;;  %v2062_v52 = vld [vmem:[#allocation2 + $0x1a2] sm:$0xff] }
 0x2a6   : > { %1930 = vrot.lane.b32.xlu0 %v1852_v29, %s3016_s28 }
 0x2a7   : > { %v1923_v6 = vpop.permute.xlu1 %1922 }
 0x2a8   : > { %2009 = vst.msk [vmem:[#allocation3 + $0x28] sm:$0xf] %vm1998_vm10, %v1923_v6  ;;  %v2136_v59 = vpop.permute.xlu0 %2135 }
 0x2a9   : > { %2228 = vst.msk [vmem:[#allocation3 + $0x10] sm:$0xf] %vm2223_vm11, %v2136_v59  ;;  %2179 = vrot.lane.b32.xlu2 %v2089_v34, %s3017_s29  ;;  %v1612_v34 = vld [vmem:[#allocation2 + $0x1a0] sm:$0xff] }
 0x2aa   : > { %2234 = vst.msk [vmem:[#allocation3 + $0x28] sm:$0xf] %vm2223_vm11, %v2148_v26  ;;  %v2094_v26 = vpack.c.bf16 %v2062_v52, %v2062_v52  ;;  %v1644_v6 = vpack.c.bf16 %v1612_v34, %v1612_v34 }
 0x2ab   : > { %v1716_v4 = vpop.permute.xlu2 %1715 }
 0x2ac   : > { %1793 = vst.msk [vmem:[#allocation3 + $0x4c] sm:$0xf] %vm1773_vm9, %v1716_v4 }
 0x2ad   : > { %1932 = vrot.lane.b32.xlu1 %v1853_v61, %s3016_s28 }
 0x2ae   : > { %2157 = vrot.lane.b32.xlu0 %v3750_v25, %s3017_s29 }
 0x2af   : > { %v2138_v8 = vpop.permute.xlu1 %2137 }
 0x2b0   : > { %2229 = vst.msk [vmem:[#allocation3 + $0x14] sm:$0xf] %vm2223_vm11, %v2138_v8  ;;  %v2150_v13 = vpop.permute.xlu0 %2149 }
 0x2b1   : > { %2235 = vst.msk [vmem:[#allocation3 + $0x2c] sm:$0xf] %vm2223_vm11, %v2150_v13  ;;  %1707 = vrot.lane.b32.xlu2 %v1628_v63, %s3015_s27  ;;  %v2061_v63 = vld [vmem:[#allocation2 + $0x19a] sm:$0xff] }
 0x2b2   : > { %v2093_v12 = vpack.c.bf16 %v2061_v63, %v2061_v63 }
 0x2b3   : > { %v1939_v40 = vpop.permute.xlu2 %1938 }
 0x2b5   : > { %1509 = vrot.lane.b32.xlu1 %v2090_v33, %s3014_s26  ;;  %v1836_v33 = vld [vmem:[#allocation2 + $0x199] sm:$0xff] }
 0x2b6   : > { %1723 = vrot.lane.b32.xlu0 %v1636_v48, %s3015_s27  ;;  %v1868_v41 = vpack.c.bf16 %v1836_v33, %v1836_v33 }
 0x2b7   : > { %v1714_v32 = vpop.permute.xlu1 %1713  ;;  %v2959_v25 = vld [vmem:[#allocation3 + $0x10] sm:$0xff] }
 0x2b8   : > { %1792 = vst.msk [vmem:[#allocation3 + $0x48] sm:$0xf] %vm1773_vm9, %v1714_v32  ;;  %v1726_v37 = vpop.permute.xlu0 %1725  ;;  %v2962_v39 = vld [vmem:[#allocation3 + $0x28] sm:$0xff]  ;;  %2939 = vmatmul.msk.bf16.gmra.mxu0 %vm2388_vm12, %v2959_v25 }
 0x2b9   : > { %1798 = vst.msk [vmem:[#allocation3 + $0x60] sm:$0xf] %vm1773_vm9, %v1726_v37  ;;  %2155 = vrot.lane.b32.xlu2 %v2077_v15, %s3017_s29  ;;  %2942 = vmatmul.msk.bf16.gmra.mxu1 %vm2388_vm12, %v2962_v39 }
 0x2ba   : > { %2017 = vst.msk [vmem:[#allocation3 + $0x48] sm:$0xf] %vm1998_vm10, %v1939_v40 }
 0x2bb   : > { %v1953_v38 = vpop.permute.xlu2 %1952 }
 0x2bd   : > { %1733 = vrot.lane.b32.xlu1 %v1641_v53, %s3015_s27 }
 0x2be   : > { %1946 = vrot.lane.b32.xlu0 %v1860_v51, %s3016_s28 }
 0x2bf   : > { %v1728_v5 = vpop.permute.xlu1 %1727 }
 0x2c0   : > { %1799 = vst.msk [vmem:[#allocation3 + $0x64] sm:$0xf] %vm1773_vm9, %v1728_v5  ;;  %v1941_v36 = vpop.permute.xlu0 %1940 }
 0x2c1   : > { %2018 = vst.msk [vmem:[#allocation3 + $0x4c] sm:$0xf] %vm1998_vm10, %v1941_v36  ;;  %1721 = vrot.lane.b32.xlu2 %v1635_v17, %s3015_s27 }
 0x2c2   : > { %2024 = vst.msk [vmem:[#allocation3 + $0x64] sm:$0xf] %vm1998_vm10, %v1953_v38 }
 0x2c3   : > { %v2176_v3 = vpop.permute.xlu2 %2175 }
 0x2c5   : > { %1948 = vrot.lane.b32.xlu1 %v1861_v27, %s3016_s28 }
 0x2c6   : > { %1960 = vrot.lane.b32.xlu0 %v1867_v10, %s3016_s28 }
 0x2c7   : > { %v1951_v19 = vpop.permute.xlu1 %1950 }
 0x2c8   : > { %2023 = vst.msk [vmem:[#allocation3 + $0x60] sm:$0xf] %vm1998_vm10, %v1951_v19  ;;  %v2164_v30 = vpop.permute.xlu0 %2163 }
 0x2c9   : > { %2242 = vst.msk [vmem:[#allocation3 + $0x48] sm:$0xf] %vm2223_vm11, %v2164_v30  ;;  %1735 = vrot.lane.b32.xlu2 %v1642_v55, %s3015_s27 }
 0x2ca   : > { %2248 = vst.msk [vmem:[#allocation3 + $0x60] sm:$0xf] %vm2223_vm11, %v2176_v3 }
 0x2cb   : > { %v1692_v45 = vpop.permute.xlu2 %1691 }
 0x2cc   : > { %1781 = vst.msk [vmem:[#allocation3 + $0x1c] sm:$0xf] %vm1773_vm9, %v1692_v45 }
 0x2cd   : > { %2171 = vrot.lane.b32.xlu1 %v3796_v16, %s3017_s29  ;;  %v1611_v16 = vld [vmem:[#allocation2 + $0x198] sm:$0xff] }
 0x2ce   : > { %2183 = vrot.lane.b32.xlu0 %v2091_v18, %s3017_s29  ;;  %v1643_v62 = vpack.c.bf16 %v1611_v16, %v1611_v16 }
 0x2cf   : > { %v2166_v24 = vpop.permute.xlu1 %2165 }
 0x2d0   : > { %2243 = vst.msk [vmem:[#allocation3 + $0x4c] sm:$0xf] %vm2223_vm11, %v2166_v24  ;;  %v2178_v46 = vpop.permute.xlu0 %2177 }
 0x2d1   : > { %2249 = vst.msk [vmem:[#allocation3 + $0x64] sm:$0xf] %vm2223_vm11, %v2178_v46  ;;  %1958 = vrot.lane.b32.xlu2 %v1866_v20, %s3016_s28 }
 0x2d3   : > { %v1915_v14 = vpop.permute.xlu2 %1914 }
 0x2d5   : > { %2185 = vrot.lane.b32.xlu1 %v2092_v31, %s3017_s29 }
 0x2d6   : > { %1513 = vrot.lane.b32.xlu0 %v2092_v31, %s3014_s26 }
 0x2d7   : > { %v1690_v49 = vpop.permute.xlu1 %1689  ;;  %v2966_v43 = vld [vmem:[#allocation3 + $0x48] sm:$0xff] }
 0x2d8   : > { %1780 = vst.msk [vmem:[#allocation3 + $0x18] sm:$0xf] %vm1773_vm9, %v1690_v49  ;;  %v1702_v56 = vpop.permute.xlu0 %1701  ;;  %v2969_v47 = vld [vmem:[#allocation3 + $0x60] sm:$0xff]  ;;  %2946 = vmatmul.msk.bf16.gmra.mxu2 %vm2388_vm12, %v2966_v43 }
 0x2d9   : > { %1786 = vst.msk [vmem:[#allocation3 + $0x30] sm:$0xf] %vm1773_vm9, %v1702_v56  ;;  %2173 = vrot.lane.b32.xlu2 %v2086_v44, %s3017_s29  ;;  %2949 = vmatmul.msk.bf16.vlgmr.msra.gmra.mxu3 %vm2388_vm12, %v2969_v47 }
 0x2da   : > { %2005 = vst.msk [vmem:[#allocation3 + $0x18] sm:$0xf] %vm1998_vm10, %v1915_v14 }
 0x2db   : > { %v1929_v0 = vpop.permute.xlu2 %1928 }
 0x2dd   : > { %1737 = vrot.lane.b32.xlu1 %v1643_v62, %s3015_s27 }
 0x2de   : > { %1962 = vrot.lane.b32.xlu0 %v1868_v41, %s3016_s28 }
 0x2df   : > { %v1704_v50 = vpop.permute.xlu1 %1703 }
 0x2e0   : > { %1787 = vst.msk [vmem:[#allocation3 + $0x34] sm:$0xf] %vm1773_vm9, %v1704_v50  ;;  %v1917_v29 = vpop.permute.xlu0 %1916 }
 0x2e1   : > { %2006 = vst.msk [vmem:[#allocation3 + $0x1c] sm:$0xf] %vm1998_vm10, %v1917_v29  ;;  %1511 = vrot.lane.b32.xlu2 %v2091_v18, %s3014_s26 }
 0x2e2   : > { %2012 = vst.msk [vmem:[#allocation3 + $0x34] sm:$0xf] %vm1998_vm10, %v1929_v0 }
 0x2e3   : > { %v2152_v57 = vpop.permute.xlu2 %2151 }
 0x2e5   : > { %1964 = vrot.lane.b32.xlu1 %v1869_v58, %s3016_s28 }
 0x2e6   : > { %2189 = vrot.lane.b32.xlu0 %v2094_v26, %s3017_s29  ;;  %v2450_v61 = vpop.f32.mrf.mxu0 }
 0x2e7   : > { %v1927_v59 = vpop.permute.xlu1 %1926  ;;  %v2530_v4 = vpack.c.bf16 %v2450_v61, %v2450_v61  ;;  %v2667_v13 = vmul.f32 %v2450_v61, %v2450_v61  ;;  %v2596_v40 = vsel %vm2595_vm14, %v2450_v61, 0.0 }
 0x2e8   : > { %2011 = vst.msk [vmem:[#allocation3 + $0x30] sm:$0xf] %vm1998_vm10, %v1927_v59  ;;  %v2140_v60 = vpop.permute.xlu0 %2139 }
 0x2e9   : > { %2230 = vst.msk [vmem:[#allocation3 + $0x18] sm:$0xf] %vm2223_vm11, %v2140_v60  ;;  %1739 = vrot.lane.b32.xlu2 %v1644_v6, %s3015_s27  ;;  %v2699_v37 = vsel %vm2595_vm14, %v2667_v13, 0.0 }
 0x2ea   : > { %2563 = vst.msk [vmem:[%s4059_s14] sm:$0xf] %vm2562_vm13, %v2530_v4 }
 0x2eb   : > { %2236 = vst.msk [vmem:[#allocation3 + $0x30] sm:$0xf] %vm2223_vm11, %v2152_v57  ;;  %v1720_v8 = vpop.permute.xlu2 %1719 }
 0x2ec   : > { %1795 = vst.msk [vmem:[#allocation3 + $0x54] sm:$0xf] %vm1773_vm9, %v1720_v8 }
 0x2ee   : > { %v2452_v35 = vpop.f32.mrf.mxu0 }
 0x2ef   : > { %v2142_v48 = vpop.permute.xlu1 %2141  ;;  %v2531_v22 = vpack.c.bf16 %v2452_v35, %v2452_v35  ;;  %v2597_v32 = vsel %vm2595_vm14, %v2452_v35, 0.0  ;;  %v2668_v25 = vmul.f32 %v2452_v35, %v2452_v35 }
 0x2f0   : > { %2231 = vst.msk [vmem:[#allocation3 + $0x1c] sm:$0xf] %vm2223_vm11, %v2142_v48  ;;  %v2154_v15 = vpop.permute.xlu0 %2153  ;;  %v2598_v28 = vadd.f32 %v2597_v32, %v2596_v40 }
 0x2f1   : > { %2237 = vst.msk [vmem:[#allocation3 + $0x34] sm:$0xf] %vm2223_vm11, %v2154_v15  ;;  %2187 = vrot.lane.b32.xlu2 %v2093_v12, %s3017_s29  ;;  %v2700_v39 = vsel %vm2595_vm14, %v2668_v25, 0.0 }
 0x2f2   : > { %2564 = vst.msk [vmem:[%s4059_s14 + $0x4] sm:$0xf] %vm2562_vm13, %v2531_v22  ;;  %v2701_v53 = vadd.f32 %v2700_v39, %v2699_v37 }
 0x2f3   : > { %v1943_v51 = vpop.permute.xlu2 %1942 }
 0x2f7   : > { %v1718_v42 = vpop.permute.xlu1 %1717  ;;  %v2960_v38 = vld [vmem:[#allocation3 + $0x18] sm:$0xff] }
 0x2f8   : > { %1794 = vst.msk [vmem:[#allocation3 + $0x50] sm:$0xf] %vm1773_vm9, %v1718_v42  ;;  %v1730_v17 = vpop.permute.xlu0 %1729  ;;  %v2963_v2 = vld [vmem:[#allocation3 + $0x30] sm:$0xff]  ;;  %2940 = vmatmul.msk.bf16.gmra.mxu0 %vm2388_vm12, %v2960_v38 }
 0x2f9   : > { %1800 = vst.msk [vmem:[#allocation3 + $0x68] sm:$0xf] %vm1773_vm9, %v1730_v17  ;;  %2943 = vmatmul.msk.bf16.gmra.mxu1 %vm2388_vm12, %v2963_v2 }
 0x2fa   : > { %2019 = vst.msk [vmem:[#allocation3 + $0x50] sm:$0xf] %vm1998_vm10, %v1943_v51 }
 0x2fb   : > { %v1957_v5 = vpop.permute.xlu2 %1956 }
 0x2ff   : > { %v1732_v23 = vpop.permute.xlu1 %1731 }
 0x300   : > { %1801 = vst.msk [vmem:[#allocation3 + $0x6c] sm:$0xf] %vm1773_vm9, %v1732_v23  ;;  %v1945_v36 = vpop.permute.xlu0 %1944 }
 0x301   : > { %2020 = vst.msk [vmem:[#allocation3 + $0x54] sm:$0xf] %vm1998_vm10, %v1945_v36 }
 0x302   : > { %2026 = vst.msk [vmem:[#allocation3 + $0x6c] sm:$0xf] %vm1998_vm10, %v1957_v5 }
 0x303   : > { %v2180_v27 = vpop.permute.xlu2 %2179 }
 0x305   : > { %v2455_v10 = vpop.f32.mrf.mxu0 }
 0x306   : > { %v2532_v3 = vpack.c.bf16 %v2455_v10, %v2455_v10  ;;  %v2599_v55 = vsel %vm2595_vm14, %v2455_v10, 0.0  ;;  %v2669_v19 = vmul.f32 %v2455_v10, %v2455_v10  ;;  %v4086_v7 = vpop.f32.mrf.mxu1 }
 0x307   : > { %v1955_v54 = vpop.permute.xlu1 %1954  ;;  %v2600_v30 = vadd.f32 %v2599_v55, %v2598_v28  ;;  %v2538_v11 = vpack.c.bf16 %v4086_v7, %v4086_v7 }
 0x308   : > { %2025 = vst.msk [vmem:[#allocation3 + $0x68] sm:$0xf] %vm1998_vm10, %v1955_v54  ;;  %v2168_v18 = vpop.permute.xlu0 %2167  ;;  %v2702_v45 = vsel %vm2595_vm14, %v2669_v19, 0.0 }
 0x309   : > { %2565 = vst.msk [vmem:[%s4059_s14 + $0x8] sm:$0xf] %vm2562_vm13, %v2532_v3  ;;  %v2703_v20 = vadd.f32 %v2702_v45, %v2701_v53 }
 0x30a   : > { %2244 = vst.msk [vmem:[#allocation3 + $0x50] sm:$0xf] %vm2223_vm11, %v2168_v18 }
 0x30b   : > { %2571 = vst.msk [vmem:[%s4059_s14 + $0x20] sm:$0xf] %vm2562_vm13, %v2538_v11  ;;  %v1708_v1 = vpop.permute.xlu2 %1707 }
 0x30c   : > { %2250 = vst.msk [vmem:[#allocation3 + $0x68] sm:$0xf] %vm2223_vm11, %v2180_v27 }
 0x30d   : > { %1789 = vst.msk [vmem:[#allocation3 + $0x3c] sm:$0xf] %vm1773_vm9, %v1708_v1  ;;  %v2457_v24 = vpop.f32.mrf.mxu0 }
 0x30e   : > { %v2533_v31 = vpack.c.bf16 %v2457_v24, %v2457_v24  ;;  %v2601_v21 = vsel %vm2595_vm14, %v2457_v24, 0.0  ;;  %v2670_v14 = vmul.f32 %v2457_v24, %v2457_v24  ;;  %v4100_v44 = vpop.f32.mrf.mxu1 }
 0x30f   : > { %v2170_v46 = vpop.permute.xlu1 %2169  ;;  %v2602_v16 = vadd.f32 %v2601_v21, %v2600_v30  ;;  %v2539_v43 = vpack.c.bf16 %v4100_v44, %v4100_v44 }
 0x310   : > { %2245 = vst.msk [vmem:[#allocation3 + $0x54] sm:$0xf] %vm2223_vm11, %v2170_v46  ;;  %v2182_v49 = vpop.permute.xlu0 %2181  ;;  %v2704_v33 = vsel %vm2595_vm14, %v2670_v14, 0.0 }
 0x311   : > { %2566 = vst.msk [vmem:[%s4059_s14 + $0xc] sm:$0xf] %vm2562_vm13, %v2533_v31  ;;  %v2705_v56 = vadd.f32 %v2704_v33, %v2703_v20 }
 0x312   : > { %2251 = vst.msk [vmem:[#allocation3 + $0x6c] sm:$0xf] %vm2223_vm11, %v2182_v49 }
 0x313   : > { %2572 = vst.msk [vmem:[%s4059_s14 + $0x24] sm:$0xf] %vm2562_vm13, %v2539_v43  ;;  %v2156_v47 = vpop.permute.xlu2 %2155 }
 0x317   : > { %v1706_v62 = vpop.permute.xlu1 %1705  ;;  %v2967_v41 = vld [vmem:[#allocation3 + $0x50] sm:$0xff] }
 0x318   : > { %1788 = vst.msk [vmem:[#allocation3 + $0x38] sm:$0xf] %vm1773_vm9, %v1706_v62  ;;  %v1931_v0 = vpop.permute.xlu0 %1930  ;;  %2947 = vmatmul.msk.bf16.gmra.mxu2 %vm2388_vm12, %v2967_v41 }
 0x319   : > { %2013 = vst.msk [vmem:[#allocation3 + $0x38] sm:$0xf] %vm1998_vm10, %v1931_v0  ;;  %v2970_v9 = vld [vmem:[#allocation3 + $0x68] sm:$0xff] }
 0x31a   : > { %2238 = vst.msk [vmem:[#allocation3 + $0x38] sm:$0xf] %vm2223_vm11, %v2156_v47  ;;  %2950 = vmatmul.msk.bf16.gmra.mxu3 %vm2388_vm12, %v2970_v9 }
 0x31b   : > { %v1722_v50 = vpop.permute.xlu2 %1721 }
 0x31c   : > { %1796 = vst.msk [vmem:[#allocation3 + $0x58] sm:$0xf] %vm1773_vm9, %v1722_v50  ;;  %v4117_v52 = vpop.f32.mrf.mxu2 }
 0x31d   : > { %v2546_v29 = vpack.c.bf16 %v4117_v52, %v4117_v52 }
 0x31f   : > { %v1933_v58 = vpop.permute.xlu1 %1932  ;;  %2579 = vst.msk [vmem:[%s4059_s14 + $0x40] sm:$0xf] %vm2562_vm13, %v2546_v29 }
 0x320   : > { %v2158_v26 = vpop.permute.xlu0 %2157  ;;  %2014 = vst.msk [vmem:[#allocation3 + $0x3c] sm:$0xf] %vm1998_vm10, %v1933_v58 }
 0x321   : > { %2239 = vst.msk [vmem:[#allocation3 + $0x3c] sm:$0xf] %vm2223_vm11, %v2158_v26 }
 0x323   : > { %v1736_v34 = vpop.permute.xlu2 %1735 }
 0x324   : > { %v4125_v57 = vpop.f32.mrf.mxu2 }
 0x325   : > { %v2547_v6 = vpack.c.bf16 %v4125_v57, %v4125_v57 }
 0x327   : > { %v1510_v59 = vpop.permute.xlu1 %1509  ;;  %2580 = vst.msk [vmem:[%s4059_s14 + $0x44] sm:$0xf] %vm2562_vm13, %v2547_v6  ;;  %v2675_v6 = vmul.f32 %v4086_v7, %v4086_v7 }
 0x328   : > { %v1724_v61 = vpop.permute.xlu0 %1723  ;;  %1577 = vst.msk [vmem:[#allocation3 + $0x74] sm:$0xf] %vm1547_vm7, %v1510_v59  ;;  %v2964_v60 = vld [vmem:[#allocation3 + $0x38] sm:$0xff] }
 0x329   : > { %1797 = vst.msk [vmem:[#allocation3 + $0x5c] sm:$0xf] %vm1773_vm9, %v1724_v61  ;;  %2944 = vmatmul.msk.bf16.gmra.mxu1 %vm2388_vm12, %v2964_v60 }
 0x32a   : > { %1803 = vst.msk [vmem:[#allocation3 + $0x74] sm:$0xf] %vm1773_vm9, %v1736_v34 }
 0x32b   : > { %v1959_v4 = vpop.permute.xlu2 %1958 }
 0x32f   : > { %v1734_v63 = vpop.permute.xlu1 %1733 }
 0x330   : > { %1802 = vst.msk [vmem:[#allocation3 + $0x70] sm:$0xf] %vm1773_vm9, %v1734_v63  ;;  %v1947_v8 = vpop.permute.xlu0 %1946 }
 0x331   : > { %2021 = vst.msk [vmem:[#allocation3 + $0x58] sm:$0xf] %vm1998_vm10, %v1947_v8 }
 0x332   : > { %2027 = vst.msk [vmem:[#allocation3 + $0x70] sm:$0xf] %vm1998_vm10, %v1959_v4 }
 0x333   : > { %v2174_v12 = vpop.permute.xlu2 %2173 }
 0x335   : > { %v2460_v13 = vpop.f32.mrf.mxu0 }
 0x336   : > { %v2534_v35 = vpack.c.bf16 %v2460_v13, %v2460_v13  ;;  %v2603_v40 = vsel %vm2595_vm14, %v2460_v13, 0.0  ;;  %v2671_v15 = vmul.f32 %v2460_v13, %v2460_v13  ;;  %v4139_v22 = vpop.f32.mrf.mxu1  ;;  %v2676_v13 = vmul.f32 %v4100_v44, %v4100_v44 }
 0x337   : > { %v1949_v48 = vpop.permute.xlu1 %1948  ;;  %v2604_v32 = vadd.f32 %v2603_v40, %v2602_v16  ;;  %v2540_v28 = vpack.c.bf16 %v4139_v22, %v4139_v22 }
 0x338   : > { %2022 = vst.msk [vmem:[#allocation3 + $0x5c] sm:$0xf] %vm1998_vm10, %v1949_v48  ;;  %v1961_v25 = vpop.permute.xlu0 %1960  ;;  %v2706_v37 = vsel %vm2595_vm14, %v2671_v15, 0.0  ;;  %v2714_v15 = vsel %vm2595_vm14, %v2675_v6, 0.0 }
 0x339   : > { %2567 = vst.msk [vmem:[%s4059_s14 + $0x10] sm:$0xf] %vm2562_vm13, %v2534_v35  ;;  %v2707_v39 = vadd.f32 %v2706_v37, %v2705_v56  ;;  %v2716_v37 = vsel %vm2595_vm14, %v2676_v13, 0.0 }
 0x33a   : > { %2028 = vst.msk [vmem:[#allocation3 + $0x74] sm:$0xf] %vm1998_vm10, %v1961_v25  ;;  %v2677_v25 = vmul.f32 %v4139_v22, %v4139_v22 }
 0x33b   : > { %2573 = vst.msk [vmem:[%s4059_s14 + $0x28] sm:$0xf] %vm2562_vm13, %v2540_v28  ;;  %v1512_v53 = vpop.permute.xlu2 %1511 }
 0x33c   : > { %2247 = vst.msk [vmem:[#allocation3 + $0x5c] sm:$0xf] %vm2223_vm11, %v2174_v12  ;;  %v2611_v12 = vsel %vm2595_vm14, %v4086_v7, 0.0 }
 0x33d   : > { %1578 = vst.msk [vmem:[#allocation3 + $0x78] sm:$0xf] %vm1547_vm7, %v1512_v53  ;;  %v2462_v51 = vpop.f32.mrf.mxu0 }
 0x33e   : > { %v2535_v38 = vpack.c.bf16 %v2462_v51, %v2462_v51  ;;  %v2605_v17 = vsel %vm2595_vm14, %v2462_v51, 0.0  ;;  %v2672_v2 = vmul.f32 %v2462_v51, %v2462_v51  ;;  %v4153_v5 = vpop.f32.mrf.mxu1 }
 0x33f   : > { %v2172_v42 = vpop.permute.xlu1 %2171  ;;  %v2606_v23 = vadd.f32 %v2605_v17, %v2604_v32  ;;  %v2541_v27 = vpack.c.bf16 %v4153_v5, %v4153_v5  ;;  %v2613_v32 = vsel %vm2595_vm14, %v4100_v44, 0.0  ;;  %v2678_v53 = vmul.f32 %v4153_v5, %v4153_v5 }
 0x340   : > { %2246 = vst.msk [vmem:[#allocation3 + $0x58] sm:$0xf] %vm2223_vm11, %v2172_v42  ;;  %v2184_v36 = vpop.permute.xlu0 %2183  ;;  %v2708_v10 = vsel %vm2595_vm14, %v2672_v2, 0.0  ;;  %v2617_v44 = vsel %vm2595_vm14, %v4153_v5, 0.0 }
 0x341   : > { %2568 = vst.msk [vmem:[%s4059_s14 + $0x14] sm:$0xf] %vm2562_vm13, %v2535_v38  ;;  %v2709_v54 = vadd.f32 %v2708_v10, %v2707_v39  ;;  %v2615_v39 = vsel %vm2595_vm14, %v4139_v22, 0.0  ;;  %v2718_v38 = vsel %vm2595_vm14, %v2677_v25, 0.0 }
 0x342   : > { %2252 = vst.msk [vmem:[#allocation3 + $0x70] sm:$0xf] %vm2223_vm11, %v2184_v36  ;;  %v2720_v36 = vsel %vm2595_vm14, %v2678_v53, 0.0 }
 0x343   : > { %2574 = vst.msk [vmem:[%s4059_s14 + $0x2c] sm:$0xf] %vm2562_vm13, %v2541_v27  ;;  %v1740_v3 = vpop.permute.xlu2 %1739 }
 0x347   : > { %v2186_v55 = vpop.permute.xlu1 %2185  ;;  %v2968_v19 = vld [vmem:[#allocation3 + $0x58] sm:$0xff] }
 0x348   : > { %2253 = vst.msk [vmem:[#allocation3 + $0x74] sm:$0xf] %vm2223_vm11, %v2186_v55  ;;  %v1514_v30 = vpop.permute.xlu0 %1513  ;;  %2948 = vmatmul.msk.bf16.gmra.mxu2 %vm2388_vm12, %v2968_v19 }
 0x349   : > { %1579 = vst.msk [vmem:[#allocation3 + $0x7c] sm:$0xf] %vm1547_vm7, %v1514_v30 }
 0x34a   : > { %1805 = vst.msk [vmem:[#allocation3 + $0x7c] sm:$0xf] %vm1773_vm9, %v1740_v3 }
 0x34b   : > { %v2188_v45 = vpop.permute.xlu2 %2187 }
 0x34f   : > { %v1738_v18 = vpop.permute.xlu1 %1737  ;;  %v2971_v11 = vld [vmem:[#allocation3 + $0x70] sm:$0xff] }
 0x350   : > { %1804 = vst.msk [vmem:[#allocation3 + $0x78] sm:$0xf] %vm1773_vm9, %v1738_v18  ;;  %v1963_v20 = vpop.permute.xlu0 %1962  ;;  %2951 = vmatmul.msk.bf16.gmra.mxu3 %vm2388_vm12, %v2971_v11 }
 0x351   : > { %2029 = vst.msk [vmem:[#allocation3 + $0x78] sm:$0xf] %vm1998_vm10, %v1963_v20 }
 0x352   : > { %2254 = vst.msk [vmem:[#allocation3 + $0x78] sm:$0xf] %vm2223_vm11, %v2188_v45 }
 0x357   : > { %v1965_v1 = vpop.permute.xlu1 %1964 }
 0x358   : > { %2030 = vst.msk [vmem:[#allocation3 + $0x7c] sm:$0xf] %vm1998_vm10, %v1965_v1  ;;  %v2190_v24 = vpop.permute.xlu0 %2189 }
 0x359   : > { %2255 = vst.msk [vmem:[#allocation3 + $0x7c] sm:$0xf] %vm2223_vm11, %v2190_v24 }
 0x35b   : > { %v4174_v46 = vpop.f32.mrf.mxu2 }
 0x35c   : > { %v2548_v31 = vpack.c.bf16 %v4174_v46, %v4174_v46  ;;  %v4178_v21 = vpop.f32.mrf.mxu3  ;;  %v2685_v13 = vmul.f32 %v4174_v46, %v4174_v46 }
 0x35d   : > { %v2554_v14 = vpack.c.bf16 %v4178_v21, %v4178_v21 }
 0x35e   : > { %2581 = vst.msk [vmem:[%s4059_s14 + $0x48] sm:$0xf] %vm2562_vm13, %v2548_v31 }
 0x35f   : > { %2587 = vst.msk [vmem:[%s4059_s14 + $0x60] sm:$0xf] %vm2562_vm13, %v2554_v14 }
 0x360   : > { %v2972_v16 = vld [vmem:[#allocation3 + $0x78] sm:$0xff] }
 0x361   : > { %2952 = vmatmul.msk.bf16.gmra.mxu3 %vm2388_vm12, %v2972_v16 }
 0x363   : > { %v4187_v49 = vpop.f32.mrf.mxu2 }
 0x364   : > { %v2549_v43 = vpack.c.bf16 %v4187_v49, %v4187_v49  ;;  %v4191_v33 = vpop.f32.mrf.mxu3 }
 0x365   : > { %v2555_v56 = vpack.c.bf16 %v4191_v33, %v4191_v33 }
 0x366   : > { %2582 = vst.msk [vmem:[%s4059_s14 + $0x4c] sm:$0xf] %vm2562_vm13, %v2549_v43 }
 0x367   : > { %2588 = vst.msk [vmem:[%s4059_s14 + $0x64] sm:$0xf] %vm2562_vm13, %v2555_v56 }
 0x375   : > { %v2465_v47 = vpop.f32.mrf.mxu0 }
 0x376   : > { %v2536_v62 = vpack.c.bf16 %v2465_v47, %v2465_v47  ;;  %v2607_v41 = vsel %vm2595_vm14, %v2465_v47, 0.0  ;;  %v2673_v0 = vmul.f32 %v2465_v47, %v2465_v47  ;;  %v2480_v9 = vpop.f32.mrf.mxu1 }
 0x377   : > { %v2608_v50 = vadd.f32 %v2607_v41, %v2606_v23  ;;  %v2542_v29 = vpack.c.bf16 %v2480_v9, %v2480_v9  ;;  %v2679_v17 = vmul.f32 %v2480_v9, %v2480_v9  ;;  %v2619_v27 = vsel %vm2595_vm14, %v2480_v9, 0.0 }
 0x378   : > { %2569 = vst.msk [vmem:[%s4059_s14 + $0x18] sm:$0xf] %vm2562_vm13, %v2536_v62  ;;  %v2710_v58 = vsel %vm2595_vm14, %v2673_v0, 0.0 }
 0x379   : > { %v2711_v26 = vadd.f32 %v2710_v58, %v2709_v54  ;;  %2575 = vst.msk [vmem:[%s4059_s14 + $0x30] sm:$0xf] %vm2562_vm13, %v2542_v29  ;;  %v2722_v3 = vsel %vm2595_vm14, %v2679_v17, 0.0 }
 0x37d   : > { %v2467_v34 = vpop.f32.mrf.mxu0 }
 0x37e   : > { %v2537_v59 = vpack.c.bf16 %v2467_v34, %v2467_v34  ;;  %v2609_v61 = vsel %vm2595_vm14, %v2467_v34, 0.0  ;;  %v2674_v60 = vmul.f32 %v2467_v34, %v2467_v34  ;;  %v2482_v4 = vpop.f32.mrf.mxu1 }
 0x37f   : > { %v2610_v63 = vadd.f32 %v2609_v61, %v2608_v50  ;;  %v2543_v8 = vpack.c.bf16 %v2482_v4, %v2482_v4  ;;  %v2680_v22 = vmul.f32 %v2482_v4, %v2482_v4  ;;  %v2621_v55 = vsel %vm2595_vm14, %v2482_v4, 0.0 }
 0x380   : > { %2570 = vst.msk [vmem:[%s4059_s14 + $0x1c] sm:$0xf] %vm2562_vm13, %v2537_v59  ;;  %v2712_v48 = vsel %vm2595_vm14, %v2674_v60, 0.0  ;;  %v2683_v50 = vmul.f32 %v4117_v52, %v4117_v52  ;;  %v2627_v59 = vsel %vm2595_vm14, %v4117_v52, 0.0  ;;  %v2684_v61 = vmul.f32 %v4125_v57, %v4125_v57 }
 0x381   : > { %v2612_v35 = vadd.f32 %v2611_v12, %v2610_v63  ;;  %v2713_v40 = vadd.f32 %v2712_v48, %v2711_v26  ;;  %2576 = vst.msk [vmem:[%s4059_s14 + $0x34] sm:$0xf] %vm2562_vm13, %v2543_v8  ;;  %v2724_v30 = vsel %vm2595_vm14, %v2680_v22, 0.0  ;;  %v2629_v12 = vsel %vm2595_vm14, %v4125_v57, 0.0 }
 0x382   : > { %v2730_v8 = vsel %vm2595_vm14, %v2683_v50, 0.0  ;;  %v2732_v52 = vsel %vm2595_vm14, %v2684_v61, 0.0  ;;  %v2633_v57 = vsel %vm2595_vm14, %v4187_v49, 0.0 }
 0x383   : > { %v2614_v7 = vadd.f32 %v2613_v32, %v2612_v35  ;;  %v2715_v28 = vadd.f32 %v2714_v15, %v2713_v40  ;;  %v2631_v40 = vsel %vm2595_vm14, %v4174_v46, 0.0  ;;  %v2686_v15 = vmul.f32 %v4187_v49, %v4187_v49 }
 0x385   : > { %v2616_v51 = vadd.f32 %v2615_v39, %v2614_v7  ;;  %v2717_v42 = vadd.f32 %v2716_v37, %v2715_v28  ;;  %v2734_v7 = vsel %vm2595_vm14, %v2685_v13, 0.0  ;;  %v2736_v39 = vsel %vm2595_vm14, %v2686_v15, 0.0 }
 0x387   : > { %v2719_v2 = vadd.f32 %v2718_v38, %v2717_v42  ;;  %v2618_v23 = vadd.f32 %v2617_v44, %v2616_v51 }
 0x389   : > { %v2620_v10 = vadd.f32 %v2619_v27, %v2618_v23  ;;  %v2721_v54 = vadd.f32 %v2720_v36, %v2719_v2 }
 0x38b   : > { %v2622_v19 = vadd.f32 %v2621_v55, %v2620_v10  ;;  %v2723_v5 = vadd.f32 %v2722_v3, %v2721_v54  ;;  %v2691_v3 = vmul.f32 %v4178_v21, %v4178_v21 }
 0x38d   : > { %v2725_v18 = vadd.f32 %v2724_v30, %v2723_v5 }
 0x39b   : > { %v2500_v11 = vpop.f32.mrf.mxu2 }
 0x39c   : > { %v2550_v45 = vpack.c.bf16 %v2500_v11, %v2500_v11  ;;  %v2687_v51 = vmul.f32 %v2500_v11, %v2500_v11  ;;  %v2635_v46 = vsel %vm2595_vm14, %v2500_v11, 0.0 }
 0x39d   : > { %v4235_v20 = vpop.f32.mrf.mxu3 }
 0x39e   : > { %2583 = vst.msk [vmem:[%s4059_s14 + $0x50] sm:$0xf] %vm2562_vm13, %v2550_v45  ;;  %v2556_v1 = vpack.c.bf16 %v4235_v20, %v4235_v20  ;;  %v2738_v17 = vsel %vm2595_vm14, %v2687_v51, 0.0 }
 0x3a0   : > { %2589 = vst.msk [vmem:[%s4059_s14 + $0x68] sm:$0xf] %vm2562_vm13, %v2556_v1 }
 0x3a3   : > { %v2502_v24 = vpop.f32.mrf.mxu2 }
 0x3a4   : > { %v2551_v31 = vpack.c.bf16 %v2502_v24, %v2502_v24  ;;  %v2688_v2 = vmul.f32 %v2502_v24, %v2502_v24  ;;  %v2637_v49 = vsel %vm2595_vm14, %v2502_v24, 0.0 }
 0x3a5   : > { %v4243_v14 = vpop.f32.mrf.mxu3 }
 0x3a6   : > { %2584 = vst.msk [vmem:[%s4059_s14 + $0x54] sm:$0xf] %vm2562_vm13, %v2551_v31  ;;  %v2557_v16 = vpack.c.bf16 %v4243_v14, %v4243_v14  ;;  %v2485_v43 = vpop.f32.mrf.mxu1  ;;  %v2740_v10 = vsel %vm2595_vm14, %v2688_v2, 0.0 }
 0x3a7   : > { %v2544_v56 = vpack.c.bf16 %v2485_v43, %v2485_v43  ;;  %v2681_v47 = vmul.f32 %v2485_v43, %v2485_v43  ;;  %v2623_v62 = vsel %vm2595_vm14, %v2485_v43, 0.0  ;;  %v2692_v43 = vmul.f32 %v4191_v33, %v4191_v33 }
 0x3a8   : > { %2590 = vst.msk [vmem:[%s4059_s14 + $0x6c] sm:$0xf] %vm2562_vm13, %v2557_v16  ;;  %v2624_v0 = vadd.f32 %v2623_v62, %v2622_v19  ;;  %v2643_v16 = vsel %vm2595_vm14, %v4178_v21, 0.0  ;;  %v2693_v21 = vmul.f32 %v4235_v20, %v4235_v20 }
 0x3a9   : > { %2577 = vst.msk [vmem:[%s4059_s14 + $0x38] sm:$0xf] %vm2562_vm13, %v2544_v56  ;;  %v2726_v41 = vsel %vm2595_vm14, %v2681_v47, 0.0 }
 0x3aa   : > { %v2727_v34 = vadd.f32 %v2726_v41, %v2725_v18  ;;  %v2746_v41 = vsel %vm2595_vm14, %v2691_v3, 0.0 }
 0x3ae   : > { %v2487_v9 = vpop.f32.mrf.mxu1 }
 0x3af   : > { %v2545_v29 = vpack.c.bf16 %v2487_v9, %v2487_v9  ;;  %v2625_v58 = vsel %vm2595_vm14, %v2487_v9, 0.0  ;;  %v2682_v26 = vmul.f32 %v2487_v9, %v2487_v9 }
 0x3b0   : > { %v2626_v6 = vadd.f32 %v2625_v58, %v2624_v0  ;;  %v2645_v0 = vsel %vm2595_vm14, %v4191_v33, 0.0  ;;  %v2647_v58 = vsel %vm2595_vm14, %v4235_v20, 0.0  ;;  %v2694_v33 = vmul.f32 %v4243_v14, %v4243_v14 }
 0x3b1   : > { %2578 = vst.msk [vmem:[%s4059_s14 + $0x3c] sm:$0xf] %vm2562_vm13, %v2545_v29  ;;  %v2728_v60 = vsel %vm2595_vm14, %v2682_v26, 0.0  ;;  %v2748_v29 = vsel %vm2595_vm14, %v2692_v43, 0.0 }
 0x3b2   : > { %v2628_v4 = vadd.f32 %v2627_v59, %v2626_v6  ;;  %v2729_v63 = vadd.f32 %v2728_v60, %v2727_v34  ;;  %v2750_v59 = vsel %vm2595_vm14, %v2693_v21, 0.0 }
 0x3b4   : > { %v2630_v48 = vadd.f32 %v2629_v12, %v2628_v4  ;;  %v2731_v35 = vadd.f32 %v2730_v8, %v2729_v63  ;;  %v2649_v4 = vsel %vm2595_vm14, %v4243_v14, 0.0  ;;  %v2752_v8 = vsel %vm2595_vm14, %v2694_v33, 0.0 }
 0x3b6   : > { %v2632_v32 = vadd.f32 %v2631_v40, %v2630_v48  ;;  %v2733_v25 = vadd.f32 %v2732_v52, %v2731_v35 }
 0x3b8   : > { %v2735_v28 = vadd.f32 %v2734_v7, %v2733_v25  ;;  %v2634_v37 = vadd.f32 %v2633_v57, %v2632_v32 }
 0x3ba   : > { %v2737_v53 = vadd.f32 %v2736_v39, %v2735_v28  ;;  %v2636_v44 = vadd.f32 %v2635_v46, %v2634_v37 }
 0x3bc   : > { %v2739_v36 = vadd.f32 %v2738_v17, %v2737_v53  ;;  %v2638_v22 = vadd.f32 %v2637_v49, %v2636_v44 }
 0x3be   : > { %v2741_v19 = vadd.f32 %v2740_v10, %v2739_v36 }
 0x3cb   : > { %v2505_v42 = vpop.f32.mrf.mxu2 }
 0x3cc   : > { %v2552_v38 = vpack.c.bf16 %v2505_v42, %v2505_v42  ;;  %v2689_v23 = vmul.f32 %v2505_v42, %v2505_v42  ;;  %v2639_v27 = vsel %vm2595_vm14, %v2505_v42, 0.0 }
 0x3cd   : > { %v2640_v55 = vadd.f32 %v2639_v27, %v2638_v22 }
 0x3ce   : > { %2585 = vst.msk [vmem:[%s4059_s14 + $0x58] sm:$0xf] %vm2562_vm13, %v2552_v38  ;;  %v2742_v54 = vsel %vm2595_vm14, %v2689_v23, 0.0 }
 0x3cf   : > { %v2743_v24 = vadd.f32 %v2742_v54, %v2741_v19 }
 0x3d3   : > { %v2507_v5 = vpop.f32.mrf.mxu2  ;;  %v2520_v30 = vpop.f32.mrf.mxu3 }
 0x3d4   : > { %v2553_v18 = vpack.c.bf16 %v2507_v5, %v2507_v5  ;;  %v2641_v11 = vsel %vm2595_vm14, %v2507_v5, 0.0  ;;  %v2690_v45 = vmul.f32 %v2507_v5, %v2507_v5  ;;  %v2558_v1 = vpack.c.bf16 %v2520_v30, %v2520_v30 }
 0x3d5   : > { %v2642_v31 = vadd.f32 %v2641_v11, %v2640_v55  ;;  %v2695_v20 = vmul.f32 %v2520_v30, %v2520_v30  ;;  %v2651_v48 = vsel %vm2595_vm14, %v2520_v30, 0.0 }
 0x3d6   : > { %2586 = vst.msk [vmem:[%s4059_s14 + $0x5c] sm:$0xf] %vm2562_vm13, %v2553_v18  ;;  %v2744_v56 = vsel %vm2595_vm14, %v2690_v45, 0.0 }
 0x3d7   : > { %v2644_v47 = vadd.f32 %v2643_v16, %v2642_v31  ;;  %v2745_v62 = vadd.f32 %v2744_v56, %v2743_v24  ;;  %2591 = vst.msk [vmem:[%s4059_s14 + $0x70] sm:$0xf] %vm2562_vm13, %v2558_v1  ;;  %v2754_v40 = vsel %vm2595_vm14, %v2695_v20, 0.0 }
 0x3d9   : > { %v2646_v9 = vadd.f32 %v2645_v0, %v2644_v47  ;;  %v2747_v50 = vadd.f32 %v2746_v41, %v2745_v62 }
 0x3db   : > { %v2749_v26 = vadd.f32 %v2748_v29, %v2747_v50  ;;  %v2648_v34 = vadd.f32 %v2647_v58, %v2646_v9  ;;  %v2522_v6 = vpop.f32.mrf.mxu3 }
 0x3dc   : > { %v2559_v61 = vpack.c.bf16 %v2522_v6, %v2522_v6  ;;  %v2696_v15 = vmul.f32 %v2522_v6, %v2522_v6  ;;  %v2653_v14 = vsel %vm2595_vm14, %v2522_v6, 0.0 }
 0x3dd   : > { %v2751_v60 = vadd.f32 %v2750_v59, %v2749_v26  ;;  %v2650_v63 = vadd.f32 %v2649_v4, %v2648_v34 }
 0x3de   : > { %2592 = vst.msk [vmem:[%s4059_s14 + $0x74] sm:$0xf] %vm2562_vm13, %v2559_v61  ;;  %v2756_v28 = vsel %vm2595_vm14, %v2696_v15, 0.0 }
 0x3df   : > { %v2753_v12 = vadd.f32 %v2752_v8, %v2751_v60  ;;  %v2652_v52 = vadd.f32 %v2651_v48, %v2650_v63 }
 0x3e1   : > { %v2755_v25 = vadd.f32 %v2754_v40, %v2753_v12  ;;  %v2654_v57 = vadd.f32 %v2653_v14, %v2652_v52 }
 0x3e3   : > { %v2757_v39 = vadd.f32 %v2756_v28, %v2755_v25 }
 0x3e4   : > { %v2525_v13 = vpop.f32.mrf.mxu3 }
 0x3e5   : > { %v2560_v35 = vpack.c.bf16 %v2525_v13, %v2525_v13  ;;  %v2697_v32 = vmul.f32 %v2525_v13, %v2525_v13  ;;  %v2655_v7 = vsel %vm2595_vm14, %v2525_v13, 0.0 }
 0x3e6   : > { %v2656_v53 = vadd.f32 %v2655_v7, %v2654_v57 }
 0x3e7   : > { %2593 = vst.msk [vmem:[%s4059_s14 + $0x78] sm:$0xf] %vm2562_vm13, %v2560_v35  ;;  %v2758_v37 = vsel %vm2595_vm14, %v2697_v32, 0.0 }
 0x3e8   : > { %v2759_v44 = vadd.f32 %v2758_v37, %v2757_v39 }
 0x3ec   : > { %v2527_v51 = vpop.f32.mrf.mxu3 }
 0x3ed   : > { %v2561_v42 = vpack.c.bf16 %v2527_v51, %v2527_v51  ;;  %v2657_v46 = vsel %vm2595_vm14, %v2527_v51, 0.0  ;;  %v2698_v38 = vmul.f32 %v2527_v51, %v2527_v51 }
 0x3ee   : > { %v2658_v17 = vadd.f32 %v2657_v46, %v2656_v53 }
 0x3ef   : > { %2594 = vst.msk [vmem:[%s4059_s14 + $0x7c] sm:$0xf] %vm2562_vm13, %v2561_v42  ;;  %v2760_v2 = vsel %vm2595_vm14, %v2698_v38, 0.0 }
 0x3f0   : > { %v2659_v23 = vrot.slane %v2658_v17, 4  ;;  %v2761_v36 = vadd.f32 %v2760_v2, %v2759_v44 }
 0x3f2   : > { %v2660_v49 = vadd.f32 %v2659_v23, %v2658_v17  ;;  %v2762_v27 = vrot.slane %v2761_v36, 4 }
 0x3f4   : > { %v2661_v22 = vrot.slane %v2660_v49, 2  ;;  %v2763_v10 = vadd.f32 %v2762_v27, %v2761_v36 }
 0x3f6   : > { %v2662_v54 = vadd.f32 %v2661_v22, %v2660_v49  ;;  %v2764_v3 = vrot.slane %v2763_v10, 2 }
 0x3f8   : > { %v2663_v55 = vrot.slane %v2662_v54, 1  ;;  %v2765_v19 = vadd.f32 %v2764_v3, %v2763_v10 }
 0x3fa   : > { %v2664_v5 = vadd.f32 %v2663_v55, %v2662_v54  ;;  %v2766_v30 = vrot.slane %v2765_v19, 1 }
 0x3fc   : > { %2666 = vst.msk [vmem:[%s235_s2] sm:$0x1] %vm2665_vm15, %v2664_v5  ;;  %v2767_v18 = vadd.f32 %v2766_v30, %v2765_v19 }
 0x3fe   : > { %2768 = vst.msk [vmem:[%s235_s2 + $0x1] sm:$0x1] %vm2665_vm15, %v2767_v18 }
 0x3ff PF: > { %s16_s18 = sadd.s32 1, %s3007_s18  }
 0x400   : > { %p13_p4 = scmp.ge.s32.totalorder %s16_s18, 4  }
 0x402   :  { %15 = sbr.rel (!%p13_p4) target bundleno = 1 (0x1), region = 80 }

// kernel: unet_block_nchw.4
= control target key start
LH: loop header
LB: loop body
LE: loop exit
PB: predicated region body
PF: predicated region fallthrough
CT: control target
= control target key end

     0   :  { %s3297_s18 = smov 0   ;;  %s4684_s0 = inlined_call_operand.vmem [shape: bf16[2,16,16,8], index: 0, kind: input, shape index: {}]   ;;  %s4685_s1 = inlined_call_operand.vmem [shape: f32[1,8], index: 1, kind: input, shape index: {}]   ;;  %s4686_s2 = inlined_call_operand.vmem [shape: f32[1,8], index: 2, kind: input, shape index: {}]   ;;  %s4687_s3 = inlined_call_operand.vmem [shape: bf16[72,128], index: 3, kind: input, shape index: {}]   ;;  %s4688_s4 = inlined_call_operand.vmem [shape: bf16[2,16,16,8], index: 4, kind: output, shape index: {0}]   ;;  %s4689_s5 = inlined_call_operand.vmem [shape: f32[2,2,8], index: 5, kind: output, shape index: {1}]  }
   0x1 LB: > { %s3005_s19 = sadd.s32 4294967295, %s3256_s18   ;;  %p3009_p0 = scmp.ge.s32.totalorder %s3256_s18, 1  ;;  %s3256_s18 = sphi %s3297_s18, %s16_s18  }
   0x2   : > { %p190_p1 = scmp.lt.s32.totalorder %s3256_s18, 3 }
   0x4   : > { %p191_p2 = pnand %p3009_p0, %p190_p1 }
   0x5   : > { %s3259_s20 = smov (!%p191_p2), 8   ;;  %p222_p3 = scmp.lt.s32.totalorder (!%p191_p2), %s3005_s19, 1 }
   0x6   : > { %194 = sbr.rel (%p191_p2) target bundleno = 1031 (0x407), region = 36  ;;  %s3260_s29 = smov (!%p191_p2), 16  }
   0x7   : > { %s3261_s30 = smov (!%p191_p2), 24   ;;  %s3262_s10 = smov (!%p191_p2), 32  }
   0x8   : > { %s3263_s11 = smov (!%p191_p2), 40   ;;  %s3264_s12 = smov (!%p191_p2), 56  }
   0x9   : > { %s3265_s13 = smov (!%p191_p2), 48   ;;  %s3266_s14 = smov (!%p191_p2), 64  }
   0xb   : > { %vm405_vm0 = vcmask 64512   ;;  %v3258_v0 = vmov 0.0   ;;  %s4691_s19 = smov (!%p222_p3, %s3005_s19), 1  ;;  %vm408_vm1 = vcmask 58368   ;;  %v3403_v6 = vld [vmem:[%s4685_s1] ss:$0 sm:$0xff] }
   0xc   : > { %406 = vst.msk [vmem:[#allocation2] sm:$0xff] %vm405_vm0, %v3258_v0  ;;  %s3113_s21 = sshll.u32 %s4691_s19, 7  ;;  %v3423_v14 = vld [vmem:[%s4686_s2] ss:$0 sm:$0xff]  ;;  %vm558_vm2 = vcmask 60416   ;;  %vm783_vm3 = vcmask 126016  }
   0xd   : > { %407 = vst.msk [vmem:[#allocation2 + $0x8] sm:$0xff] %vm405_vm0, %v3258_v0  ;;  %s3384_s24 = scalar_lea.vmem %s4684_s0, %s3113_s21  ;;  %vm1008_vm4 = vcmask 191616   ;;  %vm1233_vm5 = vcmask 257216   ;;  %vm1458_vm6 = vcmask 322816   ;;  %vm1683_vm7 = vcmask 388416  }
   0xe   : > { %410 = vst.msk [vmem:[#allocation2 + $0x18] sm:$0xff] %vm405_vm0, %v3258_v0  ;;  %v3136_v3 = vld [vmem:[%s3384_s24] sm:$0xff]   ;;  %v3200_v4 = vld [vmem:[%s3384_s24 + $0x10] sm:$0xff]   ;;  %v3406_v7 = vld [vmem:[%s3384_s24 + $0x18] sm:$0xff]   ;;  %vm2589_vm8 = vcmask 1043456   ;;  %vm1909_vm9 = vcmask 454016  }
   0xf   : > { %411 = vst.msk [vmem:[#allocation2 + $0x20] sm:$0xff] %vm405_vm0, %v3258_v0  ;;  %v3137_v5 = vunpack.c.l.bf16 %v3136_v3  ;;  %v3145_v8 = vunpack.c.l.bf16 %v3200_v4  ;;  %v3138_v9 = vunpack.c.h.bf16 %v3136_v3  ;;  %v3203_v10 = vld [vmem:[%s3384_s24 + $0x28] sm:$0xff]   ;;  %v3150_v12 = vunpack.c.h.bf16 %v3406_v7  ;;  %v3426_v16 = vld [vmem:[%s3384_s24 + $0x20] sm:$0xff]   ;;  %v3432_v21 = vld [vmem:[%s3384_s24 + $0x30] sm:$0xff]  }
  0x10   : > { %413 = vst.msk [vmem:[#allocation2 + $0x30] sm:$0xff] %vm405_vm0, %v3258_v0  ;;  %v3199_v11 = vld [vmem:[%s3384_s24 + $0x8] sm:$0xff]   ;;  %v3146_v15 = vunpack.c.h.bf16 %v3200_v4  ;;  %v3157_v19 = vunpack.c.l.bf16 %v3203_v10  ;;  %v3153_v25 = vunpack.c.l.bf16 %v3426_v16  ;;  %v3162_v28 = vunpack.c.h.bf16 %v3432_v21  ;;  %v3453_v33 = vld [vmem:[%s3384_s24 + $0x40] sm:$0xff]   ;;  %v3481_v52 = vld [vmem:[%s3384_s24 + $0x38] sm:$0xff]  }
  0x11   : > { %414 = vst.msk [vmem:[#allocation2 + $0x38] sm:$0xff] %vm405_vm0, %v3258_v0  ;;  %v306_v13 = vmul.f32 %v3403_v6, %v3137_v5  ;;  %v310_v18 = vmul.f32 %v3403_v6, %v3145_v8  ;;  %v3141_v20 = vunpack.c.l.bf16 %v3199_v11  ;;  %v307_v23 = vmul.f32 %v3403_v6, %v3138_v9  ;;  %v3490_v60 = vld [vmem:[%s3384_s24 + $0x48] sm:$0xff]  }
  0x12   : > { %416 = vst.msk [vmem:[#allocation2 + $0x48] sm:$0xff] %vm405_vm0, %v3258_v0  ;;  %v313_v24 = vmul.f32 %v3403_v6, %v3150_v12  ;;  %v311_v27 = vmul.f32 %v3403_v6, %v3146_v15  ;;  %v316_v30 = vmul.f32 %v3403_v6, %v3157_v19  ;;  %v3142_v31 = vunpack.c.h.bf16 %v3199_v11 }
  0x13   : > { %417 = vst.msk [vmem:[#allocation2 + $0x50] sm:$0xff] %vm405_vm0, %v3258_v0  ;;  %v341_v26 = vadd.f32 %v3423_v14, %v306_v13  ;;  %v345_v29 = vadd.f32 %v3423_v14, %v310_v18  ;;  %v308_v32 = vmul.f32 %v3403_v6, %v3141_v20  ;;  %v342_v34 = vadd.f32 %v3423_v14, %v307_v23  ;;  %v3209_v23 = vld [vmem:[%s3384_s24 + $0x58] sm:$0xff]  }
  0x14   : > { %v591_v1 = vld [vmem:[#allocation2 + $0x1] sm:$0xff]  ;;  %419 = vst.msk [vmem:[#allocation2 + $0x60] sm:$0xff] %vm405_vm0, %v3258_v0  ;;  %v3158_v35 = vunpack.c.h.bf16 %v3203_v10  ;;  %v348_v36 = vadd.f32 %v3423_v14, %v313_v24  ;;  %v314_v37 = vmul.f32 %v3403_v6, %v3153_v25  ;;  %v3169_v38 = vunpack.c.l.bf16 %v3453_v33 }
  0x15   : > { %v623_v2 = vpack.c.bf16 %v591_v1, %v591_v1  ;;  %420 = vst.msk [vmem:[#allocation2 + $0x68] sm:$0xff] %vm405_vm0, %v3258_v0  ;;  %v373_v39 = vmax.f32 %v341_v26, 0.0  ;;  %v346_v40 = vadd.f32 %v3423_v14, %v311_v27  ;;  %v319_v41 = vmul.f32 %v3403_v6, %v3162_v28 }
  0x16   : > { %422 = vst.msk [vmem:[#allocation2 + $0x78] sm:$0xff] %vm405_vm0, %v3258_v0  ;;  %v3149_v42 = vunpack.c.l.bf16 %v3406_v7  ;;  %v377_v43 = vmax.f32 %v345_v29, 0.0  ;;  %v351_v44 = vadd.f32 %v3423_v14, %v316_v30  ;;  %v343_v45 = vadd.f32 %v3423_v14, %v308_v32 }
  0x17   : > { %687 = vrot.lane.b32.xlu0 %v623_v2, %s3259_s20  ;;  %423 = vst.msk [vmem:[#allocation2 + $0x80] sm:$0xff] %vm405_vm0, %v3258_v0  ;;  %v309_v46 = vmul.f32 %v3403_v6, %v3142_v31  ;;  %v374_v47 = vmax.f32 %v342_v34, 0.0  ;;  %v317_v48 = vmul.f32 %v3403_v6, %v3158_v35  ;;  %v380_v49 = vmax.f32 %v348_v36, 0.0 }
  0x18   : > { %425 = vst.msk [vmem:[#allocation2 + $0x90] sm:$0xff] %vm405_vm0, %v3258_v0  ;;  %v349_v50 = vadd.f32 %v3423_v14, %v314_v37  ;;  %v322_v51 = vmul.f32 %v3403_v6, %v3169_v38  ;;  %v378_v53 = vmax.f32 %v346_v40, 0.0  ;;  %v354_v54 = vadd.f32 %v3423_v14, %v319_v41  ;;  %v3529_v40 = vld [vmem:[%s3384_s24 + $0x50] sm:$0xff]  }
  0x19   : > { %426 = vst.msk [vmem:[#allocation2 + $0x98] sm:$0xff] %vm405_vm0, %v3258_v0  ;;  %v312_v55 = vmul.f32 %v3403_v6, %v3149_v42  ;;  %v3165_v56 = vunpack.c.l.bf16 %v3481_v52  ;;  %v383_v57 = vmax.f32 %v351_v44, 0.0  ;;  %v375_v58 = vmax.f32 %v343_v45, 0.0  ;;  %v3535_v45 = vld [vmem:[%s3384_s24 + $0x60] sm:$0xff]  }
  0x1a   : > { %428 = vst.msk [vmem:[#allocation2 + $0xa8] sm:$0xff] %vm405_vm0, %v3258_v0  ;;  %v344_v59 = vadd.f32 %v3423_v14, %v309_v46  ;;  %v352_v61 = vadd.f32 %v3423_v14, %v317_v48  ;;  %v3174_v63 = vunpack.c.h.bf16 %v3490_v60  ;;  %v381_v1 = vmax.f32 %v349_v50, 0.0 }
  0x1b   : > { %429 = vst.msk [vmem:[#allocation2 + $0xb0] sm:$0xff] %vm405_vm0, %v3258_v0  ;;  %v320_v62 = vmul.f32 %v3403_v6, %v3165_v56  ;;  %v357_v2 = vadd.f32 %v3423_v14, %v322_v51  ;;  %v386_v3 = vmax.f32 %v354_v54, 0.0  ;;  %v347_v4 = vadd.f32 %v3423_v14, %v312_v55 }
  0x1c   : > { %431 = vst.msk [vmem:[#allocation2 + $0xc0] sm:$0xff] %vm405_vm0, %v3258_v0  ;;  %v325_v5 = vmul.f32 %v3403_v6, %v3174_v63  ;;  %v376_v8 = vmax.f32 %v344_v59, 0.0  ;;  %v384_v10 = vmax.f32 %v352_v61, 0.0  ;;  %v3170_v19 = vunpack.c.h.bf16 %v3453_v33 }
  0x1d   : > { %432 = vst.msk [vmem:[#allocation2 + $0xc8] sm:$0xff] %vm405_vm0, %v3258_v0  ;;  %v355_v9 = vadd.f32 %v3423_v14, %v320_v62  ;;  %v389_v13 = vmax.f32 %v357_v2, 0.0  ;;  %v379_v18 = vmax.f32 %v347_v4, 0.0  ;;  %v3181_v27 = vunpack.c.l.bf16 %v3209_v23 }
  0x1e   : > { %434 = vst.msk [vmem:[#allocation2 + $0xd8] sm:$0xff] %vm405_vm0, %v3258_v0  ;;  %v360_v11 = vadd.f32 %v3423_v14, %v325_v5  ;;  %v323_v26 = vmul.f32 %v3403_v6, %v3170_v19  ;;  %v3161_v28 = vunpack.c.l.bf16 %v3432_v21  ;;  %v3166_v48 = vunpack.c.h.bf16 %v3481_v52 }
  0x1f   : > { %435 = vst.msk [vmem:[#allocation2 + $0xe0] sm:$0xff] %vm405_vm0, %v3258_v0  ;;  %v328_v32 = vmul.f32 %v3403_v6, %v3181_v27  ;;  %v3182_v63 = vunpack.c.h.bf16 %v3209_v23  ;;  %v3173_v4 = vunpack.c.l.bf16 %v3490_v60  ;;  %vm2134_vm10 = vcmask 519616  }
  0x20   : > { %437 = vst.msk [vmem:[#allocation2 + $0xf0] sm:$0xff] %vm405_vm0, %v3258_v0  ;;  %v392_v25 = vmax.f32 %v360_v11, 0.0  ;;  %v358_v31 = vadd.f32 %v3423_v14, %v323_v26  ;;  %v318_v33 = vmul.f32 %v3403_v6, %v3161_v28  ;;  %v321_v55 = vmul.f32 %v3403_v6, %v3166_v48 }
  0x21   : > { %438 = vst.msk [vmem:[#allocation2 + $0xf8] sm:$0xff] %vm405_vm0, %v3258_v0  ;;  %v363_v37 = vadd.f32 %v3423_v14, %v328_v32  ;;  %v329_v2 = vmul.f32 %v3403_v6, %v3182_v63  ;;  %v324_v11 = vmul.f32 %v3403_v6, %v3173_v4  ;;  %vm2359_vm11 = vcmask 585216  }
  0x22   : > { %440 = vst.msk [vmem:[#allocation2 + $0x108] sm:$0xff] %vm405_vm0, %v3258_v0  ;;  %v390_v36 = vmax.f32 %v358_v31, 0.0  ;;  %v353_v38 = vadd.f32 %v3423_v14, %v318_v33  ;;  %v356_v52 = vadd.f32 %v3423_v14, %v321_v55  ;;  %vm2540_vm12 = vcmask 588800  }
  0x23   : > { %441 = vst.msk [vmem:[#allocation2 + $0x110] sm:$0xff] %vm405_vm0, %v3258_v0  ;;  %v395_v41 = vmax.f32 %v363_v37, 0.0  ;;  %v3185_v37 = vunpack.c.l.bf16 %v3535_v45  ;;  %vm2815_vm13 = vcmask 57344  }
  0x24   : > { %443 = vst.msk [vmem:[#allocation2 + $0x120] sm:$0xff] %vm405_vm0, %v3258_v0  ;;  %v385_v42 = vmax.f32 %v353_v38, 0.0  ;;  %v388_v62 = vmax.f32 %v356_v52, 0.0 }
  0x25   : > { %444 = vst.msk [vmem:[#allocation2 + $0x128] sm:$0xff] %vm405_vm0, %v3258_v0 }
  0x26   : > { %446 = vst.msk [vmem:[#allocation2 + $0x138] sm:$0xff] %vm405_vm0, %v3258_v0 }
  0x27   : > { %447 = vst.msk [vmem:[#allocation2 + $0x140] sm:$0xff] %vm405_vm0, %v3258_v0 }
  0x28   : > { %449 = vst.msk [vmem:[#allocation2 + $0x150] sm:$0xff] %vm405_vm0, %v3258_v0 }
  0x29   : > { %450 = vst.msk [vmem:[#allocation2 + $0x158] sm:$0xff] %vm405_vm0, %v3258_v0 }
  0x2a   : > { %452 = vst.msk [vmem:[#allocation2 + $0x168] sm:$0xff] %vm405_vm0, %v3258_v0 }
  0x2b   : > { %453 = vst.msk [vmem:[#allocation2 + $0x170] sm:$0xff] %vm405_vm0, %v3258_v0 }
  0x2c   : > { %455 = vst.msk [vmem:[#allocation2 + $0x180] sm:$0xff] %vm405_vm0, %v3258_v0 }
  0x2d   : > { %456 = vst.msk [vmem:[#allocation2 + $0x188] sm:$0xff] %vm405_vm0, %v3258_v0 }
  0x2e   : > { %458 = vst.msk [vmem:[#allocation2 + $0x198] sm:$0xff] %vm405_vm0, %v3258_v0 }
  0x2f   : > { %459 = vst.msk [vmem:[#allocation2 + $0x1a0] sm:$0xff] %vm405_vm0, %v3258_v0 }
  0x30   : > { %409 = vst.msk [vmem:[#allocation2 + $0x10] sm:$0x3] %vm408_vm1, %v3258_v0 }
  0x31   : > { %412 = vst.msk [vmem:[#allocation2 + $0x28] sm:$0x3] %vm408_vm1, %v3258_v0 }
  0x32   : > { %415 = vst.msk [vmem:[#allocation2 + $0x40] sm:$0x3] %vm408_vm1, %v3258_v0 }
  0x33   : > { %418 = vst.msk [vmem:[#allocation2 + $0x58] sm:$0x3] %vm408_vm1, %v3258_v0 }
  0x34   : > { %421 = vst.msk [vmem:[#allocation2 + $0x70] sm:$0x3] %vm408_vm1, %v3258_v0 }
  0x35   : > { %424 = vst.msk [vmem:[#allocation2 + $0x88] sm:$0x3] %vm408_vm1, %v3258_v0 }
  0x36   : > { %427 = vst.msk [vmem:[#allocation2 + $0xa0] sm:$0x3] %vm408_vm1, %v3258_v0 }
  0x37   : > { %v592_v17 = vld [vmem:[#allocation2 + $0x9] sm:$0xff]  ;;  %430 = vst.msk [vmem:[#allocation2 + $0xb8] sm:$0x3] %vm408_vm1, %v3258_v0 }
  0x38   : > { %v624_v22 = vpack.c.bf16 %v592_v17, %v592_v17  ;;  %433 = vst.msk [vmem:[#allocation2 + $0xd0] sm:$0x3] %vm408_vm1, %v3258_v0 }
  0x39   : > { %436 = vst.msk [vmem:[#allocation2 + $0xe8] sm:$0x3] %vm408_vm1, %v3258_v0 }
  0x3a   : > { %689 = vrot.lane.b32.xlu0 %v624_v22, %s3259_s20  ;;  %439 = vst.msk [vmem:[#allocation2 + $0x100] sm:$0x3] %vm408_vm1, %v3258_v0  ;;  %v387_v22 = vmax.f32 %v355_v9, 0.0  ;;  %v364_v9 = vadd.f32 %v3423_v14, %v329_v2 }
  0x3b   : > { %442 = vst.msk [vmem:[#allocation2 + $0x118] sm:$0x3] %vm408_vm1, %v3258_v0 }
  0x3c   : > { %445 = vst.msk [vmem:[#allocation2 + $0x130] sm:$0x3] %vm408_vm1, %v3258_v0 }
  0x3d   : > { %448 = vst.msk [vmem:[#allocation2 + $0x148] sm:$0x3] %vm408_vm1, %v3258_v0 }
  0x3e   : > { %451 = vst.msk [vmem:[#allocation2 + $0x160] sm:$0x3] %vm408_vm1, %v3258_v0 }
  0x3f   : > { %454 = vst.msk [vmem:[#allocation2 + $0x178] sm:$0x3] %vm408_vm1, %v3258_v0 }
  0x40   : > { %457 = vst.msk [vmem:[#allocation2 + $0x190] sm:$0x3] %vm408_vm1, %v3258_v0 }
  0x41   : > { %460 = vst.msk [vmem:[#allocation2 + $0x1a8] sm:$0x3] %vm408_vm1, %v3258_v0  ;;  %v3154_v0 = vunpack.c.h.bf16 %v3426_v16 }
  0x42   : > { %462 = vst.msk [vmem:[#allocation2 + $0x19] sm:$0xff] %vm405_vm0, %v373_v39 }
  0x43   : > { %466 = vst.msk [vmem:[#allocation2 + $0x49] sm:$0xff] %vm405_vm0, %v377_v43  ;;  %v315_v7 = vmul.f32 %v3403_v6, %v3154_v0  ;;  %v3177_v43 = vunpack.c.l.bf16 %v3529_v40 }
  0x44   : > { %463 = vst.msk [vmem:[#allocation2 + $0x21] sm:$0xff] %vm405_vm0, %v374_v47  ;;  %v3186_v47 = vunpack.c.h.bf16 %v3535_v45 }
  0x45   : > { %469 = vst.msk [vmem:[#allocation2 + $0x69] sm:$0xff] %vm405_vm0, %v380_v49  ;;  %v350_v15 = vadd.f32 %v3423_v14, %v315_v7  ;;  %v326_v46 = vmul.f32 %v3403_v6, %v3177_v43 }
  0x46   : > { %467 = vst.msk [vmem:[#allocation2 + $0x51] sm:$0xff] %vm405_vm0, %v378_v53  ;;  %v331_v54 = vmul.f32 %v3403_v6, %v3186_v47 }
  0x47   : > { %472 = vst.msk [vmem:[#allocation2 + $0x91] sm:$0xff] %vm405_vm0, %v383_v57  ;;  %v382_v29 = vmax.f32 %v350_v15, 0.0  ;;  %v361_v53 = vadd.f32 %v3423_v14, %v326_v46 }
  0x48   : > { %464 = vst.msk [vmem:[#allocation2 + $0x31] sm:$0xff] %vm405_vm0, %v375_v58  ;;  %v366_v58 = vadd.f32 %v3423_v14, %v331_v54 }
  0x49   : > { %v593_v12 = vld [vmem:[#allocation2 + $0x19] sm:$0xff]  ;;  %470 = vst.msk [vmem:[#allocation2 + $0x79] sm:$0xff] %vm405_vm0, %v381_v1  ;;  %v393_v57 = vmax.f32 %v361_v53, 0.0  ;;  %v3212_v1 = vld [vmem:[%s3384_s24 + $0x70] sm:$0xff]  }
  0x4a   : > { %v625_v16 = vpack.c.bf16 %v593_v12, %v593_v12  ;;  %v597_v17 = vld [vmem:[#allocation2 + $0x49] sm:$0xff]  ;;  %475 = vst.msk [vmem:[#allocation2 + $0xb1] sm:$0xff] %vm405_vm0, %v386_v3  ;;  %v398_v61 = vmax.f32 %v366_v58, 0.0  ;;  %v3193_v3 = vunpack.c.l.bf16 %v3212_v1 }
  0x4b   : > { %v629_v20 = vpack.c.bf16 %v597_v17, %v597_v17  ;;  %465 = vst.msk [vmem:[#allocation2 + $0x39] sm:$0xff] %vm405_vm0, %v376_v8  ;;  %v594_v24 = vld [vmem:[#allocation2 + $0x21] sm:$0xff] }
  0x4c   : > { %691 = vrot.lane.b32.xlu1 %v625_v16, %s3259_s20  ;;  %473 = vst.msk [vmem:[#allocation2 + $0x99] sm:$0xff] %vm405_vm0, %v384_v10  ;;  %v600_v30 = vld [vmem:[#allocation2 + $0x69] sm:$0xff]  ;;  %v626_v34 = vpack.c.bf16 %v594_v24, %v594_v24  ;;  %v334_v10 = vmul.f32 %v3403_v6, %v3193_v3  ;;  %v359_v16 = vadd.f32 %v3423_v14, %v324_v11  ;;  %v3178_v24 = vunpack.c.h.bf16 %v3529_v40 }
  0x4d   : > { %699 = vrot.lane.b32.xlu0 %v629_v20, %s3259_s20  ;;  %478 = vst.msk [vmem:[#allocation2 + $0xd9] sm:$0xff] %vm405_vm0, %v389_v13  ;;  %v632_v39 = vpack.c.bf16 %v600_v30, %v600_v30  ;;  %v598_v49 = vld [vmem:[#allocation2 + $0x51] sm:$0xff]  ;;  %v396_v13 = vmax.f32 %v364_v9, 0.0  ;;  %v3211_v17 = vld [vmem:[%s3384_s24 + $0x68] sm:$0xff]  }
  0x4e   : > { %468 = vst.msk [vmem:[#allocation2 + $0x61] sm:$0xff] %vm405_vm0, %v379_v18  ;;  %v603_v50 = vld [vmem:[#allocation2 + $0x91] sm:$0xff]  ;;  %v630_v56 = vpack.c.bf16 %v598_v49, %v598_v49  ;;  %v369_v15 = vadd.f32 %v3423_v14, %v334_v10  ;;  %v391_v19 = vmax.f32 %v359_v16, 0.0  ;;  %v3189_v20 = vunpack.c.l.bf16 %v3211_v17 }
  0x4f   : > { %v595_v35 = vld [vmem:[#allocation2 + $0x31] sm:$0xff]  ;;  %476 = vst.msk [vmem:[#allocation2 + $0xc1] sm:$0xff] %vm405_vm0, %v387_v22  ;;  %v635_v59 = vpack.c.bf16 %v603_v50, %v603_v50  ;;  %v3190_v49 = vunpack.c.h.bf16 %v3211_v17  ;;  %v495_v17 = vld [vmem:[#allocation2 + $0x8] sm:$0xff] }
  0x50   : > { %v627_v21 = vpack.c.bf16 %v595_v35, %v595_v35  ;;  %481 = vst.msk [vmem:[#allocation2 + $0xf9] sm:$0xff] %vm405_vm0, %v392_v25  ;;  %v601_v5 = vld [vmem:[#allocation2 + $0x79] sm:$0xff]  ;;  %v401_v18 = vmax.f32 %v369_v15, 0.0  ;;  %v332_v23 = vmul.f32 %v3403_v6, %v3189_v20  ;;  %v3194_v35 = vunpack.c.h.bf16 %v3212_v1  ;;  %v817_v9 = vld [vmem:[#allocation2 + $0xa] sm:$0xff] }
  0x51   : > { %471 = vst.msk [vmem:[#allocation2 + $0x81] sm:$0xff] %vm405_vm0, %v382_v29  ;;  %v606_v7 = vld [vmem:[#allocation2 + $0xb1] sm:$0xff]  ;;  %v633_v12 = vpack.c.bf16 %v601_v5, %v601_v5  ;;  %v327_v29 = vmul.f32 %v3403_v6, %v3178_v24  ;;  %v333_v54 = vmul.f32 %v3403_v6, %v3190_v49  ;;  %v849_v15 = vpack.c.bf16 %v817_v9, %v817_v9 }
  0x52   : > { %695 = vrot.lane.b32.xlu2 %v627_v21, %s3259_s20  ;;  %479 = vst.msk [vmem:[#allocation2 + $0xe1] sm:$0xff] %vm405_vm0, %v390_v36  ;;  %v596_v44 = vld [vmem:[#allocation2 + $0x39] sm:$0xff]  ;;  %v638_v60 = vpack.c.bf16 %v606_v7, %v606_v7  ;;  %v367_v28 = vadd.f32 %v3423_v14, %v332_v23  ;;  %v335_v36 = vmul.f32 %v3403_v6, %v3194_v35  ;;  %v822_v49 = vld [vmem:[#allocation2 + $0x4a] sm:$0xff] }
  0x53   : > { %484 = vst.msk [vmem:[#allocation2 + $0x121] sm:$0xff] %vm405_vm0, %v395_v41  ;;  %v628_v51 = vpack.c.bf16 %v596_v44, %v596_v44  ;;  %v604_v25 = vld [vmem:[#allocation2 + $0x99] sm:$0xff]  ;;  %v362_v32 = vadd.f32 %v3423_v14, %v327_v29 }
  0x54   : > { %693 = vrot.lane.b32.xlu1 %v626_v34, %s3259_s20  ;;  %474 = vst.msk [vmem:[#allocation2 + $0xa9] sm:$0xff] %vm405_vm0, %v385_v42  ;;  %v609_v26 = vld [vmem:[#allocation2 + $0xd9] sm:$0xff]  ;;  %v636_v30 = vpack.c.bf16 %v604_v25, %v604_v25  ;;  %v399_v31 = vmax.f32 %v367_v28, 0.0  ;;  %v370_v41 = vadd.f32 %v3423_v14, %v335_v36  ;;  %v330_v42 = vmul.f32 %v3403_v6, %v3185_v37  ;;  %v819_v37 = vld [vmem:[#allocation2 + $0x22] sm:$0xff] }
  0x55   : > { %705 = vrot.lane.b32.xlu0 %v632_v39, %s3259_s20  ;;  %482 = vst.msk [vmem:[#allocation2 + $0x109] sm:$0xff] %vm405_vm0, %v393_v57  ;;  %v599_v0 = vld [vmem:[#allocation2 + $0x61] sm:$0xff]  ;;  %v641_v33 = vpack.c.bf16 %v609_v26, %v609_v26  ;;  %v394_v34 = vmax.f32 %v362_v32, 0.0  ;;  %v499_v35 = vld [vmem:[#allocation2 + $0x38] sm:$0xff] }
  0x56   : > { %487 = vst.msk [vmem:[#allocation2 + $0x141] sm:$0xff] %vm405_vm0, %v398_v61  ;;  %v631_v8 = vpack.c.bf16 %v599_v0, %v599_v0  ;;  %v607_v38 = vld [vmem:[#allocation2 + $0xc1] sm:$0xff]  ;;  %v402_v44 = vmax.f32 %v370_v41, 0.0  ;;  %v365_v46 = vadd.f32 %v3423_v14, %v330_v42  ;;  %v3621_v36 = vpack.c.bf16 %v499_v35, %v499_v35 }
  0x57   : > { %477 = vst.msk [vmem:[#allocation2 + $0xc9] sm:$0xff] %vm405_vm0, %v388_v62  ;;  %v612_v39 = vld [vmem:[#allocation2 + $0xf9] sm:$0xff]  ;;  %v639_v43 = vpack.c.bf16 %v607_v38, %v607_v38  ;;  %v816_v26 = vld [vmem:[#allocation2 + $0x2] sm:$0xff]  ;;  %v851_v42 = vpack.c.bf16 %v819_v37, %v819_v37 }
  0x58   : > { %485 = vst.msk [vmem:[#allocation2 + $0x129] sm:$0xff] %vm405_vm0, %v396_v13  ;;  %v602_v22 = vld [vmem:[#allocation2 + $0x81] sm:$0xff]  ;;  %v644_v47 = vpack.c.bf16 %v612_v39, %v612_v39  ;;  %v397_v48 = vmax.f32 %v365_v46, 0.0 }
  0x59   : > { %490 = vst.msk [vmem:[#allocation2 + $0x169] sm:$0xff] %vm405_vm0, %v401_v18  ;;  %v634_v27 = vpack.c.bf16 %v602_v22, %v602_v22  ;;  %v610_v50 = vld [vmem:[#allocation2 + $0xe1] sm:$0xff]  ;;  %v498_v18 = vld [vmem:[#allocation2 + $0x30] sm:$0xff]  ;;  %v527_v22 = vpack.c.bf16 %v495_v17, %v495_v17 }
  0x5a   : > { %697 = vrot.lane.b32.xlu2 %v628_v51, %s3259_s20  ;;  %480 = vst.msk [vmem:[#allocation2 + $0xf1] sm:$0xff] %vm405_vm0, %v391_v19  ;;  %v615_v51 = vld [vmem:[#allocation2 + $0x121] sm:$0xff]  ;;  %v642_v55 = vpack.c.bf16 %v610_v50, %v610_v50  ;;  %v820_v19 = vld [vmem:[#allocation2 + $0x32] sm:$0xff]  ;;  %v3607_v23 = vpack.c.bf16 %v498_v18, %v498_v18 }
  0x5b   : > { %488 = vst.msk [vmem:[#allocation2 + $0x151] sm:$0xff] %vm405_vm0, %v399_v31  ;;  %v605_v21 = vld [vmem:[#allocation2 + $0xa9] sm:$0xff]  ;;  %v647_v57 = vpack.c.bf16 %v615_v51, %v615_v51  ;;  %v852_v25 = vpack.c.bf16 %v820_v19, %v820_v19  ;;  %v818_v29 = vld [vmem:[#allocation2 + $0x1a] sm:$0xff]  ;;  %v848_v31 = vpack.c.bf16 %v816_v26, %v816_v26 }
  0x5c   : > { %701 = vrot.lane.b32.xlu1 %v630_v56, %s3259_s20  ;;  %483 = vst.msk [vmem:[#allocation2 + $0x111] sm:$0xff] %vm405_vm0, %v394_v34  ;;  %v637_v40 = vpack.c.bf16 %v605_v21, %v605_v21  ;;  %v368_v56 = vadd.f32 %v3423_v14, %v333_v54  ;;  %v500_v32 = vld [vmem:[#allocation2 + $0x48] sm:$0xff]  ;;  %v497_v38 = vld [vmem:[#allocation2 + $0x20] sm:$0xff]  ;;  %v501_v50 = vld [vmem:[#allocation2 + $0x50] sm:$0xff] }
  0x5d   : > { %711 = vrot.lane.b32.xlu0 %v635_v59, %s3259_s20  ;;  %491 = vst.msk [vmem:[#allocation2 + $0x171] sm:$0xff] %vm405_vm0, %v402_v44  ;;  %v613_v59 = vld [vmem:[#allocation2 + $0x109] sm:$0xff]  ;;  %v618_v61 = vld [vmem:[#allocation2 + $0x141] sm:$0xff]  ;;  %v3619_v34 = vpack.c.bf16 %v500_v32, %v500_v32  ;;  %v3629_v39 = vpack.c.bf16 %v497_v38, %v497_v38  ;;  %v3644_v54 = vpack.c.bf16 %v501_v50, %v501_v50 }
  0x5e   : > { %v608_v45 = vld [vmem:[#allocation2 + $0xc9] sm:$0xff]  ;;  %486 = vst.msk [vmem:[#allocation2 + $0x139] sm:$0xff] %vm405_vm0, %v397_v48  ;;  %v400_v58 = vmax.f32 %v368_v56, 0.0  ;;  %v645_v63 = vpack.c.bf16 %v613_v59, %v613_v59  ;;  %v650_v0 = vpack.c.bf16 %v618_v61, %v618_v61  ;;  %v826_v41 = vld [vmem:[#allocation2 + $0x7a] sm:$0xff] }
  0x5f   : > { %v640_v53 = vpack.c.bf16 %v608_v45, %v608_v45  ;;  %v616_v14 = vld [vmem:[#allocation2 + $0x129] sm:$0xff]  ;;  %560 = vst.msk [vmem:[#allocation3 + $0x4] sm:$0xf] %vm558_vm2, %v527_v22  ;;  %v858_v48 = vpack.c.bf16 %v826_v41, %v826_v41  ;;  %v829_v56 = vld [vmem:[#allocation2 + $0x9a] sm:$0xff] }
  0x60   : > { %489 = vst.msk [vmem:[#allocation2 + $0x159] sm:$0xff] %vm405_vm0, %v400_v58  ;;  %v621_v1 = vld [vmem:[#allocation2 + $0x169] sm:$0xff]  ;;  %v648_v3 = vpack.c.bf16 %v616_v14, %v616_v14  ;;  %v505_v61 = vld [vmem:[#allocation2 + $0x80] sm:$0xff]  ;;  %v512_v22 = vld [vmem:[#allocation2 + $0xd8] sm:$0xff] }
  0x61   : > { %v611_v52 = vld [vmem:[#allocation2 + $0xf1] sm:$0xff]  ;;  %v653_v4 = vpack.c.bf16 %v621_v1, %v621_v1  ;;  %563 = vst.msk [vmem:[#allocation3 + $0x10] sm:$0xf] %vm558_vm2, %v3607_v23  ;;  %v508_v9 = vld [vmem:[#allocation2 + $0xa8] sm:$0xff]  ;;  %v513_v50 = vld [vmem:[#allocation2 + $0xe0] sm:$0xff] }
  0x62   : > { %703 = vrot.lane.b32.xlu2 %v631_v8, %s3259_s20  ;;  %v643_v62 = vpack.c.bf16 %v611_v52, %v611_v52  ;;  %v619_v7 = vld [vmem:[#allocation2 + $0x151] sm:$0xff]  ;;  %v494_v8 = vld [vmem:[#allocation2] sm:$0xff]  ;;  %565 = vst.msk [vmem:[#allocation3 + $0x18] sm:$0xf] %vm558_vm2, %v3619_v34  ;;  %v511_v26 = vld [vmem:[#allocation2 + $0xc8] sm:$0xff] }
  0x63   : > { %v614_v6 = vld [vmem:[#allocation2 + $0x111] sm:$0xff]  ;;  %v526_v11 = vpack.c.bf16 %v494_v8, %v494_v8  ;;  %564 = vst.msk [vmem:[#allocation3 + $0x14] sm:$0xf] %vm558_vm2, %v3621_v36  ;;  %v835_v18 = vld [vmem:[#allocation2 + $0xe2] sm:$0xff] }
  0x64   : > { %707 = vrot.lane.b32.xlu1 %v633_v12, %s3259_s20  ;;  %v646_v2 = vpack.c.bf16 %v614_v6, %v614_v6  ;;  %v651_v12 = vpack.c.bf16 %v619_v7, %v619_v7  ;;  %562 = vst.msk [vmem:[#allocation3 + $0xc] sm:$0xf] %vm558_vm2, %v3629_v39  ;;  %v506_v58 = vld [vmem:[#allocation2 + $0x90] sm:$0xff]  ;;  %v504_v6 = vld [vmem:[#allocation2 + $0x78] sm:$0xff] }
  0x65   : > { %717 = vrot.lane.b32.xlu0 %v638_v60, %s3259_s20  ;;  %v617_v5 = vld [vmem:[#allocation2 + $0x139] sm:$0xff]  ;;  %559 = vst.msk [vmem:[#allocation3] sm:$0xf] %vm558_vm2, %v526_v11  ;;  %v622_v60 = vld [vmem:[#allocation2 + $0x171] sm:$0xff]  ;;  %v3651_v59 = vpack.c.bf16 %v506_v58, %v506_v58  ;;  %v3661_v1 = vpack.c.bf16 %v504_v6, %v504_v6  ;;  %v3671_v11 = vpack.c.bf16 %v508_v9, %v508_v9 }
  0x66   : > { %v649_v10 = vpack.c.bf16 %v617_v5, %v617_v5  ;;  %v654_v24 = vpack.c.bf16 %v622_v60, %v622_v60  ;;  %566 = vst.msk [vmem:[#allocation3 + $0x1c] sm:$0xf] %vm558_vm2, %v3644_v54  ;;  %v509_v5 = vld [vmem:[#allocation2 + $0xb0] sm:$0xff]  ;;  %v515_v41 = vld [vmem:[#allocation2 + $0xf8] sm:$0xff] }
  0x67   : > { %v620_v16 = vld [vmem:[#allocation2 + $0x159] sm:$0xff]  ;;  %571 = vst.msk [vmem:[#allocation3 + $0x30] sm:$0xf] %vm558_vm2, %v3651_v59  ;;  %v3669_v8 = vpack.c.bf16 %v509_v5, %v509_v5  ;;  %v830_v60 = vld [vmem:[#allocation2 + $0xaa] sm:$0xff] }
  0x68   : > { %v652_v20 = vpack.c.bf16 %v620_v16, %v620_v16  ;;  %569 = vst.msk [vmem:[#allocation3 + $0x28] sm:$0xf] %vm558_vm2, %v3661_v1  ;;  %v833_v35 = vld [vmem:[#allocation2 + $0xca] sm:$0xff] }
  0x69   : > { %574 = vst.msk [vmem:[#allocation3 + $0x3c] sm:$0xf] %vm558_vm2, %v3669_v8  ;;  %v838_v37 = vld [vmem:[#allocation2 + $0x10a] sm:$0xff] }
  0x6a   : > { %709 = vrot.lane.b32.xlu2 %v634_v27, %s3259_s20  ;;  %v496_v27 = vld [vmem:[#allocation2 + $0x18] sm:$0xff]  ;;  %573 = vst.msk [vmem:[#allocation3 + $0x38] sm:$0xf] %vm558_vm2, %v3671_v11  ;;  %v517_v6 = vld [vmem:[#allocation2 + $0x110] sm:$0xff]  ;;  %v516_v5 = vld [vmem:[#allocation2 + $0x108] sm:$0xff] }
  0x6b   : > { %v3614_v28 = vpack.c.bf16 %v496_v27, %v496_v27  ;;  %v867_v27 = vpack.c.bf16 %v835_v18, %v835_v18  ;;  %v3743_v9 = vpack.c.bf16 %v516_v5, %v516_v5  ;;  %v846_v5 = vld [vmem:[#allocation2 + $0x16a] sm:$0xff] }
  0x6c   : > { %713 = vrot.lane.b32.xlu1 %v636_v30, %s3259_s20  ;;  %v823_v30 = vld [vmem:[#allocation2 + $0x52] sm:$0xff] }
  0x6d   : > { %723 = vrot.lane.b32.xlu0 %v641_v33, %s3259_s20  ;;  %561 = vst.msk [vmem:[#allocation3 + $0x8] sm:$0xf] %vm558_vm2, %v3614_v28  ;;  %v850_v33 = vpack.c.bf16 %v818_v29, %v818_v29  ;;  %v855_v21 = vpack.c.bf16 %v823_v30, %v823_v30  ;;  %v3692_v29 = vpack.c.bf16 %v511_v26, %v511_v26  ;;  %v831_v30 = vld [vmem:[#allocation2 + $0xb2] sm:$0xff] }
  0x6e   : > { %v3705_v38 = vpack.c.bf16 %v831_v30, %v831_v30  ;;  %581 = vst.msk [vmem:[#allocation3 + $0x58] sm:$0xf] %vm558_vm2, %v3743_v9  ;;  %v519_v30 = vld [vmem:[#allocation2 + $0x128] sm:$0xff] }
  0x6f   : > { %576 = vst.msk [vmem:[#allocation3 + $0x44] sm:$0xf] %vm558_vm2, %v3692_v29 }
  0x72   : > { %715 = vrot.lane.b32.xlu2 %v637_v40, %s3259_s20  ;;  %v821_v40 = vld [vmem:[#allocation2 + $0x3a] sm:$0xff] }
  0x73   : > { %v853_v44 = vpack.c.bf16 %v821_v40, %v821_v40 }
  0x74   : > { %719 = vrot.lane.b32.xlu1 %v639_v43, %s3259_s20  ;;  %v503_v43 = vld [vmem:[#allocation2 + $0x68] sm:$0xff] }
  0x75   : > { %729 = vrot.lane.b32.xlu0 %v644_v47, %s3259_s20  ;;  %v3634_v46 = vpack.c.bf16 %v503_v43, %v503_v43  ;;  %v502_v47 = vld [vmem:[#allocation2 + $0x60] sm:$0xff]  ;;  %v3711_v43 = vpack.c.bf16 %v515_v41, %v515_v41 }
  0x76   : > { %v3636_v45 = vpack.c.bf16 %v502_v47, %v502_v47  ;;  %v870_v47 = vpack.c.bf16 %v838_v37, %v838_v37  ;;  %v847_v37 = vld [vmem:[#allocation2 + $0x172] sm:$0xff] }
  0x77   : > { %568 = vst.msk [vmem:[#allocation3 + $0x24] sm:$0xf] %vm558_vm2, %v3634_v46 }
  0x78   : > { %567 = vst.msk [vmem:[#allocation3 + $0x20] sm:$0xf] %vm558_vm2, %v3636_v45 }
  0x79   : > { %580 = vst.msk [vmem:[#allocation3 + $0x54] sm:$0xf] %vm558_vm2, %v3711_v43 }
  0x7a   : > { %721 = vrot.lane.b32.xlu2 %v640_v53, %s3259_s20 }
  0x7c   : > { %725 = vrot.lane.b32.xlu1 %v642_v55, %s3259_s20  ;;  %v824_v55 = vld [vmem:[#allocation2 + $0x62] sm:$0xff] }
  0x7d   : > { %735 = vrot.lane.b32.xlu0 %v647_v57, %s3259_s20  ;;  %v854_v57 = vpack.c.bf16 %v822_v49, %v822_v49  ;;  %v856_v52 = vpack.c.bf16 %v824_v55, %v824_v55  ;;  %v834_v49 = vld [vmem:[#allocation2 + $0xda] sm:$0xff]  ;;  %v836_v55 = vld [vmem:[#allocation2 + $0xf2] sm:$0xff] }
  0x7e   : > { %v3726_v58 = vpack.c.bf16 %v834_v49, %v834_v49  ;;  %v523_v49 = vld [vmem:[#allocation2 + $0x158] sm:$0xff] }
  0x82   : > { %727 = vrot.lane.b32.xlu2 %v643_v62, %s3259_s20  ;;  %v861_v62 = vpack.c.bf16 %v829_v56, %v829_v56 }
  0x84   : > { %731 = vrot.lane.b32.xlu1 %v645_v63, %s3259_s20  ;;  %v3653_v63 = vpack.c.bf16 %v505_v61, %v505_v61  ;;  %v518_v61 = vld [vmem:[#allocation2 + $0x120] sm:$0xff] }
  0x85   : > { %741 = vrot.lane.b32.xlu0 %v650_v0, %s3259_s20  ;;  %v825_v0 = vld [vmem:[#allocation2 + $0x6a] sm:$0xff] }
  0x86   : > { %570 = vst.msk [vmem:[#allocation3 + $0x2c] sm:$0xf] %vm558_vm2, %v3653_v63 }
  0x89   : > { %v688_v13 = vpop.permute.xlu0 %687 }
  0x8a   : > { %733 = vrot.lane.b32.xlu2 %v646_v2, %s3259_s20  ;;  %784 = vst.msk [vmem:[#allocation3] sm:$0xf] %vm783_vm3, %v688_v13  ;;  %v827_v2 = vld [vmem:[#allocation2 + $0x82] sm:$0xff]  ;;  %v507_v13 = vld [vmem:[#allocation2 + $0x98] sm:$0xff] }
  0x8b   : > { %v859_v7 = vpack.c.bf16 %v827_v2, %v827_v2  ;;  %v3680_v16 = vpack.c.bf16 %v507_v13, %v507_v13  ;;  %v3734_v2 = vpack.c.bf16 %v517_v6, %v517_v6  ;;  %v844_v13 = vld [vmem:[#allocation2 + $0x152] sm:$0xff] }
  0x8c   : > { %737 = vrot.lane.b32.xlu1 %v648_v3, %s3259_s20  ;;  %v832_v3 = vld [vmem:[#allocation2 + $0xc2] sm:$0xff] }
  0x8d   : > { %747 = vrot.lane.b32.xlu0 %v653_v4, %s3259_s20  ;;  %v3665_v4 = vpack.c.bf16 %v825_v0, %v825_v0  ;;  %572 = vst.msk [vmem:[#allocation3 + $0x34] sm:$0xf] %vm558_vm2, %v3680_v16  ;;  %v3732_v0 = vpack.c.bf16 %v518_v61, %v518_v61  ;;  %v845_v61 = vld [vmem:[#allocation2 + $0x15a] sm:$0xff] }
  0x8e   : > { %582 = vst.msk [vmem:[#allocation3 + $0x5c] sm:$0xf] %vm558_vm2, %v3734_v2 }
  0x8f   : > { %583 = vst.msk [vmem:[#allocation3 + $0x60] sm:$0xf] %vm558_vm2, %v3732_v0 }
  0x92   : > { %739 = vrot.lane.b32.xlu2 %v649_v10, %s3259_s20  ;;  %v864_v10 = vpack.c.bf16 %v832_v3, %v832_v3  ;;  %v837_v3 = vld [vmem:[#allocation2 + $0xfa] sm:$0xff] }
  0x94   : > { %743 = vrot.lane.b32.xlu1 %v651_v12, %s3259_s20  ;;  %v828_v12 = vld [vmem:[#allocation2 + $0x92] sm:$0xff] }
  0x95   : > { %914 = vrot.lane.b32.xlu0 %v849_v15, %s3260_s29  ;;  %v3684_v19 = vpack.c.bf16 %v828_v12, %v828_v12 }
  0x9a   : > { %745 = vrot.lane.b32.xlu2 %v652_v20, %s3259_s20 }
  0x9c   : > { %749 = vrot.lane.b32.xlu1 %v654_v24, %s3259_s20  ;;  %v862_v24 = vpack.c.bf16 %v830_v60, %v830_v60 }
  0x9d   : > { %920 = vrot.lane.b32.xlu0 %v852_v25, %s3260_s29  ;;  %v3690_v25 = vpack.c.bf16 %v512_v22, %v512_v22  ;;  %v520_v22 = vld [vmem:[#allocation2 + $0x138] sm:$0xff] }
  0x9e   : > { %v3755_v26 = vpack.c.bf16 %v520_v22, %v520_v22 }
  0x9f   : > { %577 = vst.msk [vmem:[#allocation3 + $0x48] sm:$0xf] %vm558_vm2, %v3690_v25 }
  0xa0   : > { %585 = vst.msk [vmem:[#allocation3 + $0x68] sm:$0xf] %vm558_vm2, %v3755_v26 }
  0xa2   : > { %912 = vrot.lane.b32.xlu2 %v848_v31, %s3260_s29  ;;  %v510_v31 = vld [vmem:[#allocation2 + $0xc0] sm:$0xff] }
  0xa4   : > { %916 = vrot.lane.b32.xlu1 %v850_v33, %s3260_s29  ;;  %v3701_v33 = vpack.c.bf16 %v510_v31, %v510_v31 }
  0xa5   : > { %926 = vrot.lane.b32.xlu0 %v855_v21, %s3260_s29 }
  0xa6   : > { %575 = vst.msk [vmem:[#allocation3 + $0x40] sm:$0xf] %vm558_vm2, %v3701_v33 }
  0xaa   : > { %918 = vrot.lane.b32.xlu2 %v851_v42, %s3260_s29  ;;  %v865_v42 = vpack.c.bf16 %v833_v35, %v833_v35  ;;  %v842_v35 = vld [vmem:[#allocation2 + $0x13a] sm:$0xff] }
  0xac   : > { %922 = vrot.lane.b32.xlu1 %v853_v44, %s3260_s29  ;;  %v690_v51 = vpop.permute.xlu0 %689  ;;  %v696_v53 = vpop.permute.xlu2 %695  ;;  %v514_v44 = vld [vmem:[#allocation2 + $0xf0] sm:$0xff] }
  0xad   : > { %932 = vrot.lane.b32.xlu0 %v858_v48, %s3260_s29  ;;  %785 = vst.msk [vmem:[#allocation3 + $0x4] sm:$0xf] %vm783_vm3, %v690_v51  ;;  %v3713_v48 = vpack.c.bf16 %v514_v44, %v514_v44  ;;  %v874_v44 = vpack.c.bf16 %v842_v35, %v842_v35 }
  0xae   : > { %788 = vst.msk [vmem:[#allocation3 + $0x10] sm:$0xf] %vm783_vm3, %v696_v53  ;;  %v3722_v53 = vpack.c.bf16 %v513_v50, %v513_v50  ;;  %v879_v50 = vpack.c.bf16 %v847_v37, %v847_v37 }
  0xaf   : > { %579 = vst.msk [vmem:[#allocation3 + $0x50] sm:$0xf] %vm558_vm2, %v3713_v48 }
  0xb0   : > { %578 = vst.msk [vmem:[#allocation3 + $0x4c] sm:$0xf] %vm558_vm2, %v3722_v53 }
  0xb2   : > { %924 = vrot.lane.b32.xlu2 %v854_v57, %s3260_s29  ;;  %v841_v57 = vld [vmem:[#allocation2 + $0x12a] sm:$0xff] }
  0xb4   : > { %928 = vrot.lane.b32.xlu1 %v856_v52, %s3260_s29  ;;  %v698_v14 = vpop.permute.xlu2 %697 }
  0xb5   : > { %938 = vrot.lane.b32.xlu0 %v861_v62, %s3260_s29  ;;  %789 = vst.msk [vmem:[#allocation3 + $0x14] sm:$0xf] %vm783_vm3, %v698_v14  ;;  %v868_v62 = vpack.c.bf16 %v836_v55, %v836_v55  ;;  %v873_v14 = vpack.c.bf16 %v841_v57, %v841_v57  ;;  %v843_v55 = vld [vmem:[#allocation2 + $0x142] sm:$0xff] }
  0xb6   : > { %v3789_v6 = vpack.c.bf16 %v843_v55, %v843_v55  ;;  %v1266_v55 = vld [vmem:[#allocation2 + $0x19] sm:$0xff] }
  0xba   : > { %930 = vrot.lane.b32.xlu2 %v3665_v4, %s3260_s29 }
  0xbc   : > { %934 = vrot.lane.b32.xlu1 %v859_v7, %s3260_s29  ;;  %v704_v15 = vpop.permute.xlu2 %703 }
  0xbd   : > { %944 = vrot.lane.b32.xlu0 %v864_v10, %s3260_s29  ;;  %792 = vst.msk [vmem:[#allocation3 + $0x20] sm:$0xf] %vm783_vm3, %v704_v15  ;;  %v839_v10 = vld [vmem:[#allocation2 + $0x112] sm:$0xff]  ;;  %v3747_v15 = vpack.c.bf16 %v837_v3, %v837_v3  ;;  %v877_v3 = vpack.c.bf16 %v845_v61, %v845_v61 }
  0xbe   : > { %v692_v17 = vpop.permute.xlu1 %691  ;;  %v871_v18 = vpack.c.bf16 %v839_v10, %v839_v10  ;;  %v1269_v61 = vld [vmem:[#allocation2 + $0x39] sm:$0xff] }
  0xbf   : > { %786 = vst.msk [vmem:[#allocation3 + $0x8] sm:$0xf] %vm783_vm3, %v692_v17  ;;  %v700_v20 = vpop.permute.xlu0 %699  ;;  %v521_v17 = vld [vmem:[#allocation2 + $0x140] sm:$0xff] }
  0xc0   : > { %790 = vst.msk [vmem:[#allocation3 + $0x18] sm:$0xf] %vm783_vm3, %v700_v20  ;;  %v3753_v20 = vpack.c.bf16 %v521_v17, %v521_v17 }
  0xc2   : > { %936 = vrot.lane.b32.xlu2 %v3684_v19, %s3260_s29  ;;  %586 = vst.msk [vmem:[#allocation3 + $0x6c] sm:$0xf] %vm558_vm2, %v3753_v20 }
  0xc4   : > { %940 = vrot.lane.b32.xlu1 %v862_v24, %s3260_s29  ;;  %v710_v32 = vpop.permute.xlu2 %709  ;;  %v876_v24 = vpack.c.bf16 %v844_v13, %v844_v13 }
  0xc5   : > { %950 = vrot.lane.b32.xlu0 %v867_v27, %s3260_s29  ;;  %795 = vst.msk [vmem:[#allocation3 + $0x2c] sm:$0xf] %vm783_vm3, %v710_v32  ;;  %v840_v27 = vld [vmem:[#allocation2 + $0x122] sm:$0xff]  ;;  %v3764_v32 = vpack.c.bf16 %v519_v30, %v519_v30 }
  0xc6   : > { %v694_v21 = vpop.permute.xlu1 %693 }
  0xc7   : > { %787 = vst.msk [vmem:[#allocation3 + $0xc] sm:$0xf] %vm783_vm3, %v694_v21  ;;  %v706_v40 = vpop.permute.xlu0 %705 }
  0xc8   : > { %793 = vst.msk [vmem:[#allocation3 + $0x24] sm:$0xf] %vm783_vm3, %v706_v40  ;;  %v3768_v40 = vpack.c.bf16 %v840_v27, %v840_v27  ;;  %v3213_v27 = vld [vmem:[%s3384_s24 + $0x78] sm:$0xff]  }
  0xc9   : > { %584 = vst.msk [vmem:[#allocation3 + $0x64] sm:$0xf] %vm558_vm2, %v3764_v32 }
  0xca   : > { %942 = vrot.lane.b32.xlu2 %v3705_v38, %s3260_s29 }
  0xcc   : > { %946 = vrot.lane.b32.xlu1 %v865_v42, %s3260_s29  ;;  %v716_v51 = vpop.permute.xlu2 %715  ;;  %v524_v42 = vld [vmem:[#allocation2 + $0x168] sm:$0xff] }
  0xcd   : > { %956 = vrot.lane.b32.xlu0 %v870_v47, %s3260_s29  ;;  %798 = vst.msk [vmem:[#allocation3 + $0x38] sm:$0xf] %vm783_vm3, %v716_v51  ;;  %v3774_v47 = vpack.c.bf16 %v524_v42, %v524_v42  ;;  %v3776_v51 = vpack.c.bf16 %v523_v49, %v523_v49 }
  0xce   : > { %v702_v56 = vpop.permute.xlu1 %701 }
  0xcf   : > { %791 = vst.msk [vmem:[#allocation3 + $0x1c] sm:$0xf] %vm783_vm3, %v702_v56  ;;  %v712_v52 = vpop.permute.xlu0 %711  ;;  %v522_v56 = vld [vmem:[#allocation2 + $0x150] sm:$0xff] }
  0xd0   : > { %796 = vst.msk [vmem:[#allocation3 + $0x30] sm:$0xf] %vm783_vm3, %v712_v52  ;;  %v3785_v52 = vpack.c.bf16 %v522_v56, %v522_v56 }
  0xd1   : > { %589 = vst.msk [vmem:[#allocation3 + $0x78] sm:$0xf] %vm558_vm2, %v3774_v47 }
  0xd2   : > { %948 = vrot.lane.b32.xlu2 %v3726_v58, %s3260_s29  ;;  %588 = vst.msk [vmem:[#allocation3 + $0x74] sm:$0xf] %vm558_vm2, %v3776_v51 }
  0xd3   : > { %587 = vst.msk [vmem:[#allocation3 + $0x70] sm:$0xf] %vm558_vm2, %v3785_v52 }
  0xd4   : > { %952 = vrot.lane.b32.xlu1 %v868_v62, %s3260_s29  ;;  %v722_v7 = vpop.permute.xlu2 %721 }
  0xd5   : > { %962 = vrot.lane.b32.xlu0 %v873_v14, %s3260_s29  ;;  %801 = vst.msk [vmem:[#allocation3 + $0x44] sm:$0xf] %vm783_vm3, %v722_v7  ;;  %v525_v7 = vld [vmem:[#allocation2 + $0x170] sm:$0xff] }
  0xd6   : > { %v708_v12 = vpop.permute.xlu1 %707 }
  0xd7   : > { %794 = vst.msk [vmem:[#allocation3 + $0x28] sm:$0xf] %vm783_vm3, %v708_v12  ;;  %v718_v60 = vpop.permute.xlu0 %717  ;;  %v3798_v12 = vpack.c.bf16 %v525_v7, %v525_v7 }
  0xd8   : > { %799 = vst.msk [vmem:[#allocation3 + $0x3c] sm:$0xf] %vm783_vm3, %v718_v60  ;;  %v3803_v60 = vpack.c.bf16 %v846_v5, %v846_v5  ;;  %v1267_v5 = vld [vmem:[#allocation2 + $0x21] sm:$0xff] }
  0xd9   : > { %590 = vst.msk [vmem:[#allocation3 + $0x7c] sm:$0xf] %vm558_vm2, %v3798_v12 }
  0xda   : > { %954 = vrot.lane.b32.xlu2 %v3747_v15, %s3260_s29 }
  0xdc   : > { %958 = vrot.lane.b32.xlu1 %v871_v18, %s3260_s29  ;;  %v728_v31 = vpop.permute.xlu2 %727 }
  0xdd   : > { %968 = vrot.lane.b32.xlu0 %v876_v24, %s3260_s29  ;;  %804 = vst.msk [vmem:[#allocation3 + $0x50] sm:$0xf] %vm783_vm3, %v728_v31 }
  0xde   : > { %v714_v21 = vpop.permute.xlu1 %713 }
  0xdf   : > { %797 = vst.msk [vmem:[#allocation3 + $0x34] sm:$0xf] %vm783_vm3, %v714_v21  ;;  %v724_v41 = vpop.permute.xlu0 %723 }
  0xe0   : > { %802 = vst.msk [vmem:[#allocation3 + $0x48] sm:$0xf] %vm783_vm3, %v724_v41 }
  0xe2   : > { %960 = vrot.lane.b32.xlu2 %v3768_v40, %s3260_s29 }
  0xe4   : > { %964 = vrot.lane.b32.xlu1 %v874_v44, %s3260_s29  ;;  %v734_v57 = vpop.permute.xlu2 %733 }
  0xe5   : > { %974 = vrot.lane.b32.xlu0 %v879_v50, %s3260_s29  ;;  %807 = vst.msk [vmem:[#allocation3 + $0x5c] sm:$0xf] %vm783_vm3, %v734_v57  ;;  %v1298_v57 = vpack.c.bf16 %v1266_v55, %v1266_v55 }
  0xe6   : > { %v720_v62 = vpop.permute.xlu1 %719 }
  0xe7   : > { %800 = vst.msk [vmem:[#allocation3 + $0x40] sm:$0xf] %vm783_vm3, %v720_v62  ;;  %v730_v14 = vpop.permute.xlu0 %729 }
  0xe8   : > { %805 = vst.msk [vmem:[#allocation3 + $0x54] sm:$0xf] %vm783_vm3, %v730_v14 }
  0xea   : > { %966 = vrot.lane.b32.xlu2 %v3789_v6, %s3260_s29 }
  0xec   : > { %970 = vrot.lane.b32.xlu1 %v877_v3, %s3260_s29  ;;  %v740_v10 = vpop.permute.xlu2 %739  ;;  %v3907_v3 = vpack.c.bf16 %v1269_v61, %v1269_v61 }
  0xed   : > { %1141 = vrot.lane.b32.xlu0 %v3607_v23, %s3261_s30  ;;  %810 = vst.msk [vmem:[#allocation3 + $0x68] sm:$0xf] %vm783_vm3, %v740_v10  ;;  %v1272_v10 = vld [vmem:[#allocation2 + $0x61] sm:$0xff] }
  0xee   : > { %v726_v13 = vpop.permute.xlu1 %725 }
  0xef   : > { %803 = vst.msk [vmem:[#allocation3 + $0x4c] sm:$0xf] %vm783_vm3, %v726_v13  ;;  %v736_v17 = vpop.permute.xlu0 %735 }
  0xf0   : > { %808 = vst.msk [vmem:[#allocation3 + $0x60] sm:$0xf] %vm783_vm3, %v736_v17  ;;  %v1299_v17 = vpack.c.bf16 %v1267_v5, %v1267_v5 }
  0xf2   : > { %972 = vrot.lane.b32.xlu2 %v3803_v60, %s3260_s29 }
  0xf4   : > { %1137 = vrot.lane.b32.xlu1 %v3614_v28, %s3261_s30  ;;  %v746_v23 = vpop.permute.xlu2 %745 }
  0xf5   : > { %1147 = vrot.lane.b32.xlu0 %v3644_v54, %s3261_s30  ;;  %813 = vst.msk [vmem:[#allocation3 + $0x74] sm:$0xf] %vm783_vm3, %v746_v23  ;;  %v1268_v23 = vld [vmem:[#allocation2 + $0x31] sm:$0xff] }
  0xf6   : > { %v732_v18 = vpop.permute.xlu1 %731 }
  0xf7   : > { %806 = vst.msk [vmem:[#allocation3 + $0x58] sm:$0xf] %vm783_vm3, %v732_v18  ;;  %v742_v22 = vpop.permute.xlu0 %741 }
  0xf8   : > { %811 = vst.msk [vmem:[#allocation3 + $0x6c] sm:$0xf] %vm783_vm3, %v742_v22  ;;  %v1270_v22 = vld [vmem:[#allocation2 + $0x49] sm:$0xff] }
  0xfa   : > { %1139 = vrot.lane.b32.xlu2 %v3629_v39, %s3261_s30 }
  0xfc   : > { %1143 = vrot.lane.b32.xlu1 %v3621_v36, %s3261_s30  ;;  %v913_v28 = vpop.permute.xlu2 %912 }
  0xfd   : > { %1153 = vrot.lane.b32.xlu0 %v3661_v1, %s3261_s30  ;;  %1009 = vst.msk [vmem:[#allocation3] sm:$0xf] %vm1008_vm4, %v913_v28 }
  0xfe   : > { %v738_v54 = vpop.permute.xlu1 %737 }
  0xff   : > { %809 = vst.msk [vmem:[#allocation3 + $0x64] sm:$0xf] %vm783_vm3, %v738_v54  ;;  %v748_v24 = vpop.permute.xlu0 %747  ;;  %v1275_v54 = vld [vmem:[#allocation2 + $0x81] sm:$0xff] }
 0x100   : > { %814 = vst.msk [vmem:[#allocation3 + $0x78] sm:$0xf] %vm783_vm3, %v748_v24  ;;  %v3924_v24 = vpack.c.bf16 %v1268_v23, %v1268_v23  ;;  %v1286_v23 = vld [vmem:[#allocation2 + $0x109] sm:$0xff] }
 0x102   : > { %1145 = vrot.lane.b32.xlu2 %v3619_v34, %s3261_s30 }
 0x104   : > { %1149 = vrot.lane.b32.xlu1 %v3636_v45, %s3261_s30  ;;  %v919_v39 = vpop.permute.xlu2 %918 }
 0x105   : > { %1159 = vrot.lane.b32.xlu0 %v3680_v16, %s3261_s30  ;;  %1012 = vst.msk [vmem:[#allocation3 + $0xc] sm:$0xf] %vm1008_vm4, %v919_v39 }
 0x106   : > { %v744_v36 = vpop.permute.xlu1 %743 }
 0x107   : > { %812 = vst.msk [vmem:[#allocation3 + $0x70] sm:$0xf] %vm783_vm3, %v744_v36  ;;  %v915_v1 = vpop.permute.xlu0 %914  ;;  %v3928_v36 = vpack.c.bf16 %v1270_v22, %v1270_v22  ;;  %v1288_v22 = vld [vmem:[#allocation2 + $0x121] sm:$0xff] }
 0x108   : > { %1010 = vst.msk [vmem:[#allocation3 + $0x4] sm:$0xf] %vm1008_vm4, %v915_v1  ;;  %v1307_v1 = vpack.c.bf16 %v1275_v54, %v1275_v54  ;;  %v1293_v54 = vld [vmem:[#allocation2 + $0x159] sm:$0xff] }
 0x10a   : > { %1151 = vrot.lane.b32.xlu2 %v3634_v46, %s3261_s30  ;;  %v3197_v46 = vunpack.c.l.bf16 %v3213_v27 }
 0x10c   : > { %1155 = vrot.lane.b32.xlu1 %v3653_v63, %s3261_s30  ;;  %v925_v34 = vpop.permute.xlu2 %924 }
 0x10d   : > { %1165 = vrot.lane.b32.xlu0 %v3701_v33, %s3261_s30  ;;  %1015 = vst.msk [vmem:[#allocation3 + $0x18] sm:$0xf] %vm1008_vm4, %v925_v34  ;;  %v3248_v33 = vld [vmem:[%s4685_s1] ss:$0 sm:$0xff]  ;;  %v1271_v34 = vld [vmem:[#allocation2 + $0x51] sm:$0xff] }
 0x10e   : > { %v750_v45 = vpop.permute.xlu1 %749  ;;  %v336_v30 = vmul.f32 %v3248_v33, %v3197_v46  ;;  %v1278_v46 = vld [vmem:[#allocation2 + $0xa9] sm:$0xff] }
 0x10f   : > { %815 = vst.msk [vmem:[#allocation3 + $0x7c] sm:$0xf] %vm783_vm3, %v750_v45  ;;  %v921_v16 = vpop.permute.xlu0 %920 }
 0x110   : > { %1013 = vst.msk [vmem:[#allocation3 + $0x10] sm:$0xf] %vm1008_vm4, %v921_v16  ;;  %v1273_v16 = vld [vmem:[#allocation2 + $0x69] sm:$0xff] }
 0x112   : > { %1157 = vrot.lane.b32.xlu2 %v3651_v59, %s3261_s30  ;;  %v3249_v59 = vld [vmem:[%s4686_s2] ss:$0 sm:$0xff] }
 0x113   : > { %v371_v35 = vadd.f32 %v3249_v59, %v336_v30  ;;  %v3940_v30 = vpack.c.bf16 %v1273_v16, %v1273_v16  ;;  %v1289_v16 = vld [vmem:[#allocation2 + $0x129] sm:$0xff] }
 0x114   : > { %1161 = vrot.lane.b32.xlu1 %v3671_v11, %s3261_s30  ;;  %v931_v63 = vpop.permute.xlu2 %930 }
 0x115   : > { %1171 = vrot.lane.b32.xlu0 %v3722_v53, %s3261_s30  ;;  %1018 = vst.msk [vmem:[#allocation3 + $0x24] sm:$0xf] %vm1008_vm4, %v931_v63  ;;  %v403_v21 = vmax.f32 %v371_v35, 0.0  ;;  %v3936_v63 = vpack.c.bf16 %v1271_v34, %v1271_v34  ;;  %v1320_v34 = vpack.c.bf16 %v1288_v22, %v1288_v22 }
 0x116   : > { %v917_v31 = vpop.permute.xlu1 %916 }
 0x117   : > { %1011 = vst.msk [vmem:[#allocation3 + $0x8] sm:$0xf] %vm1008_vm4, %v917_v31  ;;  %v927_v11 = vpop.permute.xlu0 %926  ;;  %v3942_v31 = vpack.c.bf16 %v1278_v46, %v1278_v46  ;;  %v1291_v46 = vld [vmem:[#allocation2 + $0x141] sm:$0xff] }
 0x118   : > { %1016 = vst.msk [vmem:[#allocation3 + $0x1c] sm:$0xf] %vm1008_vm4, %v927_v11  ;;  %v1276_v11 = vld [vmem:[#allocation2 + $0x91] sm:$0xff] }
 0x119   : > { %492 = vst.msk [vmem:[#allocation2 + $0x181] sm:$0xff] %vm405_vm0, %v403_v21 }
 0x11a   : > { %1163 = vrot.lane.b32.xlu2 %v3669_v8, %s3261_s30 }
 0x11c   : > { %1167 = vrot.lane.b32.xlu1 %v3692_v29, %s3261_s30  ;;  %v937_v53 = vpop.permute.xlu2 %936  ;;  %v3198_v29 = vunpack.c.h.bf16 %v3213_v27 }
 0x11d   : > { %1177 = vrot.lane.b32.xlu0 %v3743_v9, %s3261_s30  ;;  %1021 = vst.msk [vmem:[#allocation3 + $0x30] sm:$0xf] %vm1008_vm4, %v937_v53  ;;  %v1281_v53 = vld [vmem:[#allocation2 + $0xc9] sm:$0xff] }
 0x11e   : > { %v923_v37 = vpop.permute.xlu1 %922  ;;  %v337_v42 = vmul.f32 %v3248_v33, %v3198_v29  ;;  %v1313_v29 = vpack.c.bf16 %v1281_v53, %v1281_v53 }
 0x11f   : > { %1014 = vst.msk [vmem:[#allocation3 + $0x14] sm:$0xf] %vm1008_vm4, %v923_v37  ;;  %v933_v41 = vpop.permute.xlu0 %932 }
 0x120   : > { %1019 = vst.msk [vmem:[#allocation3 + $0x28] sm:$0xf] %vm1008_vm4, %v933_v41  ;;  %v372_v49 = vadd.f32 %v3249_v59, %v337_v42  ;;  %v1274_v59 = vld [vmem:[#allocation2 + $0x79] sm:$0xff] }
 0x121   : > { %v1306_v37 = vpack.c.bf16 %v1274_v59, %v1274_v59  ;;  %v1296_v59 = vld [vmem:[#allocation2 + $0x181] sm:$0xff] }
 0x122   : > { %1169 = vrot.lane.b32.xlu2 %v3690_v25, %s3261_s30  ;;  %v404_v25 = vmax.f32 %v372_v49, 0.0  ;;  %v1328_v53 = vpack.c.bf16 %v1296_v59, %v1296_v59 }
 0x124   : > { %1173 = vrot.lane.b32.xlu1 %v3713_v48, %s3261_s30  ;;  %v943_v8 = vpop.permute.xlu2 %942  ;;  %493 = vst.msk [vmem:[#allocation2 + $0x189] sm:$0xff] %vm405_vm0, %v404_v25  ;;  %v1284_v25 = vld [vmem:[#allocation2 + $0xf1] sm:$0xff] }
 0x125   : > { %1183 = vrot.lane.b32.xlu0 %v3764_v32, %s3261_s30  ;;  %1024 = vst.msk [vmem:[#allocation3 + $0x3c] sm:$0xf] %vm1008_vm4, %v943_v8  ;;  %v3953_v8 = vpack.c.bf16 %v1276_v11, %v1276_v11 }
 0x126   : > { %v929_v9 = vpop.permute.xlu1 %928 }
 0x127   : > { %1017 = vst.msk [vmem:[#allocation3 + $0x20] sm:$0xf] %vm1008_vm4, %v929_v9  ;;  %v939_v44 = vpop.permute.xlu0 %938  ;;  %v1277_v9 = vld [vmem:[#allocation2 + $0x99] sm:$0xff] }
 0x128   : > { %1022 = vst.msk [vmem:[#allocation3 + $0x34] sm:$0xf] %vm1008_vm4, %v939_v44  ;;  %v1279_v44 = vld [vmem:[#allocation2 + $0xb1] sm:$0xff] }
 0x12a   : > { %1175 = vrot.lane.b32.xlu2 %v3711_v43, %s3261_s30 }
 0x12c   : > { %1179 = vrot.lane.b32.xlu1 %v3734_v2, %s3261_s30  ;;  %v949_v48 = vpop.permute.xlu2 %948 }
 0x12d   : > { %1189 = vrot.lane.b32.xlu0 %v3785_v52, %s3261_s30  ;;  %1027 = vst.msk [vmem:[#allocation3 + $0x48] sm:$0xf] %vm1008_vm4, %v949_v48  ;;  %v3960_v48 = vpack.c.bf16 %v1277_v9, %v1277_v9 }
 0x12e   : > { %v935_v32 = vpop.permute.xlu1 %934 }
 0x12f   : > { %1020 = vst.msk [vmem:[#allocation3 + $0x2c] sm:$0xf] %vm1008_vm4, %v935_v32  ;;  %v945_v50 = vpop.permute.xlu0 %944 }
 0x130   : > { %1025 = vst.msk [vmem:[#allocation3 + $0x40] sm:$0xf] %vm1008_vm4, %v945_v50  ;;  %v3964_v50 = vpack.c.bf16 %v1279_v44, %v1279_v44 }
 0x132   : > { %1181 = vrot.lane.b32.xlu2 %v3732_v0, %s3261_s30 }
 0x134   : > { %1185 = vrot.lane.b32.xlu1 %v3755_v26, %s3261_s30  ;;  %v955_v43 = vpop.permute.xlu2 %954  ;;  %v1071_v26 = vld [vmem:[#allocation2 + $0x180] sm:$0xff] }
 0x135   : > { %1195 = vrot.lane.b32.xlu0 %v3798_v12, %s3261_s30  ;;  %1030 = vst.msk [vmem:[#allocation3 + $0x54] sm:$0xf] %vm1008_vm4, %v955_v43  ;;  %v1103_v14 = vpack.c.bf16 %v1071_v26, %v1071_v26  ;;  %v3966_v43 = vpack.c.bf16 %v1284_v25, %v1284_v25 }
 0x136   : > { %v941_v2 = vpop.permute.xlu1 %940 }
 0x137   : > { %1023 = vst.msk [vmem:[#allocation3 + $0x38] sm:$0xf] %vm1008_vm4, %v941_v2  ;;  %v951_v56 = vpop.permute.xlu0 %950  ;;  %v1280_v2 = vld [vmem:[#allocation2 + $0xc1] sm:$0xff] }
 0x138   : > { %1028 = vst.msk [vmem:[#allocation3 + $0x4c] sm:$0xf] %vm1008_vm4, %v951_v56  ;;  %v1282_v56 = vld [vmem:[#allocation2 + $0xd9] sm:$0xff]  ;;  %v3975_v26 = vpack.c.bf16 %v1280_v2, %v1280_v2  ;;  %v1295_v2 = vld [vmem:[#allocation2 + $0x171] sm:$0xff] }
 0x139   : > { %v1314_v61 = vpack.c.bf16 %v1282_v56, %v1282_v56  ;;  %v1297_v56 = vld [vmem:[#allocation2 + $0x189] sm:$0xff] }
 0x13a   : > { %1187 = vrot.lane.b32.xlu2 %v3753_v20, %s3261_s30  ;;  %v1072_v20 = vld [vmem:[#allocation2 + $0x188] sm:$0xff] }
 0x13b   : > { %v1104_v12 = vpack.c.bf16 %v1072_v20, %v1072_v20 }
 0x13c   : > { %1191 = vrot.lane.b32.xlu1 %v3776_v51, %s3261_s30  ;;  %v961_v0 = vpop.permute.xlu2 %960 }
 0x13d   : > { %1362 = vrot.lane.b32.xlu0 %v1298_v57, %s3262_s10  ;;  %1033 = vst.msk [vmem:[#allocation3 + $0x60] sm:$0xf] %vm1008_vm4, %v961_v0  ;;  %v1287_v0 = vld [vmem:[#allocation2 + $0x111] sm:$0xff] }
 0x13e   : > { %v947_v52 = vpop.permute.xlu1 %946 }
 0x13f   : > { %1026 = vst.msk [vmem:[#allocation3 + $0x44] sm:$0xf] %vm1008_vm4, %v947_v52  ;;  %v957_v62 = vpop.permute.xlu0 %956 }
 0x140   : > { %1031 = vst.msk [vmem:[#allocation3 + $0x58] sm:$0xf] %vm1008_vm4, %v957_v62  ;;  %v3979_v62 = vpack.c.bf16 %v1287_v0, %v1287_v0  ;;  %v1495_v0 = vld [vmem:[#allocation2 + $0x4a] sm:$0xff] }
 0x142   : > { %1193 = vrot.lane.b32.xlu2 %v3774_v47, %s3261_s30  ;;  %v3917_v47 = vpack.c.bf16 %v1272_v10, %v1272_v10 }
 0x144   : > { %1197 = vrot.lane.b32.xlu1 %v1103_v14, %s3261_s30  ;;  %v967_v51 = vpop.permute.xlu2 %966  ;;  %v1283_v14 = vld [vmem:[#allocation2 + $0xe1] sm:$0xff] }
 0x145   : > { %1368 = vrot.lane.b32.xlu0 %v3907_v3, %s3262_s10  ;;  %1036 = vst.msk [vmem:[#allocation3 + $0x6c] sm:$0xf] %vm1008_vm4, %v967_v51  ;;  %v1285_v51 = vld [vmem:[#allocation2 + $0xf9] sm:$0xff]  ;;  %v1315_v10 = vpack.c.bf16 %v1283_v14, %v1283_v14  ;;  %v1329_v14 = vpack.c.bf16 %v1297_v56, %v1297_v56 }
 0x146   : > { %v953_v7 = vpop.permute.xlu1 %952 }
 0x147   : > { %1029 = vst.msk [vmem:[#allocation3 + $0x50] sm:$0xf] %vm1008_vm4, %v953_v7  ;;  %v963_v13 = vpop.permute.xlu0 %962  ;;  %v1290_v7 = vld [vmem:[#allocation2 + $0x139] sm:$0xff] }
 0x148   : > { %1034 = vst.msk [vmem:[#allocation3 + $0x64] sm:$0xf] %vm1008_vm4, %v963_v13  ;;  %v3989_v13 = vpack.c.bf16 %v1285_v51, %v1285_v51  ;;  %v1491_v51 = vld [vmem:[#allocation2 + $0x1a] sm:$0xff] }
 0x14a   : > { %1199 = vrot.lane.b32.xlu2 %v1104_v12, %s3261_s30  ;;  %s4412_s30 = scalar_lea.vmem %s4688_s4, %s3113_s21  ;;  %s3014_s21 = sshll.u32 %s4691_s19, 1 }
 0x14b   : > { %s235_s8 = scalar_lea.vmem %s4689_s5, %s3014_s21 }
 0x14c   : > { %1364 = vrot.lane.b32.xlu1 %v1299_v17, %s3262_s10  ;;  %v973_v18 = vpop.permute.xlu2 %972  ;;  %v1322_v17 = vpack.c.bf16 %v1290_v7, %v1290_v7  ;;  %v1493_v7 = vld [vmem:[#allocation2 + $0x32] sm:$0xff] }
 0x14d   : > { %1374 = vrot.lane.b32.xlu0 %v3917_v47, %s3262_s10  ;;  %1039 = vst.msk [vmem:[#allocation3 + $0x78] sm:$0xf] %vm1008_vm4, %v973_v18 }
 0x14e   : > { %v959_v28 = vpop.permute.xlu1 %958 }
 0x14f   : > { %1032 = vst.msk [vmem:[#allocation3 + $0x5c] sm:$0xf] %vm1008_vm4, %v959_v28  ;;  %v969_v39 = vpop.permute.xlu0 %968 }
 0x150   : > { %1037 = vst.msk [vmem:[#allocation3 + $0x70] sm:$0xf] %vm1008_vm4, %v969_v39  ;;  %v3996_v39 = vpack.c.bf16 %v1286_v23, %v1286_v23  ;;  %v4037_v23 = vpack.c.bf16 %v1493_v7, %v1493_v7  ;;  %v1511_v7 = vld [vmem:[#allocation2 + $0x10a] sm:$0xff] }
 0x152   : > { %1366 = vrot.lane.b32.xlu2 %v3924_v24, %s3262_s10 }
 0x154   : > { %1370 = vrot.lane.b32.xlu1 %v3928_v36, %s3262_s10  ;;  %v1140_v45 = vpop.permute.xlu2 %1139 }
 0x155   : > { %1380 = vrot.lane.b32.xlu0 %v1307_v1, %s3262_s10  ;;  %1235 = vst.msk [vmem:[#allocation3 + $0x4] sm:$0xf] %vm1233_vm5, %v1140_v45  ;;  %v4000_v45 = vpack.c.bf16 %v1293_v54, %v1293_v54 }
 0x156   : > { %v965_v27 = vpop.permute.xlu1 %964 }
 0x157   : > { %1035 = vst.msk [vmem:[#allocation3 + $0x68] sm:$0xf] %vm1008_vm4, %v965_v27  ;;  %v975_v33 = vpop.permute.xlu0 %974 }
 0x158   : > { %1040 = vst.msk [vmem:[#allocation3 + $0x7c] sm:$0xf] %vm1008_vm4, %v975_v33 }
 0x15a   : > { %1372 = vrot.lane.b32.xlu2 %v3936_v63, %s3262_s10 }
 0x15c   : > { %1376 = vrot.lane.b32.xlu1 %v3940_v30, %s3262_s10  ;;  %v1146_v35 = vpop.permute.xlu2 %1145 }
 0x15d   : > { %1386 = vrot.lane.b32.xlu0 %v3942_v31, %s3262_s10  ;;  %1238 = vst.msk [vmem:[#allocation3 + $0x10] sm:$0xf] %vm1233_vm5, %v1146_v35  ;;  %v4008_v35 = vpack.c.bf16 %v1289_v16, %v1289_v16 }
 0x15e   : > { %v971_v21 = vpop.permute.xlu1 %970 }
 0x15f   : > { %1038 = vst.msk [vmem:[#allocation3 + $0x74] sm:$0xf] %vm1008_vm4, %v971_v21  ;;  %v1142_v41 = vpop.permute.xlu0 %1141  ;;  %v1323_v21 = vpack.c.bf16 %v1291_v46, %v1291_v46  ;;  %v1499_v46 = vld [vmem:[#allocation2 + $0x7a] sm:$0xff] }
 0x160   : > { %1236 = vst.msk [vmem:[#allocation3 + $0x8] sm:$0xf] %vm1233_vm5, %v1142_v41 }
 0x162   : > { %1378 = vrot.lane.b32.xlu2 %v1306_v37, %s3262_s10  ;;  %v1292_v37 = vld [vmem:[#allocation2 + $0x151] sm:$0xff] }
 0x163   : > { %v4017_v44 = vpack.c.bf16 %v1292_v37, %v1292_v37  ;;  %v1502_v37 = vld [vmem:[#allocation2 + $0x9a] sm:$0xff] }
 0x164   : > { %1382 = vrot.lane.b32.xlu1 %v3953_v8, %s3262_s10  ;;  %v1152_v42 = vpop.permute.xlu2 %1151 }
 0x165   : > { %1392 = vrot.lane.b32.xlu0 %v1313_v29, %s3262_s10  ;;  %1241 = vst.msk [vmem:[#allocation3 + $0x1c] sm:$0xf] %vm1233_vm5, %v1152_v42  ;;  %v1294_v29 = vld [vmem:[#allocation2 + $0x169] sm:$0xff] }
 0x166   : > { %v1138_v49 = vpop.permute.xlu1 %1137  ;;  %v1492_v42 = vld [vmem:[#allocation2 + $0x22] sm:$0xff]  ;;  %v1326_v25 = vpack.c.bf16 %v1294_v29, %v1294_v29 }
 0x167   : > { %1234 = vst.msk [vmem:[#allocation3] sm:$0xf] %vm1233_vm5, %v1138_v49  ;;  %v1148_v32 = vpop.permute.xlu0 %1147 }
 0x168   : > { %1239 = vst.msk [vmem:[#allocation3 + $0x14] sm:$0xf] %vm1233_vm5, %v1148_v32  ;;  %v1524_v32 = vpack.c.bf16 %v1492_v42, %v1492_v42  ;;  %v4075_v42 = vpack.c.bf16 %v1502_v37, %v1502_v37 }
 0x16a   : > { %1384 = vrot.lane.b32.xlu2 %v3960_v48, %s3262_s10 }
 0x16c   : > { %1388 = vrot.lane.b32.xlu1 %v3964_v50, %s3262_s10  ;;  %v1158_v55 = vpop.permute.xlu2 %1157 }
 0x16d   : > { %1398 = vrot.lane.b32.xlu0 %v3966_v43, %s3262_s10  ;;  %1244 = vst.msk [vmem:[#allocation3 + $0x28] sm:$0xf] %vm1233_vm5, %v1158_v55 }
 0x16e   : > { %v1144_v57 = vpop.permute.xlu1 %1143 }
 0x16f   : > { %1237 = vst.msk [vmem:[#allocation3 + $0xc] sm:$0xf] %vm1233_vm5, %v1144_v57  ;;  %v1154_v52 = vpop.permute.xlu0 %1153 }
 0x170   : > { %1242 = vst.msk [vmem:[#allocation3 + $0x20] sm:$0xf] %vm1233_vm5, %v1154_v52  ;;  %v1327_v52 = vpack.c.bf16 %v1295_v2, %v1295_v2 }
 0x172   : > { %1390 = vrot.lane.b32.xlu2 %v3975_v26, %s3262_s10 }
 0x174   : > { %1394 = vrot.lane.b32.xlu1 %v1314_v61, %s3262_s10  ;;  %v1164_v20 = vpop.permute.xlu2 %1163 }
 0x175   : > { %1404 = vrot.lane.b32.xlu0 %v3979_v62, %s3262_s10  ;;  %1247 = vst.msk [vmem:[#allocation3 + $0x34] sm:$0xf] %vm1233_vm5, %v1164_v20  ;;  %v4028_v20 = vpack.c.bf16 %v1495_v0, %v1495_v0  ;;  %v1508_v0 = vld [vmem:[#allocation2 + $0xe2] sm:$0xff] }
 0x176   : > { %v1150_v5 = vpop.permute.xlu1 %1149 }
 0x177   : > { %1240 = vst.msk [vmem:[#allocation3 + $0x18] sm:$0xf] %vm1233_vm5, %v1150_v5  ;;  %v1160_v12 = vpop.permute.xlu0 %1159 }
 0x178   : > { %1245 = vst.msk [vmem:[#allocation3 + $0x2c] sm:$0xf] %vm1233_vm5, %v1160_v12  ;;  %v1523_v12 = vpack.c.bf16 %v1491_v51, %v1491_v51  ;;  %v4101_v51 = vpack.c.bf16 %v1508_v0, %v1508_v0 }
 0x17a   : > { %1396 = vrot.lane.b32.xlu2 %v1315_v10, %s3262_s10 }
 0x17c   : > { %1400 = vrot.lane.b32.xlu1 %v3989_v13, %s3262_s10  ;;  %v1170_v18 = vpop.permute.xlu2 %1169 }
 0x17d   : > { %1410 = vrot.lane.b32.xlu0 %v1322_v17, %s3262_s10  ;;  %1250 = vst.msk [vmem:[#allocation3 + $0x40] sm:$0xf] %vm1233_vm5, %v1170_v18  ;;  %v1494_v18 = vld [vmem:[#allocation2 + $0x3a] sm:$0xff] }
 0x17e   : > { %v1156_v28 = vpop.permute.xlu1 %1155 }
 0x17f   : > { %1243 = vst.msk [vmem:[#allocation3 + $0x24] sm:$0xf] %vm1233_vm5, %v1156_v28  ;;  %v1166_v1 = vpop.permute.xlu0 %1165  ;;  %v1496_v28 = vld [vmem:[#allocation2 + $0x52] sm:$0xff] }
 0x180   : > { %1248 = vst.msk [vmem:[#allocation3 + $0x38] sm:$0xf] %vm1233_vm5, %v1166_v1  ;;  %v4045_v1 = vpack.c.bf16 %v1494_v18, %v1494_v18  ;;  %v4049_v16 = vpack.c.bf16 %v1496_v28, %v1496_v28  ;;  %v4114_v18 = vpack.c.bf16 %v1511_v7, %v1511_v7  ;;  %v1514_v28 = vld [vmem:[#allocation2 + $0x12a] sm:$0xff] }
 0x182   : > { %1402 = vrot.lane.b32.xlu2 %v3996_v39, %s3262_s10 }
 0x184   : > { %1406 = vrot.lane.b32.xlu1 %v1320_v34, %s3262_s10  ;;  %v1176_v27 = vpop.permute.xlu2 %1175 }
 0x185   : > { %1416 = vrot.lane.b32.xlu0 %v4000_v45, %s3262_s10  ;;  %1253 = vst.msk [vmem:[#allocation3 + $0x4c] sm:$0xf] %vm1233_vm5, %v1176_v27  ;;  %v1497_v27 = vld [vmem:[#allocation2 + $0x62] sm:$0xff] }
 0x186   : > { %v1162_v33 = vpop.permute.xlu1 %1161  ;;  %v4058_v59 = vpack.c.bf16 %v1497_v27, %v1497_v27 }
 0x187   : > { %1246 = vst.msk [vmem:[#allocation3 + $0x30] sm:$0xf] %vm1233_vm5, %v1162_v33  ;;  %v1172_v11 = vpop.permute.xlu0 %1171 }
 0x188   : > { %1251 = vst.msk [vmem:[#allocation3 + $0x44] sm:$0xf] %vm1233_vm5, %v1172_v11 }
 0x18a   : > { %1408 = vrot.lane.b32.xlu2 %v4008_v35, %s3262_s10 }
 0x18c   : > { %1412 = vrot.lane.b32.xlu1 %v1323_v21, %s3262_s10  ;;  %v1182_v41 = vpop.permute.xlu2 %1181  ;;  %v4062_v21 = vpack.c.bf16 %v1499_v46, %v1499_v46  ;;  %v1515_v46 = vld [vmem:[#allocation2 + $0x13a] sm:$0xff] }
 0x18d   : > { %1422 = vrot.lane.b32.xlu0 %v1328_v53, %s3262_s10  ;;  %1256 = vst.msk [vmem:[#allocation3 + $0x58] sm:$0xf] %vm1233_vm5, %v1182_v41  ;;  %v1500_v53 = vld [vmem:[#allocation2 + $0x82] sm:$0xff] }
 0x18e   : > { %v1168_v9 = vpop.permute.xlu1 %1167  ;;  %v4071_v29 = vpack.c.bf16 %v1500_v53, %v1500_v53  ;;  %v4136_v53 = vpack.c.bf16 %v1515_v46, %v1515_v46 }
 0x18f   : > { %1249 = vst.msk [vmem:[#allocation3 + $0x3c] sm:$0xf] %vm1233_vm5, %v1168_v9  ;;  %v1178_v49 = vpop.permute.xlu0 %1177 }
 0x190   : > { %1254 = vst.msk [vmem:[#allocation3 + $0x50] sm:$0xf] %vm1233_vm5, %v1178_v49  ;;  %v1503_v49 = vld [vmem:[#allocation2 + $0xaa] sm:$0xff] }
 0x191   : > { %v4084_v2 = vpack.c.bf16 %v1503_v49, %v1503_v49 }
 0x192   : > { %1414 = vrot.lane.b32.xlu2 %v4017_v44, %s3262_s10 }
 0x194   : > { %1418 = vrot.lane.b32.xlu1 %v1326_v25, %s3262_s10  ;;  %v1188_v55 = vpop.permute.xlu2 %1187  ;;  %v1505_v25 = vld [vmem:[#allocation2 + $0xc2] sm:$0xff] }
 0x195   : > { %1589 = vrot.lane.b32.xlu0 %v1524_v32, %s3263_s11  ;;  %1259 = vst.msk [vmem:[#allocation3 + $0x64] sm:$0xf] %vm1233_vm5, %v1188_v55  ;;  %v4088_v56 = vpack.c.bf16 %v1505_v25, %v1505_v25 }
 0x196   : > { %v1174_v57 = vpop.permute.xlu1 %1173 }
 0x197   : > { %1252 = vst.msk [vmem:[#allocation3 + $0x48] sm:$0xf] %vm1233_vm5, %v1174_v57  ;;  %v1184_v61 = vpop.permute.xlu0 %1183  ;;  %v1506_v57 = vld [vmem:[#allocation2 + $0xca] sm:$0xff] }
 0x198   : > { %1257 = vst.msk [vmem:[#allocation3 + $0x5c] sm:$0xf] %vm1233_vm5, %v1184_v61  ;;  %v4097_v61 = vpack.c.bf16 %v1506_v57, %v1506_v57 }
 0x19a   : > { %1420 = vrot.lane.b32.xlu2 %v1327_v52, %s3262_s10 }
 0x19c   : > { %1424 = vrot.lane.b32.xlu1 %v1329_v14, %s3262_s10  ;;  %v1194_v5 = vpop.permute.xlu2 %1193 }
 0x19d   : > { %1595 = vrot.lane.b32.xlu0 %v4028_v20, %s3263_s11  ;;  %1262 = vst.msk [vmem:[#allocation3 + $0x70] sm:$0xf] %vm1233_vm5, %v1194_v5  ;;  %v1509_v5 = vld [vmem:[#allocation2 + $0xf2] sm:$0xff] }
 0x19e   : > { %v1180_v10 = vpop.permute.xlu1 %1179 }
 0x19f   : > { %1255 = vst.msk [vmem:[#allocation3 + $0x54] sm:$0xf] %vm1233_vm5, %v1180_v10  ;;  %v1190_v17 = vpop.permute.xlu0 %1189 }
 0x1a0   : > { %1260 = vst.msk [vmem:[#allocation3 + $0x68] sm:$0xf] %vm1233_vm5, %v1190_v17 }
 0x1a2   : > { %1587 = vrot.lane.b32.xlu2 %v1523_v12, %s3263_s11  ;;  %v4110_v12 = vpack.c.bf16 %v1509_v5, %v1509_v5 }
 0x1a4   : > { %1591 = vrot.lane.b32.xlu1 %v4037_v23, %s3263_s11  ;;  %v1200_v22 = vpop.permute.xlu2 %1199 }
 0x1a5   : > { %1601 = vrot.lane.b32.xlu0 %v3665_v4, %s3263_s11  ;;  %1265 = vst.msk [vmem:[#allocation3 + $0x7c] sm:$0xf] %vm1233_vm5, %v1200_v22  ;;  %v1512_v22 = vld [vmem:[#allocation2 + $0x112] sm:$0xff] }
 0x1a6   : > { %v1186_v54 = vpop.permute.xlu1 %1185 }
 0x1a7   : > { %1258 = vst.msk [vmem:[#allocation3 + $0x60] sm:$0xf] %vm1233_vm5, %v1186_v54  ;;  %v1196_v34 = vpop.permute.xlu0 %1195 }
 0x1a8   : > { %1263 = vst.msk [vmem:[#allocation3 + $0x74] sm:$0xf] %vm1233_vm5, %v1196_v34  ;;  %v4123_v34 = vpack.c.bf16 %v1512_v22, %v1512_v22  ;;  %v1726_v22 = vld [vmem:[#allocation2 + $0x98] sm:$0xff] }
 0x1aa   : > { %1593 = vrot.lane.b32.xlu2 %v4045_v1, %s3263_s11 }
 0x1ac   : > { %1597 = vrot.lane.b32.xlu1 %v4049_v16, %s3263_s11  ;;  %v1367_v4 = vpop.permute.xlu2 %1366 }
 0x1ad   : > { %1607 = vrot.lane.b32.xlu0 %v3684_v19, %s3263_s11  ;;  %1461 = vst.msk [vmem:[#allocation3 + $0x8] sm:$0xf] %vm1458_vm6, %v1367_v4  ;;  %v4127_v4 = vpack.c.bf16 %v1514_v28, %v1514_v28 }
 0x1ae   : > { %v1192_v33 = vpop.permute.xlu1 %1191 }
 0x1af   : > { %1261 = vst.msk [vmem:[#allocation3 + $0x6c] sm:$0xf] %vm1233_vm5, %v1192_v33  ;;  %v1363_v11 = vpop.permute.xlu0 %1362  ;;  %v1517_v33 = vld [vmem:[#allocation2 + $0x152] sm:$0xff] }
 0x1b0   : > { %1459 = vst.msk [vmem:[#allocation3] sm:$0xf] %vm1458_vm6, %v1363_v11  ;;  %v4140_v37 = vpack.c.bf16 %v1517_v33, %v1517_v33 }
 0x1b2   : > { %1599 = vrot.lane.b32.xlu2 %v4058_v59, %s3263_s11 }
 0x1b4   : > { %1603 = vrot.lane.b32.xlu1 %v4062_v21, %s3263_s11  ;;  %v1373_v19 = vpop.permute.xlu2 %1372 }
 0x1b5   : > { %1613 = vrot.lane.b32.xlu0 %v3705_v38, %s3263_s11  ;;  %1464 = vst.msk [vmem:[#allocation3 + $0x14] sm:$0xf] %vm1458_vm6, %v1373_v19 }
 0x1b6   : > { %v1198_v41 = vpop.permute.xlu1 %1197 }
 0x1b7   : > { %1264 = vst.msk [vmem:[#allocation3 + $0x78] sm:$0xf] %vm1233_vm5, %v1198_v41  ;;  %v1369_v9 = vpop.permute.xlu0 %1368  ;;  %v1518_v41 = vld [vmem:[#allocation2 + $0x15a] sm:$0xff] }
 0x1b8   : > { %1462 = vst.msk [vmem:[#allocation3 + $0xc] sm:$0xf] %vm1458_vm6, %v1369_v9  ;;  %v1717_v9 = vld [vmem:[#allocation2 + $0x30] sm:$0xff] }
 0x1ba   : > { %1605 = vrot.lane.b32.xlu2 %v4071_v29, %s3263_s11 }
 0x1bc   : > { %1609 = vrot.lane.b32.xlu1 %v4075_v42, %s3263_s11  ;;  %v1379_v38 = vpop.permute.xlu2 %1378 }
 0x1bd   : > { %1619 = vrot.lane.b32.xlu0 %v3726_v58, %s3263_s11  ;;  %1467 = vst.msk [vmem:[#allocation3 + $0x20] sm:$0xf] %vm1458_vm6, %v1379_v38  ;;  %v4149_v38 = vpack.c.bf16 %v1518_v41, %v1518_v41 }
 0x1be   : > { %v1365_v32 = vpop.permute.xlu1 %1364 }
 0x1bf   : > { %1460 = vst.msk [vmem:[#allocation3 + $0x4] sm:$0xf] %vm1458_vm6, %v1365_v32  ;;  %v1375_v55 = vpop.permute.xlu0 %1374  ;;  %v1749_v32 = vpack.c.bf16 %v1717_v9, %v1717_v9 }
 0x1c0   : > { %1465 = vst.msk [vmem:[#allocation3 + $0x18] sm:$0xf] %vm1458_vm6, %v1375_v55  ;;  %v1718_v55 = vld [vmem:[#allocation2 + $0x38] sm:$0xff] }
 0x1c1   : > { %v1750_v0 = vpack.c.bf16 %v1718_v55, %v1718_v55 }
 0x1c2   : > { %1611 = vrot.lane.b32.xlu2 %v4084_v2, %s3263_s11 }
 0x1c4   : > { %1615 = vrot.lane.b32.xlu1 %v4088_v56, %s3263_s11  ;;  %v1385_v58 = vpop.permute.xlu2 %1384 }
 0x1c5   : > { %1625 = vrot.lane.b32.xlu0 %v3747_v15, %s3263_s11  ;;  %1470 = vst.msk [vmem:[#allocation3 + $0x2c] sm:$0xf] %vm1458_vm6, %v1385_v58  ;;  %v1725_v58 = vld [vmem:[#allocation2 + $0x90] sm:$0xff] }
 0x1c6   : > { %v1371_v52 = vpop.permute.xlu1 %1370 }
 0x1c7   : > { %1463 = vst.msk [vmem:[#allocation3 + $0x10] sm:$0xf] %vm1458_vm6, %v1371_v52  ;;  %v1381_v14 = vpop.permute.xlu0 %1380 }
 0x1c8   : > { %1468 = vst.msk [vmem:[#allocation3 + $0x24] sm:$0xf] %vm1458_vm6, %v1381_v14  ;;  %v1757_v14 = vpack.c.bf16 %v1725_v58, %v1725_v58  ;;  %v1721_v58 = vld [vmem:[#allocation2 + $0x60] sm:$0xff] }
 0x1ca   : > { %1617 = vrot.lane.b32.xlu2 %v4097_v61, %s3263_s11 }
 0x1cc   : > { %1621 = vrot.lane.b32.xlu1 %v4101_v51, %s3263_s11  ;;  %v1391_v15 = vpop.permute.xlu2 %1390 }
 0x1cd   : > { %1631 = vrot.lane.b32.xlu0 %v3768_v40, %s3263_s11  ;;  %1473 = vst.msk [vmem:[#allocation3 + $0x38] sm:$0xf] %vm1458_vm6, %v1391_v15 }
 0x1ce   : > { %v1377_v10 = vpop.permute.xlu1 %1376 }
 0x1cf   : > { %1466 = vst.msk [vmem:[#allocation3 + $0x1c] sm:$0xf] %vm1458_vm6, %v1377_v10  ;;  %v1387_v17 = vpop.permute.xlu0 %1386 }
 0x1d0   : > { %1471 = vst.msk [vmem:[#allocation3 + $0x30] sm:$0xf] %vm1458_vm6, %v1387_v17  ;;  %v1720_v17 = vld [vmem:[#allocation2 + $0x50] sm:$0xff] }
 0x1d1   : > { %v1752_v28 = vpack.c.bf16 %v1720_v17, %v1720_v17 }
 0x1d2   : > { %1623 = vrot.lane.b32.xlu2 %v4110_v12, %s3263_s11 }
 0x1d4   : > { %1627 = vrot.lane.b32.xlu1 %v4114_v18, %s3263_s11  ;;  %v1397_v40 = vpop.permute.xlu2 %1396 }
 0x1d5   : > { %1637 = vrot.lane.b32.xlu0 %v3789_v6, %s3263_s11  ;;  %1476 = vst.msk [vmem:[#allocation3 + $0x44] sm:$0xf] %vm1458_vm6, %v1397_v40 }
 0x1d6   : > { %v1383_v54 = vpop.permute.xlu1 %1382 }
 0x1d7   : > { %1469 = vst.msk [vmem:[#allocation3 + $0x28] sm:$0xf] %vm1458_vm6, %v1383_v54  ;;  %v1393_v27 = vpop.permute.xlu0 %1392 }
 0x1d8   : > { %1474 = vst.msk [vmem:[#allocation3 + $0x3c] sm:$0xf] %vm1458_vm6, %v1393_v27  ;;  %v1758_v27 = vpack.c.bf16 %v1726_v22, %v1726_v22 }
 0x1da   : > { %1629 = vrot.lane.b32.xlu2 %v4123_v34, %s3263_s11 }
 0x1dc   : > { %1633 = vrot.lane.b32.xlu1 %v4127_v4, %s3263_s11  ;;  %v1403_v6 = vpop.permute.xlu2 %1402 }
 0x1dd   : > { %1643 = vrot.lane.b32.xlu0 %v3803_v60, %s3263_s11  ;;  %1479 = vst.msk [vmem:[#allocation3 + $0x50] sm:$0xf] %vm1458_vm6, %v1403_v6 }
 0x1de   : > { %v1389_v11 = vpop.permute.xlu1 %1388 }
 0x1df   : > { %1472 = vst.msk [vmem:[#allocation3 + $0x34] sm:$0xf] %vm1458_vm6, %v1389_v11  ;;  %v1399_v19 = vpop.permute.xlu0 %1398  ;;  %v2175_v11 = vld [vmem:[#allocation2 + $0x92] sm:$0xff] }
 0x1e0   : > { %1477 = vst.msk [vmem:[#allocation3 + $0x48] sm:$0xf] %vm1458_vm6, %v1399_v19  ;;  %v2184_v19 = vld [vmem:[#allocation2 + $0xfa] sm:$0xff]  ;;  %v2207_v41 = vpack.c.bf16 %v2175_v11, %v2175_v11 }
 0x1e1   : > { %v2216_v9 = vpack.c.bf16 %v2184_v19, %v2184_v19 }
 0x1e2   : > { %1635 = vrot.lane.b32.xlu2 %v4136_v53, %s3263_s11 }
 0x1e4   : > { %1639 = vrot.lane.b32.xlu1 %v4140_v37, %s3263_s11  ;;  %v1409_v60 = vpop.permute.xlu2 %1408 }
 0x1e5   : > { %2038 = vrot.lane.b32.xlu0 %v3924_v24, %s3264_s12  ;;  %1482 = vst.msk [vmem:[#allocation3 + $0x5c] sm:$0xf] %vm1458_vm6, %v1409_v60 }
 0x1e6   : > { %v1395_v49 = vpop.permute.xlu1 %1394 }
 0x1e7   : > { %1475 = vst.msk [vmem:[#allocation3 + $0x40] sm:$0xf] %vm1458_vm6, %v1395_v49  ;;  %v1405_v25 = vpop.permute.xlu0 %1404 }
 0x1e8   : > { %1480 = vst.msk [vmem:[#allocation3 + $0x54] sm:$0xf] %vm1458_vm6, %v1405_v25  ;;  %v1727_v25 = vld [vmem:[#allocation2 + $0xa8] sm:$0xff] }
 0x1ea   : > { %1641 = vrot.lane.b32.xlu2 %v4149_v38, %s3263_s11 }
 0x1ec   : > { %1813 = vrot.lane.b32.xlu1 %v1749_v32, %s3265_s13  ;;  %v1415_v24 = vpop.permute.xlu2 %1414 }
 0x1ed   : > { %2265 = vrot.lane.b32.xlu0 %v4045_v1, %s3266_s14  ;;  %1485 = vst.msk [vmem:[#allocation3 + $0x68] sm:$0xf] %vm1458_vm6, %v1415_v24  ;;  %v1719_v1 = vld [vmem:[#allocation2 + $0x48] sm:$0xff]  ;;  %v1759_v24 = vpack.c.bf16 %v1727_v25, %v1727_v25 }
 0x1ee   : > { %v1401_v57 = vpop.permute.xlu1 %1400  ;;  %v1751_v10 = vpack.c.bf16 %v1719_v1, %v1719_v1  ;;  %v1728_v1 = vld [vmem:[#allocation2 + $0xb0] sm:$0xff] }
 0x1ef   : > { %1478 = vst.msk [vmem:[#allocation3 + $0x4c] sm:$0xf] %vm1458_vm6, %v1401_v57  ;;  %v1411_v52 = vpop.permute.xlu0 %1410  ;;  %v1760_v17 = vpack.c.bf16 %v1728_v1, %v1728_v1  ;;  %v1730_v1 = vld [vmem:[#allocation2 + $0xc8] sm:$0xff] }
 0x1f0   : > { %1483 = vst.msk [vmem:[#allocation3 + $0x60] sm:$0xf] %vm1458_vm6, %v1411_v52 }
 0x1f2   : > { %1815 = vrot.lane.b32.xlu2 %v1750_v0, %s3265_s13 }
 0x1f4   : > { %2040 = vrot.lane.b32.xlu1 %v3907_v3, %s3264_s12  ;;  %v1421_v5 = vpop.permute.xlu2 %1420 }
 0x1f5   : > { %1829 = vrot.lane.b32.xlu0 %v1757_v14, %s3265_s13  ;;  %1488 = vst.msk [vmem:[#allocation3 + $0x74] sm:$0xf] %vm1458_vm6, %v1421_v5  ;;  %v1753_v14 = vpack.c.bf16 %v1721_v58, %v1721_v58  ;;  %v1722_v5 = vld [vmem:[#allocation2 + $0x68] sm:$0xff] }
 0x1f6   : > { %v1407_v15 = vpop.permute.xlu1 %1406 }
 0x1f7   : > { %1481 = vst.msk [vmem:[#allocation3 + $0x58] sm:$0xf] %vm1458_vm6, %v1407_v15  ;;  %v1417_v7 = vpop.permute.xlu0 %1416 }
 0x1f8   : > { %1486 = vst.msk [vmem:[#allocation3 + $0x6c] sm:$0xf] %vm1458_vm6, %v1417_v7  ;;  %v1754_v7 = vpack.c.bf16 %v1722_v5, %v1722_v5 }
 0x1fa   : > { %2263 = vrot.lane.b32.xlu2 %v4037_v23, %s3266_s14 }
 0x1fc   : > { %1817 = vrot.lane.b32.xlu1 %v1751_v10, %s3265_s13  ;;  %v1588_v3 = vpop.permute.xlu2 %1587 }
 0x1fd   : > { %2044 = vrot.lane.b32.xlu0 %v3936_v63, %s3264_s12  ;;  %1684 = vst.msk [vmem:[#allocation3] sm:$0xf] %vm1683_vm7, %v1588_v3  ;;  %v2178_v3 = vld [vmem:[#allocation2 + $0xb2] sm:$0xff] }
 0x1fe   : > { %v1413_v40 = vpop.permute.xlu1 %1412 }
 0x1ff   : > { %1484 = vst.msk [vmem:[#allocation3 + $0x64] sm:$0xf] %vm1458_vm6, %v1413_v40  ;;  %v1423_v54 = vpop.permute.xlu0 %1422  ;;  %v2432_v40 = vld [vmem:[%s4687_s3 + $0x20] sm:$0xf] }
 0x200   : > { %1489 = vst.msk [vmem:[#allocation3 + $0x78] sm:$0xf] %vm1458_vm6, %v1423_v54  ;;  %v2530_v54 = vunpack.c.l.b16 %v2432_v40 }
 0x202   : > { %1819 = vrot.lane.b32.xlu2 %v1752_v28, %s3265_s13  ;;  %v2210_v28 = vpack.c.bf16 %v2178_v3, %v2178_v3 }
 0x204   : > { %1831 = vrot.lane.b32.xlu1 %v1758_v27, %s3265_s13  ;;  %v1594_v23 = vpop.permute.xlu2 %1593  ;;  %v2535_v27 = vpack.c.b16 %v2530_v54, %v2530_v54 }
 0x205   : > { %2267 = vrot.lane.b32.xlu0 %v4028_v20, %s3266_s14  ;;  %1687 = vst.msk [vmem:[#allocation3 + $0xc] sm:$0xf] %vm1683_vm7, %v1594_v23  ;;  %v2172_v23 = vld [vmem:[#allocation2 + $0x6a] sm:$0xff] }
 0x206   : > { %v1419_v63 = vpop.permute.xlu1 %1418 }
 0x207   : > { %1487 = vst.msk [vmem:[#allocation3 + $0x70] sm:$0xf] %vm1458_vm6, %v1419_v63  ;;  %v1590_v46 = vpop.permute.xlu0 %1589  ;;  %v2591_v63 = vsel %vm2589_vm8, %v2535_v27, 0  ;;  %v1743_v27 = vld [vmem:[#allocation2 + $0x168] sm:$0xff] }
 0x208   : > { %1685 = vst.msk [vmem:[#allocation3 + $0x4] sm:$0xf] %vm1683_vm7, %v1590_v46  ;;  %2596 = vmatpush.bf16.msra.mxu0 %v2591_v63  ;;  %3214 = vmatpush.bf16.msra.mxu1 %v2591_v63 }
 0x209   : > { %3215 = vmatpush.bf16.msra.mxu2 %v2591_v63  ;;  %3216 = vmatpush.bf16.msra.mxu3 %v2591_v63  ;;  %v1775_v63 = vpack.c.bf16 %v1743_v27, %v1743_v27  ;;  %v1745_v27 = vld [vmem:[#allocation2 + $0x180] sm:$0xff] }
 0x20a   : > { %2042 = vrot.lane.b32.xlu2 %v3928_v36, %s3264_s12 }
 0x20c   : > { %2054 = vrot.lane.b32.xlu1 %v3953_v8, %s3264_s12  ;;  %v1600_v6 = vpop.permute.xlu2 %1599  ;;  %v1733_v8 = vld [vmem:[#allocation2 + $0xf0] sm:$0xff] }
 0x20d   : > { %2281 = vrot.lane.b32.xlu0 %v4075_v42, %s3266_s14  ;;  %1690 = vst.msk [vmem:[#allocation3 + $0x18] sm:$0xf] %vm1683_vm7, %v1600_v6  ;;  %v1741_v6 = vld [vmem:[#allocation2 + $0x150] sm:$0xff] }
 0x20e   : > { %v1425_v20 = vpop.permute.xlu1 %1424 }
 0x20f   : > { %1490 = vst.msk [vmem:[#allocation3 + $0x7c] sm:$0xf] %vm1458_vm6, %v1425_v20  ;;  %v1596_v33 = vpop.permute.xlu0 %1595 }
 0x210   : > { %1688 = vst.msk [vmem:[#allocation3 + $0x10] sm:$0xf] %vm1683_vm7, %v1596_v33  ;;  %v1773_v33 = vpack.c.bf16 %v1741_v6, %v1741_v6 }
 0x212   : > { %2056 = vrot.lane.b32.xlu2 %v3960_v48, %s3264_s12  ;;  %v1765_v48 = vpack.c.bf16 %v1733_v8, %v1733_v8  ;;  %v1735_v8 = vld [vmem:[#allocation2 + $0x108] sm:$0xff] }
 0x213   : > { %v1767_v19 = vpack.c.bf16 %v1735_v8, %v1735_v8  ;;  %v2187_v8 = vld [vmem:[#allocation2 + $0x122] sm:$0xff] }
 0x214   : > { %2269 = vrot.lane.b32.xlu1 %v4049_v16, %s3266_s14  ;;  %v1606_v36 = vpop.permute.xlu2 %1605  ;;  %v1734_v16 = vld [vmem:[#allocation2 + $0xf8] sm:$0xff] }
 0x215   : > { %2070 = vrot.lane.b32.xlu0 %v3966_v43, %s3264_s12  ;;  %1693 = vst.msk [vmem:[#allocation3 + $0x24] sm:$0xf] %vm1683_vm7, %v1606_v36  ;;  %v1766_v32 = vpack.c.bf16 %v1734_v16, %v1734_v16  ;;  %v3133_v36 = vld [vmem:[%s4687_s3 + $0x10] sm:$0xff]  ;;  %v1742_v16 = vld [vmem:[#allocation2 + $0x158] sm:$0xff] }
 0x216   : > { %v1592_v42 = vpop.permute.xlu1 %1591  ;;  %v1774_v25 = vpack.c.bf16 %v1742_v16, %v1742_v16 }
 0x217   : > { %1686 = vst.msk [vmem:[#allocation3 + $0x8] sm:$0xf] %vm1683_vm7, %v1592_v42  ;;  %v1602_v60 = vpop.permute.xlu0 %1601 }
 0x218   : > { %1691 = vst.msk [vmem:[#allocation3 + $0x1c] sm:$0xf] %vm1683_vm7, %v1602_v60  ;;  %v1736_v60 = vld [vmem:[#allocation2 + $0x110] sm:$0xff] }
 0x21a   : > { %2279 = vrot.lane.b32.xlu2 %v2207_v41, %s3266_s14  ;;  %v3132_v41 = vld [vmem:[%s4687_s3 + $0x8] sm:$0xff] }
 0x21c   : > { %1845 = vrot.lane.b32.xlu1 %v1765_v48, %s3265_s13  ;;  %v1612_v49 = vpop.permute.xlu2 %1611 }
 0x21d   : > { %2297 = vrot.lane.b32.xlu0 %v2216_v9, %s3266_s14  ;;  %1696 = vst.msk [vmem:[#allocation3 + $0x30] sm:$0xf] %vm1683_vm7, %v1612_v49  ;;  %v3131_v9 = vld [vmem:[%s4687_s3] sm:$0xff]  ;;  %v1768_v49 = vpack.c.bf16 %v1736_v60, %v1736_v60  ;;  %v1968_v60 = vld [vmem:[#allocation2 + $0x169] sm:$0xff] }
 0x21e   : > { %v1598_v43 = vpop.permute.xlu1 %1597 }
 0x21f   : > { %1689 = vst.msk [vmem:[#allocation3 + $0x14] sm:$0xf] %vm1683_vm7, %v1598_v43  ;;  %v1608_v55 = vpop.permute.xlu0 %1607 }
 0x220   : > { %1694 = vst.msk [vmem:[#allocation3 + $0x28] sm:$0xf] %vm1683_vm7, %v1608_v55 }
 0x222   : > { %1847 = vrot.lane.b32.xlu2 %v1766_v32, %s3265_s13 }
 0x224   : > { %2072 = vrot.lane.b32.xlu1 %v3989_v13, %s3264_s12  ;;  %v1618_v57 = vpop.permute.xlu2 %1617 }
 0x225   : > { %1833 = vrot.lane.b32.xlu0 %v1759_v24, %s3265_s13  ;;  %1699 = vst.msk [vmem:[#allocation3 + $0x3c] sm:$0xf] %vm1683_vm7, %v1618_v57 }
 0x226   : > { %v1604_v0 = vpop.permute.xlu1 %1603 }
 0x227   : > { %1692 = vst.msk [vmem:[#allocation3 + $0x20] sm:$0xf] %vm1683_vm7, %v1604_v0  ;;  %v1614_v52 = vpop.permute.xlu0 %1613 }
 0x228   : > { %1697 = vst.msk [vmem:[#allocation3 + $0x34] sm:$0xf] %vm1683_vm7, %v1614_v52  ;;  %v1949_v52 = vld [vmem:[#allocation2 + $0x81] sm:$0xff] }
 0x22a   : > { %2295 = vrot.lane.b32.xlu2 %v4110_v12, %s3266_s14 }
 0x22c   : > { %1821 = vrot.lane.b32.xlu1 %v1753_v14, %s3265_s13  ;;  %v1624_v13 = vpop.permute.xlu2 %1623 }
 0x22d   : > { %2048 = vrot.lane.b32.xlu0 %v3940_v30, %s3264_s12  ;;  %1702 = vst.msk [vmem:[#allocation3 + $0x48] sm:$0xf] %vm1683_vm7, %v1624_v13  ;;  %v1981_v13 = vpack.c.bf16 %v1949_v52, %v1949_v52 }
 0x22e   : > { %v1610_v15 = vpop.permute.xlu1 %1609 }
 0x22f   : > { %1695 = vst.msk [vmem:[#allocation3 + $0x2c] sm:$0xf] %vm1683_vm7, %v1610_v15  ;;  %v1620_v10 = vpop.permute.xlu0 %1619 }
 0x230   : > { %1700 = vst.msk [vmem:[#allocation3 + $0x40] sm:$0xf] %vm1683_vm7, %v1620_v10 }
 0x232   : > { %1823 = vrot.lane.b32.xlu2 %v1754_v7, %s3265_s13 }
 0x234   : > { %1835 = vrot.lane.b32.xlu1 %v1760_v17, %s3265_s13  ;;  %v1630_v12 = vpop.permute.xlu2 %1629 }
 0x235   : > { %2271 = vrot.lane.b32.xlu0 %v4058_v59, %s3266_s14  ;;  %1705 = vst.msk [vmem:[#allocation3 + $0x54] sm:$0xf] %vm1683_vm7, %v1630_v12  ;;  %v1762_v12 = vpack.c.bf16 %v1730_v1, %v1730_v1  ;;  %v1740_v1 = vld [vmem:[#allocation2 + $0x140] sm:$0xff] }
 0x236   : > { %v1616_v30 = vpop.permute.xlu1 %1615 }
 0x237   : > { %1698 = vst.msk [vmem:[#allocation3 + $0x38] sm:$0xf] %vm1683_vm7, %v1616_v30  ;;  %v1626_v22 = vpop.permute.xlu0 %1625 }
 0x238   : > { %1703 = vst.msk [vmem:[#allocation3 + $0x4c] sm:$0xf] %vm1683_vm7, %v1626_v22 }
 0x23a   : > { %2046 = vrot.lane.b32.xlu2 %v3917_v47, %s3264_s12  ;;  %v2204_v47 = vpack.c.bf16 %v2172_v23, %v2172_v23 }
 0x23c   : > { %2058 = vrot.lane.b32.xlu1 %v3942_v31, %s3264_s12  ;;  %v1636_v59 = vpop.permute.xlu2 %1635  ;;  %v3134_v31 = vld [vmem:[%s4687_s3 + $0x18] sm:$0xff] }
 0x23d   : > { %2285 = vrot.lane.b32.xlu0 %v2210_v28, %s3266_s14  ;;  %1708 = vst.msk [vmem:[#allocation3 + $0x60] sm:$0xf] %vm1683_vm7, %v1636_v59  ;;  %2597 = vmatpush.bf16.msra.mxu0 %v3134_v31  ;;  %v1955_v28 = vld [vmem:[#allocation2 + $0xc9] sm:$0xff] }
 0x23e   : > { %v1622_v46 = vpop.permute.xlu1 %1621  ;;  %3217 = vmatpush.bf16.msra.mxu1 %v3134_v31  ;;  %3218 = vmatpush.bf16.msra.mxu2 %v3134_v31  ;;  %v1987_v59 = vpack.c.bf16 %v1955_v28, %v1955_v28 }
 0x23f   : > { %1701 = vst.msk [vmem:[#allocation3 + $0x44] sm:$0xf] %vm1683_vm7, %v1622_v46  ;;  %v1632_v20 = vpop.permute.xlu0 %1631  ;;  %3219 = vmatpush.bf16.msra.mxu3 %v3134_v31  ;;  %v1738_v31 = vld [vmem:[#allocation2 + $0x128] sm:$0xff] }
 0x240   : > { %1706 = vst.msk [vmem:[#allocation3 + $0x58] sm:$0xf] %vm1683_vm7, %v1632_v20 }
 0x241   : > { %2598 = vmatpush.bf16.msra.mxu0 %v3133_v36 }
 0x242   : > { %2060 = vrot.lane.b32.xlu2 %v3964_v50, %s3264_s12  ;;  %3220 = vmatpush.bf16.msra.mxu1 %v3133_v36 }
 0x243   : > { %3221 = vmatpush.bf16.msra.mxu2 %v3133_v36  ;;  %3222 = vmatpush.bf16.msra.mxu3 %v3133_v36 }
 0x244   : > { %2273 = vrot.lane.b32.xlu1 %v2204_v47, %s3266_s14  ;;  %v1642_v11 = vpop.permute.xlu2 %1641 }
 0x245   : > { %1861 = vrot.lane.b32.xlu0 %v1773_v33, %s3265_s13  ;;  %1711 = vst.msk [vmem:[#allocation3 + $0x6c] sm:$0xf] %vm1683_vm7, %v1642_v11  ;;  %2599 = vmatpush.bf16.msra.mxu0 %v3132_v41 }
 0x246   : > { %v1628_v42 = vpop.permute.xlu1 %1627  ;;  %3223 = vmatpush.bf16.msra.mxu1 %v3132_v41 }
 0x247   : > { %1704 = vst.msk [vmem:[#allocation3 + $0x50] sm:$0xf] %vm1683_vm7, %v1628_v42  ;;  %v1638_v50 = vpop.permute.xlu0 %1637  ;;  %3224 = vmatpush.bf16.msra.mxu2 %v3132_v41  ;;  %3225 = vmatpush.bf16.msra.mxu3 %v3132_v41  ;;  %v1770_v42 = vpack.c.bf16 %v1738_v31, %v1738_v31  ;;  %v1965_v31 = vld [vmem:[#allocation2 + $0x141] sm:$0xff] }
 0x248   : > { %1709 = vst.msk [vmem:[#allocation3 + $0x64] sm:$0xf] %vm1683_vm7, %v1638_v50 }
 0x249   : > { %2600 = vmatpush.bf16.msra.mxu0 %v3131_v9 }
 0x24a   : > { %2283 = vrot.lane.b32.xlu2 %v4084_v2, %s3266_s14  ;;  %3226 = vmatpush.bf16.msra.mxu1 %v3131_v9 }
 0x24b   : > { %3227 = vmatpush.bf16.msra.mxu2 %v3131_v9  ;;  %3228 = vmatpush.bf16.msra.mxu3 %v3131_v9  ;;  %v2194_v9 = vld [vmem:[#allocation2 + $0x172] sm:$0xff] }
 0x24c   : > { %1849 = vrot.lane.b32.xlu1 %v1767_v19, %s3265_s13  ;;  %v1816_v48 = vpop.permute.xlu2 %1815  ;;  %v2219_v19 = vpack.c.bf16 %v2187_v8, %v2187_v8  ;;  %v1997_v8 = vpack.c.bf16 %v1965_v31, %v1965_v31 }
 0x24d   : > { %2076 = vrot.lane.b32.xlu0 %v3979_v62, %s3264_s12  ;;  %1911 = vst.msk [vmem:[#allocation3 + $0x4] sm:$0xf] %vm1909_vm9, %v1816_v48 }
 0x24e   : > { %v1634_v2 = vpop.permute.xlu1 %1633 }
 0x24f   : > { %1707 = vst.msk [vmem:[#allocation3 + $0x5c] sm:$0xf] %vm1683_vm7, %v1634_v2  ;;  %v1644_v43 = vpop.permute.xlu0 %1643 }
 0x250   : > { %1712 = vst.msk [vmem:[#allocation3 + $0x70] sm:$0xf] %vm1683_vm7, %v1644_v43  ;;  %v2226_v43 = vpack.c.bf16 %v2194_v9, %v2194_v9  ;;  %v2190_v9 = vld [vmem:[#allocation2 + $0x142] sm:$0xff] }
 0x252   : > { %1851 = vrot.lane.b32.xlu2 %v1768_v49, %s3265_s13  ;;  %v2000_v49 = vpack.c.bf16 %v1968_v60, %v1968_v60 }
 0x254   : > { %1863 = vrot.lane.b32.xlu1 %v1774_v25, %s3265_s13  ;;  %v2264_v62 = vpop.permute.xlu2 %2263  ;;  %v1969_v25 = vld [vmem:[#allocation2 + $0x171] sm:$0xff] }
 0x255   : > { %2299 = vrot.lane.b32.xlu0 %v4114_v18, %s3266_s14  ;;  %v1729_v18 = vld [vmem:[#allocation2 + $0xc0] sm:$0xff] }
 0x256   : > { %v1640_v32 = vpop.permute.xlu1 %1639 }
 0x257   : > { %1710 = vst.msk [vmem:[#allocation3 + $0x68] sm:$0xf] %vm1683_vm7, %v1640_v32  ;;  %v2039_v55 = vpop.permute.xlu0 %2038 }
 0x25a   : > { %2074 = vrot.lane.b32.xlu2 %v3996_v39, %s3264_s12  ;;  %v1761_v39 = vpack.c.bf16 %v1729_v18, %v1729_v18 }
 0x25c   : > { %2086 = vrot.lane.b32.xlu1 %v4017_v44, %s3264_s12  ;;  %v1820_v24 = vpop.permute.xlu2 %1819 }
 0x25d   : > { %2313 = vrot.lane.b32.xlu0 %v4149_v38, %s3266_s14  ;;  %1913 = vst.msk [vmem:[#allocation3 + $0xc] sm:$0xf] %vm1909_vm9, %v1820_v24  ;;  %v1723_v38 = vld [vmem:[#allocation2 + $0x78] sm:$0xff]  ;;  %v2001_v24 = vpack.c.bf16 %v1969_v25, %v1969_v25 }
 0x25e   : > { %v1814_v57 = vpop.permute.xlu1 %1813  ;;  %v1755_v5 = vpack.c.bf16 %v1723_v38, %v1723_v38  ;;  %v1731_v38 = vld [vmem:[#allocation2 + $0xd8] sm:$0xff] }
 0x25f   : > { %1910 = vst.msk [vmem:[#allocation3] sm:$0xf] %vm1909_vm9, %v1814_v57  ;;  %v2266_v58 = vpop.permute.xlu0 %2265 }
 0x260   : > { %2135 = vst.msk [vmem:[#allocation3] sm:$0xf] %vm2134_vm10, %v2039_v55  ;;  %v1956_v55 = vld [vmem:[#allocation2 + $0xd9] sm:$0xff] }
 0x261   : > { %2360 = vst.msk [vmem:[#allocation3] sm:$0xf] %vm2359_vm11, %v2264_v62 }
 0x262   : > { %2088 = vrot.lane.b32.xlu2 %v4000_v45, %s3264_s12  ;;  %v1724_v45 = vld [vmem:[#allocation2 + $0x80] sm:$0xff] }
 0x263   : > { %v1756_v7 = vpack.c.bf16 %v1724_v45, %v1724_v45  ;;  %v1957_v45 = vld [vmem:[#allocation2 + $0xe1] sm:$0xff] }
 0x264   : > { %2301 = vrot.lane.b32.xlu1 %v4123_v34, %s3266_s14  ;;  %v2043_v44 = vpop.permute.xlu2 %2042 }
 0x265   : > { %1837 = vrot.lane.b32.xlu0 %v1761_v39, %s3265_s13  ;;  %v2193_v39 = vld [vmem:[#allocation2 + $0x16a] sm:$0xff] }
 0x266   : > { %v2041_v0 = vpop.permute.xlu1 %2040  ;;  %v2225_v52 = vpack.c.bf16 %v2193_v39, %v2193_v39 }
 0x267   : > { %2136 = vst.msk [vmem:[#allocation3 + $0x4] sm:$0xf] %vm2134_vm10, %v2041_v0  ;;  %v1830_v14 = vpop.permute.xlu0 %1829 }
 0x268   : > { %2361 = vst.msk [vmem:[#allocation3 + $0x4] sm:$0xf] %vm2359_vm11, %v2266_v58  ;;  %v1988_v58 = vpack.c.bf16 %v1956_v55, %v1956_v55  ;;  %v1747_v55 = vld [vmem:[#allocation2 + $0x198] sm:$0xff] }
 0x269   : > { %1918 = vst.msk [vmem:[#allocation3 + $0x20] sm:$0xf] %vm1909_vm9, %v1830_v14  ;;  %v1779_v39 = vpack.c.bf16 %v1747_v55, %v1747_v55 }
 0x26a   : > { %2311 = vrot.lane.b32.xlu2 %v4140_v37, %s3266_s14  ;;  %v1948_v37 = vld [vmem:[#allocation2 + $0x79] sm:$0xff] }
 0x26b   : > { %v1980_v22 = vpack.c.bf16 %v1948_v37, %v1948_v37 }
 0x26c   : > { %1825 = vrot.lane.b32.xlu1 %v1755_v5, %s3265_s13  ;;  %v2057_v34 = vpop.permute.xlu2 %2056  ;;  %v1763_v5 = vpack.c.bf16 %v1731_v38, %v1731_v38  ;;  %v1748_v38 = vld [vmem:[#allocation2 + $0x1a0] sm:$0xff] }
 0x26d   : > { %2052 = vrot.lane.b32.xlu0 %v1981_v13, %s3264_s12  ;;  %v1732_v13 = vld [vmem:[#allocation2 + $0xe0] sm:$0xff] }
 0x26e   : > { %v1818_v15 = vpop.permute.xlu1 %1817 }
 0x26f   : > { %1912 = vst.msk [vmem:[#allocation3 + $0x8] sm:$0xf] %vm1909_vm9, %v1818_v15  ;;  %v2045_v10 = vpop.permute.xlu0 %2044  ;;  %v3115_v17 = vld [vmem:[#allocation3] sm:$0xff]  ;;  %v1764_v15 = vpack.c.bf16 %v1732_v13, %v1732_v13 }
 0x270   : > { %2138 = vst.msk [vmem:[#allocation3 + $0xc] sm:$0xf] %vm2134_vm10, %v2045_v10  ;;  %3095 = vmatmul.msk.bf16.vlgmr.msra.gmra.mxu0 %vm2540_vm12, %v3115_v17  ;;  %v1989_v10 = vpack.c.bf16 %v1957_v45, %v1957_v45  ;;  %v1772_v17 = vpack.c.bf16 %v1740_v1, %v1740_v1  ;;  %v2197_v45 = vld [vmem:[#allocation2 + $0x19a] sm:$0xff] }
 0x271   : > { %2137 = vst.msk [vmem:[#allocation3 + $0x8] sm:$0xf] %vm2134_vm10, %v2043_v44 }
 0x272   : > { %1827 = vrot.lane.b32.xlu2 %v1756_v7, %s3265_s13 }
 0x274   : > { %1839 = vrot.lane.b32.xlu1 %v1762_v12, %s3265_s13  ;;  %v2280_v30 = vpop.permute.xlu2 %2279  ;;  %v2181_v12 = vld [vmem:[#allocation2 + $0xda] sm:$0xff] }
 0x275   : > { %2275 = vrot.lane.b32.xlu0 %v4062_v21, %s3266_s14 }
 0x276   : > { %v1832_v3 = vpop.permute.xlu1 %1831 }
 0x277   : > { %1919 = vst.msk [vmem:[#allocation3 + $0x24] sm:$0xf] %vm1909_vm9, %v1832_v3  ;;  %v2268_v40 = vpop.permute.xlu0 %2267  ;;  %v2213_v3 = vpack.c.bf16 %v2181_v12, %v2181_v12 }
 0x278   : > { %2362 = vst.msk [vmem:[#allocation3 + $0x8] sm:$0xf] %vm2359_vm11, %v2268_v40 }
 0x279   : > { %2144 = vst.msk [vmem:[#allocation3 + $0x24] sm:$0xf] %vm2134_vm10, %v2057_v34 }
 0x27a   : > { %2050 = vrot.lane.b32.xlu2 %v1980_v22, %s3264_s12 }
 0x27c   : > { %2062 = vrot.lane.b32.xlu1 %v3975_v26, %s3264_s12  ;;  %v1848_v54 = vpop.permute.xlu2 %1847 }
 0x27d   : > { %2289 = vrot.lane.b32.xlu0 %v4097_v61, %s3266_s14  ;;  %1927 = vst.msk [vmem:[#allocation3 + $0x44] sm:$0xf] %vm1909_vm9, %v1848_v54  ;;  %v1737_v61 = vld [vmem:[#allocation2 + $0x120] sm:$0xff]  ;;  %v1739_v54 = vld [vmem:[#allocation2 + $0x138] sm:$0xff] }
 0x27e   : > { %v2055_v21 = vpop.permute.xlu1 %2054  ;;  %v1769_v47 = vpack.c.bf16 %v1737_v61, %v1737_v61 }
 0x27f   : > { %2143 = vst.msk [vmem:[#allocation3 + $0x20] sm:$0xf] %vm2134_vm10, %v2055_v21  ;;  %v2282_v23 = vpop.permute.xlu0 %2281 }
 0x280   : > { %2369 = vst.msk [vmem:[#allocation3 + $0x24] sm:$0xf] %vm2359_vm11, %v2282_v23 }
 0x281   : > { %2368 = vst.msk [vmem:[#allocation3 + $0x20] sm:$0xf] %vm2359_vm11, %v2280_v30  ;;  %v1964_v30 = vld [vmem:[#allocation2 + $0x139] sm:$0xff] }
 0x282   : > { %2064 = vrot.lane.b32.xlu2 %v1987_v59, %s3264_s12  ;;  %v1996_v28 = vpack.c.bf16 %v1964_v30, %v1964_v30 }
 0x284   : > { %2277 = vrot.lane.b32.xlu1 %v4071_v29, %s3266_s14  ;;  %v2296_v26 = vpop.permute.xlu2 %2295  ;;  %v1744_v29 = vld [vmem:[#allocation2 + $0x170] sm:$0xff] }
 0x285   : > { %1865 = vrot.lane.b32.xlu0 %v1775_v63, %s3265_s13  ;;  %v1971_v63 = vld [vmem:[#allocation2 + $0x189] sm:$0xff] }
 0x286   : > { %v2270_v46 = vpop.permute.xlu1 %2269 }
 0x287   : > { %2363 = vst.msk [vmem:[#allocation3 + $0xc] sm:$0xf] %vm2359_vm11, %v2270_v46  ;;  %v2071_v6 = vpop.permute.xlu0 %2070  ;;  %v1777_v46 = vpack.c.bf16 %v1745_v27, %v1745_v27 }
 0x288   : > { %v3119_v20 = vld [vmem:[#allocation3 + $0x20] sm:$0xff] }
 0x289   : > { %3099 = vmatmul.msk.bf16.vlgmr.msra.gmra.mxu1 %vm2540_vm12, %v3119_v20  ;;  %v1746_v20 = vld [vmem:[#allocation2 + $0x188] sm:$0xff] }
 0x28a   : > { %2287 = vrot.lane.b32.xlu2 %v4088_v56, %s3266_s14  ;;  %v1776_v56 = vpack.c.bf16 %v1744_v29, %v1744_v29  ;;  %v2195_v29 = vld [vmem:[#allocation2 + $0x182] sm:$0xff] }
 0x28c   : > { %1853 = vrot.lane.b32.xlu1 %v1769_v47, %s3265_s13  ;;  %v1824_v33 = vpop.permute.xlu2 %1823 }
 0x28d   : > { %2080 = vrot.lane.b32.xlu0 %v4008_v35, %s3264_s12  ;;  %1915 = vst.msk [vmem:[#allocation3 + $0x14] sm:$0xf] %vm1909_vm9, %v1824_v33  ;;  %v1962_v35 = vld [vmem:[#allocation2 + $0x121] sm:$0xff] }
 0x28e   : > { %v1846_v11 = vpop.permute.xlu1 %1845  ;;  %v3116_v36 = vld [vmem:[#allocation3 + $0x8] sm:$0xff]  ;;  %v1994_v16 = vpack.c.bf16 %v1962_v35, %v1962_v35  ;;  %v2196_v35 = vld [vmem:[#allocation2 + $0x18a] sm:$0xff] }
 0x28f   : > { %1926 = vst.msk [vmem:[#allocation3 + $0x40] sm:$0xf] %vm1909_vm9, %v1846_v11  ;;  %v2298_v50 = vpop.permute.xlu0 %2297  ;;  %3096 = vmatmul.msk.bf16.gmra.mxu0 %vm2540_vm12, %v3116_v36  ;;  %v1778_v11 = vpack.c.bf16 %v1746_v20, %v1746_v20 }
 0x290   : > { %2151 = vst.msk [vmem:[#allocation3 + $0x40] sm:$0xf] %vm2134_vm10, %v2071_v6  ;;  %v2003_v6 = vpack.c.bf16 %v1971_v63, %v1971_v63 }
 0x291   : > { %2376 = vst.msk [vmem:[#allocation3 + $0x40] sm:$0xf] %vm2359_vm11, %v2296_v26  ;;  %v1771_v26 = vpack.c.bf16 %v1739_v54, %v1739_v54 }
 0x292   : > { %1855 = vrot.lane.b32.xlu2 %v1770_v42, %s3265_s13  ;;  %v2227_v42 = vpack.c.bf16 %v2195_v29, %v2195_v29 }
 0x294   : > { %1867 = vrot.lane.b32.xlu1 %v1776_v56, %s3265_s13  ;;  %v2047_v41 = vpop.permute.xlu2 %2046 }
 0x295   : > { %2303 = vrot.lane.b32.xlu0 %v2219_v19, %s3266_s14 }
 0x296   : > { %v2073_v48 = vpop.permute.xlu1 %2072 }
 0x297   : > { %2152 = vst.msk [vmem:[#allocation3 + $0x44] sm:$0xf] %vm2134_vm10, %v2073_v48  ;;  %v1834_v2 = vpop.permute.xlu0 %1833  ;;  %v2228_v48 = vpack.c.bf16 %v2196_v35, %v2196_v35 }
 0x298   : > { %2377 = vst.msk [vmem:[#allocation3 + $0x44] sm:$0xf] %vm2359_vm11, %v2298_v50  ;;  %v1970_v50 = vld [vmem:[#allocation2 + $0x181] sm:$0xff] }
 0x299   : > { %1920 = vst.msk [vmem:[#allocation3 + $0x28] sm:$0xf] %vm1909_vm9, %v1834_v2 }
 0x29a   : > { %2078 = vrot.lane.b32.xlu2 %v1994_v16, %s3264_s12 }
 0x29c   : > { %2090 = vrot.lane.b32.xlu1 %v2000_v49, %s3264_s12  ;;  %v2061_v62 = vpop.permute.xlu2 %2060  ;;  %v1972_v49 = vld [vmem:[#allocation2 + $0x199] sm:$0xff] }
 0x29d   : > { %2317 = vrot.lane.b32.xlu0 %v2226_v43, %s3266_s14 }
 0x29e   : > { %v1822_v32 = vpop.permute.xlu1 %1821 }
 0x29f   : > { %1914 = vst.msk [vmem:[#allocation3 + $0x10] sm:$0xf] %vm1909_vm9, %v1822_v32  ;;  %v2049_v57 = vpop.permute.xlu0 %2048  ;;  %v3123_v18 = vld [vmem:[#allocation3 + $0x40] sm:$0xff]  ;;  %v2004_v32 = vpack.c.bf16 %v1972_v49, %v1972_v49 }
 0x2a0   : > { %2140 = vst.msk [vmem:[#allocation3 + $0x14] sm:$0xf] %vm2134_vm10, %v2049_v57  ;;  %3103 = vmatmul.msk.bf16.vlgmr.msra.gmra.mxu2 %vm2540_vm12, %v3123_v18  ;;  %v2198_v18 = vld [vmem:[#allocation2 + $0x1a2] sm:$0xff] }
 0x2a1   : > { %2139 = vst.msk [vmem:[#allocation3 + $0x10] sm:$0xf] %vm2134_vm10, %v2047_v41  ;;  %v2002_v41 = vpack.c.bf16 %v1970_v50, %v1970_v50 }
 0x2a2   : > { %2092 = vrot.lane.b32.xlu2 %v2001_v24, %s3264_s12 }
 0x2a4   : > { %2305 = vrot.lane.b32.xlu1 %v4127_v4, %s3266_s14  ;;  %v2284_v44 = vpop.permute.xlu2 %2283 }
 0x2a5   : > { %2066 = vrot.lane.b32.xlu0 %v1988_v58, %s3264_s12 }
 0x2a6   : > { %v1836_v0 = vpop.permute.xlu1 %1835 }
 0x2a7   : > { %1921 = vst.msk [vmem:[#allocation3 + $0x2c] sm:$0xf] %vm1909_vm9, %v1836_v0  ;;  %v2272_v14 = vpop.permute.xlu0 %2271 }
 0x2a8   : > { %2364 = vst.msk [vmem:[#allocation3 + $0x10] sm:$0xf] %vm2359_vm11, %v2272_v14 }
 0x2a9   : > { %2146 = vst.msk [vmem:[#allocation3 + $0x2c] sm:$0xf] %vm2134_vm10, %v2061_v62 }
 0x2aa   : > { %2315 = vrot.lane.b32.xlu2 %v2225_v52, %s3266_s14  ;;  %v1973_v52 = vld [vmem:[#allocation2 + $0x1a1] sm:$0xff] }
 0x2ac   : > { %1841 = vrot.lane.b32.xlu1 %v1763_v5, %s3265_s13  ;;  %v1852_v4 = vpop.permute.xlu2 %1851  ;;  %v1780_v5 = vpack.c.bf16 %v1748_v38, %v1748_v38 }
 0x2ad   : > { %2293 = vrot.lane.b32.xlu0 %v4101_v51, %s3266_s14  ;;  %1929 = vst.msk [vmem:[#allocation3 + $0x4c] sm:$0xf] %vm1909_vm9, %v1852_v4  ;;  %v2005_v4 = vpack.c.bf16 %v1973_v52, %v1973_v52 }
 0x2ae   : > { %v2059_v34 = vpop.permute.xlu1 %2058 }
 0x2af   : > { %2145 = vst.msk [vmem:[#allocation3 + $0x28] sm:$0xf] %vm2134_vm10, %v2059_v34  ;;  %v2286_v7 = vpop.permute.xlu0 %2285 }
 0x2b0   : > { %2371 = vst.msk [vmem:[#allocation3 + $0x2c] sm:$0xf] %vm2359_vm11, %v2286_v7  ;;  %v2229_v7 = vpack.c.bf16 %v2197_v45, %v2197_v45 }
 0x2b1   : > { %2370 = vst.msk [vmem:[#allocation3 + $0x28] sm:$0xf] %vm2359_vm11, %v2284_v44  ;;  %v2230_v44 = vpack.c.bf16 %v2198_v18, %v2198_v18 }
 0x2b2   : > { %1843 = vrot.lane.b32.xlu2 %v1764_v15, %s3265_s13 }
 0x2b4   : > { %2068 = vrot.lane.b32.xlu1 %v1989_v10, %s3264_s12  ;;  %v2075_v51 = vpop.permute.xlu2 %2074 }
 0x2b5   : > { %1859 = vrot.lane.b32.xlu0 %v1772_v17, %s3265_s13 }
 0x2b6   : > { %v2274_v37 = vpop.permute.xlu1 %2273 }
 0x2b7   : > { %2365 = vst.msk [vmem:[#allocation3 + $0x14] sm:$0xf] %vm2359_vm11, %v2274_v37  ;;  %v1862_v22 = vpop.permute.xlu0 %1861 }
 0x2b8   : > { %1934 = vst.msk [vmem:[#allocation3 + $0x60] sm:$0xf] %vm1909_vm9, %v1862_v22  ;;  %v3120_v40 = vld [vmem:[#allocation3 + $0x28] sm:$0xff] }
 0x2b9   : > { %3100 = vmatmul.msk.bf16.gmra.mxu1 %vm2540_vm12, %v3120_v40 }
 0x2ba   : > { %2291 = vrot.lane.b32.xlu2 %v2213_v3, %s3266_s14 }
 0x2bc   : > { %1645 = vrot.lane.b32.xlu1 %v2226_v43, %s3263_s11  ;;  %v2089_v21 = vpop.permute.xlu2 %2088  ;;  %v2222_v43 = vpack.c.bf16 %v2190_v9, %v2190_v9 }
 0x2bd   : > { %2082 = vrot.lane.b32.xlu0 %v1996_v28, %s3264_s12 }
 0x2be   : > { %v1850_v59 = vpop.permute.xlu1 %1849  ;;  %v3117_v23 = vld [vmem:[#allocation3 + $0x10] sm:$0xff] }
 0x2bf   : > { %1928 = vst.msk [vmem:[#allocation3 + $0x48] sm:$0xf] %vm1909_vm9, %v1850_v59  ;;  %v2077_v61 = vpop.permute.xlu0 %2076  ;;  %3097 = vmatmul.msk.bf16.gmra.mxu0 %vm2540_vm12, %v3117_v23 }
 0x2c0   : > { %2154 = vst.msk [vmem:[#allocation3 + $0x4c] sm:$0xf] %vm2134_vm10, %v2077_v61 }
 0x2c1   : > { %2153 = vst.msk [vmem:[#allocation3 + $0x48] sm:$0xf] %vm2134_vm10, %v2075_v51 }
 0x2c2   : > { %1857 = vrot.lane.b32.xlu2 %v1771_v26, %s3265_s13 }
 0x2c4   : > { %1869 = vrot.lane.b32.xlu1 %v1777_v46, %s3265_s13  ;;  %v2312_v47 = vpop.permute.xlu2 %2311 }
 0x2c5   : > { %2096 = vrot.lane.b32.xlu0 %v2003_v6, %s3264_s12 }
 0x2c6   : > { %v1864_v33 = vpop.permute.xlu1 %1863 }
 0x2c7   : > { %1935 = vst.msk [vmem:[#allocation3 + $0x64] sm:$0xf] %vm1909_vm9, %v1864_v33  ;;  %v2300_v36 = vpop.permute.xlu0 %2299 }
 0x2c8   : > { %2378 = vst.msk [vmem:[#allocation3 + $0x48] sm:$0xf] %vm2359_vm11, %v2300_v36 }
 0x2c9   : > { %2160 = vst.msk [vmem:[#allocation3 + $0x64] sm:$0xf] %vm2134_vm10, %v2089_v21 }
 0x2ca   : > { %1871 = vrot.lane.b32.xlu2 %v1778_v11, %s3265_s13 }
 0x2cc   : > { %2084 = vrot.lane.b32.xlu1 %v1997_v8, %s3264_s12  ;;  %v1828_v56 = vpop.permute.xlu2 %1827 }
 0x2cd   : > { %2319 = vrot.lane.b32.xlu0 %v2227_v42, %s3266_s14  ;;  %1917 = vst.msk [vmem:[#allocation3 + $0x1c] sm:$0xf] %vm1909_vm9, %v1828_v56 }
 0x2ce   : > { %v2087_v19 = vpop.permute.xlu1 %2086 }
 0x2cf   : > { %2159 = vst.msk [vmem:[#allocation3 + $0x60] sm:$0xf] %vm2134_vm10, %v2087_v19  ;;  %v2314_v60 = vpop.permute.xlu0 %2313 }
 0x2d0   : > { %2385 = vst.msk [vmem:[#allocation3 + $0x64] sm:$0xf] %vm2359_vm11, %v2314_v60 }
 0x2d1   : > { %2384 = vst.msk [vmem:[#allocation3 + $0x60] sm:$0xf] %vm2359_vm11, %v2312_v47 }
 0x2d2   : > { %2094 = vrot.lane.b32.xlu2 %v2002_v41, %s3264_s12 }
 0x2d4   : > { %2307 = vrot.lane.b32.xlu1 %v4136_v53, %s3266_s14  ;;  %v2051_v16 = vpop.permute.xlu2 %2050 }
 0x2d5   : > { %1649 = vrot.lane.b32.xlu0 %v2228_v48, %s3263_s11 }
 0x2d6   : > { %v2302_v2 = vpop.permute.xlu1 %2301 }
 0x2d7   : > { %2379 = vst.msk [vmem:[#allocation3 + $0x4c] sm:$0xf] %vm2359_vm11, %v2302_v2  ;;  %v1838_v25 = vpop.permute.xlu0 %1837 }
 0x2d8   : > { %1922 = vst.msk [vmem:[#allocation3 + $0x30] sm:$0xf] %vm1909_vm9, %v1838_v25  ;;  %v3127_v62 = vld [vmem:[#allocation3 + $0x60] sm:$0xff] }
 0x2d9   : > { %3107 = vmatmul.msk.bf16.vlgmr.msra.gmra.mxu3 %vm2540_vm12, %v3127_v62 }
 0x2da   : > { %2309 = vrot.lane.b32.xlu2 %v2222_v43, %s3266_s14 }
 0x2dc   : > { %2321 = vrot.lane.b32.xlu1 %v2228_v48, %s3266_s14  ;;  %v2065_v53 = vpop.permute.xlu2 %2064 }
 0x2dd   : > { %2098 = vrot.lane.b32.xlu0 %v2004_v32, %s3264_s12 }
 0x2de   : > { %v1826_v24 = vpop.permute.xlu1 %1825  ;;  %v3124_v57 = vld [vmem:[#allocation3 + $0x48] sm:$0xff] }
 0x2df   : > { %1916 = vst.msk [vmem:[#allocation3 + $0x18] sm:$0xf] %vm1909_vm9, %v1826_v24  ;;  %v2053_v58 = vpop.permute.xlu0 %2052  ;;  %3104 = vmatmul.msk.bf16.gmra.mxu2 %vm2540_vm12, %v3124_v57 }
 0x2e0   : > { %2142 = vst.msk [vmem:[#allocation3 + $0x1c] sm:$0xf] %vm2134_vm10, %v2053_v58 }
 0x2e1   : > { %2141 = vst.msk [vmem:[#allocation3 + $0x18] sm:$0xf] %vm2134_vm10, %v2051_v16 }
 0x2e2   : > { %1647 = vrot.lane.b32.xlu2 %v2227_v42, %s3263_s11 }
 0x2e4   : > { %1873 = vrot.lane.b32.xlu1 %v1779_v39, %s3265_s13  ;;  %v2288_v0 = vpop.permute.xlu2 %2287 }
 0x2e5   : > { %2325 = vrot.lane.b32.xlu0 %v2230_v44, %s3266_s14 }
 0x2e6   : > { %v1840_v14 = vpop.permute.xlu1 %1839 }
 0x2e7   : > { %1923 = vst.msk [vmem:[#allocation3 + $0x34] sm:$0xf] %vm1909_vm9, %v1840_v14  ;;  %v2276_v13 = vpop.permute.xlu0 %2275 }
 0x2e8   : > { %2366 = vst.msk [vmem:[#allocation3 + $0x18] sm:$0xf] %vm2359_vm11, %v2276_v13 }
 0x2e9   : > { %2148 = vst.msk [vmem:[#allocation3 + $0x34] sm:$0xf] %vm2134_vm10, %v2065_v53 }
 0x2ea   : > { %1875 = vrot.lane.b32.xlu2 %v1780_v5, %s3265_s13 }
 0x2ec   : > { %2100 = vrot.lane.b32.xlu1 %v2005_v4, %s3264_s12  ;;  %v1856_v34 = vpop.permute.xlu2 %1855 }
 0x2ed   : > { %1931 = vst.msk [vmem:[#allocation3 + $0x54] sm:$0xf] %vm1909_vm9, %v1856_v34  ;;  %v2602_v15 = vpop.f32.mrf.mxu0 }
 0x2ee   : > { %v2063_v1 = vpop.permute.xlu1 %2062  ;;  %v2682_v10 = vpack.c.bf16 %v2602_v15, %v2602_v15  ;;  %v2817_v51 = vmul.f32 %v2602_v15, %v2602_v15  ;;  %v2746_v3 = vsel %vm405_vm0, %v2602_v15, 0.0 }
 0x2ef   : > { %2147 = vst.msk [vmem:[#allocation3 + $0x30] sm:$0xf] %vm2134_vm10, %v2063_v1  ;;  %v2290_v17 = vpop.permute.xlu0 %2289 }
 0x2f0   : > { %2373 = vst.msk [vmem:[#allocation3 + $0x34] sm:$0xf] %vm2359_vm11, %v2290_v17  ;;  %v2849_v27 = vsel %vm405_vm0, %v2817_v51, 0.0 }
 0x2f1   : > { %2714 = vst.msk [vmem:[%s4412_s30] sm:$0xf] %vm558_vm2, %v2682_v10 }
 0x2f2   : > { %2372 = vst.msk [vmem:[#allocation3 + $0x30] sm:$0xf] %vm2359_vm11, %v2288_v0  ;;  %2323 = vrot.lane.b32.xlu2 %v2229_v7, %s3266_s14 }
 0x2f4   : > { %v2079_v12 = vpop.permute.xlu2 %2078 }
 0x2f5   : > { %v2604_v30 = vpop.f32.mrf.mxu0 }
 0x2f6   : > { %v2278_v37 = vpop.permute.xlu1 %2277  ;;  %v2683_v22 = vpack.c.bf16 %v2604_v30, %v2604_v30  ;;  %v2747_v40 = vsel %vm405_vm0, %v2604_v30, 0.0  ;;  %v2818_v28 = vmul.f32 %v2604_v30, %v2604_v30 }
 0x2f7   : > { %2367 = vst.msk [vmem:[#allocation3 + $0x1c] sm:$0xf] %vm2359_vm11, %v2278_v37  ;;  %v1866_v54 = vpop.permute.xlu0 %1865  ;;  %v2748_v21 = vadd.f32 %v2747_v40, %v2746_v3 }
 0x2f8   : > { %1936 = vst.msk [vmem:[#allocation3 + $0x68] sm:$0xf] %vm1909_vm9, %v1866_v54  ;;  %v2850_v59 = vsel %vm405_vm0, %v2818_v28, 0.0 }
 0x2f9   : > { %2715 = vst.msk [vmem:[%s4412_s30 + $0x4] sm:$0xf] %vm558_vm2, %v2683_v22  ;;  %v3121_v23 = vld [vmem:[#allocation3 + $0x30] sm:$0xff]  ;;  %v2851_v63 = vadd.f32 %v2850_v59, %v2849_v27 }
 0x2fa   : > { %3101 = vmatmul.msk.bf16.gmra.mxu1 %vm2540_vm12, %v3121_v23 }
 0x2fc   : > { %v2093_v26 = vpop.permute.xlu2 %2092 }
 0x2fe   : > { %v1854_v61 = vpop.permute.xlu1 %1853  ;;  %v3118_v46 = vld [vmem:[#allocation3 + $0x18] sm:$0xff] }
 0x2ff   : > { %1930 = vst.msk [vmem:[#allocation3 + $0x50] sm:$0xf] %vm1909_vm9, %v1854_v61  ;;  %v2081_v6 = vpop.permute.xlu0 %2080  ;;  %3098 = vmatmul.msk.bf16.gmra.mxu0 %vm2540_vm12, %v3118_v46 }
 0x300   : > { %2156 = vst.msk [vmem:[#allocation3 + $0x54] sm:$0xf] %vm2134_vm10, %v2081_v6 }
 0x301   : > { %2155 = vst.msk [vmem:[#allocation3 + $0x50] sm:$0xf] %vm2134_vm10, %v2079_v12 }
 0x304   : > { %v2316_v20 = vpop.permute.xlu2 %2315 }
 0x306   : > { %v1868_v47 = vpop.permute.xlu1 %1867  ;;  %v4434_v33 = vpop.f32.mrf.mxu1 }
 0x307   : > { %1937 = vst.msk [vmem:[#allocation3 + $0x6c] sm:$0xf] %vm1909_vm9, %v1868_v47  ;;  %v2304_v31 = vpop.permute.xlu0 %2303  ;;  %v2690_v29 = vpack.c.bf16 %v4434_v33, %v4434_v33 }
 0x308   : > { %2380 = vst.msk [vmem:[#allocation3 + $0x50] sm:$0xf] %vm2359_vm11, %v2304_v31 }
 0x309   : > { %2162 = vst.msk [vmem:[#allocation3 + $0x6c] sm:$0xf] %vm2134_vm10, %v2093_v26 }
 0x30a   : > { %2722 = vst.msk [vmem:[%s4412_s30 + $0x20] sm:$0xf] %vm558_vm2, %v2690_v29 }
 0x30c   : > { %v1844_v11 = vpop.permute.xlu2 %1843  ;;  %v2607_v36 = vpop.f32.mrf.mxu0 }
 0x30d   : > { %1925 = vst.msk [vmem:[#allocation3 + $0x3c] sm:$0xf] %vm1909_vm9, %v1844_v11  ;;  %v2684_v42 = vpack.c.bf16 %v2607_v36, %v2607_v36  ;;  %v2749_v50 = vsel %vm405_vm0, %v2607_v36, 0.0  ;;  %v2819_v56 = vmul.f32 %v2607_v36, %v2607_v36 }
 0x30e   : > { %v2091_v8 = vpop.permute.xlu1 %2090  ;;  %v2750_v19 = vadd.f32 %v2749_v50, %v2748_v21  ;;  %v4445_v41 = vpop.f32.mrf.mxu1 }
 0x30f   : > { %2161 = vst.msk [vmem:[#allocation3 + $0x68] sm:$0xf] %vm2134_vm10, %v2091_v8  ;;  %v2318_v35 = vpop.permute.xlu0 %2317  ;;  %v2852_v60 = vsel %vm405_vm0, %v2819_v56, 0.0  ;;  %v2691_v48 = vpack.c.bf16 %v4445_v41, %v4445_v41 }
 0x310   : > { %2716 = vst.msk [vmem:[%s4412_s30 + $0x8] sm:$0xf] %vm558_vm2, %v2684_v42  ;;  %v2853_v9 = vadd.f32 %v2852_v60, %v2851_v63 }
 0x311   : > { %2387 = vst.msk [vmem:[#allocation3 + $0x6c] sm:$0xf] %vm2359_vm11, %v2318_v35 }
 0x312   : > { %2386 = vst.msk [vmem:[#allocation3 + $0x68] sm:$0xf] %vm2359_vm11, %v2316_v20 }
 0x313   : > { %2723 = vst.msk [vmem:[%s4412_s30 + $0x24] sm:$0xf] %vm558_vm2, %v2691_v48 }
 0x314   : > { %v2292_v16 = vpop.permute.xlu2 %2291  ;;  %v2609_v2 = vpop.f32.mrf.mxu0 }
 0x315   : > { %v2685_v43 = vpack.c.bf16 %v2609_v2, %v2609_v2  ;;  %v2751_v25 = vsel %vm405_vm0, %v2609_v2, 0.0  ;;  %v2820_v62 = vmul.f32 %v2609_v2, %v2609_v2 }
 0x316   : > { %v2306_v49 = vpop.permute.xlu1 %2305  ;;  %v2752_v32 = vadd.f32 %v2751_v25, %v2750_v19 }
 0x317   : > { %2381 = vst.msk [vmem:[#allocation3 + $0x54] sm:$0xf] %vm2359_vm11, %v2306_v49  ;;  %v2067_v53 = vpop.permute.xlu0 %2066  ;;  %v2854_v55 = vsel %vm405_vm0, %v2820_v62, 0.0 }
 0x318   : > { %2717 = vst.msk [vmem:[%s4412_s30 + $0xc] sm:$0xf] %vm558_vm2, %v2685_v43  ;;  %v2855_v24 = vadd.f32 %v2854_v55, %v2853_v9 }
 0x319   : > { %v3128_v57 = vld [vmem:[#allocation3 + $0x68] sm:$0xff] }
 0x31a   : > { %3108 = vmatmul.msk.bf16.gmra.mxu3 %vm2540_vm12, %v3128_v57 }
 0x31c   : > { %v1858_v18 = vpop.permute.xlu2 %1857 }
 0x31d   : > { %1932 = vst.msk [vmem:[#allocation3 + $0x58] sm:$0xf] %vm1909_vm9, %v1858_v18 }
 0x31e   : > { %v1842_v58 = vpop.permute.xlu1 %1841  ;;  %v3125_v39 = vld [vmem:[#allocation3 + $0x50] sm:$0xff] }
 0x31f   : > { %1924 = vst.msk [vmem:[#allocation3 + $0x38] sm:$0xf] %vm1909_vm9, %v1842_v58  ;;  %v2294_v44 = vpop.permute.xlu0 %2293  ;;  %3105 = vmatmul.msk.bf16.gmra.mxu2 %vm2540_vm12, %v3125_v39 }
 0x320   : > { %2149 = vst.msk [vmem:[#allocation3 + $0x38] sm:$0xf] %vm2134_vm10, %v2067_v53 }
 0x321   : > { %2374 = vst.msk [vmem:[#allocation3 + $0x38] sm:$0xf] %vm2359_vm11, %v2292_v16 }
 0x323   : > { %v4467_v38 = vpop.f32.mrf.mxu2 }
 0x324   : > { %v1872_v0 = vpop.permute.xlu2 %1871  ;;  %v2698_v52 = vpack.c.bf16 %v4467_v38, %v4467_v38 }
 0x326   : > { %v2069_v14 = vpop.permute.xlu1 %2068  ;;  %2730 = vst.msk [vmem:[%s4412_s30 + $0x40] sm:$0xf] %vm558_vm2, %v2698_v52 }
 0x327   : > { %v1860_v5 = vpop.permute.xlu0 %1859  ;;  %2150 = vst.msk [vmem:[#allocation3 + $0x3c] sm:$0xf] %vm2134_vm10, %v2069_v14 }
 0x328   : > { %2375 = vst.msk [vmem:[#allocation3 + $0x3c] sm:$0xf] %vm2359_vm11, %v2294_v44 }
 0x329   : > { %1933 = vst.msk [vmem:[#allocation3 + $0x5c] sm:$0xf] %vm1909_vm9, %v1860_v5 }
 0x32b   : > { %v4476_v13 = vpop.f32.mrf.mxu2 }
 0x32c   : > { %v2095_v4 = vpop.permute.xlu2 %2094  ;;  %v2699_v45 = vpack.c.bf16 %v4476_v13, %v4476_v13 }
 0x32e   : > { %v1646_v34 = vpop.permute.xlu1 %1645  ;;  %2731 = vst.msk [vmem:[%s4412_s30 + $0x44] sm:$0xf] %vm558_vm2, %v2699_v45  ;;  %v2825_v45 = vmul.f32 %v4434_v33, %v4434_v33 }
 0x32f   : > { %v2083_v1 = vpop.permute.xlu0 %2082  ;;  %1713 = vst.msk [vmem:[#allocation3 + $0x74] sm:$0xf] %vm1683_vm7, %v1646_v34  ;;  %v3122_v15 = vld [vmem:[#allocation3 + $0x38] sm:$0xff] }
 0x330   : > { %1939 = vst.msk [vmem:[#allocation3 + $0x74] sm:$0xf] %vm1909_vm9, %v1872_v0  ;;  %3102 = vmatmul.msk.bf16.gmra.mxu1 %vm2540_vm12, %v3122_v15 }
 0x331   : > { %2157 = vst.msk [vmem:[#allocation3 + $0x58] sm:$0xf] %vm2134_vm10, %v2083_v1 }
 0x334   : > { %v2310_v7 = vpop.permute.xlu2 %2309 }
 0x336   : > { %v1870_v10 = vpop.permute.xlu1 %1869  ;;  %v4487_v17 = vpop.f32.mrf.mxu1 }
 0x337   : > { %1938 = vst.msk [vmem:[#allocation3 + $0x70] sm:$0xf] %vm1909_vm9, %v1870_v10  ;;  %v2097_v12 = vpop.permute.xlu0 %2096  ;;  %v2692_v51 = vpack.c.bf16 %v4487_v17, %v4487_v17  ;;  %v2761_v10 = vsel %vm405_vm0, %v4434_v33, 0.0 }
 0x338   : > { %2163 = vst.msk [vmem:[#allocation3 + $0x70] sm:$0xf] %vm2134_vm10, %v2095_v4 }
 0x339   : > { %2164 = vst.msk [vmem:[#allocation3 + $0x74] sm:$0xf] %vm2134_vm10, %v2097_v12  ;;  %v2826_v12 = vmul.f32 %v4445_v41, %v4445_v41 }
 0x33a   : > { %2724 = vst.msk [vmem:[%s4412_s30 + $0x28] sm:$0xf] %vm558_vm2, %v2692_v51 }
 0x33b   : > { %v2866_v33 = vsel %vm405_vm0, %v2826_v12, 0.0 }
 0x33c   : > { %v1648_v37 = vpop.permute.xlu2 %1647  ;;  %v2612_v30 = vpop.f32.mrf.mxu0 }
 0x33d   : > { %1714 = vst.msk [vmem:[#allocation3 + $0x78] sm:$0xf] %vm1683_vm7, %v1648_v37  ;;  %v2686_v22 = vpack.c.bf16 %v2612_v30, %v2612_v30  ;;  %v2753_v40 = vsel %vm405_vm0, %v2612_v30, 0.0  ;;  %v2821_v28 = vmul.f32 %v2612_v30, %v2612_v30 }
 0x33e   : > { %v2085_v3 = vpop.permute.xlu1 %2084  ;;  %v2754_v54 = vadd.f32 %v2753_v40, %v2752_v32  ;;  %v4498_v21 = vpop.f32.mrf.mxu1  ;;  %v2827_v40 = vmul.f32 %v4487_v17, %v4487_v17 }
 0x33f   : > { %2158 = vst.msk [vmem:[#allocation3 + $0x5c] sm:$0xf] %vm2134_vm10, %v2085_v3  ;;  %v2320_v27 = vpop.permute.xlu0 %2319  ;;  %v2856_v59 = vsel %vm405_vm0, %v2821_v28, 0.0  ;;  %v2693_v23 = vpack.c.bf16 %v4498_v21, %v4498_v21  ;;  %v2864_v3 = vsel %vm405_vm0, %v2825_v45, 0.0  ;;  %v2834_v45 = vmul.f32 %v4476_v13, %v4476_v13 }
 0x340   : > { %2718 = vst.msk [vmem:[%s4412_s30 + $0x10] sm:$0xf] %vm558_vm2, %v2686_v22  ;;  %v2857_v63 = vadd.f32 %v2856_v59, %v2855_v24  ;;  %v2763_v22 = vsel %vm405_vm0, %v4445_v41, 0.0  ;;  %v2828_v59 = vmul.f32 %v4498_v21, %v4498_v21  ;;  %v2767_v41 = vsel %vm405_vm0, %v4498_v21, 0.0 }
 0x341   : > { %2383 = vst.msk [vmem:[#allocation3 + $0x5c] sm:$0xf] %vm2359_vm11, %v2310_v7 }
 0x342   : > { %2725 = vst.msk [vmem:[%s4412_s30 + $0x2c] sm:$0xf] %vm558_vm2, %v2693_v23 }
 0x343   : > { %2388 = vst.msk [vmem:[#allocation3 + $0x70] sm:$0xf] %vm2359_vm11, %v2320_v27  ;;  %v2765_v27 = vsel %vm405_vm0, %v4487_v17, 0.0 }
 0x344   : > { %v2614_v26 = vpop.f32.mrf.mxu0  ;;  %v1876_v29 = vpop.permute.xlu2 %1875 }
 0x345   : > { %v2687_v46 = vpack.c.bf16 %v2614_v26, %v2614_v26  ;;  %v2755_v6 = vsel %vm405_vm0, %v2614_v26, 0.0  ;;  %v2822_v20 = vmul.f32 %v2614_v26, %v2614_v26  ;;  %v2868_v26 = vsel %vm405_vm0, %v2827_v40, 0.0 }
 0x346   : > { %v2308_v61 = vpop.permute.xlu1 %2307  ;;  %v2756_v47 = vadd.f32 %v2755_v6, %v2754_v54 }
 0x347   : > { %2382 = vst.msk [vmem:[#allocation3 + $0x58] sm:$0xf] %vm2359_vm11, %v2308_v61  ;;  %v1650_v31 = vpop.permute.xlu0 %1649  ;;  %v2858_v11 = vsel %vm405_vm0, %v2822_v20, 0.0  ;;  %v2870_v20 = vsel %vm405_vm0, %v2828_v59, 0.0 }
 0x348   : > { %2719 = vst.msk [vmem:[%s4412_s30 + $0x14] sm:$0xf] %vm558_vm2, %v2687_v46  ;;  %v2859_v36 = vadd.f32 %v2858_v11, %v2857_v63 }
 0x349   : > { %1715 = vst.msk [vmem:[#allocation3 + $0x7c] sm:$0xf] %vm1683_vm7, %v1650_v31 }
 0x34a   : > { %1941 = vst.msk [vmem:[#allocation3 + $0x7c] sm:$0xf] %vm1909_vm9, %v1876_v29 }
 0x34c   : > { %v2324_v35 = vpop.permute.xlu2 %2323 }
 0x34e   : > { %v2322_v8 = vpop.permute.xlu1 %2321  ;;  %v3126_v42 = vld [vmem:[#allocation3 + $0x58] sm:$0xff] }
 0x34f   : > { %2389 = vst.msk [vmem:[#allocation3 + $0x74] sm:$0xf] %vm2359_vm11, %v2322_v8  ;;  %3106 = vmatmul.msk.bf16.gmra.mxu2 %vm2540_vm12, %v3126_v42  ;;  %v2099_v50 = vpop.permute.xlu0 %2098 }
 0x356   : > { %v1874_v56 = vpop.permute.xlu1 %1873  ;;  %v3129_v19 = vld [vmem:[#allocation3 + $0x70] sm:$0xff] }
 0x357   : > { %1940 = vst.msk [vmem:[#allocation3 + $0x78] sm:$0xf] %vm1909_vm9, %v1874_v56  ;;  %3109 = vmatmul.msk.bf16.gmra.mxu3 %vm2540_vm12, %v3129_v19  ;;  %v2326_v16 = vpop.permute.xlu0 %2325 }
 0x358   : > { %2165 = vst.msk [vmem:[#allocation3 + $0x78] sm:$0xf] %vm2134_vm10, %v2099_v50 }
 0x359   : > { %2390 = vst.msk [vmem:[#allocation3 + $0x78] sm:$0xf] %vm2359_vm11, %v2324_v35 }
 0x35c   : > { %v4522_v60 = vpop.f32.mrf.mxu3 }
 0x35d   : > { %v2706_v48 = vpack.c.bf16 %v4522_v60, %v4522_v60 }
 0x35e   : > { %v2101_v9 = vpop.permute.xlu1 %2100 }
 0x35f   : > { %2166 = vst.msk [vmem:[#allocation3 + $0x7c] sm:$0xf] %vm2134_vm10, %v2101_v9 }
 0x360   : > { %2738 = vst.msk [vmem:[%s4412_s30 + $0x60] sm:$0xf] %vm558_vm2, %v2706_v48 }
 0x361   : > { %2391 = vst.msk [vmem:[#allocation3 + $0x7c] sm:$0xf] %vm2359_vm11, %v2326_v16 }
 0x362   : > { %v4530_v2 = vpop.f32.mrf.mxu2 }
 0x363   : > { %v2700_v49 = vpack.c.bf16 %v4530_v2, %v4530_v2  ;;  %v2835_v12 = vmul.f32 %v4530_v2, %v4530_v2 }
 0x364   : > { %v4534_v43 = vpop.f32.mrf.mxu3 }
 0x365   : > { %2732 = vst.msk [vmem:[%s4412_s30 + $0x48] sm:$0xf] %vm558_vm2, %v2700_v49  ;;  %v2707_v25 = vpack.c.bf16 %v4534_v43, %v4534_v43 }
 0x367   : > { %2739 = vst.msk [vmem:[%s4412_s30 + $0x64] sm:$0xf] %vm558_vm2, %v2707_v25 }
 0x368   : > { %v3130_v62 = vld [vmem:[#allocation3 + $0x78] sm:$0xff] }
 0x369   : > { %3110 = vmatmul.msk.bf16.gmra.mxu3 %vm2540_vm12, %v3130_v62 }
 0x36a   : > { %v4543_v32 = vpop.f32.mrf.mxu2 }
 0x36b   : > { %v2701_v53 = vpack.c.bf16 %v4543_v32, %v4543_v32 }
 0x36d   : > { %2733 = vst.msk [vmem:[%s4412_s30 + $0x4c] sm:$0xf] %vm558_vm2, %v2701_v53 }
 0x377   : > { %v2632_v55 = vpop.f32.mrf.mxu1 }
 0x378   : > { %v2694_v24 = vpack.c.bf16 %v2632_v55, %v2632_v55  ;;  %v2829_v61 = vmul.f32 %v2632_v55, %v2632_v55 }
 0x37a   : > { %2726 = vst.msk [vmem:[%s4412_s30 + $0x30] sm:$0xf] %vm558_vm2, %v2694_v24  ;;  %v2872_v11 = vsel %vm405_vm0, %v2829_v61, 0.0 }
 0x37c   : > { %v2617_v57 = vpop.f32.mrf.mxu0 }
 0x37d   : > { %v2688_v18 = vpack.c.bf16 %v2617_v57, %v2617_v57  ;;  %v2757_v58 = vsel %vm405_vm0, %v2617_v57, 0.0  ;;  %v2823_v39 = vmul.f32 %v2617_v57, %v2617_v57 }
 0x37e   : > { %v2758_v44 = vadd.f32 %v2757_v58, %v2756_v47  ;;  %v2769_v47 = vsel %vm405_vm0, %v2632_v55, 0.0 }
 0x37f   : > { %2720 = vst.msk [vmem:[%s4412_s30 + $0x18] sm:$0xf] %vm558_vm2, %v2688_v18  ;;  %v2860_v0 = vsel %vm405_vm0, %v2823_v39, 0.0  ;;  %v2634_v52 = vpop.f32.mrf.mxu1  ;;  %v2833_v39 = vmul.f32 %v4467_v38, %v4467_v38 }
 0x380   : > { %v2861_v14 = vadd.f32 %v2860_v0, %v2859_v36  ;;  %v2695_v5 = vpack.c.bf16 %v2634_v52, %v2634_v52  ;;  %v2830_v17 = vmul.f32 %v2634_v52, %v2634_v52  ;;  %v2771_v36 = vsel %vm405_vm0, %v2634_v52, 0.0 }
 0x382   : > { %2727 = vst.msk [vmem:[%s4412_s30 + $0x34] sm:$0xf] %vm558_vm2, %v2695_v5  ;;  %v2874_v42 = vsel %vm405_vm0, %v2830_v17, 0.0 }
 0x384   : > { %v2619_v4 = vpop.f32.mrf.mxu0 }
 0x385   : > { %v2689_v34 = vpack.c.bf16 %v2619_v4, %v2619_v4  ;;  %v2759_v1 = vsel %vm405_vm0, %v2619_v4, 0.0  ;;  %v2824_v15 = vmul.f32 %v2619_v4, %v2619_v4  ;;  %v2777_v4 = vsel %vm405_vm0, %v4467_v38, 0.0 }
 0x386   : > { %v2760_v7 = vadd.f32 %v2759_v1, %v2758_v44  ;;  %v2882_v38 = vsel %vm405_vm0, %v2834_v45, 0.0 }
 0x387   : > { %2721 = vst.msk [vmem:[%s4412_s30 + $0x1c] sm:$0xf] %vm558_vm2, %v2689_v34  ;;  %v2862_v51 = vsel %vm405_vm0, %v2824_v15, 0.0 }
 0x388   : > { %v2762_v37 = vadd.f32 %v2761_v10, %v2760_v7  ;;  %v2863_v30 = vadd.f32 %v2862_v51, %v2861_v14  ;;  %v2880_v7 = vsel %vm405_vm0, %v2833_v39, 0.0  ;;  %v2779_v10 = vsel %vm405_vm0, %v4476_v13, 0.0 }
 0x389   : > { %v2783_v13 = vsel %vm405_vm0, %v4543_v32, 0.0 }
 0x38a   : > { %v2764_v28 = vadd.f32 %v2763_v22, %v2762_v37  ;;  %v2865_v54 = vadd.f32 %v2864_v3, %v2863_v30  ;;  %v2781_v30 = vsel %vm405_vm0, %v4530_v2, 0.0  ;;  %v2836_v3 = vmul.f32 %v4543_v32, %v4543_v32 }
 0x38c   : > { %v2766_v23 = vadd.f32 %v2765_v27, %v2764_v28  ;;  %v2867_v63 = vadd.f32 %v2866_v33, %v2865_v54  ;;  %v2884_v28 = vsel %vm405_vm0, %v2835_v12, 0.0  ;;  %v2886_v27 = vsel %vm405_vm0, %v2836_v3, 0.0 }
 0x38e   : > { %v2869_v46 = vadd.f32 %v2868_v26, %v2867_v63  ;;  %v2768_v6 = vadd.f32 %v2767_v41, %v2766_v23 }
 0x390   : > { %v2770_v31 = vadd.f32 %v2769_v47, %v2768_v6  ;;  %v2871_v29 = vadd.f32 %v2870_v20, %v2869_v46 }
 0x392   : > { %v2772_v8 = vadd.f32 %v2771_v36, %v2770_v31  ;;  %v2873_v21 = vadd.f32 %v2872_v11, %v2871_v29  ;;  %v2841_v11 = vmul.f32 %v4522_v60, %v4522_v60 }
 0x394   : > { %v2875_v50 = vadd.f32 %v2874_v42, %v2873_v21 }
 0x39d   : > { %v4585_v56 = vpop.f32.mrf.mxu3 }
 0x39e   : > { %v2708_v19 = vpack.c.bf16 %v4585_v56, %v4585_v56 }
 0x3a0   : > { %2740 = vst.msk [vmem:[%s4412_s30 + $0x68] sm:$0xf] %vm558_vm2, %v2708_v19 }
 0x3a2   : > { %v2652_v35 = vpop.f32.mrf.mxu2 }
 0x3a3   : > { %v2702_v48 = vpack.c.bf16 %v2652_v35, %v2652_v35  ;;  %v2837_v23 = vmul.f32 %v2652_v35, %v2652_v35  ;;  %v2785_v2 = vsel %vm405_vm0, %v2652_v35, 0.0 }
 0x3a5   : > { %2734 = vst.msk [vmem:[%s4412_s30 + $0x50] sm:$0xf] %vm558_vm2, %v2702_v48  ;;  %v4593_v9 = vpop.f32.mrf.mxu3  ;;  %v2888_v61 = vsel %vm405_vm0, %v2837_v23, 0.0 }
 0x3a6   : > { %v2709_v16 = vpack.c.bf16 %v4593_v9, %v4593_v9  ;;  %v2799_v45 = vsel %vm405_vm0, %v4593_v9, 0.0 }
 0x3a8   : > { %2741 = vst.msk [vmem:[%s4412_s30 + $0x6c] sm:$0xf] %vm558_vm2, %v2709_v16 }
 0x3aa   : > { %v2654_v49 = vpop.f32.mrf.mxu2 }
 0x3ab   : > { %v2703_v25 = vpack.c.bf16 %v2654_v49, %v2654_v49  ;;  %v2838_v46 = vmul.f32 %v2654_v49, %v2654_v49  ;;  %v2787_v32 = vsel %vm405_vm0, %v2654_v49, 0.0 }
 0x3ad   : > { %2735 = vst.msk [vmem:[%s4412_s30 + $0x54] sm:$0xf] %vm558_vm2, %v2703_v25  ;;  %v2637_v62 = vpop.f32.mrf.mxu1  ;;  %v2890_v31 = vsel %vm405_vm0, %v2838_v46, 0.0  ;;  %v2793_v25 = vsel %vm405_vm0, %v4522_v60, 0.0  ;;  %v2843_v60 = vmul.f32 %v4585_v56, %v4585_v56 }
 0x3ae   : > { %v2696_v53 = vpack.c.bf16 %v2637_v62, %v2637_v62  ;;  %v2831_v55 = vmul.f32 %v2637_v62, %v2637_v62  ;;  %v2773_v24 = vsel %vm405_vm0, %v2637_v62, 0.0  ;;  %v2842_v62 = vmul.f32 %v4534_v43, %v4534_v43 }
 0x3af   : > { %v2774_v18 = vadd.f32 %v2773_v24, %v2772_v8 }
 0x3b0   : > { %2728 = vst.msk [vmem:[%s4412_s30 + $0x38] sm:$0xf] %vm558_vm2, %v2696_v53  ;;  %v2876_v57 = vsel %vm405_vm0, %v2831_v55, 0.0 }
 0x3b1   : > { %v2877_v14 = vadd.f32 %v2876_v57, %v2875_v50  ;;  %v2896_v57 = vsel %vm405_vm0, %v2841_v11, 0.0 }
 0x3b5   : > { %v2639_v58 = vpop.f32.mrf.mxu1 }
 0x3b6   : > { %v2697_v44 = vpack.c.bf16 %v2639_v58, %v2639_v58  ;;  %v2775_v0 = vsel %vm405_vm0, %v2639_v58, 0.0  ;;  %v2832_v52 = vmul.f32 %v2639_v58, %v2639_v58 }
 0x3b7   : > { %v2776_v5 = vadd.f32 %v2775_v0, %v2774_v18  ;;  %v2795_v18 = vsel %vm405_vm0, %v4534_v43, 0.0  ;;  %v2797_v0 = vsel %vm405_vm0, %v4585_v56, 0.0  ;;  %v2900_v43 = vsel %vm405_vm0, %v2843_v60, 0.0 }
 0x3b8   : > { %2729 = vst.msk [vmem:[%s4412_s30 + $0x3c] sm:$0xf] %vm558_vm2, %v2697_v44  ;;  %v2878_v34 = vsel %vm405_vm0, %v2832_v52, 0.0  ;;  %v2898_v44 = vsel %vm405_vm0, %v2842_v62, 0.0  ;;  %v2844_v52 = vmul.f32 %v4593_v9, %v4593_v9 }
 0x3b9   : > { %v2778_v1 = vadd.f32 %v2777_v4, %v2776_v5  ;;  %v2879_v15 = vadd.f32 %v2878_v34, %v2877_v14 }
 0x3bb   : > { %v2780_v51 = vadd.f32 %v2779_v10, %v2778_v1  ;;  %v2881_v37 = vadd.f32 %v2880_v7, %v2879_v15  ;;  %v2902_v7 = vsel %vm405_vm0, %v2844_v52, 0.0 }
 0x3bd   : > { %v2782_v22 = vadd.f32 %v2781_v30, %v2780_v51  ;;  %v2883_v40 = vadd.f32 %v2882_v38, %v2881_v37 }
 0x3bf   : > { %v2885_v54 = vadd.f32 %v2884_v28, %v2883_v40  ;;  %v2784_v33 = vadd.f32 %v2783_v13, %v2782_v22 }
 0x3c1   : > { %v2887_v59 = vadd.f32 %v2886_v27, %v2885_v54  ;;  %v2786_v41 = vadd.f32 %v2785_v2, %v2784_v33 }
 0x3c3   : > { %v2889_v20 = vadd.f32 %v2888_v61, %v2887_v59  ;;  %v2788_v17 = vadd.f32 %v2787_v32, %v2786_v41 }
 0x3c5   : > { %v2891_v8 = vadd.f32 %v2890_v31, %v2889_v20 }
 0x3d2   : > { %v2657_v63 = vpop.f32.mrf.mxu2 }
 0x3d3   : > { %v2704_v26 = vpack.c.bf16 %v2657_v63, %v2657_v63  ;;  %v2839_v6 = vmul.f32 %v2657_v63, %v2657_v63  ;;  %v2789_v47 = vsel %vm405_vm0, %v2657_v63, 0.0 }
 0x3d4   : > { %v2790_v36 = vadd.f32 %v2789_v47, %v2788_v17 }
 0x3d5   : > { %2736 = vst.msk [vmem:[%s4412_s30 + $0x58] sm:$0xf] %vm558_vm2, %v2704_v26  ;;  %v2892_v29 = vsel %vm405_vm0, %v2839_v6, 0.0 }
 0x3d6   : > { %v2893_v16 = vadd.f32 %v2892_v29, %v2891_v8 }
 0x3da   : > { %v2659_v21 = vpop.f32.mrf.mxu2  ;;  %v2672_v42 = vpop.f32.mrf.mxu3 }
 0x3db   : > { %v2705_v50 = vpack.c.bf16 %v2659_v21, %v2659_v21  ;;  %v2791_v19 = vsel %vm405_vm0, %v2659_v21, 0.0  ;;  %v2840_v35 = vmul.f32 %v2659_v21, %v2659_v21  ;;  %v2710_v48 = vpack.c.bf16 %v2672_v42, %v2672_v42 }
 0x3dc   : > { %v2792_v49 = vadd.f32 %v2791_v19, %v2790_v36  ;;  %v2845_v10 = vmul.f32 %v2672_v42, %v2672_v42  ;;  %v2801_v51 = vsel %vm405_vm0, %v2672_v42, 0.0 }
 0x3dd   : > { %2737 = vst.msk [vmem:[%s4412_s30 + $0x5c] sm:$0xf] %vm558_vm2, %v2705_v50  ;;  %v2894_v53 = vsel %vm405_vm0, %v2840_v35, 0.0 }
 0x3de   : > { %v2794_v55 = vadd.f32 %v2793_v25, %v2792_v49  ;;  %v2895_v24 = vadd.f32 %v2894_v53, %v2893_v16  ;;  %2742 = vst.msk [vmem:[%s4412_s30 + $0x70] sm:$0xf] %vm558_vm2, %v2710_v48  ;;  %v2904_v30 = vsel %vm405_vm0, %v2845_v10, 0.0 }
 0x3e0   : > { %v2796_v58 = vadd.f32 %v2795_v18, %v2794_v55  ;;  %v2897_v39 = vadd.f32 %v2896_v57, %v2895_v24 }
 0x3e2   : > { %v2899_v14 = vadd.f32 %v2898_v44, %v2897_v39  ;;  %v2798_v5 = vadd.f32 %v2797_v0, %v2796_v58  ;;  %v2674_v4 = vpop.f32.mrf.mxu3 }
 0x3e3   : > { %v2711_v34 = vpack.c.bf16 %v2674_v4, %v2674_v4  ;;  %v2846_v3 = vmul.f32 %v2674_v4, %v2674_v4  ;;  %v2803_v40 = vsel %vm405_vm0, %v2674_v4, 0.0 }
 0x3e4   : > { %v2800_v1 = vadd.f32 %v2799_v45, %v2798_v5  ;;  %v2901_v15 = vadd.f32 %v2900_v43, %v2899_v14 }
 0x3e5   : > { %2743 = vst.msk [vmem:[%s4412_s30 + $0x74] sm:$0xf] %vm558_vm2, %v2711_v34  ;;  %v2906_v54 = vsel %vm405_vm0, %v2846_v3, 0.0 }
 0x3e6   : > { %v2903_v56 = vadd.f32 %v2902_v7, %v2901_v15  ;;  %v2802_v38 = vadd.f32 %v2801_v51, %v2800_v1 }
 0x3e8   : > { %v2905_v22 = vadd.f32 %v2904_v30, %v2903_v56  ;;  %v2804_v13 = vadd.f32 %v2803_v40, %v2802_v38 }
 0x3ea   : > { %v2907_v27 = vadd.f32 %v2906_v54, %v2905_v22 }
 0x3ec   : > { %v2677_v12 = vpop.f32.mrf.mxu3 }
 0x3ed   : > { %v2712_v37 = vpack.c.bf16 %v2677_v12, %v2677_v12  ;;  %v2847_v9 = vmul.f32 %v2677_v12, %v2677_v12  ;;  %v2805_v28 = vsel %vm405_vm0, %v2677_v12, 0.0 }
 0x3ee   : > { %v2806_v59 = vadd.f32 %v2805_v28, %v2804_v13 }
 0x3ef   : > { %2744 = vst.msk [vmem:[%s4412_s30 + $0x78] sm:$0xf] %vm558_vm2, %v2712_v37  ;;  %v2908_v33 = vsel %vm405_vm0, %v2847_v9, 0.0 }
 0x3f0   : > { %v2909_v41 = vadd.f32 %v2908_v33, %v2907_v27 }
 0x3f4   : > { %v2679_v23 = vpop.f32.mrf.mxu3 }
 0x3f5   : > { %v2713_v63 = vpack.c.bf16 %v2679_v23, %v2679_v23  ;;  %v2807_v2 = vsel %vm405_vm0, %v2679_v23, 0.0  ;;  %v2848_v26 = vmul.f32 %v2679_v23, %v2679_v23 }
 0x3f6   : > { %v2808_v61 = vadd.f32 %v2807_v2, %v2806_v59 }
 0x3f7   : > { %2745 = vst.msk [vmem:[%s4412_s30 + $0x7c] sm:$0xf] %vm558_vm2, %v2713_v63  ;;  %v2910_v46 = vsel %vm405_vm0, %v2848_v26, 0.0 }
 0x3f8   : > { %v2809_v6 = vrot.slane %v2808_v61, 4  ;;  %v2911_v20 = vadd.f32 %v2910_v46, %v2909_v41 }
 0x3fa   : > { %v2810_v32 = vadd.f32 %v2809_v6, %v2808_v61  ;;  %v2912_v47 = vrot.slane %v2911_v20, 4 }
 0x3fc   : > { %v2811_v17 = vrot.slane %v2810_v32, 2  ;;  %v2913_v31 = vadd.f32 %v2912_v47, %v2911_v20 }
 0x3fe   : > { %v2812_v29 = vadd.f32 %v2811_v17, %v2810_v32  ;;  %v2914_v11 = vrot.slane %v2913_v31, 2 }
 0x400   : > { %v2813_v36 = vrot.slane %v2812_v29, 1  ;;  %v2915_v8 = vadd.f32 %v2914_v11, %v2913_v31 }
 0x402   : > { %v2814_v21 = vadd.f32 %v2813_v36, %v2812_v29  ;;  %v2916_v42 = vrot.slane %v2915_v8, 1 }
 0x404   : > { %2816 = vst.msk [vmem:[%s235_s8] sm:$0x1] %vm2815_vm13, %v2814_v21  ;;  %v2917_v50 = vadd.f32 %v2916_v42, %v2915_v8 }
 0x406   : > { %2918 = vst.msk [vmem:[%s235_s8 + $0x1] sm:$0x1] %vm2815_vm13, %v2917_v50 }
 0x407 PF: > { %s16_s18 = sadd.s32 1, %s3256_s18  }
 0x408   : > { %p13_p4 = scmp.ge.s32.totalorder %s16_s18, 4  }
 0x40a   :  { %15 = sbr.rel (!%p13_p4) target bundleno = 1 (0x1), region = 80 }

</bundles_post_ra>
